<compile_context>
chip_gen: v6e
topology: v6e:2x2x1
jax: 0.10.0
libtpu: 0.0.40
codegen_flags: <defaults>
</compile_context>

<pallas_src>
import jax
import jax.numpy as jnp
from jax import lax
from jax.experimental import pallas as pl
from jax.experimental.pallas import tpu as pltpu

_LN2 = 0.6931471805599453


def _ssp(x):
    # shifted softplus: softplus(x) - ln 2  (EUP exp/log; separate VLIW slot).
    return jax.nn.softplus(x) - _LN2


def _atomic_property_kernel(x_ref, w1_ref, b1_ref, w2_ref, b2_ref,
                            w3_ref, b3_ref, o_ref):
    f32 = jnp.float32
    # Layer 1: [tile_n, F] @ [F, 128]  (f32 accumulation), bias, ssp in f32.
    h = jnp.dot(x_ref[...], w1_ref[...], preferred_element_type=f32)
    h = _ssp(h + b1_ref[...])
    # Layer 2: [tile_n, 128] @ [128, 64], bias, ssp in f32.
    h = jnp.dot(h.astype(w2_ref.dtype), w2_ref[...], preferred_element_type=f32)
    h = _ssp(h + b2_ref[...])
    # Layer 3: per-atom scalar as w3_row @ h^T -> (1, tile_n) lane-dense row.
    # (Avoids the N=1 matmul column that would force masked 1-lane stores.)
    out = lax.dot_general(w3_ref[...], h,
                          dimension_numbers=(((1,), (1,)), ((), ())),
                          preferred_element_type=f32)
    # b3 is a scalar in SMEM.
    o_ref[...] = (out + b3_ref[0]).astype(o_ref.dtype)


def atomic_property(a, params, *, tile_n=1024, compute_dtype=None):
    """a: [B, A, F] atomic features -> [B, A, 1] per-atom property.

    tile_n: atoms per grid step (multiple of 128; sweep 512-2048).
    compute_dtype: e.g. jnp.bfloat16 to feed the MXU bf16 operands on v6e/v7x
                   (accumulation and activations stay f32).
    """
    assert tile_n % 128 == 0, "tile_n must be a multiple of 128 (lane-dense output)"
    B, A, F = a.shape
    N = B * A
    w1, b1, w2, b2, w3, b3 = params  # (F,128),(1,128),(128,64),(1,64),(64,1),(1,1)

    out_dtype = a.dtype
    x = a.reshape(N, F)
    if compute_dtype is not None:
        x = x.astype(compute_dtype)
        w1 = w1.astype(compute_dtype)
        w2 = w2.astype(compute_dtype)

    # Pad atom count up to a multiple of tile_n instead of asserting divisibility.
    num_tiles = pl.cdiv(N, tile_n)
    n_pad = num_tiles * tile_n
    if n_pad != N:
        x = jnp.pad(x, ((0, n_pad - N), (0, 0)))

    w3_row = w3.reshape(1, -1).astype(jnp.float32)  # (64,1) -> (1,64), stays f32
    b3_s = b3.reshape(1).astype(jnp.float32)        # scalar -> SMEM

    # Weights/biases: constant block index -> DMA'd once, resident in VMEM.
    resident = lambda arr: pl.BlockSpec(arr.shape, lambda i: (0, 0))

    out = pl.pallas_call(
        _atomic_property_kernel,
        out_shape=jax.ShapeDtypeStruct((1, n_pad), out_dtype),
        grid_spec=pltpu.PrefetchScalarGridSpec(
            num_scalar_prefetch=0,
            grid=(num_tiles,),
            in_specs=[
                # Streaming x tile. If profiling shows the DMA exposed, add
                # pipeline_mode=pl.Buffered(3) here (weights stay 1-buffered).
                pl.BlockSpec((tile_n, F), lambda i: (i, 0)),
                resident(w1), resident(b1),
                resident(w2), resident(b2),
                resident(w3_row),
                pl.BlockSpec(memory_space=pltpu.MemorySpace.SMEM),  # b3 scalar
            ],
            # Lane-dense output: each step writes a contiguous (1, tile_n) row.
            out_specs=pl.BlockSpec((1, tile_n), lambda i: (0, i)),
        ),
        compiler_params=pltpu.CompilerParams(
            dimension_semantics=("parallel",)),
    )(x, w1, b1, w2, b2, w3_row, b3_s)

    return out.reshape(n_pad)[:N].reshape(B, A, 1)


def init_params(key, n_features):
    """Deterministic Kaiming-uniform-ish init matching nn.Linear shapes."""
    ks = jax.random.split(key, 6)

    def linear(kw, kb, fan_in, fan_out):
        bound = 1.0 / jnp.sqrt(fan_in)
        w = jax.random.uniform(kw, (fan_in, fan_out), jnp.float32, -bound, bound)
        b = jax.random.uniform(kb, (1, fan_out), jnp.float32, -bound, bound)
        return w, b

    w1, b1 = linear(ks[0], ks[1], n_features, 128)
    w2, b2 = linear(ks[2], ks[3], 128, 64)
    w3, b3 = linear(ks[4], ks[5], 64, 1)
    return (w1, b1, w2, b2, w3, b3)


def _reference(a, params):
    w1, b1, w2, b2, w3, b3 = params
    h = _ssp(a @ w1 + b1[0])
    h = _ssp(h @ w2 + b2[0])
    return h @ w3 + b3[0]


if __name__ == "__main__":
    key = jax.random.PRNGKey(0)
    k_x, k_p, k_x2 = jax.random.split(key, 3)

    # Small MPNN-ish shapes: 2 molecules x 8 atoms x 32 features.
    B, A, F = 2, 8, 32
    a = jax.random.normal(k_x, (B, A, F), jnp.float32)
    params = init_params(k_p, F)

    # f32 path (default tile_n=1024 -> one padded tile here).
    out = jax.block_until_ready(atomic_property(a, params))
    ref = _reference(a, params)
    assert out.shape == (B, A, 1)
    assert jnp.allclose(out, ref, atol=1e-4, rtol=1e-4), "f32 mismatch vs reference"

    # Multi-tile + padding path: N=300 atoms, tile_n=128 -> 3 tiles, 84 padded rows.
    B2, A2 = 3, 100
    a2 = jax.random.normal(k_x2, (B2, A2, F), jnp.float32)
    out2 = jax.block_until_ready(atomic_property(a2, params, tile_n=128))
    assert jnp.allclose(out2, _reference(a2, params), atol=1e-4, rtol=1e-4), \
        "multi-tile mismatch vs reference"

    # bf16 MXU-operand path (v6e/v7x); accumulation and final layer stay f32.
    out_bf16 = jax.block_until_ready(
        atomic_property(a, params, compute_dtype=jnp.bfloat16))
    assert jnp.allclose(out_bf16, ref, atol=5e-2, rtol=5e-2), "bf16 mismatch"

    print("KERNEL_OK")
</pallas_src>

<mosaic_0001>
module attributes {stable_mosaic.version = 11 : i64} {
  func.func @_atomic_property_kernel(%arg0: i32, %arg1: memref<1024x32xf32, #tpu.memory_space<vmem>>, %arg2: memref<32x128xf32, #tpu.memory_space<vmem>>, %arg3: memref<1x128xf32, #tpu.memory_space<vmem>>, %arg4: memref<128x64xf32, #tpu.memory_space<vmem>>, %arg5: memref<1x64xf32, #tpu.memory_space<vmem>>, %arg6: memref<1x64xf32, #tpu.memory_space<vmem>>, %arg7: memref<1xf32, #tpu.memory_space<smem>>, %arg8: memref<1x1024xf32, #tpu.memory_space<vmem>>) attributes {dimension_semantics = [#tpu.dimension_semantics<parallel>], iteration_bounds = array<i64: 1>, scalar_prefetch = 0 : i64, scratch_operands = 0 : i64, tpu.core_type = #tpu.core_type<tc>, window_params = [{transform_indices = @transform_0, window_bounds = array<i64: 1024, 32>}, {pipeline_mode = #tpu.pipeline_mode<synchronous>, transform_indices = @transform_1, window_bounds = array<i64: 32, 128>}, {pipeline_mode = #tpu.pipeline_mode<synchronous>, transform_indices = @transform_2, window_bounds = array<i64: 1, 128>}, {pipeline_mode = #tpu.pipeline_mode<synchronous>, transform_indices = @transform_3, window_bounds = array<i64: 128, 64>}, {pipeline_mode = #tpu.pipeline_mode<synchronous>, transform_indices = @transform_4, window_bounds = array<i64: 1, 64>}, {pipeline_mode = #tpu.pipeline_mode<synchronous>, transform_indices = @transform_5, window_bounds = array<i64: 1, 64>}, {transform_indices = @transform_6, window_bounds = array<i64: 1>}, {transform_indices = @transform_7, window_bounds = array<i64: 1, 1024>}]} {
    %c0 = arith.constant 0 : index
    %c0_0 = arith.constant 0 : index
    %0 = vector.load %arg1[%c0, %c0_0] : memref<1024x32xf32, #tpu.memory_space<vmem>>, vector<1024x32xf32>
    %c0_1 = arith.constant 0 : index
    %c0_2 = arith.constant 0 : index
    %1 = vector.load %arg2[%c0_1, %c0_2] : memref<32x128xf32, #tpu.memory_space<vmem>>, vector<32x128xf32>
    %cst = arith.constant dense<0.000000e+00> : vector<1024x128xf32>
    %2 = tpu.matmul %0, %1, %cst {dimension_numbers = #tpu.dot_dimension_numbers<[1], [0], [0], [1], [0, 0, 1, 1], [], []>} : vector<1024x32xf32>, vector<32x128xf32>, vector<1024x128xf32> -> vector<1024x128xf32>
    %c0_3 = arith.constant 0 : index
    %c0_4 = arith.constant 0 : index
    %3 = vector.load %arg3[%c0_3, %c0_4] : memref<1x128xf32, #tpu.memory_space<vmem>>, vector<1x128xf32>
    %4 = vector.broadcast %3 : vector<1x128xf32> to vector<1024x128xf32>
    %5 = arith.addf %2, %4 : vector<1024x128xf32>
    %cst_5 = arith.constant 0.000000e+00 : f32
    %6 = vector.broadcast %cst_5 : f32 to vector<1024x128xf32>
    %7 = arith.maximumf %5, %6 : vector<1024x128xf32>
    %8 = vector.broadcast %cst_5 : f32 to vector<1024x128xf32>
    %9 = arith.subf %5, %8 : vector<1024x128xf32>
    %10 = arith.cmpf one, %9, %9 : vector<1024x128xf32>
    %11 = vector.broadcast %cst_5 : f32 to vector<1024x128xf32>
    %12 = arith.addf %5, %11 : vector<1024x128xf32>
    %13 = math.absf %9 : vector<1024x128xf32>
    %cst_6 = arith.constant 0.000000e+00 : f32
    %14 = vector.broadcast %cst_6 : f32 to vector<1024x128xf32>
    %15 = arith.subf %14, %13 : vector<1024x128xf32>
    %16 = math.exp %15 : vector<1024x128xf32>
    %17 = math.log1p %16 : vector<1024x128xf32>
    %18 = arith.addf %7, %17 : vector<1024x128xf32>
    %19 = arith.select %10, %12, %18 : vector<1024x128xi1>, vector<1024x128xf32>
    %cst_7 = arith.constant 0.693147182 : f32
    %20 = vector.broadcast %cst_7 : f32 to vector<1024x128xf32>
    %21 = arith.subf %19, %20 : vector<1024x128xf32>
    %c0_8 = arith.constant 0 : index
    %c0_9 = arith.constant 0 : index
    %22 = vector.load %arg4[%c0_8, %c0_9] : memref<128x64xf32, #tpu.memory_space<vmem>>, vector<128x64xf32>
    %cst_10 = arith.constant dense<0.000000e+00> : vector<1024x64xf32>
    %23 = tpu.matmul %21, %22, %cst_10 {dimension_numbers = #tpu.dot_dimension_numbers<[1], [0], [0], [1], [0, 0, 1, 1], [], []>} : vector<1024x128xf32>, vector<128x64xf32>, vector<1024x64xf32> -> vector<1024x64xf32>
    %c0_11 = arith.constant 0 : index
    %c0_12 = arith.constant 0 : index
    %24 = vector.load %arg5[%c0_11, %c0_12] : memref<1x64xf32, #tpu.memory_space<vmem>>, vector<1x64xf32>
    %25 = vector.broadcast %24 : vector<1x64xf32> to vector<1024x64xf32>
    %26 = arith.addf %23, %25 : vector<1024x64xf32>
    %cst_13 = arith.constant 0.000000e+00 : f32
    %27 = vector.broadcast %cst_13 : f32 to vector<1024x64xf32>
    %28 = arith.maximumf %26, %27 : vector<1024x64xf32>
    %29 = vector.broadcast %cst_13 : f32 to vector<1024x64xf32>
    %30 = arith.subf %26, %29 : vector<1024x64xf32>
    %31 = arith.cmpf one, %30, %30 : vector<1024x64xf32>
    %32 = vector.broadcast %cst_13 : f32 to vector<1024x64xf32>
    %33 = arith.addf %26, %32 : vector<1024x64xf32>
    %34 = math.absf %30 : vector<1024x64xf32>
    %cst_14 = arith.constant 0.000000e+00 : f32
    %35 = vector.broadcast %cst_14 : f32 to vector<1024x64xf32>
    %36 = arith.subf %35, %34 : vector<1024x64xf32>
    %37 = math.exp %36 : vector<1024x64xf32>
    %38 = math.log1p %37 : vector<1024x64xf32>
    %39 = arith.addf %28, %38 : vector<1024x64xf32>
    %40 = arith.select %31, %33, %39 : vector<1024x64xi1>, vector<1024x64xf32>
    %cst_15 = arith.constant 0.693147182 : f32
    %41 = vector.broadcast %cst_15 : f32 to vector<1024x64xf32>
    %42 = arith.subf %40, %41 : vector<1024x64xf32>
    %c0_16 = arith.constant 0 : index
    %c0_17 = arith.constant 0 : index
    %43 = vector.load %arg6[%c0_16, %c0_17] : memref<1x64xf32, #tpu.memory_space<vmem>>, vector<1x64xf32>
    %cst_18 = arith.constant dense<0.000000e+00> : vector<1x1024xf32>
    %44 = tpu.matmul %43, %42, %cst_18 {dimension_numbers = #tpu.dot_dimension_numbers<[1], [1], [0], [0], [0, 0, 1, 0], [], []>} : vector<1x64xf32>, vector<1024x64xf32>, vector<1x1024xf32> -> vector<1x1024xf32>
    %c0_19 = arith.constant 0 : index
    %45 = memref.load %arg7[%c0_19] : memref<1xf32, #tpu.memory_space<smem>>
    %46 = vector.broadcast %45 : f32 to vector<1x1024xf32>
    %47 = arith.addf %44, %46 : vector<1x1024xf32>
    %c0_20 = arith.constant 0 : index
    %c0_21 = arith.constant 0 : index
    %48 = vector.load %arg8[%c0_20, %c0_21] : memref<1x1024xf32, #tpu.memory_space<vmem>>, vector<1x1024xf32>
    tpu.vector_store %arg8[%c0_20, %c0_21], %47 {strides = array<i32>} : memref<1x1024xf32, #tpu.memory_space<vmem>>, vector<1x1024xf32>,
    return
  }
  func.func @transform_0(%arg0: i32) -> (i32, i32) {
    %c0_i32 = arith.constant 0 : i32
    %c0_i32_0 = arith.constant 0 : i32
    return %arg0, %c0_i32 : i32, i32
  }
  func.func @transform_1(%arg0: i32) -> (i32, i32) {
    %c0_i32 = arith.constant 0 : i32
    %c0_i32_0 = arith.constant 0 : i32
    %c0_i32_1 = arith.constant 0 : i32
    return %c0_i32, %c0_i32_0 : i32, i32
  }
  func.func @transform_2(%arg0: i32) -> (i32, i32) {
    %c0_i32 = arith.constant 0 : i32
    %c0_i32_0 = arith.constant 0 : i32
    %c0_i32_1 = arith.constant 0 : i32
    return %c0_i32, %c0_i32_0 : i32, i32
  }
  func.func @transform_3(%arg0: i32) -> (i32, i32) {
    %c0_i32 = arith.constant 0 : i32
    %c0_i32_0 = arith.constant 0 : i32
    %c0_i32_1 = arith.constant 0 : i32
    return %c0_i32, %c0_i32_0 : i32, i32
  }
  func.func @transform_4(%arg0: i32) -> (i32, i32) {
    %c0_i32 = arith.constant 0 : i32
    %c0_i32_0 = arith.constant 0 : i32
    %c0_i32_1 = arith.constant 0 : i32
    return %c0_i32, %c0_i32_0 : i32, i32
  }
  func.func @transform_5(%arg0: i32) -> (i32, i32) {
    %c0_i32 = arith.constant 0 : i32
    %c0_i32_0 = arith.constant 0 : i32
    %c0_i32_1 = arith.constant 0 : i32
    return %c0_i32, %c0_i32_0 : i32, i32
  }
  func.func @transform_6(%arg0: i32) -> i32 {
    %c0_i32 = arith.constant 0 : i32
    %c0_i32_0 = arith.constant 0 : i32
    return %c0_i32 : i32
  }
  func.func @transform_7(%arg0: i32) -> (i32, i32) {
    %c0_i32 = arith.constant 0 : i32
    %c0_i32_0 = arith.constant 0 : i32
    return %c0_i32, %arg0 : i32, i32
  }
}

</mosaic_0001>

<bundles_post_ra>
// kernel: tpu_custom_call.1
= control target key start
LH: loop header
LB: loop body
LE: loop exit
PB: predicated region body
PF: predicated region fallthrough
CT: control target
= control target key end

     0   :  { %vm167_vm0 = vcmask 261120   ;;  %s16821_s0 = inlined_call_operand.vmem [shape: f32[1024,32], index: 0, kind: input, shape index: {}]   ;;  %s16822_s1 = inlined_call_operand.vmem [shape: f32[32,128], index: 1, kind: input, shape index: {}]   ;;  %s16823_s2 = inlined_call_operand.vmem [shape: f32[1,128], index: 2, kind: input, shape index: {}]   ;;  %s16824_s3 = inlined_call_operand.vmem [shape: f32[128,64], index: 3, kind: input, shape index: {}]   ;;  %s16825_s4 = inlined_call_operand.vmem [shape: f32[1,64], index: 4, kind: input, shape index: {}]   ;;  %s16826_s5 = inlined_call_operand.vmem [shape: f32[1,64], index: 5, kind: input, shape index: {}]   ;;  %s16827_s6 = inlined_call_operand.<no memory space> [shape: f32[1], index: 6, kind: input, shape index: {}]   ;;  %s16828_s7 = inlined_call_operand.hbm [shape: f32[1,1024], index: 7, kind: output, shape index: {}]  }
   0x1   :  { %v159_v0 = vld [vmem:[%s16822_s1 + $0x18] sm:$0xff]  ;;  %v158_v1 = vld [vmem:[%s16822_s1 + $0x10] sm:$0xff]  ;;  %v28_v2 = vld [vmem:[%s16821_s0] sm:$0xff] }
   0x2   :  { %8527 = vmatprep.subr.mxu0 %v159_v0  ;;  %v157_v3 = vld [vmem:[%s16822_s1 + $0x8] sm:$0xff]  ;;  %8535 = vmatprep.mubr.msk.f32.mxu0 %vm167_vm0, %v28_v2  ;;  %v156_v4 = vld [vmem:[%s16822_s1] sm:$0xff]  ;;  %v30_v6 = vld [vmem:[%s16821_s0 + $0x10] sm:$0xff] }
   0x3   :  { %8528 = vmatpush3.msra.mxu0 %v159_v0  ;;  %v29_v5 = vld [vmem:[%s16821_s0 + $0x8] sm:$0xff]  ;;  %v31_v7 = vld [vmem:[%s16821_s0 + $0x18] sm:$0xff]  ;;  %v32_v8 = vld [vmem:[%s16821_s0 + $0x20] sm:$0xff] }
   0x4   :  { %8529 = vmatprep.subr.mxu0 %v158_v1  ;;  %v33_v9 = vld [vmem:[%s16821_s0 + $0x28] sm:$0xff]  ;;  %v34_v10 = vld [vmem:[%s16821_s0 + $0x30] sm:$0xff]  ;;  %v35_v11 = vld [vmem:[%s16821_s0 + $0x38] sm:$0xff] }
   0x5   :  { %8530 = vmatpush3.msra.mxu0 %v158_v1  ;;  %v36_v12 = vld [vmem:[%s16821_s0 + $0x40] sm:$0xff]  ;;  %v37_v13 = vld [vmem:[%s16821_s0 + $0x48] sm:$0xff]  ;;  %v38_v14 = vld [vmem:[%s16821_s0 + $0x50] sm:$0xff] }
   0x6   :  { %8531 = vmatprep.subr.mxu0 %v157_v3  ;;  %v39_v15 = vld [vmem:[%s16821_s0 + $0x58] sm:$0xff] }
   0x7   :  { %8532 = vmatpush3.msra.mxu0 %v157_v3 }
   0x8   :  { %8533 = vmatprep.subr.mxu0 %v156_v4 }
   0x9   :  { %8534 = vmatpush3.msra.mxu0 %v156_v4 }
   0xa   :  { %8536 = vmatmul.mubr.msk.f32.vlgmr.msra.gmra.mxu0 %vm167_vm0, %v29_v5 }
   0xb   :  { %8538 = vmatprep.mubr.msk.f32.mxu0 %vm167_vm0, %v30_v6 }
   0xe   :  { %8539 = vmatmul.mubr.msk.f32.gmra.mxu0 %vm167_vm0, %v31_v7 }
   0xf   :  { %8541 = vmatprep.mubr.msk.f32.mxu0 %vm167_vm0, %v32_v8 }
  0x12   :  { %8542 = vmatmul.mubr.msk.f32.gmra.mxu0 %vm167_vm0, %v33_v9 }
  0x13   :  { %8544 = vmatprep.mubr.msk.f32.mxu0 %vm167_vm0, %v34_v10 }
  0x16   :  { %8545 = vmatmul.mubr.msk.f32.gmra.mxu0 %vm167_vm0, %v35_v11 }
  0x17   :  { %8547 = vmatprep.mubr.msk.f32.mxu0 %vm167_vm0, %v36_v12 }
  0x1a   :  { %8548 = vmatmul.mubr.msk.f32.gmra.mxu0 %vm167_vm0, %v37_v13 }
  0x1b   :  { %8550 = vmatprep.mubr.msk.f32.mxu0 %vm167_vm0, %v38_v14 }
  0x1c   :  { %13 = vsyncpa [#allocation4], 0  ;;  %v40_v16 = vld [vmem:[%s16821_s0 + $0x60] sm:$0xff]  ;;  %v41_v17 = vld [vmem:[%s16821_s0 + $0x68] sm:$0xff] }
  0x1d   :  { %v42_v18 = vld [vmem:[%s16821_s0 + $0x70] sm:$0xff]  ;;  %v43_v19 = vld [vmem:[%s16821_s0 + $0x78] sm:$0xff]  ;;  %v44_v20 = vld [vmem:[%s16821_s0 + $0x80] sm:$0xff] }
  0x1e   :  { %8551 = vmatmul.mubr.msk.f32.gmra.mxu0 %vm167_vm0, %v39_v15  ;;  %v45_v21 = vld [vmem:[%s16821_s0 + $0x88] sm:$0xff]  ;;  %v46_v22 = vld [vmem:[%s16821_s0 + $0x90] sm:$0xff]  ;;  %v47_v23 = vld [vmem:[%s16821_s0 + $0x98] sm:$0xff] }
  0x1f   :  { %8553 = vmatprep.mubr.msk.f32.mxu0 %vm167_vm0, %v40_v16  ;;  %v48_v24 = vld [vmem:[%s16821_s0 + $0xa0] sm:$0xff]  ;;  %v49_v25 = vld [vmem:[%s16821_s0 + $0xa8] sm:$0xff]  ;;  %v50_v26 = vld [vmem:[%s16821_s0 + $0xb0] sm:$0xff] }
  0x20   :  { %v51_v27 = vld [vmem:[%s16821_s0 + $0xb8] sm:$0xff]  ;;  %v52_v28 = vld [vmem:[%s16821_s0 + $0xc0] sm:$0xff]  ;;  %v53_v29 = vld [vmem:[%s16821_s0 + $0xc8] sm:$0xff] }
  0x21   :  { %v54_v30 = vld [vmem:[%s16821_s0 + $0xd0] sm:$0xff]  ;;  %v55_v31 = vld [vmem:[%s16821_s0 + $0xd8] sm:$0xff]  ;;  %v56_v32 = vld [vmem:[%s16821_s0 + $0xe0] sm:$0xff] }
  0x22   :  { %8554 = vmatmul.mubr.msk.f32.gmra.mxu0 %vm167_vm0, %v41_v17  ;;  %v57_v33 = vld [vmem:[%s16821_s0 + $0xe8] sm:$0xff]  ;;  %v58_v34 = vld [vmem:[%s16821_s0 + $0xf0] sm:$0xff]  ;;  %v59_v35 = vld [vmem:[%s16821_s0 + $0xf8] sm:$0xff] }
  0x23   :  { %8556 = vmatprep.mubr.msk.f32.mxu0 %vm167_vm0, %v42_v18  ;;  %v60_v36 = vld [vmem:[%s16821_s0 + $0x100] sm:$0xff]  ;;  %v61_v37 = vld [vmem:[%s16821_s0 + $0x108] sm:$0xff]  ;;  %v62_v38 = vld [vmem:[%s16821_s0 + $0x110] sm:$0xff] }
  0x24   :  { %v63_v39 = vld [vmem:[%s16821_s0 + $0x118] sm:$0xff]  ;;  %v64_v40 = vld [vmem:[%s16821_s0 + $0x120] sm:$0xff]  ;;  %v65_v41 = vld [vmem:[%s16821_s0 + $0x128] sm:$0xff] }
  0x25   :  { %v66_v42 = vld [vmem:[%s16821_s0 + $0x130] sm:$0xff]  ;;  %v67_v43 = vld [vmem:[%s16821_s0 + $0x138] sm:$0xff]  ;;  %v68_v44 = vld [vmem:[%s16821_s0 + $0x140] sm:$0xff] }
  0x26   :  { %8557 = vmatmul.mubr.msk.f32.gmra.mxu0 %vm167_vm0, %v43_v19  ;;  %v69_v45 = vld [vmem:[%s16821_s0 + $0x148] sm:$0xff]  ;;  %v70_v46 = vld [vmem:[%s16821_s0 + $0x150] sm:$0xff]  ;;  %v71_v47 = vld [vmem:[%s16821_s0 + $0x158] sm:$0xff] }
  0x27   :  { %8559 = vmatprep.mubr.msk.f32.mxu0 %vm167_vm0, %v44_v20  ;;  %v72_v48 = vld [vmem:[%s16821_s0 + $0x160] sm:$0xff]  ;;  %v3704_v49 = vld [vmem:[%s16824_s3 + $0x78] sm:$0xff]  ;;  %v3703_v50 = vld [vmem:[%s16824_s3 + $0x70] sm:$0xff] }
  0x28   :  { %8727 = vmatprep.subr.mxu1 %v3704_v49  ;;  %v73_v51 = vld [vmem:[%s16821_s0 + $0x168] sm:$0xff]  ;;  %v74_v52 = vld [vmem:[%s16821_s0 + $0x170] sm:$0xff]  ;;  %v3701_v54 = vld [vmem:[%s16824_s3 + $0x60] sm:$0xff] }
  0x29   :  { %8728 = vmatpush3.msra.mxu1 %v3704_v49  ;;  %v3702_v53 = vld [vmem:[%s16824_s3 + $0x68] sm:$0xff]  ;;  %v75_v55 = vld [vmem:[%s16821_s0 + $0x178] sm:$0xff]  ;;  %v76_v56 = vld [vmem:[%s16821_s0 + $0x180] sm:$0xff] }
  0x2a   :  { %8560 = vmatmul.mubr.msk.f32.gmra.mxu0 %vm167_vm0, %v45_v21  ;;  %8729 = vmatprep.subr.mxu1 %v3703_v50  ;;  %v3700_v57 = vld [vmem:[%s16824_s3 + $0x58] sm:$0xff]  ;;  %v3699_v58 = vld [vmem:[%s16824_s3 + $0x50] sm:$0xff]  ;;  %v77_v59 = vld [vmem:[%s16821_s0 + $0x188] sm:$0xff] }
  0x2b   :  { %8562 = vmatprep.mubr.msk.f32.mxu0 %vm167_vm0, %v46_v22  ;;  %8730 = vmatpush3.msra.mxu1 %v3703_v50  ;;  %v78_v60 = vld [vmem:[%s16821_s0 + $0x190] sm:$0xff]  ;;  %v3698_v61 = vld [vmem:[%s16824_s3 + $0x48] sm:$0xff]  ;;  %v3697_v62 = vld [vmem:[%s16824_s3 + $0x40] sm:$0xff] }
  0x2c   :  { %8731 = vmatprep.subr.mxu1 %v3702_v53  ;;  %v79_v63 = vld [vmem:[%s16821_s0 + $0x198] sm:$0xff]  ;;  %v80_v0 = vld [vmem:[%s16821_s0 + $0x1a0] sm:$0xff]  ;;  %v3695_v2 = vld [vmem:[%s16824_s3 + $0x30] sm:$0xff] }
  0x2d   :  { %8732 = vmatpush3.msra.mxu1 %v3702_v53  ;;  %v3696_v1 = vld [vmem:[%s16824_s3 + $0x38] sm:$0xff]  ;;  %v81_v3 = vld [vmem:[%s16821_s0 + $0x1a8] sm:$0xff]  ;;  %v82_v4 = vld [vmem:[%s16821_s0 + $0x1b0] sm:$0xff] }
  0x2e   :  { %8563 = vmatmul.mubr.msk.f32.gmra.mxu0 %vm167_vm0, %v47_v23  ;;  %8733 = vmatprep.subr.mxu1 %v3701_v54  ;;  %v3694_v5 = vld [vmem:[%s16824_s3 + $0x28] sm:$0xff]  ;;  %v3693_v6 = vld [vmem:[%s16824_s3 + $0x20] sm:$0xff]  ;;  %v83_v7 = vld [vmem:[%s16821_s0 + $0x1b8] sm:$0xff] }
  0x2f   :  { %8565 = vmatprep.mubr.msk.f32.mxu0 %vm167_vm0, %v48_v24  ;;  %8734 = vmatpush3.msra.mxu1 %v3701_v54  ;;  %v84_v8 = vld [vmem:[%s16821_s0 + $0x1c0] sm:$0xff]  ;;  %v3692_v9 = vld [vmem:[%s16824_s3 + $0x18] sm:$0xff]  ;;  %v3691_v10 = vld [vmem:[%s16824_s3 + $0x10] sm:$0xff] }
  0x30   :  { %8735 = vmatprep.subr.mxu1 %v3700_v57  ;;  %v85_v11 = vld [vmem:[%s16821_s0 + $0x1c8] sm:$0xff]  ;;  %v86_v12 = vld [vmem:[%s16821_s0 + $0x1d0] sm:$0xff]  ;;  %v3689_v14 = vld [vmem:[%s16824_s3] sm:$0xff] }
  0x31   :  { %8736 = vmatpush3.msra.mxu1 %v3700_v57  ;;  %v3690_v13 = vld [vmem:[%s16824_s3 + $0x8] sm:$0xff]  ;;  %v87_v15 = vld [vmem:[%s16821_s0 + $0x1d8] sm:$0xff]  ;;  %v88_v16 = vld [vmem:[%s16821_s0 + $0x1e0] sm:$0xff] }
  0x32   :  { %8566 = vmatmul.mubr.msk.f32.gmra.mxu0 %vm167_vm0, %v49_v25  ;;  %8737 = vmatprep.subr.mxu1 %v3699_v58  ;;  %v89_v17 = vld [vmem:[%s16821_s0 + $0x1e8] sm:$0xff]  ;;  %v90_v18 = vld [vmem:[%s16821_s0 + $0x1f0] sm:$0xff]  ;;  %v91_v19 = vld [vmem:[%s16821_s0 + $0x1f8] sm:$0xff] }
  0x33   :  { %8568 = vmatprep.mubr.msk.f32.mxu0 %vm167_vm0, %v50_v26  ;;  %8738 = vmatpush3.msra.mxu1 %v3699_v58  ;;  %v92_v20 = vld [vmem:[%s16821_s0 + $0x200] sm:$0xff]  ;;  %v93_v21 = vld [vmem:[%s16821_s0 + $0x208] sm:$0xff]  ;;  %v94_v22 = vld [vmem:[%s16821_s0 + $0x210] sm:$0xff] }
  0x34   :  { %8739 = vmatprep.subr.mxu1 %v3698_v61  ;;  %v95_v23 = vld [vmem:[%s16821_s0 + $0x218] sm:$0xff]  ;;  %v96_v24 = vld [vmem:[%s16821_s0 + $0x220] sm:$0xff]  ;;  %v97_v25 = vld [vmem:[%s16821_s0 + $0x228] sm:$0xff] }
  0x35   :  { %8740 = vmatpush3.msra.mxu1 %v3698_v61  ;;  %v98_v26 = vld [vmem:[%s16821_s0 + $0x230] sm:$0xff]  ;;  %v121_v49 = vld [vmem:[%s16821_s0 + $0x2e8] sm:$0xff]  ;;  %v10506_v54 = vld [vmem:[%s16823_s2] ss:$0 sm:$0xff] }
  0x36   :  { %8569 = vmatmul.mubr.msk.f32.gmra.mxu0 %vm167_vm0, %v51_v27  ;;  %8741 = vmatprep.subr.mxu1 %v3697_v62  ;;  %v99_v27 = vld [vmem:[%s16821_s0 + $0x238] sm:$0xff]  ;;  %v122_v50 = vld [vmem:[%s16821_s0 + $0x2f0] sm:$0xff]  ;;  %v125_v53 = vld [vmem:[%s16821_s0 + $0x308] sm:$0xff] }
  0x37   :  { %8571 = vmatprep.mubr.msk.f32.mxu0 %vm167_vm0, %v52_v28  ;;  %8742 = vmatpush3.msra.mxu1 %v3697_v62  ;;  %v100_v28 = vld [vmem:[%s16821_s0 + $0x240] sm:$0xff]  ;;  %v127_v58 = vld [vmem:[%s16821_s0 + $0x318] sm:$0xff] }
  0x38   :  { %8743 = vmatprep.subr.mxu1 %v3696_v1 }
  0x39   :  { %8744 = vmatpush3.msra.mxu1 %v3696_v1 }
  0x3a   :  { %8572 = vmatmul.mubr.msk.f32.gmra.mxu0 %vm167_vm0, %v53_v29  ;;  %8745 = vmatprep.subr.mxu1 %v3695_v2  ;;  %v101_v29 = vld [vmem:[%s16821_s0 + $0x248] sm:$0xff] }
  0x3b   :  { %8574 = vmatprep.mubr.msk.f32.mxu0 %vm167_vm0, %v54_v30  ;;  %8746 = vmatpush3.msra.mxu1 %v3695_v2  ;;  %v102_v30 = vld [vmem:[%s16821_s0 + $0x250] sm:$0xff]  ;;  %v129_v2 = vld [vmem:[%s16821_s0 + $0x328] sm:$0xff] }
  0x3c   :  { %8747 = vmatprep.subr.mxu1 %v3694_v5 }
  0x3d   :  { %8748 = vmatpush3.msra.mxu1 %v3694_v5 }
  0x3e   :  { %8575 = vmatmul.mubr.msk.f32.gmra.mxu0 %vm167_vm0, %v55_v31  ;;  %8749 = vmatprep.subr.mxu1 %v3693_v6  ;;  %v103_v31 = vld [vmem:[%s16821_s0 + $0x258] sm:$0xff] }
  0x3f   :  { %8577 = vmatprep.mubr.msk.f32.mxu0 %vm167_vm0, %v56_v32  ;;  %8750 = vmatpush3.msra.mxu1 %v3693_v6  ;;  %v104_v32 = vld [vmem:[%s16821_s0 + $0x260] sm:$0xff] }
  0x40   :  { %8751 = vmatprep.subr.mxu1 %v3692_v9 }
  0x41   :  { %8752 = vmatpush3.msra.mxu1 %v3692_v9  ;;  %v131_v9 = vld [vmem:[%s16821_s0 + $0x338] sm:$0xff] }
  0x42   :  { %8578 = vmatmul.mubr.msk.f32.gmra.mxu0 %vm167_vm0, %v57_v33  ;;  %8753 = vmatprep.subr.mxu1 %v3691_v10  ;;  %v105_v33 = vld [vmem:[%s16821_s0 + $0x268] sm:$0xff] }
  0x43   :  { %8580 = vmatprep.mubr.msk.f32.mxu0 %vm167_vm0, %v58_v34  ;;  %8754 = vmatpush3.msra.mxu1 %v3691_v10  ;;  %v106_v34 = vld [vmem:[%s16821_s0 + $0x270] sm:$0xff] }
  0x44   :  { %8755 = vmatprep.subr.mxu1 %v3690_v13 }
  0x45   :  { %8756 = vmatpush3.msra.mxu1 %v3690_v13  ;;  %v133_v13 = vld [vmem:[%s16821_s0 + $0x348] sm:$0xff] }
  0x46   :  { %8581 = vmatmul.mubr.msk.f32.gmra.mxu0 %vm167_vm0, %v59_v35  ;;  %8757 = vmatprep.subr.mxu1 %v3689_v14  ;;  %v107_v35 = vld [vmem:[%s16821_s0 + $0x278] sm:$0xff] }
  0x47   :  { %8583 = vmatprep.mubr.msk.f32.mxu0 %vm167_vm0, %v60_v36  ;;  %8758 = vmatpush3.msra.mxu1 %v3689_v14  ;;  %v108_v36 = vld [vmem:[%s16821_s0 + $0x280] sm:$0xff] }
  0x4a   :  { %8584 = vmatmul.mubr.msk.f32.gmra.mxu0 %vm167_vm0, %v61_v37  ;;  %v109_v37 = vld [vmem:[%s16821_s0 + $0x288] sm:$0xff] }
  0x4b   :  { %8586 = vmatprep.mubr.msk.f32.mxu0 %vm167_vm0, %v62_v38  ;;  %v110_v38 = vld [vmem:[%s16821_s0 + $0x290] sm:$0xff] }
  0x4e   :  { %8587 = vmatmul.mubr.msk.f32.gmra.mxu0 %vm167_vm0, %v63_v39  ;;  %v111_v39 = vld [vmem:[%s16821_s0 + $0x298] sm:$0xff] }
  0x4f   :  { %8589 = vmatprep.mubr.msk.f32.mxu0 %vm167_vm0, %v64_v40  ;;  %v112_v40 = vld [vmem:[%s16821_s0 + $0x2a0] sm:$0xff] }
  0x52   :  { %8590 = vmatmul.mubr.msk.f32.gmra.mxu0 %vm167_vm0, %v65_v41  ;;  %v113_v41 = vld [vmem:[%s16821_s0 + $0x2a8] sm:$0xff] }
  0x53   :  { %8592 = vmatprep.mubr.msk.f32.mxu0 %vm167_vm0, %v66_v42  ;;  %v114_v42 = vld [vmem:[%s16821_s0 + $0x2b0] sm:$0xff] }
  0x56   :  { %8593 = vmatmul.mubr.msk.f32.gmra.mxu0 %vm167_vm0, %v67_v43  ;;  %v115_v43 = vld [vmem:[%s16821_s0 + $0x2b8] sm:$0xff] }
  0x57   :  { %8595 = vmatprep.mubr.msk.f32.mxu0 %vm167_vm0, %v68_v44  ;;  %v116_v44 = vld [vmem:[%s16821_s0 + $0x2c0] sm:$0xff] }
  0x5a   :  { %8596 = vmatmul.mubr.msk.f32.gmra.mxu0 %vm167_vm0, %v69_v45  ;;  %v117_v45 = vld [vmem:[%s16821_s0 + $0x2c8] sm:$0xff] }
  0x5b   :  { %8598 = vmatprep.mubr.msk.f32.mxu0 %vm167_vm0, %v70_v46  ;;  %v118_v46 = vld [vmem:[%s16821_s0 + $0x2d0] sm:$0xff] }
  0x5e   :  { %8599 = vmatmul.mubr.msk.f32.gmra.mxu0 %vm167_vm0, %v71_v47  ;;  %v119_v47 = vld [vmem:[%s16821_s0 + $0x2d8] sm:$0xff] }
  0x5f   :  { %8601 = vmatprep.mubr.msk.f32.mxu0 %vm167_vm0, %v72_v48  ;;  %v120_v48 = vld [vmem:[%s16821_s0 + $0x2e0] sm:$0xff] }
  0x62   :  { %8602 = vmatmul.mubr.msk.f32.gmra.mxu0 %vm167_vm0, %v73_v51  ;;  %v123_v51 = vld [vmem:[%s16821_s0 + $0x2f8] sm:$0xff] }
  0x63   :  { %8604 = vmatprep.mubr.msk.f32.mxu0 %vm167_vm0, %v74_v52  ;;  %v124_v52 = vld [vmem:[%s16821_s0 + $0x300] sm:$0xff] }
  0x66   :  { %8605 = vmatmul.mubr.msk.f32.gmra.mxu0 %vm167_vm0, %v75_v55  ;;  %v126_v55 = vld [vmem:[%s16821_s0 + $0x310] sm:$0xff] }
  0x67   :  { %8607 = vmatprep.mubr.msk.f32.mxu0 %vm167_vm0, %v76_v56 }
  0x6a   :  { %8608 = vmatmul.mubr.msk.f32.gmra.mxu0 %vm167_vm0, %v77_v59 }
  0x6b   :  { %8610 = vmatprep.mubr.msk.f32.mxu0 %vm167_vm0, %v78_v60  ;;  %v128_v60 = vld [vmem:[%s16821_s0 + $0x320] sm:$0xff] }
  0x6e   :  { %8611 = vmatmul.mubr.msk.f32.gmra.mxu0 %vm167_vm0, %v79_v63 }
  0x6f   :  { %8613 = vmatprep.mubr.msk.f32.mxu0 %vm167_vm0, %v80_v0 }
  0x72   :  { %8614 = vmatmul.mubr.msk.f32.gmra.mxu0 %vm167_vm0, %v81_v3 }
  0x73   :  { %8616 = vmatprep.mubr.msk.f32.mxu0 %vm167_vm0, %v82_v4  ;;  %v130_v4 = vld [vmem:[%s16821_s0 + $0x330] sm:$0xff] }
  0x76   :  { %8617 = vmatmul.mubr.msk.f32.gmra.mxu0 %vm167_vm0, %v83_v7 }
  0x77   :  { %8619 = vmatprep.mubr.msk.f32.mxu0 %vm167_vm0, %v84_v8 }
  0x7a   :  { %8620 = vmatmul.mubr.msk.f32.gmra.mxu0 %vm167_vm0, %v85_v11  ;;  %v132_v11 = vld [vmem:[%s16821_s0 + $0x340] sm:$0xff] }
  0x7b   :  { %8622 = vmatprep.mubr.msk.f32.mxu0 %vm167_vm0, %v86_v12 }
  0x7e   :  { %8623 = vmatmul.mubr.msk.f32.gmra.mxu0 %vm167_vm0, %v87_v15  ;;  %v134_v15 = vld [vmem:[%s16821_s0 + $0x350] sm:$0xff] }
  0x7f   :  { %8625 = vmatprep.mubr.msk.f32.mxu0 %vm167_vm0, %v88_v16 }
  0x82   :  { %8626 = vmatmul.mubr.msk.f32.gmra.mxu0 %vm167_vm0, %v89_v17  ;;  %v135_v17 = vld [vmem:[%s16821_s0 + $0x358] sm:$0xff] }
  0x83   :  { %8628 = vmatprep.mubr.msk.f32.mxu0 %vm167_vm0, %v90_v18  ;;  %v136_v18 = vld [vmem:[%s16821_s0 + $0x360] sm:$0xff] }
  0x86   :  { %8629 = vmatmul.mubr.msk.f32.gmra.mxu0 %vm167_vm0, %v91_v19 }
  0x87   :  { %8631 = vmatprep.mubr.msk.f32.mxu0 %vm167_vm0, %v92_v20  ;;  %v137_v20 = vld [vmem:[%s16821_s0 + $0x368] sm:$0xff] }
  0x8a   :  { %8632 = vmatmul.mubr.msk.f32.gmra.mxu0 %vm167_vm0, %v93_v21  ;;  %v138_v21 = vld [vmem:[%s16821_s0 + $0x370] sm:$0xff] }
  0x8b   :  { %8634 = vmatprep.mubr.msk.f32.mxu0 %vm167_vm0, %v94_v22 }
  0x8e   :  { %8635 = vmatmul.mubr.msk.f32.gmra.mxu0 %vm167_vm0, %v95_v23 }
  0x8f   :  { %8637 = vmatprep.mubr.msk.f32.mxu0 %vm167_vm0, %v96_v24 }
  0x92   :  { %8638 = vmatmul.mubr.msk.f32.gmra.mxu0 %vm167_vm0, %v97_v25 }
  0x93   :  { %8640 = vmatprep.mubr.msk.f32.mxu0 %vm167_vm0, %v98_v26  ;;  %v139_v26 = vld [vmem:[%s16821_s0 + $0x378] sm:$0xff] }
  0x96   :  { %8641 = vmatmul.mubr.msk.f32.gmra.mxu0 %vm167_vm0, %v99_v27  ;;  %v140_v27 = vld [vmem:[%s16821_s0 + $0x380] sm:$0xff] }
  0x97   :  { %8643 = vmatprep.mubr.msk.f32.mxu0 %vm167_vm0, %v100_v28 }
  0x9a   :  { %8644 = vmatmul.mubr.msk.f32.gmra.mxu0 %vm167_vm0, %v101_v29 }
  0x9b   :  { %8646 = vmatprep.mubr.msk.f32.mxu0 %vm167_vm0, %v102_v30 }
  0x9e   :  { %8647 = vmatmul.mubr.msk.f32.gmra.mxu0 %vm167_vm0, %v103_v31 }
  0x9f   :  { %8649 = vmatprep.mubr.msk.f32.mxu0 %vm167_vm0, %v104_v32 }
  0xa2   :  { %8650 = vmatmul.mubr.msk.f32.gmra.mxu0 %vm167_vm0, %v105_v33  ;;  %v141_v33 = vld [vmem:[%s16821_s0 + $0x388] sm:$0xff] }
  0xa3   :  { %8652 = vmatprep.mubr.msk.f32.mxu0 %vm167_vm0, %v106_v34 }
  0xa6   :  { %8653 = vmatmul.mubr.msk.f32.gmra.mxu0 %vm167_vm0, %v107_v35  ;;  %v142_v35 = vld [vmem:[%s16821_s0 + $0x390] sm:$0xff] }
  0xa7   :  { %8655 = vmatprep.mubr.msk.f32.mxu0 %vm167_vm0, %v108_v36 }
  0xaa   :  { %8656 = vmatmul.mubr.msk.f32.gmra.mxu0 %vm167_vm0, %v109_v37 }
  0xab   :  { %8658 = vmatprep.mubr.msk.f32.mxu0 %vm167_vm0, %v110_v38 }
  0xae   :  { %8659 = vmatmul.mubr.msk.f32.gmra.mxu0 %vm167_vm0, %v111_v39 }
  0xaf   :  { %8661 = vmatprep.mubr.msk.f32.mxu0 %vm167_vm0, %v112_v40  ;;  %v143_v40 = vld [vmem:[%s16821_s0 + $0x398] sm:$0xff] }
  0xb2   :  { %8662 = vmatmul.mubr.msk.f32.gmra.mxu0 %vm167_vm0, %v113_v41 }
  0xb3   :  { %8664 = vmatprep.mubr.msk.f32.mxu0 %vm167_vm0, %v114_v42  ;;  %v144_v42 = vld [vmem:[%s16821_s0 + $0x3a0] sm:$0xff] }
  0xb6   :  { %8665 = vmatmul.mubr.msk.f32.gmra.mxu0 %vm167_vm0, %v115_v43 }
  0xb7   :  { %8667 = vmatprep.mubr.msk.f32.mxu0 %vm167_vm0, %v116_v44 }
  0xba   :  { %8668 = vmatmul.mubr.msk.f32.gmra.mxu0 %vm167_vm0, %v117_v45 }
  0xbb   :  { %8670 = vmatprep.mubr.msk.f32.mxu0 %vm167_vm0, %v118_v46 }
  0xbe   :  { %8671 = vmatmul.mubr.msk.f32.gmra.mxu0 %vm167_vm0, %v119_v47 }
  0xbf   :  { %8673 = vmatprep.mubr.msk.f32.mxu0 %vm167_vm0, %v120_v48 }
  0xc2   :  { %8674 = vmatmul.mubr.msk.f32.gmra.mxu0 %vm167_vm0, %v121_v49 }
  0xc3   :  { %8676 = vmatprep.mubr.msk.f32.mxu0 %vm167_vm0, %v122_v50  ;;  %v145_v50 = vld [vmem:[%s16821_s0 + $0x3a8] sm:$0xff] }
  0xc6   :  { %8677 = vmatmul.mubr.msk.f32.gmra.mxu0 %vm167_vm0, %v123_v51 }
  0xc7   :  { %8679 = vmatprep.mubr.msk.f32.mxu0 %vm167_vm0, %v124_v52  ;;  %v146_v52 = vld [vmem:[%s16821_s0 + $0x3b0] sm:$0xff] }
  0xca   :  { %v8537_v56 = vpop.f32.mrf.mxu0  ;;  %8680 = vmatmul.mubr.msk.f32.gmra.mxu0 %vm167_vm0, %v125_v53 }
  0xcb   :  { %v10513_v57 = vadd.f32 %v8537_v56, %v10506_v54  ;;  %8682 = vmatprep.mubr.msk.f32.mxu0 %vm167_vm0, %v126_v55 }
  0xcc   :  { %v618_v59 = vpop.f32.mrf.mxu0 }
  0xcd   :  { %v1642_v61 = vand.u32 2147483647, %v10513_v57  ;;  %v10524_v62 = vadd.f32 %v10506_v54, %v618_v59  ;;  %vm1386_vm4 = vcmp.ne.f32.partialorder %v10513_v57, %v10513_v57 }
  0xce   :  { %v8540_v63 = vpop.f32.mrf.mxu0  ;;  %8683 = vmatmul.mubr.msk.f32.gmra.mxu0 %vm167_vm0, %v127_v58 }
  0xcf   :  { %v1770_v0 = vsub.f32 0.0, %v1642_v61  ;;  %v1641_v1 = vand.u32 2147483647, %v10524_v62  ;;  %8685 = vmatprep.mubr.msk.f32.mxu0 %vm167_vm0, %v128_v60  ;;  %v10572_v23 = vadd.f32 %v8540_v63, %v10506_v54  ;;  %vm1385_vm2 = vcmp.ne.f32.partialorder %v10524_v62, %v10524_v62 }
  0xd0   :  { %v628_v3 = vpop.f32.mrf.mxu0 }
  0xd1   :  { %v1769_v5 = vsub.f32 0.0, %v1641_v1  ;;  %v1899_v6 = vmul.f32 1.442695, %v1770_v0  ;;  %v10536_v7 = vadd.f32 %v10506_v54, %v628_v3  ;;  %v1644_v29 = vand.u32 2147483647, %v10572_v23  ;;  %v147_v1 = vld [vmem:[%s16821_s0 + $0x3b8] sm:$0xff] }
  0xd2   :  { %8686 = vmatmul.mubr.msk.f32.gmra.mxu0 %vm167_vm0, %v129_v2  ;;  %v8543_v16 = vpop.f32.mrf.mxu0  ;;  %v148_v3 = vld [vmem:[%s16821_s0 + $0x3c0] sm:$0xff]  ;;  %vm1388_vm7 = vcmp.ne.f32.partialorder %v10572_v23, %v10572_v23 }
  0xd3   :  { %v1897_v8 = vmul.f32 1.442695, %v1769_v5  ;;  %8688 = vmatprep.mubr.msk.f32.mxu0 %vm167_vm0, %v130_v4  ;;  %v1643_v10 = vand.u32 2147483647, %v10536_v7  ;;  %v10595_v34 = vadd.f32 %v8543_v16, %v10506_v54  ;;  %v1772_v37 = vsub.f32 0.0, %v1644_v29 }
  0xd4   :  { %v638_v19 = vpop.f32.mrf.mxu0  ;;  %vm1387_vm6 = vcmp.ne.f32.partialorder %v10536_v7, %v10536_v7 }
  0xd5   :  { %8953 = vpow2.f32 %v1897_v8  ;;  %v1771_v12 = vsub.f32 0.0, %v1643_v10  ;;  %v10588_v32 = vadd.f32 %v10506_v54, %v638_v19  ;;  %v1646_v41 = vand.u32 2147483647, %v10595_v34 }
  0xd6   :  { %8955 = vpow2.f32 %v1899_v6  ;;  %8689 = vmatmul.mubr.msk.f32.gmra.mxu0 %vm167_vm0, %v131_v9  ;;  %v8546_v24 = vpop.f32.mrf.mxu0  ;;  %v1903_v46 = vmul.f32 1.442695, %v1772_v37  ;;  %vm1390_vm10 = vcmp.ne.f32.partialorder %v10595_v34, %v10595_v34 }
  0xd7   :  { %8691 = vmatprep.mubr.msk.f32.mxu0 %vm167_vm0, %v132_v11  ;;  %v1901_v14 = vmul.f32 1.442695, %v1771_v12  ;;  %v1645_v39 = vand.u32 2147483647, %v10588_v32  ;;  %v10618_v49 = vadd.f32 %v8546_v24, %v10506_v54  ;;  %v1774_v51 = vsub.f32 0.0, %v1646_v41 }
  0xd8   :  { %v648_v30 = vpop.f32.mrf.mxu0  ;;  %v1257_v11 = vmax.f32 %v10524_v62, 0.0  ;;  %vm1389_vm9 = vcmp.ne.f32.partialorder %v10588_v32, %v10588_v32 }
  0xd9   :  { %8957 = vpow2.f32 %v1901_v14  ;;  %v10614_v45 = vadd.f32 %v10506_v54, %v648_v30  ;;  %v1773_v48 = vsub.f32 0.0, %v1645_v39  ;;  %v1648_v63 = vand.u32 2147483647, %v10618_v49  ;;  %v152_v39 = vld [vmem:[%s16821_s0 + $0x3e0] sm:$0xff] }
  0xda   :  { %8692 = vmatmul.mubr.msk.f32.gmra.mxu0 %vm167_vm0, %v133_v13  ;;  %v8549_v38 = vpop.f32.mrf.mxu0  ;;  %v1907_v2 = vmul.f32 1.442695, %v1774_v51  ;;  %vm1392_vm14 = vcmp.ne.f32.partialorder %v10618_v49, %v10618_v49 }
  0xdb   :  { %8694 = vmatprep.mubr.msk.f32.mxu0 %vm167_vm0, %v134_v15  ;;  %v1647_v56 = vand.u32 2147483647, %v10614_v45  ;;  %v1905_v61 = vmul.f32 1.442695, %v1773_v48  ;;  %v1776_v14 = vsub.f32 0.0, %v1648_v63  ;;  %v10647_v15 = vadd.f32 %v8549_v38, %v10506_v54  ;;  %v155_v63 = vld [vmem:[%s16821_s0 + $0x3f8] sm:$0xff] }
  0xdc   :  { %v658_v47 = vpop.f32.mrf.mxu0  ;;  %vm1391_vm11 = vcmp.ne.f32.partialorder %v10614_v45, %v10614_v45 }
  0xdd   :  { %v10634_v0 = vadd.f32 %v10506_v54, %v658_v47  ;;  %v1775_v8 = vsub.f32 0.0, %v1647_v56 }
  0xde   :  { %8695 = vmatmul.mubr.msk.f32.gmra.mxu0 %vm167_vm0, %v135_v17  ;;  %v10629_v59 = vpop.f32.mrf.mxu0  ;;  %v149_v17 = vld [vmem:[%s16821_s0 + $0x3c8] sm:$0xff] }
  0xdf   :  { %8697 = vmatprep.mubr.msk.f32.mxu0 %vm167_vm0, %v136_v18  ;;  %v1649_v16 = vand.u32 2147483647, %v10634_v0  ;;  %v1909_v24 = vmul.f32 1.442695, %v1775_v8 }
  0xe0   :  { %v668_v10 = vpop.f32.mrf.mxu0 }
  0xe1   :  { %v1777_v29 = vsub.f32 0.0, %v1649_v16  ;;  %v10676_v41 = vadd.f32 %v10506_v54, %v668_v10 }
  0xe2   :  { %v8954_v22 = vpop.eup %8953  ;;  %8698 = vmatmul.mubr.msk.f32.gmra.mxu0 %vm167_vm0, %v137_v20 }
  0xe3   :  { %v10575_v25 = vpop.eup %8955  ;;  %8700 = vmatprep.mubr.msk.f32.mxu0 %vm167_vm0, %v138_v21  ;;  %v2153_v28 = vadd.f32 1.0, %v8954_v22  ;;  %v2156_v43 = vmul.f32 -0.5, %v8954_v22  ;;  %v2159_v58 = vand.u32 2147483647, %v8954_v22  ;;  %v150_v21 = vld [vmem:[%s16821_s0 + $0x3d0] sm:$0xff] }
  0xe4   :  { %v2162_v31 = vadd.f32 1.0, %v10575_v25  ;;  %v2165_v55 = vmul.f32 -0.5, %v10575_v25  ;;  %v2168_v9 = vand.u32 2147483647, %v10575_v25  ;;  %v1913_v47 = vmul.f32 1.442695, %v1777_v29 }
  0xe5   :  { %8959 = vlog2.f32 %v2153_v28  ;;  %v2157_v53 = vadd.f32 1.0, %v2156_v43  ;;  %vm2160_vm1 = vcmp.lt.f32.partialorder %v2159_v58, 0.0004427343  ;;  %v1651_v56 = vand.u32 2147483647, %v10676_v41 }
  0xe6   :  { %8701 = vmatmul.mubr.msk.f32.gmra.mxu0 %vm167_vm0, %v139_v26  ;;  %v10600_v36 = vpop.eup %8957  ;;  %8961 = vlog2.f32 %v2162_v31  ;;  %v2166_v6 = vadd.f32 1.0, %v2165_v55  ;;  %vm2169_vm3 = vcmp.lt.f32.partialorder %v2168_v9, 0.0004427343  ;;  %v1258_v26 = vmax.f32 %v10513_v57, 0.0  ;;  %v151_v31 = vld [vmem:[%s16821_s0 + $0x3d8] sm:$0xff] }
  0xe7   :  { %8703 = vmatprep.mubr.msk.f32.mxu0 %vm167_vm0, %v140_v27  ;;  %v2171_v44 = vadd.f32 1.0, %v10600_v36  ;;  %v2158_v5 = vmul.f32 %v8954_v22, %v2157_v53  ;;  %v2174_v22 = vmul.f32 -0.5, %v10600_v36  ;;  %v8555_v27 = vpop.f32.mrf.mxu0  ;;  %v1259_v53 = vmax.f32 %v10536_v7, 0.0 }
  0xe8   :  { %v2167_v20 = vmul.f32 %v10575_v25, %v2166_v6  ;;  %v10693_v55 = vadd.f32 %v10629_v59, %v10506_v54  ;;  %v1779_v6 = vsub.f32 0.0, %v1651_v56  ;;  %v1262_v29 = vmax.f32 %v10595_v34, 0.0 }
  0xe9   :  { %8963 = vlog2.f32 %v2171_v44  ;;  %v2175_v38 = vadd.f32 1.0, %v2174_v22 }
  0xea   :  { %8704 = vmatmul.mubr.msk.f32.gmra.mxu0 %vm167_vm0, %v141_v33  ;;  %8965 = vpow2.f32 %v1903_v46  ;;  %v1911_v33 = vmul.f32 1.442695, %v1776_v14  ;;  %v1917_v16 = vmul.f32 1.442695, %v1779_v6 }
  0xeb   :  { %8706 = vmatprep.mubr.msk.f32.mxu0 %vm167_vm0, %v142_v35  ;;  %8967 = vpow2.f32 %v1905_v61  ;;  %v1650_v35 = vand.u32 2147483647, %v10647_v15 }
  0xec   :  { %8969 = vpow2.f32 %v1907_v2  ;;  %v10705_v2 = vadd.f32 %v8555_v27, %v10506_v54  ;;  %v1260_v27 = vmax.f32 %v10572_v23, 0.0 }
  0xed   :  { %8971 = vpow2.f32 %v1909_v24  ;;  %v1778_v51 = vsub.f32 0.0, %v1650_v35 }
  0xee   :  { %8707 = vmatmul.mubr.msk.f32.gmra.mxu0 %vm167_vm0, %v143_v40  ;;  %8973 = vpow2.f32 %v1911_v33  ;;  %v1654_v10 = vand.u32 2147483647, %v10705_v2 }
  0xef   :  { %8709 = vmatprep.mubr.msk.f32.mxu0 %vm167_vm0, %v144_v42  ;;  %v678_v42 = vpop.f32.mrf.mxu0  ;;  %8975 = vpow2.f32 %v1913_v47  ;;  %v1264_v47 = vmax.f32 %v10618_v49, 0.0 }
  0xf1   :  { %v8558_v58 = vpop.f32.mrf.mxu0 }
  0xf2   :  { %8710 = vmatmul.mubr.msk.f32.gmra.mxu0 %vm167_vm0, %v145_v50  ;;  %v8960_v60 = vpop.eup %8959  ;;  %v153_v50 = vld [vmem:[%s16821_s0 + $0x3e8] sm:$0xff]  ;;  %v10728_v24 = vadd.f32 %v8558_v58, %v10506_v54 }
  0xf3   :  { %8712 = vmatprep.mubr.msk.f32.mxu0 %vm167_vm0, %v146_v52  ;;  %v2155_v4 = vmul.f32 0.6931472, %v8960_v60  ;;  %v8962_v13 = vpop.eup %8961  ;;  %v2176_v52 = vmul.f32 %v10600_v36, %v2175_v38  ;;  %v688_v8 = vpop.f32.mrf.mxu0  ;;  %v1261_v38 = vmax.f32 %v10588_v32, 0.0 }
  0xf4   :  { %v2164_v19 = vmul.f32 0.6931472, %v8962_v13 }
  0xf5   :  { %v2161_v12 = vsel %vm2160_vm1, %v2158_v5, %v2155_v4  ;;  %v8561_v33 = vpop.f32.mrf.mxu0 }
  0xf6   :  { %8713 = vmatmul.mubr.msk.f32.gmra.mxu0 %vm167_vm0, %v147_v1  ;;  %v3305_v18 = vadd.f32 %v2161_v12, %v1257_v11  ;;  %v2170_v25 = vsel %vm2169_vm3, %v2167_v20, %v2164_v19  ;;  %v8964_v40 = vpop.eup %8963  ;;  %v1915_v1 = vmul.f32 1.442695, %v1778_v51  ;;  %v10716_v11 = vadd.f32 %v10506_v54, %v678_v42 }
  0xf7   :  { %8715 = vmatprep.mubr.msk.f32.mxu0 %vm167_vm0, %v148_v3  ;;  %v3306_v37 = vadd.f32 %v2170_v25, %v1258_v26  ;;  %v2173_v44 = vmul.f32 0.6931472, %v8964_v40  ;;  %v10680_v46 = vpop.eup %8965  ;;  %v1652_v3 = vand.u32 2147483647, %v10693_v55  ;;  %v698_v51 = vpop.f32.mrf.mxu0  ;;  %vm1394_vm3 = vcmp.ne.f32.partialorder %v10647_v15, %v10647_v15 }
  0xf8   :  { %v3433_v28 = vsel %vm1385_vm2, %v10524_v62, %v3305_v18  ;;  %v2177_v62 = vand.u32 2147483647, %v10600_v36  ;;  %v2180_v61 = vadd.f32 1.0, %v10680_v46  ;;  %v10702_v59 = vpop.eup %8967  ;;  %v1782_v18 = vsub.f32 0.0, %v1654_v10 }
  0xf9   :  { %v7726_v30 = vadd.f32 -0.6931472, %v3433_v28  ;;  %v3434_v43 = vsel %vm1386_vm4, %v10513_v57, %v3306_v37  ;;  %v154_v57 = vld [vmem:[%s16821_s0 + $0x3f0] sm:$0xff]  ;;  %v10711_v5 = vpop.eup %8969  ;;  %v2189_v12 = vadd.f32 1.0, %v10702_v59  ;;  %v1780_v13 = vsub.f32 0.0, %v1652_v3 }
  0xfa   :  { %8716 = vmatmul.mubr.msk.f32.gmra.mxu0 %vm167_vm0, %v149_v17  ;;  %v7727_v48 = vadd.f32 -0.6931472, %v3434_v43  ;;  %vm2178_vm5 = vcmp.lt.f32.partialorder %v2177_v62, 0.0004427343  ;;  %8977 = vlog2.f32 %v2180_v61  ;;  %v2198_v14 = vadd.f32 1.0, %v10711_v5 }
  0xfb   :  { %8718 = vmatprep.mubr.msk.f32.mxu0 %vm167_vm0, %v150_v21  ;;  %8759 = vmatprep.mubr.f32.mxu1 %v7726_v30  ;;  %v2179_v60 = vsel %vm2178_vm5, %v2176_v52, %v2173_v44  ;;  %8979 = vpow2.f32 %v1915_v1  ;;  %v2183_v17 = vmul.f32 -0.5, %v10680_v46  ;;  %v1653_v19 = vand.u32 2147483647, %v10716_v11 }
  0xfc   :  { %8760 = vmatmul.mubr.f32.vlgmr.msra.gmra.mxu1 %v7727_v48  ;;  %v3307_v36 = vadd.f32 %v2179_v60, %v1259_v53  ;;  %8981 = vlog2.f32 %v2189_v12  ;;  %v1919_v21 = vmul.f32 1.442695, %v1780_v13  ;;  %v2186_v28 = vand.u32 2147483647, %v10680_v46 }
  0xfd   :  { %8983 = vlog2.f32 %v2198_v14  ;;  %v2184_v26 = vadd.f32 1.0, %v2183_v17  ;;  %v1923_v30 = vmul.f32 1.442695, %v1782_v18  ;;  %v2192_v40 = vmul.f32 -0.5, %v10702_v59 }
  0xfe   :  { %8719 = vmatmul.mubr.msk.f32.gmra.mxu0 %vm167_vm0, %v151_v31  ;;  %v3435_v4 = vsel %vm1387_vm6, %v10536_v7, %v3307_v36  ;;  %v10720_v7 = vpop.eup %8971  ;;  %8985 = vpow2.f32 %v1917_v16  ;;  %v1781_v31 = vsub.f32 0.0, %v1653_v19  ;;  %v1656_v62 = vand.u32 2147483647, %v10728_v24 }
  0xff   :  { %8721 = vmatprep.mubr.msk.f32.mxu0 %vm167_vm0, %v152_v39  ;;  %v7728_v9 = vadd.f32 -0.6931472, %v3435_v4  ;;  %v10724_v20 = vpop.eup %8973  ;;  %v2207_v22 = vadd.f32 1.0, %v10720_v7  ;;  %v10740_v39 = vadd.f32 %v10506_v54, %v688_v8  ;;  %v2185_v43 = vmul.f32 %v10680_v46, %v2184_v26 }
 0x100   :  { %v10734_v25 = vpop.eup %8975  ;;  %v2216_v35 = vadd.f32 1.0, %v10724_v20  ;;  %v2201_v44 = vmul.f32 -0.5, %v10711_v5  ;;  %v1263_v48 = vmax.f32 %v10614_v45, 0.0  ;;  %vm2187_vm8 = vcmp.lt.f32.partialorder %v2186_v28, 0.0004427343 }
 0x101   :  { %8762 = vmatprep.mubr.f32.mxu1 %v7728_v9  ;;  %8987 = vlog2.f32 %v2207_v22  ;;  %v1655_v56 = vand.u32 2147483647, %v10740_v39  ;;  %v2193_v46 = vadd.f32 1.0, %v2192_v40  ;;  %v2210_v60 = vmul.f32 -0.5, %v10720_v7 }
 0x102   :  { %8722 = vmatmul.mubr.msk.f32.gmra.mxu0 %vm167_vm0, %v153_v50  ;;  %8989 = vpow2.f32 %v1919_v21  ;;  %v1921_v50 = vmul.f32 1.442695, %v1781_v31  ;;  %v1784_v61 = vsub.f32 0.0, %v1656_v62  ;;  %v2195_v36 = vand.u32 2147483647, %v10702_v59 }
 0x103   :  { %8724 = vmatprep.mubr.msk.f32.mxu0 %vm167_vm0, %v154_v57  ;;  %8991 = vlog2.f32 %v2216_v35  ;;  %v2225_v57 = vadd.f32 1.0, %v10734_v25  ;;  %v10759_v1 = vadd.f32 %v8561_v33, %v10506_v54  ;;  %v10762_v3 = vadd.f32 %v10506_v54, %v698_v51 }
 0x104   :  { %8993 = vpow2.f32 %v1923_v30  ;;  %v2204_v6 = vand.u32 2147483647, %v10711_v5  ;;  %v2219_v10 = vmul.f32 -0.5, %v10724_v20  ;;  %v1783_v14 = vsub.f32 0.0, %v1655_v56 }
 0x105   :  { %8995 = vlog2.f32 %v2225_v57  ;;  %v2194_v17 = vmul.f32 %v10702_v59, %v2193_v46  ;;  %v2211_v18 = vadd.f32 1.0, %v2210_v60  ;;  %vm2196_vm12 = vcmp.lt.f32.partialorder %v2195_v36, 0.0004427343 }
 0x106   :  { %8725 = vmatmul.mubr.msk.f32.gmra.mxu0 %vm167_vm0, %v155_v63  ;;  %v2202_v63 = vadd.f32 1.0, %v2201_v44  ;;  %8997 = vpow2.f32 %v1921_v50  ;;  %v2213_v21 = vand.u32 2147483647, %v10720_v7  ;;  %v1927_v26 = vmul.f32 1.442695, %v1784_v61 }
 0x107   :  { %v8978_v37 = vpop.eup %8977  ;;  %vm2205_vm13 = vcmp.lt.f32.partialorder %v2204_v6, 0.0004427343  ;;  %v2220_v31 = vadd.f32 1.0, %v2219_v10  ;;  %v2228_v33 = vmul.f32 -0.5, %v10734_v25  ;;  %v1657_v35 = vand.u32 2147483647, %v10762_v3 }
 0x108   :  { %v2182_v42 = vmul.f32 0.6931472, %v8978_v37  ;;  %v10749_v53 = vpop.eup %8979  ;;  %v2203_v19 = vmul.f32 %v10711_v5, %v2202_v63  ;;  %v8564_v37 = vpop.f32.mrf.mxu0  ;;  %v2212_v62 = vmul.f32 %v10720_v7, %v2211_v18  ;;  %vm2214_vm15 = vcmp.lt.f32.partialorder %v2213_v21, 0.0004427343 }
 0x109   :  { %v8982_v8 = vpop.eup %8981  ;;  %v2234_v12 = vadd.f32 1.0, %v10749_v53  ;;  %v2222_v44 = vand.u32 2147483647, %v10724_v20  ;;  %v2231_v36 = vand.u32 2147483647, %v10734_v25  ;;  %v1265_v63 = vmax.f32 %v10634_v0, 0.0 }
 0x10a   :  { %v2188_v52 = vsel %vm2187_vm8, %v2185_v43, %v2182_v42  ;;  %v8984_v13 = vpop.eup %8983  ;;  %v2191_v16 = vmul.f32 0.6931472, %v8982_v8  ;;  %v1925_v43 = vmul.f32 1.442695, %v1783_v14  ;;  %v708_v60 = vpop.f32.mrf.mxu0  ;;  %v1785_v6 = vsub.f32 0.0, %v1657_v35 }
 0x10b   :  { %v3308_v58 = vadd.f32 %v2188_v52, %v1260_v27  ;;  %v10776_v22 = vpop.eup %8985  ;;  %8999 = vlog2.f32 %v2234_v12  ;;  %vm2223_vm0 = vcmp.lt.f32.partialorder %v2222_v44, 0.0004427343  ;;  %v10811_v10 = vadd.f32 %v10506_v54, %v708_v60 }
 0x10c   :  { %v2197_v27 = vsel %vm2196_vm12, %v2194_v17, %v2191_v16  ;;  %v2243_v51 = vadd.f32 1.0, %v10776_v22  ;;  %vm2232_vm1 = vcmp.lt.f32.partialorder %v2231_v36, 0.0004427343  ;;  %vm1393_vm2 = vcmp.ne.f32.partialorder %v10634_v0, %v10634_v0 }
 0x10d   :  { %v3436_v4 = vsel %vm1388_vm7, %v10572_v23, %v3308_v58  ;;  %v2200_v23 = vmul.f32 0.6931472, %v8984_v13  ;;  %v3309_v30 = vadd.f32 %v2197_v27, %v1261_v38  ;;  %v2221_v58 = vmul.f32 %v10724_v20, %v2220_v31 }
 0x10e   :  { %v7729_v9 = vadd.f32 -0.6931472, %v3436_v4  ;;  %v8988_v28 = vpop.eup %8987  ;;  %9001 = vlog2.f32 %v2243_v51  ;;  %v1658_v4 = vand.u32 2147483647, %v10759_v1  ;;  %v1659_v31 = vand.u32 2147483647, %v10811_v10 }
 0x10f   :  { %v2206_v59 = vsel %vm2205_vm13, %v2203_v19, %v2200_v23  ;;  %v2209_v40 = vmul.f32 0.6931472, %v8988_v28  ;;  %v10785_v42 = vpop.eup %8989  ;;  %v3437_v38 = vsel %vm1389_vm9, %v10588_v32, %v3309_v30  ;;  %v2229_v32 = vadd.f32 1.0, %v2228_v33  ;;  %v8567_v23 = vpop.f32.mrf.mxu0 }
 0x110   :  { %8763 = vmatmul.mubr.f32.gmra.mxu1 %v7729_v9  ;;  %v3310_v5 = vadd.f32 %v2206_v59, %v1262_v29  ;;  %v7730_v50 = vadd.f32 -0.6931472, %v3437_v38  ;;  %v8992_v52 = vpop.eup %8991  ;;  %9003 = vpow2.f32 %v1925_v43  ;;  %v2252_v17 = vadd.f32 1.0, %v10785_v42 }
 0x111   :  { %v2215_v29 = vsel %vm2214_vm15, %v2212_v62, %v2209_v40  ;;  %v10800_v46 = vpop.eup %8993  ;;  %v2218_v61 = vmul.f32 0.6931472, %v8992_v52  ;;  %v2230_v14 = vmul.f32 %v10734_v25, %v2229_v32  ;;  %9005 = vpow2.f32 %v1927_v26  ;;  %v718_v40 = vpop.f32.mrf.mxu0 }
 0x112   :  { %v3438_v7 = vsel %vm1390_vm10, %v10595_v34, %v3310_v5  ;;  %v3311_v56 = vadd.f32 %v2215_v29, %v1263_v48  ;;  %8765 = vmatprep.mubr.f32.mxu1 %v7730_v50  ;;  %v2237_v34 = vmul.f32 -0.5, %v10749_v53  ;;  %v8996_v48 = vpop.eup %8995  ;;  %v1786_v18 = vsub.f32 0.0, %v1658_v4 }
 0x113   :  { %v7731_v57 = vadd.f32 -0.6931472, %v3438_v7  ;;  %v2224_v9 = vsel %vm2223_vm0, %v2221_v58, %v2218_v61  ;;  %v2227_v13 = vmul.f32 0.6931472, %v8996_v48  ;;  %v10816_v16 = vpop.eup %8997  ;;  %v10825_v25 = vadd.f32 %v8564_v37, %v10506_v54  ;;  %v8570_v58 = vpop.f32.mrf.mxu0 }
 0x114   :  { %v3439_v20 = vsel %vm1391_vm11, %v10614_v45, %v3311_v56  ;;  %v3312_v12 = vadd.f32 %v2224_v9, %v1264_v47  ;;  %v2238_v45 = vadd.f32 1.0, %v2237_v34  ;;  %v2240_v47 = vand.u32 2147483647, %v10749_v53 }
 0x115   :  { %8766 = vmatmul.mubr.f32.gmra.mxu1 %v7731_v57  ;;  %v7732_v8 = vadd.f32 -0.6931472, %v3439_v20  ;;  %v2233_v21 = vsel %vm2232_vm1, %v2230_v14, %v2227_v13  ;;  %v2246_v28 = vmul.f32 -0.5, %v10776_v22  ;;  %v1929_v59 = vmul.f32 1.442695, %v1785_v6 }
 0x116   :  { %v3440_v19 = vsel %vm1392_vm14, %v10618_v49, %v3312_v12  ;;  %v3313_v26 = vadd.f32 %v2233_v21, %v1265_v63  ;;  %9007 = vlog2.f32 %v2252_v17  ;;  %v1266_v49 = vmax.f32 %v10647_v15, 0.0  ;;  %v728_v12 = vpop.f32.mrf.mxu0 }
 0x117   :  { %8768 = vmatprep.mubr.f32.mxu1 %v7732_v8  ;;  %v7733_v27 = vadd.f32 -0.6931472, %v3440_v19  ;;  %v2239_v37 = vmul.f32 %v10749_v53, %v2238_v45  ;;  %v1931_v5 = vmul.f32 1.442695, %v1786_v18  ;;  %vm2241_vm4 = vcmp.lt.f32.partialorder %v2240_v47, 0.0004427343 }
 0x118   :  { %v9000_v30 = vpop.eup %8999  ;;  %v3441_v33 = vsel %vm1393_vm2, %v10634_v0, %v3313_v26  ;;  %v1660_v43 = vand.u32 2147483647, %v10825_v25  ;;  %v2247_v44 = vadd.f32 1.0, %v2246_v28  ;;  %v2261_v50 = vadd.f32 1.0, %v10816_v16 }
 0x119   :  { %8769 = vmatmul.mubr.f32.gmra.mxu1 %v7733_v27  ;;  %v2236_v35 = vmul.f32 0.6931472, %v9000_v30  ;;  %v7734_v62 = vadd.f32 -0.6931472, %v3441_v33  ;;  %9009 = vpow2.f32 %v1929_v59  ;;  %v1787_v7 = vsub.f32 0.0, %v1659_v31 }
 0x11a   :  { %v2249_v29 = vand.u32 2147483647, %v10776_v22  ;;  %v10840_v53 = vadd.f32 %v10506_v54, %v718_v40  ;;  %v2255_v51 = vmul.f32 -0.5, %v10785_v42  ;;  %9011 = vlog2.f32 %v2261_v50 }
 0x11b   :  { %v2242_v38 = vsel %vm2241_vm4, %v2239_v37, %v2236_v35  ;;  %8771 = vmatprep.mubr.f32.mxu1 %v7734_v62  ;;  %v2270_v52 = vadd.f32 1.0, %v10800_v46  ;;  %v9002_v57 = vpop.eup %9001  ;;  %v1267_v56 = vmax.f32 %v10676_v41, 0.0  ;;  %9013 = vpow2.f32 %v1931_v5  ;;  %v10874_v35 = vpop.f32.mrf.mxu0 }
 0x11c   :  { %v3314_v0 = vadd.f32 %v2242_v38, %v1266_v49  ;;  %v2245_v61 = vmul.f32 0.6931472, %v9002_v57  ;;  %v2248_v36 = vmul.f32 %v10776_v22, %v2247_v44  ;;  %v1788_v63 = vsub.f32 0.0, %v1660_v43 }
 0x11d   :  { %v10850_v34 = vpop.eup %9003  ;;  %v1933_v4 = vmul.f32 1.442695, %v1787_v7  ;;  %v10853_v20 = vadd.f32 %v8567_v23, %v10506_v54  ;;  %vm2250_vm5 = vcmp.lt.f32.partialorder %v2249_v29, 0.0004427343  ;;  %v1661_v48 = vand.u32 2147483647, %v10840_v53  ;;  %v738_v29 = vpop.f32.mrf.mxu0 }
 0x11e   :  { %v3442_v32 = vsel %vm1394_vm3, %v10647_v15, %v3314_v0  ;;  %v2251_v6 = vsel %vm2250_vm5, %v2248_v36, %v2245_v61  ;;  %v2256_v8 = vadd.f32 1.0, %v2255_v51  ;;  %9015 = vlog2.f32 %v2270_v52  ;;  %v10856_v15 = vpop.eup %9005 }
 0x11f   :  { %v7735_v60 = vadd.f32 -0.6931472, %v3442_v32  ;;  %v1268_v9 = vmax.f32 %v10693_v55, 0.0  ;;  %v3315_v22 = vadd.f32 %v2251_v6, %v1267_v56  ;;  %v2264_v13 = vmul.f32 -0.5, %v10816_v16 }
 0x120   :  { %v1270_v14 = vmax.f32 %v10705_v2, 0.0  ;;  %vm1395_vm6 = vcmp.ne.f32.partialorder %v10676_v41, %v10676_v41  ;;  %v2258_v45 = vand.u32 2147483647, %v10785_v42  ;;  %v2279_v17 = vadd.f32 1.0, %v10850_v34 }
 0x121   :  { %8772 = vmatmul.mubr.f32.gmra.mxu1 %v7735_v60  ;;  %v1935_v18 = vmul.f32 1.442695, %v1788_v63  ;;  %9017 = vpow2.f32 %v1933_v4  ;;  %v1662_v23 = vand.u32 2147483647, %v10853_v20  ;;  %v3443_v19 = vsel %vm1395_vm6, %v10676_v41, %v3315_v22 }
 0x122   :  { %v1789_v47 = vsub.f32 0.0, %v1661_v48  ;;  %v10868_v27 = vadd.f32 %v10506_v54, %v728_v12  ;;  %v7736_v26 = vadd.f32 -0.6931472, %v3443_v19  ;;  %v2257_v28 = vmul.f32 %v10785_v42, %v2256_v8 }
 0x123   :  { %v9008_v21 = vpop.eup %9007  ;;  %v2265_v59 = vadd.f32 1.0, %v2264_v13  ;;  %v2267_v31 = vand.u32 2147483647, %v10816_v16  ;;  %9019 = vlog2.f32 %v2279_v17  ;;  %v1269_v49 = vmax.f32 %v10716_v11, 0.0 }
 0x124   :  { %v2254_v30 = vmul.f32 0.6931472, %v9008_v21  ;;  %v1272_v33 = vmax.f32 %v10728_v24, 0.0  ;;  %8774 = vmatprep.mubr.f32.mxu1 %v7736_v26  ;;  %vm2259_vm7 = vcmp.lt.f32.partialorder %v2258_v45, 0.0004427343  ;;  %v2273_v41 = vmul.f32 -0.5, %v10800_v46 }
 0x125   :  { %9021 = vpow2.f32 %v1935_v18  ;;  %v10878_v37 = vadd.f32 %v8570_v58, %v10506_v54  ;;  %v2288_v5 = vadd.f32 1.0, %v10856_v15  ;;  %v1790_v62 = vsub.f32 0.0, %v1662_v23 }
 0x126   :  { %v2260_v42 = vsel %vm2259_vm7, %v2257_v28, %v2254_v30  ;;  %v10881_v40 = vpop.eup %9009  ;;  %v1937_v43 = vmul.f32 1.442695, %v1789_v47  ;;  %v1663_v38 = vand.u32 2147483647, %v10868_v27  ;;  %vm1396_vm8 = vcmp.ne.f32.partialorder %v10693_v55, %v10693_v55 }
 0x127   :  { %v3316_v44 = vadd.f32 %v2260_v42, %v1268_v9  ;;  %v9012_v50 = vpop.eup %9011  ;;  %v2266_v7 = vmul.f32 %v10816_v16, %v2265_v59  ;;  %vm10887_vm9 = vcmp.lt.f32.partialorder %v2267_v31, 0.0004427343  ;;  %9023 = vlog2.f32 %v2288_v5  ;;  %v8576_v31 = vpop.f32.mrf.mxu0 }
 0x128   :  { %v2263_v52 = vmul.f32 0.6931472, %v9012_v50  ;;  %v2274_v57 = vadd.f32 1.0, %v2273_v41  ;;  %v2282_v56 = vmul.f32 -0.5, %v10850_v34  ;;  %v10893_v58 = vpop.eup %9013  ;;  %v1271_v32 = vmax.f32 %v10740_v39, 0.0 }
 0x129   :  { %v3444_v51 = vsel %vm1396_vm8, %v10693_v55, %v3316_v44  ;;  %v2276_v61 = vand.u32 2147483647, %v10800_v46  ;;  %v2297_v16 = vadd.f32 1.0, %v10881_v40  ;;  %v1939_v36 = vmul.f32 1.442695, %v1790_v62 }
 0x12a   :  { %v7737_v60 = vadd.f32 -0.6931472, %v3444_v51  ;;  %v1664_v63 = vand.u32 2147483647, %v10878_v37  ;;  %v1791_v4 = vsub.f32 0.0, %v1663_v38  ;;  %v2269_v55 = vsel %vm10887_vm9, %v2266_v7, %v2263_v52  ;;  %v748_v51 = vpop.f32.mrf.mxu0 }
 0x12b   :  { %v9016_v48 = vpop.eup %9015  ;;  %v10902_v6 = vadd.f32 %v10506_v54, %v738_v29  ;;  %vm1397_vm10 = vcmp.ne.f32.partialorder %v10716_v11, %v10716_v11  ;;  %v3317_v8 = vadd.f32 %v2269_v55, %v1269_v49  ;;  %9025 = vlog2.f32 %v2297_v16 }
 0x12c   :  { %8775 = vmatmul.mubr.f32.gmra.mxu1 %v7737_v60  ;;  %v2272_v9 = vmul.f32 0.6931472, %v9016_v48  ;;  %v2275_v12 = vmul.f32 %v10800_v46, %v2274_v57  ;;  %v2283_v22 = vadd.f32 1.0, %v2282_v56  ;;  %v2285_v13 = vand.u32 2147483647, %v10850_v34 }
 0x12d   :  { %9027 = vpow2.f32 %v1937_v43  ;;  %v3445_v45 = vsel %vm1397_vm10, %v10716_v11, %v3317_v8  ;;  %vm2277_vm11 = vcmp.lt.f32.partialorder %v2276_v61, 0.0004427343  ;;  %v2291_v17 = vmul.f32 -0.5, %v10856_v15 }
 0x12e   :  { %v10910_v18 = vpop.eup %9017  ;;  %v1792_v23 = vsub.f32 0.0, %v1664_v63  ;;  %v7738_v19 = vadd.f32 -0.6931472, %v3445_v45  ;;  %v2278_v21 = vsel %vm2277_vm11, %v2275_v12, %v2272_v9  ;;  %v2306_v47 = vadd.f32 1.0, %v10893_v58  ;;  %v8579_v45 = vpop.f32.mrf.mxu0 }
 0x12f   :  { %9029 = vpow2.f32 %v1939_v36  ;;  %v1941_v26 = vmul.f32 1.442695, %v1791_v4  ;;  %v1665_v46 = vand.u32 2147483647, %v10902_v6  ;;  %v3318_v28 = vadd.f32 %v2278_v21, %v1270_v14 }
 0x130   :  { %v9020_v30 = vpop.eup %9019  ;;  %8777 = vmatprep.mubr.f32.mxu1 %v7738_v19  ;;  %vm1398_vm12 = vcmp.ne.f32.partialorder %v10705_v2, %v10705_v2  ;;  %v2284_v11 = vmul.f32 %v10850_v34, %v2283_v22  ;;  %vm10919_vm13 = vcmp.lt.f32.partialorder %v2285_v13, 0.0004427343  ;;  %9031 = vlog2.f32 %v2306_v47 }
 0x131   :  { %v3446_v49 = vsel %vm1398_vm12, %v10705_v2, %v3318_v28  ;;  %v2281_v41 = vmul.f32 0.6931472, %v9020_v30  ;;  %v2292_v42 = vadd.f32 1.0, %v2291_v17  ;;  %v2300_v5 = vmul.f32 -0.5, %v10881_v40 }
 0x132   :  { %v10925_v14 = vpop.eup %9021  ;;  %v1274_v62 = vmax.f32 %v10759_v1, 0.0  ;;  %v7739_v43 = vadd.f32 -0.6931472, %v3446_v49  ;;  %v2294_v38 = vand.u32 2147483647, %v10856_v15  ;;  %v2315_v34 = vadd.f32 1.0, %v10910_v18 }
 0x133   :  { %v1943_v44 = vmul.f32 1.442695, %v1792_v23  ;;  %9033 = vpow2.f32 %v1941_v26  ;;  %v10932_v50 = vadd.f32 %v10874_v35, %v10506_v54  ;;  %v2287_v2 = vsel %vm10919_vm13, %v2284_v11, %v2281_v41  ;;  %v758_v11 = vpop.f32.mrf.mxu0 }
 0x134   :  { %v9024_v7 = vpop.eup %9023  ;;  %v1793_v0 = vsub.f32 0.0, %v1665_v46  ;;  %8778 = vmatmul.mubr.f32.gmra.mxu1 %v7739_v43  ;;  %vm1399_vm14 = vcmp.ne.f32.partialorder %v10740_v39, %v10740_v39  ;;  %v3319_v29 = vadd.f32 %v2287_v2, %v1271_v32  ;;  %9035 = vlog2.f32 %v2315_v34 }
 0x135   :  { %v2290_v52 = vmul.f32 0.6931472, %v9024_v7  ;;  %v2293_v57 = vmul.f32 %v10856_v15, %v2292_v42  ;;  %v2301_v56 = vadd.f32 1.0, %v2300_v5  ;;  %v2309_v60 = vmul.f32 -0.5, %v10893_v58 }
 0x136   :  { %v3447_v35 = vsel %vm1399_vm14, %v10740_v39, %v3319_v29  ;;  %vm2295_vm15 = vcmp.lt.f32.partialorder %v2294_v38, 0.0004427343  ;;  %v2303_v61 = vand.u32 2147483647, %v10881_v40  ;;  %v2324_v16 = vadd.f32 1.0, %v10925_v14 }
 0x137   :  { %v1666_v36 = vand.u32 2147483647, %v10932_v50  ;;  %v10945_v63 = vadd.f32 %v8576_v31, %v10506_v54  ;;  %v7740_v32 = vadd.f32 -0.6931472, %v3447_v35  ;;  %v2296_v4 = vsel %vm2295_vm15, %v2293_v57, %v2290_v52 }
 0x138   :  { %v9026_v55 = vpop.eup %9025  ;;  %v1945_v48 = vmul.f32 1.442695, %v1793_v0  ;;  %v10948_v15 = vadd.f32 %v10506_v54, %v748_v51  ;;  %v3320_v39 = vadd.f32 %v2296_v4, %v1272_v33  ;;  %9037 = vlog2.f32 %v2324_v16 }
 0x139   :  { %8780 = vmatprep.mubr.f32.mxu1 %v7740_v32  ;;  %vm1400_vm0 = vcmp.ne.f32.partialorder %v10728_v24, %v10728_v24  ;;  %v2299_v8 = vmul.f32 0.6931472, %v9026_v55  ;;  %v2302_v9 = vmul.f32 %v10881_v40, %v2301_v56  ;;  %v2310_v12 = vadd.f32 1.0, %v2309_v60  ;;  %v8582_v60 = vpop.f32.mrf.mxu0 }
 0x13a   :  { %v10955_v22 = vpop.eup %9027  ;;  %v1273_v13 = vmax.f32 %v10762_v3, 0.0  ;;  %v3448_v54 = vsel %vm1400_vm0, %v10728_v24, %v3320_v39  ;;  %vm2304_vm1 = vcmp.lt.f32.partialorder %v2303_v61, 0.0004427343  ;;  %v2318_v17 = vmul.f32 -0.5, %v10910_v18 }
 0x13b   :  { %9039 = vpow2.f32 %v1943_v44  ;;  %v7741_v33 = vadd.f32 -0.6931472, %v3448_v54  ;;  %v2305_v23 = vsel %vm2304_vm1, %v2302_v9, %v2299_v8  ;;  %v2312_v19 = vand.u32 2147483647, %v10893_v58 }
 0x13c   :  { %v10961_v21 = vpop.eup %9029  ;;  %v1794_v47 = vsub.f32 0.0, %v1666_v36  ;;  %v1668_v40 = vand.u32 2147483647, %v10945_v63  ;;  %v1667_v26 = vand.u32 2147483647, %v10948_v15  ;;  %v3321_v46 = vadd.f32 %v2305_v23, %v1273_v13  ;;  %v768_v13 = vpop.f32.mrf.mxu0 }
 0x13d   :  { %v9032_v28 = vpop.eup %9031  ;;  %9041 = vpow2.f32 %v1945_v48  ;;  %8781 = vmatmul.mubr.f32.gmra.mxu1 %v7741_v33  ;;  %vm1401_vm2 = vcmp.ne.f32.partialorder %v10762_v3, %v10762_v3  ;;  %v2311_v24 = vmul.f32 %v10893_v58, %v2310_v12  ;;  %v2333_v30 = vadd.f32 1.0, %v10955_v22 }
 0x13e   :  { %v3449_v59 = vsel %vm1401_vm2, %v10762_v3, %v3321_v46  ;;  %v2308_v31 = vmul.f32 0.6931472, %v9032_v28  ;;  %v2319_v49 = vadd.f32 1.0, %v2318_v17  ;;  %v2327_v41 = vmul.f32 -0.5, %v10925_v14  ;;  %v10978_v3 = vld [vmem:[%s16823_s2] ss:$0 sm:$0xff] }
 0x13f   :  { %v7742_v42 = vadd.f32 -0.6931472, %v3449_v59  ;;  %vm2313_vm3 = vcmp.lt.f32.partialorder %v2312_v19, 0.0004427343  ;;  %v2321_v5 = vand.u32 2147483647, %v10910_v18  ;;  %9043 = vlog2.f32 %v2333_v30 }
 0x140   :  { %v10972_v43 = vpop.eup %9033  ;;  %v1275_v38 = vmax.f32 %v10811_v10, 0.0  ;;  %v1947_v34 = vmul.f32 1.442695, %v1794_v47  ;;  %v1795_v58 = vsub.f32 0.0, %v1667_v26  ;;  %v2314_v44 = vsel %vm2313_vm3, %v2311_v24, %v2308_v31  ;;  %v11013_v24 = vpop.f32.mrf.mxu0 }
 0x141   :  { %v9036_v2 = vpop.eup %9035  ;;  %v1796_v7 = vsub.f32 0.0, %v1668_v40  ;;  %v10981_v0 = vadd.f32 %v10978_v3, %v758_v11  ;;  %8783 = vmatprep.mubr.f32.mxu1 %v7742_v42  ;;  %v3322_v29 = vadd.f32 %v2314_v44, %v1274_v62  ;;  %v2342_v51 = vadd.f32 1.0, %v10961_v21 }
 0x142   :  { %vm1402_vm4 = vcmp.ne.f32.partialorder %v10759_v1, %v10759_v1  ;;  %v2317_v52 = vmul.f32 0.6931472, %v9036_v2  ;;  %v2320_v57 = vmul.f32 %v10910_v18, %v2319_v49  ;;  %v2328_v56 = vadd.f32 1.0, %v2327_v41 }
 0x143   :  { %v3450_v35 = vsel %vm1402_vm4, %v10759_v1, %v3322_v29  ;;  %vm2322_vm5 = vcmp.lt.f32.partialorder %v2321_v5, 0.0004427343  ;;  %v2330_v61 = vand.u32 2147483647, %v10925_v14  ;;  %9045 = vlog2.f32 %v2342_v51 }
 0x144   :  { %v1949_v16 = vmul.f32 1.442695, %v1795_v58  ;;  %v10992_v36 = vadd.f32 %v10978_v3, %v8579_v45  ;;  %v7743_v62 = vadd.f32 -0.6931472, %v3450_v35  ;;  %v2323_v32 = vsel %vm2322_vm5, %v2320_v57, %v2317_v52 }
 0x145   :  { %v9038_v4 = vpop.eup %9037  ;;  %v1276_v55 = vmax.f32 %v10825_v25, 0.0  ;;  %9047 = vpow2.f32 %v1947_v34  ;;  %v3323_v48 = vadd.f32 %v2323_v32, %v1275_v38  ;;  %v2336_v18 = vmul.f32 -0.5, %v10955_v22 }
 0x146   :  { %8784 = vmatmul.mubr.f32.gmra.mxu1 %v7743_v62  ;;  %vm1403_vm6 = vcmp.ne.f32.partialorder %v10811_v10, %v10811_v10  ;;  %v2326_v1 = vmul.f32 0.6931472, %v9038_v4  ;;  %v2329_v39 = vmul.f32 %v10925_v14, %v2328_v56  ;;  %v2351_v8 = vadd.f32 1.0, %v10972_v43 }
 0x147   :  { %v1951_v9 = vmul.f32 1.442695, %v1796_v7  ;;  %v1669_v12 = vand.u32 2147483647, %v10981_v0  ;;  %v3451_v45 = vsel %vm1403_vm6, %v10811_v10, %v3323_v48  ;;  %vm2331_vm7 = vcmp.lt.f32.partialorder %v2330_v61, 0.0004427343  ;;  %v778_v7 = vpop.f32.mrf.mxu0 }
 0x148   :  { %v11002_v54 = vpop.eup %9039  ;;  %9049 = vpow2.f32 %v1949_v16  ;;  %v1670_v17 = vand.u32 2147483647, %v10992_v36  ;;  %v7744_v33 = vadd.f32 -0.6931472, %v3451_v45  ;;  %v2332_v23 = vsel %vm2331_vm7, %v2329_v39, %v2326_v1 }
 0x149   :  { %v3324_v19 = vadd.f32 %v2332_v23, %v1276_v55  ;;  %v2337_v47 = vadd.f32 1.0, %v2336_v18  ;;  %v2345_v14 = vmul.f32 -0.5, %v10961_v21  ;;  %9051 = vlog2.f32 %v2351_v8  ;;  %v11038_v48 = vpop.f32.mrf.mxu0 }
 0x14a   :  { %v11006_v40 = vpop.eup %9041  ;;  %v1278_v26 = vmax.f32 %v10853_v20, 0.0  ;;  %8786 = vmatprep.mubr.f32.mxu1 %v7744_v33  ;;  %vm1404_vm8 = vcmp.ne.f32.partialorder %v10825_v25, %v10825_v25  ;;  %v2339_v10 = vand.u32 2147483647, %v10955_v22  ;;  %v1277_v46 = vmax.f32 %v10840_v53, 0.0 }
 0x14b   :  { %v1797_v28 = vsub.f32 0.0, %v1669_v12  ;;  %v3452_v30 = vsel %vm1404_vm8, %v10825_v25, %v3324_v19  ;;  %v2360_v11 = vadd.f32 1.0, %v11002_v54  ;;  %v1798_v31 = vsub.f32 0.0, %v1670_v17 }
 0x14c   :  { %v9044_v59 = vpop.eup %9043  ;;  %v11018_v49 = vadd.f32 %v10978_v3, %v8582_v60  ;;  %v11021_v41 = vadd.f32 %v10978_v3, %v768_v13  ;;  %v7745_v42 = vadd.f32 -0.6931472, %v3452_v30  ;;  %9053 = vpow2.f32 %v1951_v9 }
 0x14d   :  { %v2335_v5 = vmul.f32 0.6931472, %v9044_v59  ;;  %v2338_v38 = vmul.f32 %v10955_v22, %v2337_v47  ;;  %v2346_v34 = vadd.f32 1.0, %v2345_v14  ;;  %vm2340_vm9 = vcmp.lt.f32.partialorder %v2339_v10, 0.0004427343  ;;  %v788_v47 = vpop.f32.mrf.mxu0 }
 0x14e   :  { %8787 = vmatmul.mubr.f32.gmra.mxu1 %v7745_v42  ;;  %v2348_v25 = vand.u32 2147483647, %v10961_v21  ;;  %v2354_v58 = vmul.f32 -0.5, %v10972_v43  ;;  %9055 = vlog2.f32 %v2360_v11  ;;  %v1280_v44 = vmax.f32 %v10878_v37, 0.0 }
 0x14f   :  { %v1953_v2 = vmul.f32 1.442695, %v1797_v28  ;;  %v2341_v29 = vsel %vm2340_vm9, %v2338_v38, %v2335_v5  ;;  %v2369_v51 = vadd.f32 1.0, %v11006_v40  ;;  %v1955_v57 = vmul.f32 1.442695, %v1798_v31 }
 0x150   :  { %v9046_v52 = vpop.eup %9045  ;;  %v1672_v56 = vand.u32 2147483647, %v11018_v49  ;;  %v1671_v22 = vand.u32 2147483647, %v11021_v41  ;;  %v3325_v60 = vadd.f32 %v2341_v29, %v1277_v46  ;;  %vm1405_vm10 = vcmp.ne.f32.partialorder %v10840_v53, %v10840_v53 }
 0x151   :  { %v2344_v35 = vmul.f32 0.6931472, %v9046_v52  ;;  %v2347_v61 = vmul.f32 %v10961_v21, %v2346_v34  ;;  %9057 = vlog2.f32 %v2369_v51  ;;  %vm2349_vm11 = vcmp.lt.f32.partialorder %v2348_v25, 0.0004427343 }
 0x152   :  { %v11033_v16 = vpop.eup %9047  ;;  %v3453_v62 = vsel %vm1405_vm10, %v10840_v53, %v3325_v60  ;;  %v2355_v32 = vadd.f32 1.0, %v2354_v58  ;;  %v2363_v4 = vmul.f32 -0.5, %v11002_v54  ;;  %v1279_v55 = vmax.f32 %v10868_v27, 0.0 }
 0x153   :  { %9059 = vpow2.f32 %v1953_v2  ;;  %v7746_v18 = vadd.f32 -0.6931472, %v3453_v62  ;;  %v2350_v1 = vsel %vm2349_vm11, %v2347_v61, %v2344_v35  ;;  %v1282_v39 = vmax.f32 %v10932_v50, 0.0 }
 0x154   :  { %9061 = vpow2.f32 %v1955_v57  ;;  %v3326_v21 = vadd.f32 %v2350_v1, %v1278_v26  ;;  %v2357_v8 = vand.u32 2147483647, %v10972_v43  ;;  %v1800_v53 = vsub.f32 0.0, %v1672_v56  ;;  %v11074_v57 = vpop.f32.mrf.mxu0 }
 0x155   :  { %v11042_v9 = vpop.eup %9049  ;;  %v1799_v12 = vsub.f32 0.0, %v1671_v22  ;;  %8789 = vmatprep.mubr.f32.mxu1 %v7746_v18  ;;  %vm1406_vm12 = vcmp.ne.f32.partialorder %v10853_v20, %v10853_v20  ;;  %v2378_v13 = vadd.f32 1.0, %v11033_v16  ;;  %v11048_v17 = vadd.f32 %v10978_v3, %v778_v7 }
 0x156   :  { %v9052_v45 = vpop.eup %9051  ;;  %v3454_v33 = vsel %vm1406_vm12, %v10853_v20, %v3326_v21  ;;  %v2356_v23 = vmul.f32 %v10972_v43, %v2355_v32  ;;  %v2364_v19 = vadd.f32 1.0, %v2363_v4  ;;  %v2372_v10 = vmul.f32 -0.5, %v11006_v40 }
 0x157   :  { %v7747_v14 = vadd.f32 -0.6931472, %v3454_v33  ;;  %v2353_v26 = vmul.f32 0.6931472, %v9052_v45  ;;  %9063 = vlog2.f32 %v2378_v13  ;;  %v1281_v46 = vmax.f32 %v10902_v6, 0.0 }
 0x158   :  { %v1284_v28 = vmax.f32 %v10945_v63, 0.0  ;;  %vm2358_vm13 = vcmp.lt.f32.partialorder %v2357_v8, 0.0004427343  ;;  %v2387_v30 = vadd.f32 1.0, %v11042_v9  ;;  %v1957_v11 = vmul.f32 1.442695, %v1799_v12  ;;  %v798_v8 = vpop.f32.mrf.mxu0 }
 0x159   :  { %v11058_v20 = vadd.f32 %v10978_v3, %v11013_v24  ;;  %8790 = vmatmul.mubr.f32.gmra.mxu1 %v7747_v14  ;;  %v2359_v43 = vsel %vm2358_vm13, %v2356_v23, %v2353_v26  ;;  %v2366_v59 = vand.u32 2147483647, %v11002_v54  ;;  %v11061_v31 = vpop.eup %9053  ;;  %v1959_v42 = vmul.f32 1.442695, %v1800_v53 }
 0x15a   :  { %v1673_v5 = vand.u32 2147483647, %v11048_v17  ;;  %v11065_v38 = vadd.f32 %v10978_v3, %v788_v47  ;;  %v3327_v34 = vadd.f32 %v2359_v43, %v1279_v55  ;;  %vm1407_vm14 = vcmp.ne.f32.partialorder %v10868_v27, %v10868_v27 }
 0x15b   :  { %v9056_v25 = vpop.eup %9055  ;;  %v2365_v24 = vmul.f32 %v11002_v54, %v2364_v19  ;;  %v2373_v58 = vadd.f32 1.0, %v2372_v10  ;;  %9065 = vlog2.f32 %v2387_v30  ;;  %v2375_v29 = vand.u32 2147483647, %v11006_v40 }
 0x15c   :  { %v3455_v2 = vsel %vm1407_vm14, %v10868_v27, %v3327_v34  ;;  %v2362_v7 = vmul.f32 0.6931472, %v9056_v25  ;;  %v2381_v51 = vmul.f32 -0.5, %v11033_v16  ;;  %9067 = vpow2.f32 %v1957_v11 }
 0x15d   :  { %v1674_v52 = vand.u32 2147483647, %v11058_v20  ;;  %v7748_v56 = vadd.f32 -0.6931472, %v3455_v2  ;;  %vm2367_vm15 = vcmp.lt.f32.partialorder %v2366_v59, 0.0004427343  ;;  %vm1408_vm0 = vcmp.ne.f32.partialorder %v10878_v37, %v10878_v37 }
 0x15e   :  { %v9058_v22 = vpop.eup %9057  ;;  %v1801_v60 = vsub.f32 0.0, %v1673_v5  ;;  %v1675_v54 = vand.u32 2147483647, %v11065_v38  ;;  %v2368_v35 = vsel %vm2367_vm15, %v2365_v24, %v2362_v7  ;;  %v2396_v61 = vadd.f32 1.0, %v11061_v31 }
 0x15f   :  { %8792 = vmatprep.mubr.f32.mxu1 %v7748_v56  ;;  %v3328_v27 = vadd.f32 %v2368_v35, %v1280_v44  ;;  %v2371_v62 = vmul.f32 0.6931472, %v9058_v22  ;;  %v2374_v32 = vmul.f32 %v11006_v40, %v2373_v58  ;;  %vm2376_vm1 = vcmp.lt.f32.partialorder %v2375_v29, 0.0004427343  ;;  %v8594_v58 = vpop.f32.mrf.mxu0 }
 0x160   :  { %v11083_v4 = vpop.eup %9059  ;;  %v2382_v55 = vadd.f32 1.0, %v2381_v51  ;;  %v2390_v18 = vmul.f32 -0.5, %v11042_v9  ;;  %9069 = vlog2.f32 %v2396_v61  ;;  %v1802_v21 = vsub.f32 0.0, %v1674_v52 }
 0x161   :  { %v11086_v1 = vpop.eup %9061  ;;  %9071 = vpow2.f32 %v1959_v42  ;;  %v3456_v53 = vsel %vm1408_vm0, %v10878_v37, %v3328_v27  ;;  %v2377_v12 = vsel %vm2376_vm1, %v2374_v32, %v2371_v62  ;;  %v1961_v13 = vmul.f32 1.442695, %v1801_v60 }
 0x162   :  { %v7749_v44 = vadd.f32 -0.6931472, %v3456_v53  ;;  %v3329_v45 = vadd.f32 %v2377_v12, %v1281_v46  ;;  %v2384_v40 = vand.u32 2147483647, %v11033_v16  ;;  %v11092_v33 = vadd.f32 %v10978_v3, %v11038_v48 }
 0x163   :  { %v1803_v23 = vsub.f32 0.0, %v1675_v54  ;;  %vm1409_vm2 = vcmp.ne.f32.partialorder %v10902_v6, %v10902_v6  ;;  %v2405_v19 = vadd.f32 1.0, %v11083_v4  ;;  %v11098_v14 = vadd.f32 %v10978_v3, %v798_v8 }
 0x164   :  { %v9064_v47 = vpop.eup %9063  ;;  %8793 = vmatmul.mubr.f32.gmra.mxu1 %v7749_v44  ;;  %v3457_v37 = vsel %vm1409_vm2, %v10902_v6, %v3329_v45  ;;  %v2383_v26 = vmul.f32 %v11033_v16, %v2382_v55  ;;  %v2391_v10 = vadd.f32 1.0, %v2390_v18  ;;  %v2399_v48 = vmul.f32 -0.5, %v11061_v31 }
 0x165   :  { %v7750_v46 = vadd.f32 -0.6931472, %v3457_v37  ;;  %v2380_v30 = vmul.f32 0.6931472, %v9064_v47  ;;  %9073 = vlog2.f32 %v2405_v19  ;;  %v1283_v11 = vmax.f32 %v10948_v15, 0.0 }
 0x166   :  { %9075 = vpow2.f32 %v1961_v13  ;;  %vm2385_vm3 = vcmp.lt.f32.partialorder %v2384_v40, 0.0004427343  ;;  %v2393_v43 = vand.u32 2147483647, %v11042_v9  ;;  %v1286_v59 = vmax.f32 %v10992_v36, 0.0 }
 0x167   :  { %v1963_v42 = vmul.f32 1.442695, %v1802_v21  ;;  %8795 = vmatprep.mubr.f32.mxu1 %v7750_v46  ;;  %v2386_v5 = vsel %vm2385_vm3, %v2383_v26, %v2380_v30  ;;  %v2414_v6 = vadd.f32 1.0, %v11086_v1  ;;  %v1676_v34 = vand.u32 2147483647, %v11092_v33 }
 0x168   :  { %v9066_v16 = vpop.eup %9065  ;;  %v1965_v25 = vmul.f32 1.442695, %v1803_v23  ;;  %v1677_v24 = vand.u32 2147483647, %v11098_v14  ;;  %v3330_v2 = vadd.f32 %v2386_v5, %v1282_v39  ;;  %vm1410_vm4 = vcmp.ne.f32.partialorder %v10932_v50, %v10932_v50 }
 0x169   :  { %v2389_v7 = vmul.f32 0.6931472, %v9066_v16  ;;  %v2392_v29 = vmul.f32 %v11042_v9, %v2391_v10  ;;  %v2400_v51 = vadd.f32 1.0, %v2399_v48  ;;  %v11114_v52 = vpop.eup %9067  ;;  %vm2394_vm5 = vcmp.lt.f32.partialorder %v2393_v43, 0.0004427343  ;;  %v808_v9 = vpop.f32.mrf.mxu0 }
 0x16a   :  { %v3458_v56 = vsel %vm1410_vm4, %v10932_v50, %v3330_v2  ;;  %v2408_v22 = vmul.f32 -0.5, %v11083_v4  ;;  %9077 = vlog2.f32 %v2414_v6  ;;  %v2402_v39 = vand.u32 2147483647, %v11061_v31 }
 0x16b   :  { %9079 = vpow2.f32 %v1963_v42  ;;  %v7751_v60 = vadd.f32 -0.6931472, %v3458_v56  ;;  %v2395_v54 = vsel %vm2394_vm5, %v2392_v29, %v2389_v7  ;;  %v1804_v35 = vsub.f32 0.0, %v1676_v34  ;;  %v11133_v40 = vpop.f32.mrf.mxu0 }
 0x16c   :  { %9081 = vpow2.f32 %v1965_v25  ;;  %v11121_v61 = vadd.f32 %v10978_v3, %v11074_v57  ;;  %v3331_v27 = vadd.f32 %v2395_v54, %v1283_v11  ;;  %v1805_v32 = vsub.f32 0.0, %v1677_v24 }
 0x16d   :  { %v9070_v62 = vpop.eup %9069  ;;  %8796 = vmatmul.mubr.f32.gmra.mxu1 %v7751_v60  ;;  %vm1411_vm6 = vcmp.ne.f32.partialorder %v10948_v15, %v10948_v15  ;;  %v2401_v50 = vmul.f32 %v11061_v31, %v2400_v51  ;;  %v2423_v55 = vadd.f32 1.0, %v11114_v52  ;;  %v2409_v53 = vadd.f32 1.0, %v2408_v22  ;;  %v818_v5 = vpop.f32.mrf.mxu0 }
 0x16e   :  { %v11127_v18 = vpop.eup %9071  ;;  %v3459_v21 = vsel %vm1411_vm6, %v10948_v15, %v3331_v27  ;;  %v2398_v8 = vmul.f32 0.6931472, %v9070_v62  ;;  %v2417_v57 = vmul.f32 -0.5, %v11086_v1  ;;  %v1285_v12 = vmax.f32 %v10981_v0, 0.0 }
 0x16f   :  { %v7752_v13 = vadd.f32 -0.6931472, %v3459_v21  ;;  %vm2403_vm7 = vcmp.lt.f32.partialorder %v2402_v39, 0.0004427343  ;;  %9083 = vlog2.f32 %v2423_v55  ;;  %v1967_v44 = vmul.f32 1.442695, %v1804_v35  ;;  %v11171_v27 = vpop.f32.mrf.mxu0 }
 0x170   :  { %v1678_v45 = vand.u32 2147483647, %v11121_v61  ;;  %v2404_v31 = vsel %vm2403_vm7, %v2401_v50, %v2398_v8  ;;  %v2411_v23 = vand.u32 2147483647, %v11083_v4  ;;  %v1969_v19 = vmul.f32 1.442695, %v1805_v32 }
 0x171   :  { %v11137_v15 = vadd.f32 %v10978_v3, %v8594_v58  ;;  %8798 = vmatprep.mubr.f32.mxu1 %v7752_v13  ;;  %v3332_v47 = vadd.f32 %v2404_v31, %v1284_v28  ;;  %v2432_v37 = vadd.f32 1.0, %v11127_v18  ;;  %v11143_v10 = vadd.f32 %v10978_v3, %v808_v9 }
 0x172   :  { %v9074_v26 = vpop.eup %9073  ;;  %vm1412_vm8 = vcmp.ne.f32.partialorder %v10945_v63, %v10945_v63  ;;  %v2410_v46 = vmul.f32 %v11083_v4, %v2409_v53  ;;  %v2418_v30 = vadd.f32 1.0, %v2417_v57  ;;  %v2426_v42 = vmul.f32 -0.5, %v11114_v52 }
 0x173   :  { %v11148_v48 = vpop.eup %9075  ;;  %v3460_v11 = vsel %vm1412_vm8, %v10945_v63, %v3332_v47  ;;  %v2407_v43 = vmul.f32 0.6931472, %v9074_v26  ;;  %9085 = vlog2.f32 %v2432_v37  ;;  %v1288_v28 = vmax.f32 %v11018_v49, 0.0 }
 0x174   :  { %9087 = vpow2.f32 %v1967_v44  ;;  %v7753_v6 = vadd.f32 -0.6931472, %v3460_v11  ;;  %vm2412_vm9 = vcmp.lt.f32.partialorder %v2411_v23, 0.0004427343  ;;  %v1806_v16 = vsub.f32 0.0, %v1678_v45  ;;  %v828_v45 = vpop.f32.mrf.mxu0 }
 0x175   :  { %v1680_v34 = vand.u32 2147483647, %v11137_v15  ;;  %v2413_v25 = vsel %vm2412_vm9, %v2410_v46, %v2407_v43  ;;  %v2420_v4 = vand.u32 2147483647, %v11086_v1  ;;  %9089 = vpow2.f32 %v1969_v19 }
 0x176   :  { %v1679_v24 = vand.u32 2147483647, %v11143_v10  ;;  %8799 = vmatmul.mubr.f32.gmra.mxu1 %v7753_v6  ;;  %v3333_v63 = vadd.f32 %v2413_v25, %v1285_v12  ;;  %v2441_v58 = vadd.f32 1.0, %v11148_v48  ;;  %v11158_v7 = vadd.f32 %v10978_v3, %v818_v5 }
 0x177   :  { %v9078_v2 = vpop.eup %9077  ;;  %vm1413_vm10 = vcmp.ne.f32.partialorder %v10981_v0, %v10981_v0  ;;  %v2419_v29 = vmul.f32 %v11086_v1, %v2418_v30  ;;  %v2427_v51 = vadd.f32 1.0, %v2426_v42  ;;  %v2435_v54 = vmul.f32 -0.5, %v11127_v18 }
 0x178   :  { %v11163_v56 = vpop.eup %9079  ;;  %v3461_v22 = vsel %vm1413_vm10, %v10981_v0, %v3333_v63  ;;  %v2416_v60 = vmul.f32 0.6931472, %v9078_v2  ;;  %9091 = vlog2.f32 %v2441_v58  ;;  %v1287_v35 = vmax.f32 %v11021_v41, 0.0 }
 0x179   :  { %v11167_v39 = vpop.eup %9081  ;;  %v1290_v9 = vmax.f32 %v11058_v20, 0.0  ;;  %v7754_v62 = vadd.f32 -0.6931472, %v3461_v22  ;;  %vm2421_vm11 = vcmp.lt.f32.partialorder %v2420_v4, 0.0004427343  ;;  %v1289_v1 = vmax.f32 %v11048_v17, 0.0 }
 0x17a   :  { %v1971_v32 = vmul.f32 1.442695, %v1806_v16  ;;  %v2422_v50 = vsel %vm2421_vm11, %v2419_v29, %v2416_v60  ;;  %v2429_v0 = vand.u32 2147483647, %v11114_v52  ;;  %v1808_v55 = vsub.f32 0.0, %v1680_v34 }
 0x17b   :  { %v1807_v21 = vsub.f32 0.0, %v1679_v24  ;;  %8801 = vmatprep.mubr.f32.mxu1 %v7754_v62  ;;  %v3334_v8 = vadd.f32 %v2422_v50, %v1286_v59  ;;  %v2450_v53 = vadd.f32 1.0, %v11163_v56  ;;  %v1681_v12 = vand.u32 2147483647, %v11158_v7 }
 0x17c   :  { %v9084_v57 = vpop.eup %9083  ;;  %vm1414_vm12 = vcmp.ne.f32.partialorder %v10992_v36, %v10992_v36  ;;  %v2428_v13 = vmul.f32 %v11114_v52, %v2427_v51  ;;  %v2436_v44 = vadd.f32 1.0, %v2435_v54  ;;  %v2444_v19 = vmul.f32 -0.5, %v11148_v48 }
 0x17d   :  { %v3462_v31 = vsel %vm1414_vm12, %v10992_v36, %v3334_v8  ;;  %v2425_v23 = vmul.f32 0.6931472, %v9084_v57  ;;  %9093 = vlog2.f32 %v2450_v53  ;;  %vm2430_vm13 = vcmp.lt.f32.partialorder %v2429_v0, 0.0004427343 }
 0x17e   :  { %9095 = vpow2.f32 %v1971_v32  ;;  %v7755_v59 = vadd.f32 -0.6931472, %v3462_v31  ;;  %v2438_v47 = vand.u32 2147483647, %v11127_v18  ;;  %v1973_v37 = vmul.f32 1.442695, %v1807_v21 }
 0x17f   :  { %v11187_v26 = vadd.f32 %v10978_v3, %v11133_v40  ;;  %v2431_v46 = vsel %vm2430_vm13, %v2428_v13, %v2425_v23  ;;  %v2459_v52 = vadd.f32 1.0, %v11167_v39  ;;  %v1809_v11 = vsub.f32 0.0, %v1681_v12 }
 0x180   :  { %v9086_v30 = vpop.eup %9085  ;;  %v11191_v36 = vadd.f32 %v10978_v3, %v828_v45  ;;  %8802 = vmatmul.mubr.f32.gmra.mxu1 %v7755_v59  ;;  %vm1415_vm14 = vcmp.ne.f32.partialorder %v11021_v41, %v11021_v41  ;;  %v3335_v43 = vadd.f32 %v2431_v46, %v1287_v35  ;;  %v2437_v6 = vmul.f32 %v11127_v18, %v2436_v44  ;;  %v8603_v18 = vpop.f32.mrf.mxu0 }
 0x181   :  { %v11195_v42 = vpop.eup %9087  ;;  %v2434_v5 = vmul.f32 0.6931472, %v9086_v30  ;;  %v2445_v40 = vadd.f32 1.0, %v2444_v19  ;;  %9097 = vlog2.f32 %v2459_v52  ;;  %v1975_v16 = vmul.f32 1.442695, %v1808_v55 }
 0x182   :  { %v3463_v34 = vsel %vm1415_vm14, %v11021_v41, %v3335_v43  ;;  %vm2439_vm15 = vcmp.lt.f32.partialorder %v2438_v47, 0.0004427343  ;;  %v2453_v25 = vmul.f32 -0.5, %v11163_v56  ;;  %v11200_v4 = vpop.eup %9089  ;;  %9099 = vpow2.f32 %v1973_v37  ;;  %v838_v21 = vpop.f32.mrf.mxu0 }
 0x183   :  { %v7756_v24 = vadd.f32 -0.6931472, %v3463_v34  ;;  %v2440_v63 = vsel %vm2439_vm15, %v2437_v6, %v2434_v5  ;;  %v2447_v58 = vand.u32 2147483647, %v11148_v48  ;;  %v1292_v2 = vmax.f32 %v11092_v33, 0.0 }
 0x184   :  { %v1682_v29 = vand.u32 2147483647, %v11187_v26  ;;  %v3336_v51 = vadd.f32 %v2440_v63, %v1288_v28  ;;  %v2468_v41 = vadd.f32 1.0, %v11195_v42  ;;  %v1977_v60 = vmul.f32 1.442695, %v1809_v11  ;;  %v11231_v37 = vpop.f32.mrf.mxu0 }
 0x185   :  { %v9092_v22 = vpop.eup %9091  ;;  %v1683_v54 = vand.u32 2147483647, %v11191_v36  ;;  %8804 = vmatprep.mubr.f32.mxu1 %v7756_v24  ;;  %vm1416_vm0 = vcmp.ne.f32.partialorder %v11018_v49, %v11018_v49  ;;  %v2446_v35 = vmul.f32 %v11148_v48, %v2445_v40  ;;  %v2454_v50 = vadd.f32 1.0, %v2453_v25 }
 0x186   :  { %v3464_v62 = vsel %vm1416_vm0, %v11018_v49, %v3336_v51  ;;  %v2443_v32 = vmul.f32 0.6931472, %v9092_v22  ;;  %9101 = vlog2.f32 %v2468_v41  ;;  %vm2448_vm1 = vcmp.lt.f32.partialorder %v2447_v58, 0.0004427343  ;;  %v848_v24 = vpop.f32.mrf.mxu0 }
 0x187   :  { %9103 = vpow2.f32 %v1975_v16  ;;  %v7757_v0 = vadd.f32 -0.6931472, %v3464_v62  ;;  %v2462_v28 = vmul.f32 -0.5, %v11167_v39  ;;  %v1291_v55 = vmax.f32 %v11065_v38, 0.0 }
 0x188   :  { %v2449_v8 = vsel %vm2448_vm1, %v2446_v35, %v2443_v32  ;;  %v2456_v53 = vand.u32 2147483647, %v11163_v56  ;;  %v2477_v57 = vadd.f32 1.0, %v11200_v4  ;;  %v1810_v12 = vsub.f32 0.0, %v1682_v29 }
 0x189   :  { %9105 = vpow2.f32 %v1977_v60  ;;  %v11219_v49 = vadd.f32 %v10978_v3, %v11171_v27  ;;  %8805 = vmatmul.mubr.f32.gmra.mxu1 %v7757_v0  ;;  %v3337_v48 = vadd.f32 %v2449_v8, %v1289_v1  ;;  %v1811_v44 = vsub.f32 0.0, %v1683_v54 }
 0x18a   :  { %v9094_v13 = vpop.eup %9093  ;;  %vm1417_vm2 = vcmp.ne.f32.partialorder %v11048_v17, %v11048_v17  ;;  %v2455_v45 = vmul.f32 %v11163_v56, %v2454_v50  ;;  %v2465_v31 = vand.u32 2147483647, %v11167_v39  ;;  %v2463_v27 = vadd.f32 1.0, %v2462_v28 }
 0x18b   :  { %v11227_v23 = vpop.eup %9095  ;;  %v3465_v19 = vsel %vm1417_vm2, %v11048_v17, %v3337_v48  ;;  %v2452_v59 = vmul.f32 0.6931472, %v9094_v13  ;;  %9107 = vlog2.f32 %v2477_v57  ;;  %v1294_v47 = vmax.f32 %v11121_v61, 0.0 }
 0x18c   :  { %v7758_v1 = vadd.f32 -0.6931472, %v3465_v19  ;;  %vm2457_vm3 = vcmp.lt.f32.partialorder %v2456_v53, 0.0004427343  ;;  %v2471_v46 = vmul.f32 -0.5, %v11195_v42  ;;  %v11236_v30 = vadd.f32 %v10978_v3, %v8603_v18 }
 0x18d   :  { %v1979_v52 = vmul.f32 1.442695, %v1810_v12  ;;  %v1684_v56 = vand.u32 2147483647, %v11219_v49  ;;  %v2458_v11 = vsel %vm2457_vm3, %v2455_v45, %v2452_v59  ;;  %v1981_v17 = vmul.f32 1.442695, %v1811_v44 }
 0x18e   :  { %v9098_v43 = vpop.eup %9097  ;;  %v11239_v5 = vadd.f32 %v10978_v3, %v838_v21  ;;  %8807 = vmatprep.mubr.f32.mxu1 %v7758_v1  ;;  %v3338_v6 = vadd.f32 %v2458_v11, %v1290_v9  ;;  %v2486_v40 = vadd.f32 1.0, %v11227_v23  ;;  %vm1418_vm4 = vcmp.ne.f32.partialorder %v11058_v20, %v11058_v20 }
 0x18f   :  { %v2461_v16 = vmul.f32 0.6931472, %v9098_v43  ;;  %v2464_v34 = vmul.f32 %v11167_v39, %v2463_v27  ;;  %vm2466_vm5 = vcmp.lt.f32.partialorder %v2465_v31, 0.0004427343  ;;  %v11247_v25 = vpop.eup %9099  ;;  %v2472_v58 = vadd.f32 1.0, %v2471_v46  ;;  %v8609_v27 = vpop.f32.mrf.mxu0 }
 0x190   :  { %v3466_v63 = vsel %vm1418_vm4, %v11058_v20, %v3338_v6  ;;  %v2480_v29 = vmul.f32 -0.5, %v11200_v4  ;;  %9109 = vlog2.f32 %v2486_v40  ;;  %v2474_v51 = vand.u32 2147483647, %v11195_v42 }
 0x191   :  { %9111 = vpow2.f32 %v1979_v52  ;;  %v7759_v9 = vadd.f32 -0.6931472, %v3466_v63  ;;  %v2467_v18 = vsel %vm2466_vm5, %v2464_v34, %v2461_v16  ;;  %v1812_v41 = vsub.f32 0.0, %v1684_v56  ;;  %v858_v63 = vpop.f32.mrf.mxu0 }
 0x192   :  { %9113 = vpow2.f32 %v1981_v17  ;;  %v1686_v22 = vand.u32 2147483647, %v11236_v30  ;;  %v3339_v39 = vadd.f32 %v2467_v18, %v1291_v55  ;;  %v1685_v54 = vand.u32 2147483647, %v11239_v5 }
 0x193   :  { %v9102_v60 = vpop.eup %9101  ;;  %v11255_v35 = vadd.f32 %v10978_v3, %v848_v24  ;;  %8808 = vmatmul.mubr.f32.gmra.mxu1 %v7759_v9  ;;  %vm1419_vm6 = vcmp.ne.f32.partialorder %v11065_v38, %v11065_v38  ;;  %v2495_v20 = vadd.f32 1.0, %v11247_v25  ;;  %v2473_v0 = vmul.f32 %v11195_v42, %v2472_v58 }
 0x194   :  { %v11260_v62 = vpop.eup %9103  ;;  %v3467_v32 = vsel %vm1419_vm6, %v11065_v38, %v3339_v39  ;;  %v2470_v50 = vmul.f32 0.6931472, %v9102_v60  ;;  %v2481_v28 = vadd.f32 1.0, %v2480_v29  ;;  %vm2475_vm7 = vcmp.lt.f32.partialorder %v2474_v51, 0.0004427343 }
 0x195   :  { %v7760_v55 = vadd.f32 -0.6931472, %v3467_v32  ;;  %v2489_v21 = vmul.f32 -0.5, %v11227_v23  ;;  %9115 = vlog2.f32 %v2495_v20  ;;  %v1293_v53 = vmax.f32 %v11098_v14, 0.0  ;;  %v11299_v32 = vpop.f32.mrf.mxu0 }
 0x196   :  { %v11265_v8 = vpop.eup %9105  ;;  %v1983_v57 = vmul.f32 1.442695, %v1812_v41  ;;  %v2476_v12 = vsel %vm2475_vm7, %v2473_v0, %v2470_v50  ;;  %v2483_v48 = vand.u32 2147483647, %v11200_v4  ;;  %v1296_v13 = vmax.f32 %v11137_v15, 0.0 }
 0x197   :  { %v1813_v38 = vsub.f32 0.0, %v1685_v54  ;;  %8810 = vmatprep.mubr.f32.mxu1 %v7760_v55  ;;  %v3340_v42 = vadd.f32 %v2476_v12, %v1292_v2  ;;  %v2504_v44 = vadd.f32 1.0, %v11260_v62  ;;  %v1814_v31 = vsub.f32 0.0, %v1686_v22 }
 0x198   :  { %v9108_v45 = vpop.eup %9107  ;;  %v1687_v19 = vand.u32 2147483647, %v11255_v35  ;;  %vm1420_vm8 = vcmp.ne.f32.partialorder %v11092_v33, %v11092_v33  ;;  %v2482_v59 = vmul.f32 %v11200_v4, %v2481_v28  ;;  %v2490_v52 = vadd.f32 1.0, %v2489_v21 }
 0x199   :  { %v3468_v1 = vsel %vm1420_vm8, %v11092_v33, %v3340_v42  ;;  %v2479_v46 = vmul.f32 0.6931472, %v9108_v45  ;;  %9117 = vlog2.f32 %v2504_v44  ;;  %vm2484_vm9 = vcmp.lt.f32.partialorder %v2483_v48, 0.0004427343  ;;  %v868_v45 = vpop.f32.mrf.mxu0 }
 0x19a   :  { %9119 = vpow2.f32 %v1983_v57  ;;  %v7761_v56 = vadd.f32 -0.6931472, %v3468_v1  ;;  %v2498_v2 = vmul.f32 -0.5, %v11247_v25  ;;  %v1985_v11 = vmul.f32 1.442695, %v1813_v38 }
 0x19b   :  { %v2485_v43 = vsel %vm2484_vm9, %v2482_v59, %v2479_v46  ;;  %v2492_v17 = vand.u32 2147483647, %v11227_v23  ;;  %v2513_v6 = vadd.f32 1.0, %v11265_v8  ;;  %v1295_v40 = vmax.f32 %v11143_v10, 0.0 }
 0x19c   :  { %v1987_v4 = vmul.f32 1.442695, %v1814_v31  ;;  %v11284_v33 = vadd.f32 %v10978_v3, %v11231_v37  ;;  %8811 = vmatmul.mubr.f32.gmra.mxu1 %v7761_v56  ;;  %v3341_v16 = vadd.f32 %v2485_v43, %v1293_v53  ;;  %v1815_v24 = vsub.f32 0.0, %v1687_v19 }
 0x19d   :  { %v9110_v34 = vpop.eup %9109  ;;  %vm1421_vm10 = vcmp.ne.f32.partialorder %v11098_v14, %v11098_v14  ;;  %v2491_v58 = vmul.f32 %v11227_v23, %v2490_v52  ;;  %9121 = vlog2.f32 %v2513_v6  ;;  %v2499_v51 = vadd.f32 1.0, %v2498_v2  ;;  %v11327_v6 = vpop.f32.mrf.mxu0 }
 0x19e   :  { %v11289_v29 = vpop.eup %9111  ;;  %v3469_v9 = vsel %vm1421_vm10, %v11098_v14, %v3341_v16  ;;  %v2488_v18 = vmul.f32 0.6931472, %v9110_v34  ;;  %v2507_v37 = vmul.f32 -0.5, %v11260_v62  ;;  %v1298_v22 = vmax.f32 %v11187_v26, 0.0 }
 0x19f   :  { %v11293_v41 = vpop.eup %9113  ;;  %9123 = vpow2.f32 %v1985_v11  ;;  %v7762_v39 = vadd.f32 -0.6931472, %v3469_v9  ;;  %vm2493_vm11 = vcmp.lt.f32.partialorder %v2492_v17, 0.0004427343  ;;  %v1297_v60 = vmax.f32 %v11158_v7, 0.0 }
 0x1a0   :  { %9125 = vpow2.f32 %v1987_v4  ;;  %v2494_v23 = vsel %vm2493_vm11, %v2491_v58, %v2488_v18  ;;  %v2501_v54 = vand.u32 2147483647, %v11247_v25  ;;  %v1688_v20 = vand.u32 2147483647, %v11284_v33 }
 0x1a1   :  { %v1989_v14 = vmul.f32 1.442695, %v1815_v24  ;;  %8813 = vmatprep.mubr.f32.mxu1 %v7762_v39  ;;  %v3342_v50 = vadd.f32 %v2494_v23, %v1294_v47  ;;  %v2522_v0 = vadd.f32 1.0, %v11289_v29  ;;  %v11305_v55 = vadd.f32 %v10978_v3, %v858_v63  ;;  %v878_v39 = vpop.f32.mrf.mxu0 }
 0x1a2   :  { %v9116_v28 = vpop.eup %9115  ;;  %vm1422_vm12 = vcmp.ne.f32.partialorder %v11121_v61, %v11121_v61  ;;  %v2500_v21 = vmul.f32 %v11247_v25, %v2499_v51  ;;  %v2508_v53 = vadd.f32 1.0, %v2507_v37  ;;  %v2516_v48 = vmul.f32 -0.5, %v11265_v8 }
 0x1a3   :  { %v3470_v57 = vsel %vm1422_vm12, %v11121_v61, %v3342_v50  ;;  %v2497_v12 = vmul.f32 0.6931472, %v9116_v28  ;;  %9127 = vlog2.f32 %v2522_v0  ;;  %vm2502_vm13 = vcmp.lt.f32.partialorder %v2501_v54, 0.0004427343 }
 0x1a4   :  { %v7763_v38 = vadd.f32 -0.6931472, %v3470_v57  ;;  %v2510_v47 = vand.u32 2147483647, %v11260_v62  ;;  %v1816_v42 = vsub.f32 0.0, %v1688_v20  ;;  %v11314_v44 = vadd.f32 %v10978_v3, %v8609_v27 }
 0x1a5   :  { %v2503_v31 = vsel %vm2502_vm13, %v2500_v21, %v2497_v12  ;;  %v2531_v19 = vadd.f32 1.0, %v11293_v41  ;;  %v1689_v59 = vand.u32 2147483647, %v11305_v55  ;;  %vm1423_vm14 = vcmp.ne.f32.partialorder %v11143_v10, %v11143_v10 }
 0x1a6   :  { %v9118_v25 = vpop.eup %9117  ;;  %8814 = vmatmul.mubr.f32.gmra.mxu1 %v7763_v38  ;;  %v3343_v61 = vadd.f32 %v2503_v31, %v1295_v40  ;;  %v2509_v1 = vmul.f32 %v11260_v62, %v2508_v53  ;;  %v2517_v56 = vadd.f32 1.0, %v2516_v48  ;;  %v2519_v27 = vand.u32 2147483647, %v11265_v8 }
 0x1a7   :  { %v11321_v46 = vpop.eup %9119  ;;  %v2506_v52 = vmul.f32 0.6931472, %v9118_v25  ;;  %9129 = vlog2.f32 %v2531_v19  ;;  %vm2511_vm15 = vcmp.lt.f32.partialorder %v2510_v47, 0.0004427343  ;;  %v2525_v11 = vmul.f32 -0.5, %v11289_v29 }
 0x1a8   :  { %9131 = vpow2.f32 %v1989_v14  ;;  %v3471_v2 = vsel %vm1423_vm14, %v11143_v10, %v3343_v61  ;;  %v1991_v43 = vmul.f32 1.442695, %v1816_v42  ;;  %v1690_v17 = vand.u32 2147483647, %v11314_v44 }
 0x1a9   :  { %v7764_v40 = vadd.f32 -0.6931472, %v3471_v2  ;;  %v2512_v62 = vsel %vm2511_vm15, %v2509_v1, %v2506_v52  ;;  %v1817_v16 = vsub.f32 0.0, %v1689_v59  ;;  %v11330_v34 = vadd.f32 %v10978_v3, %v868_v45 }
 0x1aa   :  { %v9122_v4 = vpop.eup %9121  ;;  %v3344_v24 = vadd.f32 %v2512_v62, %v1296_v13  ;;  %v2540_v10 = vadd.f32 1.0, %v11321_v46  ;;  %vm1424_vm0 = vcmp.ne.f32.partialorder %v11137_v15, %v11137_v15  ;;  %v2518_v58 = vmul.f32 %v11265_v8, %v2517_v56  ;;  %v8618_v56 = vpop.f32.mrf.mxu0 }
 0x1ab   :  { %8816 = vmatprep.mubr.f32.mxu1 %v7764_v40  ;;  %v2515_v63 = vmul.f32 0.6931472, %v9122_v4  ;;  %vm2520_vm1 = vcmp.lt.f32.partialorder %v2519_v27, 0.0004427343  ;;  %v2526_v51 = vadd.f32 1.0, %v2525_v11  ;;  %v2534_v3 = vmul.f32 -0.5, %v11293_v41 }
 0x1ac   :  { %v11338_v9 = vpop.eup %9123  ;;  %v3472_v18 = vsel %vm1424_vm0, %v11137_v15, %v3344_v24  ;;  %9133 = vlog2.f32 %v2540_v10  ;;  %v1300_v13 = vmax.f32 %v11219_v49, 0.0  ;;  %v1818_v20 = vsub.f32 0.0, %v1690_v17  ;;  %v11351_v15 = vld [vmem:[%s16823_s2] ss:$0 sm:$0xff] }
 0x1ad   :  { %v11342_v37 = vpop.eup %9125  ;;  %9135 = vpow2.f32 %v1991_v43  ;;  %v7765_v23 = vadd.f32 -0.6931472, %v3472_v18  ;;  %v2521_v54 = vsel %vm2520_vm1, %v2518_v58, %v2515_v63  ;;  %v1993_v14 = vmul.f32 1.442695, %v1817_v16  ;;  %v888_v18 = vpop.f32.mrf.mxu0 }
 0x1ae   :  { %v3345_v8 = vadd.f32 %v2521_v54, %v1297_v60  ;;  %v2528_v50 = vand.u32 2147483647, %v11289_v29  ;;  %v11355_v0 = vadd.f32 %v11351_v15, %v11299_v32  ;;  %v1691_v28 = vand.u32 2147483647, %v11330_v34 }
 0x1af   :  { %8817 = vmatmul.mubr.f32.gmra.mxu1 %v7765_v23  ;;  %vm1425_vm2 = vcmp.ne.f32.partialorder %v11158_v7, %v11158_v7  ;;  %v2549_v21 = vadd.f32 1.0, %v11338_v9  ;;  %v11362_v53 = vadd.f32 %v11351_v15, %v878_v39  ;;  %v2527_v12 = vmul.f32 %v11289_v29, %v2526_v51 }
 0x1b0   :  { %v9128_v60 = vpop.eup %9127  ;;  %v3473_v57 = vsel %vm1425_vm2, %v11158_v7, %v3345_v8  ;;  %v2535_v48 = vadd.f32 1.0, %v2534_v3  ;;  %v2543_v47 = vmul.f32 -0.5, %v11321_v46  ;;  %v1995_v42 = vmul.f32 1.442695, %v1818_v20 }
 0x1b1   :  { %v7766_v38 = vadd.f32 -0.6931472, %v3473_v57  ;;  %v2524_v32 = vmul.f32 0.6931472, %v9128_v60  ;;  %9137 = vlog2.f32 %v2549_v21  ;;  %vm2529_vm3 = vcmp.lt.f32.partialorder %v2528_v50, 0.0004427343  ;;  %v8621_v60 = vpop.f32.mrf.mxu0 }
 0x1b2   :  { %9139 = vpow2.f32 %v1993_v14  ;;  %v2537_v45 = vand.u32 2147483647, %v11293_v41  ;;  %v1299_v31 = vmax.f32 %v11191_v36, 0.0  ;;  %v1819_v19 = vsub.f32 0.0, %v1691_v28 }
 0x1b3   :  { %8819 = vmatprep.mubr.f32.mxu1 %v7766_v38  ;;  %v2530_v25 = vsel %vm2529_vm3, %v2527_v12, %v2524_v32  ;;  %v2558_v7 = vadd.f32 1.0, %v11342_v37  ;;  %v1692_v29 = vand.u32 2147483647, %v11355_v0  ;;  %v1693_v61 = vand.u32 2147483647, %v11362_v53 }
 0x1b4   :  { %v9130_v59 = vpop.eup %9129  ;;  %vm1426_vm4 = vcmp.ne.f32.partialorder %v11187_v26, %v11187_v26  ;;  %v3346_v1 = vadd.f32 %v2530_v25, %v1298_v22  ;;  %v2536_v2 = vmul.f32 %v11293_v41, %v2535_v48  ;;  %v2544_v11 = vadd.f32 1.0, %v2543_v47 }
 0x1b5   :  { %v11376_v52 = vpop.eup %9131  ;;  %v2533_v27 = vmul.f32 0.6931472, %v9130_v59  ;;  %9141 = vlog2.f32 %v2558_v7  ;;  %vm2538_vm5 = vcmp.lt.f32.partialorder %v2537_v45, 0.0004427343  ;;  %v2552_v17 = vmul.f32 -0.5, %v11338_v9 }
 0x1b6   :  { %9143 = vpow2.f32 %v1995_v42  ;;  %v3474_v43 = vsel %vm1426_vm4, %v11187_v26, %v3346_v1  ;;  %v1997_v40 = vmul.f32 1.442695, %v1819_v19  ;;  %v2546_v16 = vand.u32 2147483647, %v11321_v46 }
 0x1b7   :  { %v7767_v62 = vadd.f32 -0.6931472, %v3474_v43  ;;  %v2539_v4 = vsel %vm2538_vm5, %v2536_v2, %v2533_v27  ;;  %v1302_v22 = vmax.f32 %v11236_v30, 0.0  ;;  %v1820_v24 = vsub.f32 0.0, %v1692_v29 }
 0x1b8   :  { %v3347_v10 = vadd.f32 %v2539_v4, %v1299_v31  ;;  %v2567_v63 = vadd.f32 1.0, %v11376_v52  ;;  %v11386_v58 = vadd.f32 %v11351_v15, %v11327_v6  ;;  %v1821_v26 = vsub.f32 0.0, %v1693_v61 }
 0x1b9   :  { %v9134_v41 = vpop.eup %9133  ;;  %8820 = vmatmul.mubr.f32.gmra.mxu1 %v7767_v62  ;;  %vm1427_vm6 = vcmp.ne.f32.partialorder %v11191_v36, %v11191_v36  ;;  %v2545_v51 = vmul.f32 %v11321_v46, %v2544_v11  ;;  %v2553_v54 = vadd.f32 1.0, %v2552_v17  ;;  %vm2547_vm7 = vcmp.lt.f32.partialorder %v2546_v16, 0.0004427343 }
 0x1ba   :  { %v11391_v3 = vpop.eup %9135  ;;  %v3475_v39 = vsel %vm1427_vm6, %v11191_v36, %v3347_v10  ;;  %v2542_v23 = vmul.f32 0.6931472, %v9134_v41  ;;  %9145 = vlog2.f32 %v2567_v63  ;;  %v2561_v6 = vmul.f32 -0.5, %v11342_v37 }
 0x1bb   :  { %9147 = vpow2.f32 %v1997_v40  ;;  %v7768_v20 = vadd.f32 -0.6931472, %v3475_v39  ;;  %v1301_v14 = vmax.f32 %v11239_v5, 0.0  ;;  %v1999_v8 = vmul.f32 1.442695, %v1820_v24 }
 0x1bc   :  { %v2548_v50 = vsel %vm2547_vm7, %v2545_v51, %v2542_v23  ;;  %v2555_v28 = vand.u32 2147483647, %v11338_v9  ;;  %v1694_v46 = vand.u32 2147483647, %v11386_v58  ;;  %v2001_v21 = vmul.f32 1.442695, %v1821_v26 }
 0x1bd   :  { %8822 = vmatprep.mubr.f32.mxu1 %v7768_v20  ;;  %v3348_v36 = vadd.f32 %v2548_v50, %v1300_v13  ;;  %v2576_v57 = vadd.f32 1.0, %v11391_v3  ;;  %v11402_v48 = vadd.f32 %v11351_v15, %v888_v18  ;;  %vm1428_vm8 = vcmp.ne.f32.partialorder %v11219_v49, %v11219_v49 }
 0x1be   :  { %v9138_v12 = vpop.eup %9137  ;;  %v2554_v38 = vmul.f32 %v11338_v9, %v2553_v54  ;;  %v2564_v32 = vand.u32 2147483647, %v11342_v37  ;;  %v2562_v31 = vadd.f32 1.0, %v2561_v6  ;;  %vm2556_vm9 = vcmp.lt.f32.partialorder %v2555_v28, 0.0004427343  ;;  %v898_v9 = vpop.f32.mrf.mxu0 }
 0x1bf   :  { %v11408_v47 = vpop.eup %9139  ;;  %v3476_v42 = vsel %vm1428_vm8, %v11219_v49, %v3348_v36  ;;  %v2551_v45 = vmul.f32 0.6931472, %v9138_v12  ;;  %9149 = vlog2.f32 %v2576_v57  ;;  %v2570_v19 = vmul.f32 -0.5, %v11376_v52 }
 0x1c0   :  { %9151 = vpow2.f32 %v1999_v8  ;;  %v7769_v13 = vadd.f32 -0.6931472, %v3476_v42  ;;  %v1304_v25 = vmax.f32 %v11284_v33, 0.0  ;;  %v1822_v7 = vsub.f32 0.0, %v1694_v46  ;;  %v11426_v4 = vpop.f32.mrf.mxu0 }
 0x1c1   :  { %v11414_v59 = vadd.f32 %v11351_v15, %v8618_v56  ;;  %v2557_v29 = vsel %vm2556_vm9, %v2554_v38, %v2551_v45  ;;  %9153 = vpow2.f32 %v2001_v21  ;;  %v1695_v49 = vand.u32 2147483647, %v11402_v48 }
 0x1c2   :  { %v9142_v61 = vpop.eup %9141  ;;  %8823 = vmatmul.mubr.f32.gmra.mxu1 %v7769_v13  ;;  %v3349_v1 = vadd.f32 %v2557_v29, %v1301_v14  ;;  %v2585_v27 = vadd.f32 1.0, %v11408_v47  ;;  %vm1429_vm10 = vcmp.ne.f32.partialorder %v11239_v5, %v11239_v5  ;;  %v2563_v43 = vmul.f32 %v11342_v37, %v2562_v31  ;;  %v908_v14 = vpop.f32.mrf.mxu0 }
 0x1c3   :  { %v11418_v2 = vpop.eup %9143  ;;  %v2560_v11 = vmul.f32 0.6931472, %v9142_v61  ;;  %vm2565_vm11 = vcmp.lt.f32.partialorder %v2564_v32, 0.0004427343  ;;  %v2571_v17 = vadd.f32 1.0, %v2570_v19  ;;  %v2579_v40 = vmul.f32 -0.5, %v11391_v3 }
 0x1c4   :  { %v3477_v56 = vsel %vm1429_vm10, %v11239_v5, %v3349_v1  ;;  %9155 = vlog2.f32 %v2585_v27  ;;  %v1303_v62 = vmax.f32 %v11255_v35, 0.0  ;;  %v2573_v10 = vand.u32 2147483647, %v11376_v52 }
 0x1c5   :  { %v7770_v16 = vadd.f32 -0.6931472, %v3477_v56  ;;  %v2566_v24 = vsel %vm2565_vm11, %v2563_v43, %v2560_v11  ;;  %v2003_v63 = vmul.f32 1.442695, %v1822_v7  ;;  %v1696_v41 = vand.u32 2147483647, %v11414_v59 }
 0x1c6   :  { %v1823_v26 = vsub.f32 0.0, %v1695_v49  ;;  %v3350_v37 = vadd.f32 %v2566_v24, %v1302_v22  ;;  %v11433_v18 = vadd.f32 %v11351_v15, %v8621_v60  ;;  %v11436_v51 = vadd.f32 %v11351_v15, %v898_v9 }
 0x1c7   :  { %v9146_v5 = vpop.eup %9145  ;;  %8825 = vmatprep.mubr.f32.mxu1 %v7770_v16  ;;  %vm1430_vm12 = vcmp.ne.f32.partialorder %v11236_v30, %v11236_v30  ;;  %v2594_v39 = vadd.f32 1.0, %v11418_v2  ;;  %v2572_v22 = vmul.f32 %v11376_v52, %v2571_v17  ;;  %v2580_v6 = vadd.f32 1.0, %v2579_v40 }
 0x1c8   :  { %v11441_v23 = vpop.eup %9147  ;;  %v3478_v54 = vsel %vm1430_vm12, %v11236_v30, %v3350_v37  ;;  %v2569_v20 = vmul.f32 0.6931472, %v9146_v5  ;;  %vm2574_vm13 = vcmp.lt.f32.partialorder %v2573_v10, 0.0004427343  ;;  %v2588_v50 = vmul.f32 -0.5, %v11408_v47 }
 0x1c9   :  { %v7771_v8 = vadd.f32 -0.6931472, %v3478_v54  ;;  %9157 = vlog2.f32 %v2594_v39  ;;  %v1824_v28 = vsub.f32 0.0, %v1696_v41  ;;  %v2582_v21 = vand.u32 2147483647, %v11391_v3 }
 0x1ca   :  { %9159 = vpow2.f32 %v2003_v63  ;;  %v2575_v46 = vsel %vm2574_vm13, %v2572_v22, %v2569_v20  ;;  %v2005_v60 = vmul.f32 1.442695, %v1823_v26  ;;  %v1698_v36 = vand.u32 2147483647, %v11433_v18 }
 0x1cb   :  { %8826 = vmatmul.mubr.f32.gmra.mxu1 %v7771_v8  ;;  %v3351_v30 = vadd.f32 %v2575_v46, %v1303_v62  ;;  %v2603_v57 = vadd.f32 1.0, %v11441_v23  ;;  %v1697_v12 = vand.u32 2147483647, %v11436_v51  ;;  %v11451_v38 = vadd.f32 %v11351_v15, %v908_v14 }
 0x1cc   :  { %v9150_v52 = vpop.eup %9149  ;;  %vm1431_vm14 = vcmp.ne.f32.partialorder %v11255_v35, %v11255_v35  ;;  %v2581_v32 = vmul.f32 %v11391_v3, %v2580_v6  ;;  %v2589_v13 = vadd.f32 1.0, %v2588_v50  ;;  %v1306_v19 = vmax.f32 %v11314_v44, 0.0 }
 0x1cd   :  { %v11456_v42 = vpop.eup %9151  ;;  %v3479_v45 = vsel %vm1431_vm14, %v11255_v35, %v3351_v30  ;;  %v2578_v31 = vmul.f32 0.6931472, %v9150_v52  ;;  %9161 = vlog2.f32 %v2603_v57  ;;  %vm2583_vm15 = vcmp.lt.f32.partialorder %v2582_v21, 0.0004427343  ;;  %v11465_v35 = vpop.f32.mrf.mxu0 }
 0x1ce   :  { %v7772_v7 = vadd.f32 -0.6931472, %v3479_v45  ;;  %v2597_v9 = vmul.f32 -0.5, %v11418_v2  ;;  %v11461_v29 = vpop.eup %9153  ;;  %v2007_v61 = vmul.f32 1.442695, %v1824_v28  ;;  %9163 = vpow2.f32 %v2005_v60 }
 0x1cf   :  { %v2584_v49 = vsel %vm2583_vm15, %v2581_v32, %v2578_v31  ;;  %v2591_v3 = vand.u32 2147483647, %v11408_v47  ;;  %v1305_v1 = vmax.f32 %v11305_v55, 0.0  ;;  %v1825_v27 = vsub.f32 0.0, %v1697_v12  ;;  %v918_v26 = vpop.f32.mrf.mxu0 }
 0x1d0   :  { %8828 = vmatprep.mubr.f32.mxu1 %v7772_v7  ;;  %v3352_v11 = vadd.f32 %v2584_v49, %v1304_v25  ;;  %v2612_v43 = vadd.f32 1.0, %v11456_v42  ;;  %v1826_v17 = vsub.f32 0.0, %v1698_v36  ;;  %v1699_v40 = vand.u32 2147483647, %v11451_v38 }
 0x1d1   :  { %v9156_v56 = vpop.eup %9155  ;;  %vm1432_vm0 = vcmp.ne.f32.partialorder %v11284_v33, %v11284_v33  ;;  %v2590_v62 = vmul.f32 %v11408_v47, %v2589_v13  ;;  %v2598_v10 = vadd.f32 1.0, %v2597_v9  ;;  %vm2592_vm1 = vcmp.lt.f32.partialorder %v2591_v3, 0.0004427343  ;;  %v11490_v21 = vpop.f32.mrf.mxu0 }
 0x1d2   :  { %v3480_v16 = vsel %vm1432_vm0, %v11284_v33, %v3352_v11  ;;  %v2587_v24 = vmul.f32 0.6931472, %v9156_v56  ;;  %9165 = vlog2.f32 %v2612_v43  ;;  %v2606_v25 = vmul.f32 -0.5, %v11441_v23 }
 0x1d3   :  { %9167 = vpow2.f32 %v2007_v61  ;;  %v7773_v63 = vadd.f32 -0.6931472, %v3480_v16  ;;  %v2009_v41 = vmul.f32 1.442695, %v1825_v27  ;;  %v2600_v5 = vand.u32 2147483647, %v11418_v2  ;;  %v928_v9 = vpop.f32.mrf.mxu0 }
 0x1d4   :  { %v2593_v37 = vsel %vm2592_vm1, %v2590_v62, %v2587_v24  ;;  %v2621_v39 = vadd.f32 1.0, %v11461_v29  ;;  %v2011_v54 = vmul.f32 1.442695, %v1826_v17  ;;  %v11480_v47 = vadd.f32 %v11351_v15, %v11426_v4 }
 0x1d5   :  { %v1827_v33 = vsub.f32 0.0, %v1699_v40  ;;  %8829 = vmatmul.mubr.f32.gmra.mxu1 %v7773_v63  ;;  %v3353_v20 = vadd.f32 %v2593_v37, %v1305_v1  ;;  %v1307_v6 = vmax.f32 %v11330_v34, 0.0  ;;  %vm1433_vm2 = vcmp.ne.f32.partialorder %v11305_v55, %v11305_v55 }
 0x1d6   :  { %v9158_v22 = vpop.eup %9157  ;;  %v2599_v14 = vmul.f32 %v11418_v2, %v2598_v10  ;;  %9169 = vlog2.f32 %v2621_v39  ;;  %v2607_v46 = vadd.f32 1.0, %v2606_v25  ;;  %v2609_v4 = vand.u32 2147483647, %v11441_v23 }
 0x1d7   :  { %v11486_v8 = vpop.eup %9159  ;;  %v3481_v50 = vsel %vm1433_vm2, %v11305_v55, %v3353_v20  ;;  %v2596_v28 = vmul.f32 0.6931472, %v9158_v22  ;;  %9171 = vpow2.f32 %v2009_v41  ;;  %vm2601_vm3 = vcmp.lt.f32.partialorder %v2600_v5, 0.0004427343 }
 0x1d8   :  { %v7774_v60 = vadd.f32 -0.6931472, %v3481_v50  ;;  %v2615_v36 = vmul.f32 -0.5, %v11456_v42  ;;  %9173 = vpow2.f32 %v2011_v54  ;;  %v1700_v30 = vand.u32 2147483647, %v11480_v47  ;;  %v11530_v54 = vpop.f32.mrf.mxu0 }
 0x1d9   :  { %v2013_v2 = vmul.f32 1.442695, %v1827_v33  ;;  %v2602_v57 = vsel %vm2601_vm3, %v2599_v14, %v2596_v28  ;;  %v11495_v12 = vadd.f32 %v11351_v15, %v918_v26  ;;  %vm1434_vm4 = vcmp.ne.f32.partialorder %v11314_v44, %v11314_v44 }
 0x1da   :  { %v9162_v52 = vpop.eup %9161  ;;  %8831 = vmatprep.mubr.f32.mxu1 %v7774_v60  ;;  %v3354_v55 = vadd.f32 %v2602_v57, %v1306_v19  ;;  %v2630_v32 = vadd.f32 1.0, %v11486_v8  ;;  %v2608_v31 = vmul.f32 %v11441_v23, %v2607_v46  ;;  %vm2610_vm5 = vcmp.lt.f32.partialorder %v2609_v4, 0.0004427343 }
 0x1db   :  { %v2605_v45 = vmul.f32 0.6931472, %v9162_v52  ;;  %v2618_v13 = vand.u32 2147483647, %v11456_v42  ;;  %v11502_v7 = vpop.eup %9163  ;;  %v2616_v49 = vadd.f32 1.0, %v2615_v36  ;;  %v2624_v3 = vmul.f32 -0.5, %v11461_v29 }
 0x1dc   :  { %v3482_v61 = vsel %vm1434_vm4, %v11314_v44, %v3354_v55  ;;  %9175 = vlog2.f32 %v2630_v32  ;;  %v1308_v1 = vmax.f32 %v11355_v0, 0.0  ;;  %v1828_v19 = vsub.f32 0.0, %v1700_v30  ;;  %v938_v30 = vpop.f32.mrf.mxu0 }
 0x1dd   :  { %v7775_v27 = vadd.f32 -0.6931472, %v3482_v61  ;;  %v2611_v11 = vsel %vm2610_vm5, %v2608_v31, %v2605_v45  ;;  %9177 = vpow2.f32 %v2013_v2  ;;  %v11509_v23 = vadd.f32 %v11351_v15, %v11465_v35 }
 0x1de   :  { %v1701_v43 = vand.u32 2147483647, %v11495_v12  ;;  %v3355_v56 = vadd.f32 %v2611_v11, %v1307_v6  ;;  %v11513_v44 = vadd.f32 %v11351_v15, %v928_v9  ;;  %vm1435_vm6 = vcmp.ne.f32.partialorder %v11330_v34, %v11330_v34 }
 0x1df   :  { %v9166_v17 = vpop.eup %9165  ;;  %8832 = vmatmul.mubr.f32.gmra.mxu1 %v7775_v27  ;;  %vm11517_vm7 = vcmp.lt.f32.partialorder %v2618_v13, 0.0004427343  ;;  %v2639_v62 = vadd.f32 1.0, %v11502_v7  ;;  %v2617_v10 = vmul.f32 %v11456_v42, %v2616_v49  ;;  %v2625_v63 = vadd.f32 1.0, %v2624_v3 }
 0x1e0   :  { %v11522_v16 = vpop.eup %9167  ;;  %v3483_v35 = vsel %vm1435_vm6, %v11330_v34, %v3355_v56  ;;  %v2614_v24 = vmul.f32 0.6931472, %v9166_v17  ;;  %v2627_v41 = vand.u32 2147483647, %v11461_v29  ;;  %v2633_v26 = vmul.f32 -0.5, %v11486_v8 }
 0x1e1   :  { %v7776_v25 = vadd.f32 -0.6931472, %v3483_v35  ;;  %9179 = vlog2.f32 %v2639_v62  ;;  %v1310_v37 = vmax.f32 %v11386_v58, 0.0  ;;  %v1309_v5 = vmax.f32 %v11362_v53, 0.0 }
 0x1e2   :  { %v2015_v39 = vmul.f32 1.442695, %v1828_v19  ;;  %v2620_v34 = vsel %vm11517_vm7, %v2617_v10, %v2614_v24  ;;  %v1702_v42 = vand.u32 2147483647, %v11509_v23  ;;  %v1829_v20 = vsub.f32 0.0, %v1701_v43 }
 0x1e3   :  { %v9170_v33 = vpop.eup %9169  ;;  %8834 = vmatprep.mubr.f32.mxu1 %v7776_v25  ;;  %v3356_v22 = vadd.f32 %v2620_v34, %v1308_v1  ;;  %v2648_v6 = vadd.f32 1.0, %v11522_v16  ;;  %v1703_v14 = vand.u32 2147483647, %v11513_v44  ;;  %vm1436_vm8 = vcmp.ne.f32.partialorder %v11355_v0, %v11355_v0  ;;  %v8636_v25 = vpop.f32.mrf.mxu0 }
 0x1e4   :  { %v2623_v50 = vmul.f32 0.6931472, %v9170_v33  ;;  %v2626_v28 = vmul.f32 %v11461_v29, %v2625_v63  ;;  %v11540_v46 = vpop.eup %9171  ;;  %vm2628_vm9 = vcmp.lt.f32.partialorder %v2627_v41, 0.0004427343  ;;  %v2634_v60 = vadd.f32 1.0, %v2633_v26 }
 0x1e5   :  { %v3484_v4 = vsel %vm1436_vm8, %v11355_v0, %v3356_v22  ;;  %9181 = vlog2.f32 %v2648_v6  ;;  %v11543_v36 = vpop.eup %9173  ;;  %v2642_v52 = vmul.f32 -0.5, %v11502_v7  ;;  %v1830_v55 = vsub.f32 0.0, %v1702_v42 }
 0x1e6   :  { %9183 = vpow2.f32 %v2015_v39  ;;  %v7777_v2 = vadd.f32 -0.6931472, %v3484_v4  ;;  %v2629_v57 = vsel %vm2628_vm9, %v2626_v28, %v2623_v50  ;;  %v2017_v32 = vmul.f32 1.442695, %v1829_v20  ;;  %v948_v4 = vpop.f32.mrf.mxu0 }
 0x1e7   :  { %v3357_v45 = vadd.f32 %v2629_v57, %v1309_v5  ;;  %v2636_v29 = vand.u32 2147483647, %v11486_v8  ;;  %v11549_v31 = vadd.f32 %v11351_v15, %v11490_v21  ;;  %v1831_v0 = vsub.f32 0.0, %v1703_v14 }
 0x1e8   :  { %8835 = vmatmul.mubr.f32.gmra.mxu1 %v7777_v2  ;;  %vm1437_vm10 = vcmp.ne.f32.partialorder %v11362_v53, %v11362_v53  ;;  %v2657_v13 = vadd.f32 1.0, %v11540_v46  ;;  %v11555_v61 = vadd.f32 %v11351_v15, %v938_v30  ;;  %v2635_v3 = vmul.f32 %v11486_v8, %v2634_v60 }
 0x1e9   :  { %v9176_v9 = vpop.eup %9175  ;;  %v3485_v49 = vsel %vm1437_vm10, %v11362_v53, %v3357_v45  ;;  %v2645_v1 = vand.u32 2147483647, %v11502_v7  ;;  %v2643_v27 = vadd.f32 1.0, %v2642_v52  ;;  %v1312_v43 = vmax.f32 %v11414_v59, 0.0 }
 0x1ea   :  { %v7778_v19 = vadd.f32 -0.6931472, %v3485_v49  ;;  %v2632_v21 = vmul.f32 0.6931472, %v9176_v9  ;;  %9185 = vlog2.f32 %v2657_v13  ;;  %v11560_v11 = vpop.eup %9177  ;;  %vm2637_vm11 = vcmp.lt.f32.partialorder %v2636_v29, 0.0004427343  ;;  %v8639_v49 = vpop.f32.mrf.mxu0 }
 0x1eb   :  { %9187 = vpow2.f32 %v2017_v32  ;;  %v2651_v56 = vmul.f32 -0.5, %v11522_v16  ;;  %v1311_v17 = vmax.f32 %v11402_v48, 0.0  ;;  %v2019_v40 = vmul.f32 1.442695, %v1830_v55 }
 0x1ec   :  { %8837 = vmatprep.mubr.f32.mxu1 %v7778_v19  ;;  %v2638_v53 = vsel %vm2637_vm11, %v2635_v3, %v2632_v21  ;;  %v2666_v8 = vadd.f32 1.0, %v11543_v36  ;;  %v1704_v62 = vand.u32 2147483647, %v11549_v31  ;;  %v2021_v35 = vmul.f32 1.442695, %v1831_v0 }
 0x1ed   :  { %v1705_v24 = vand.u32 2147483647, %v11555_v61  ;;  %v3358_v10 = vadd.f32 %v2638_v53, %v1310_v37  ;;  %vm1438_vm12 = vcmp.ne.f32.partialorder %v11386_v58, %v11386_v58  ;;  %v2644_v41 = vmul.f32 %v11502_v7, %v2643_v27 }
 0x1ee   :  { %v9180_v63 = vpop.eup %9179  ;;  %vm11571_vm13 = vcmp.lt.f32.partialorder %v2645_v1, 0.0004427343  ;;  %9189 = vlog2.f32 %v2666_v8  ;;  %v2652_v34 = vadd.f32 1.0, %v2651_v56  ;;  %v2660_v33 = vmul.f32 -0.5, %v11540_v46 }
 0x1ef   :  { %v3486_v5 = vsel %vm1438_vm12, %v11386_v58, %v3358_v10  ;;  %v2641_v39 = vmul.f32 0.6931472, %v9180_v63  ;;  %9191 = vpow2.f32 %v2019_v40  ;;  %v2654_v42 = vand.u32 2147483647, %v11522_v16 }
 0x1f0   :  { %v7779_v37 = vadd.f32 -0.6931472, %v3486_v5  ;;  %v2675_v20 = vadd.f32 1.0, %v11560_v11  ;;  %v1314_v22 = vmax.f32 %v11433_v18, 0.0  ;;  %v1313_v7 = vmax.f32 %v11436_v51, 0.0 }
 0x1f1   :  { %v1832_v6 = vsub.f32 0.0, %v1704_v62  ;;  %v2647_v14 = vsel %vm11571_vm13, %v2644_v41, %v2641_v39  ;;  %v11585_v58 = vadd.f32 %v11351_v15, %v11530_v54  ;;  %v1833_v28 = vsub.f32 0.0, %v1705_v24 }
 0x1f2   :  { %v9182_v50 = vpop.eup %9181  ;;  %8838 = vmatmul.mubr.f32.gmra.mxu1 %v7779_v37  ;;  %vm1439_vm14 = vcmp.ne.f32.partialorder %v11402_v48, %v11402_v48  ;;  %v3359_v60 = vadd.f32 %v2647_v14, %v1311_v17  ;;  %v2653_v57 = vmul.f32 %v11522_v16, %v2652_v34  ;;  %v2661_v52 = vadd.f32 1.0, %v2660_v33 }
 0x1f3   :  { %v11589_v30 = vpop.eup %9183  ;;  %v2650_v2 = vmul.f32 0.6931472, %v9182_v50  ;;  %9193 = vlog2.f32 %v2675_v20  ;;  %vm2655_vm15 = vcmp.lt.f32.partialorder %v2654_v42, 0.0004427343  ;;  %v2669_v54 = vmul.f32 -0.5, %v11543_v36 }
 0x1f4   :  { %9195 = vpow2.f32 %v2021_v35  ;;  %v3487_v55 = vsel %vm1439_vm14, %v11402_v48, %v3359_v60  ;;  %v2023_v32 = vmul.f32 1.442695, %v1832_v6  ;;  %v2663_v0 = vand.u32 2147483647, %v11540_v46 }
 0x1f5   :  { %v7780_v45 = vadd.f32 -0.6931472, %v3487_v55  ;;  %v2656_v29 = vsel %vm2655_vm15, %v2653_v57, %v2650_v2  ;;  %v1706_v13 = vand.u32 2147483647, %v11585_v58  ;;  %v2025_v9 = vmul.f32 1.442695, %v1833_v28 }
 0x1f6   :  { %v3360_v3 = vadd.f32 %v2656_v29, %v1312_v43  ;;  %v2684_v16 = vadd.f32 1.0, %v11589_v30  ;;  %v11598_v19 = vadd.f32 %v11351_v15, %v948_v4  ;;  %vm1440_vm0 = vcmp.ne.f32.partialorder %v11414_v59, %v11414_v59 }
 0x1f7   :  { %v9186_v1 = vpop.eup %9185  ;;  %8840 = vmatprep.mubr.f32.mxu1 %v7780_v45  ;;  %v2662_v48 = vmul.f32 %v11540_v46, %v2661_v52  ;;  %v2672_v21 = vand.u32 2147483647, %v11543_v36  ;;  %v2670_v43 = vadd.f32 1.0, %v2669_v54  ;;  %vm2664_vm1 = vcmp.lt.f32.partialorder %v2663_v0, 0.0004427343  ;;  %v958_v46 = vpop.f32.mrf.mxu0 }
 0x1f8   :  { %v11604_v27 = vpop.eup %9187  ;;  %v3488_v56 = vsel %vm1440_vm0, %v11414_v59, %v3360_v3  ;;  %v2659_v17 = vmul.f32 0.6931472, %v9186_v1  ;;  %9197 = vlog2.f32 %v2684_v16  ;;  %v2678_v53 = vmul.f32 -0.5, %v11560_v11 }
 0x1f9   :  { %9199 = vpow2.f32 %v2023_v32  ;;  %v7781_v40 = vadd.f32 -0.6931472, %v3488_v56  ;;  %v1316_v8 = vmax.f32 %v11480_v47, 0.0  ;;  %v1834_v62 = vsub.f32 0.0, %v1706_v13  ;;  %v11622_v42 = vpop.f32.mrf.mxu0 }
 0x1fa   :  { %v11610_v35 = vadd.f32 %v11351_v15, %v8636_v25  ;;  %v2665_v24 = vsel %vm2664_vm1, %v2662_v48, %v2659_v17  ;;  %9201 = vpow2.f32 %v2025_v9  ;;  %v1707_v59 = vand.u32 2147483647, %v11598_v19 }
 0x1fb   :  { %v9190_v10 = vpop.eup %9189  ;;  %8841 = vmatmul.mubr.f32.gmra.mxu1 %v7781_v40  ;;  %v3361_v63 = vadd.f32 %v2665_v24, %v1313_v7  ;;  %v2693_v41 = vadd.f32 1.0, %v11604_v27  ;;  %vm1441_vm2 = vcmp.ne.f32.partialorder %v11436_v51, %v11436_v51  ;;  %v2671_v5 = vmul.f32 %v11543_v36, %v2670_v43 }
 0x1fc   :  { %v2668_v26 = vmul.f32 0.6931472, %v9190_v10  ;;  %vm2673_vm3 = vcmp.lt.f32.partialorder %v2672_v21, 0.0004427343  ;;  %v11617_v39 = vpop.eup %9191  ;;  %v2679_v34 = vadd.f32 1.0, %v2678_v53  ;;  %v2687_v33 = vmul.f32 -0.5, %v11589_v30 }
 0x1fd   :  { %v3489_v25 = vsel %vm1441_vm2, %v11436_v51, %v3361_v63  ;;  %9203 = vlog2.f32 %v2693_v41  ;;  %v1315_v37 = vmax.f32 %v11451_v38, 0.0  ;;  %v2681_v6 = vand.u32 2147483647, %v11560_v11 }
 0x1fe   :  { %v7782_v20 = vadd.f32 -0.6931472, %v3489_v25  ;;  %v2674_v7 = vsel %vm2673_vm3, %v2671_v5, %v2668_v26  ;;  %v2027_v14 = vmul.f32 1.442695, %v1834_v62  ;;  %v1708_v36 = vand.u32 2147483647, %v11610_v35 }
 0x1ff   :  { %v11627_v50 = vadd.f32 %v11351_v15, %v8639_v49  ;;  %v3362_v51 = vadd.f32 %v2674_v7, %v1314_v22  ;;  %v1835_v4 = vsub.f32 0.0, %v1707_v59  ;;  %v11632_v60 = vadd.f32 %v11351_v15, %v958_v46  ;;  %v968_v22 = vpop.f32.mrf.mxu0 }
 0x200   :  { %v9194_v28 = vpop.eup %9193  ;;  %8843 = vmatprep.mubr.f32.mxu1 %v7782_v20  ;;  %vm1442_vm4 = vcmp.ne.f32.partialorder %v11433_v18, %v11433_v18  ;;  %v2702_v2 = vadd.f32 1.0, %v11617_v39  ;;  %v2680_v54 = vmul.f32 %v11560_v11, %v2679_v34  ;;  %v2688_v32 = vadd.f32 1.0, %v2687_v33 }
 0x201   :  { %v11637_v57 = vpop.eup %9195  ;;  %v3490_v52 = vsel %vm1442_vm4, %v11433_v18, %v3362_v51  ;;  %v2677_v55 = vmul.f32 0.6931472, %v9194_v28  ;;  %vm2682_vm5 = vcmp.lt.f32.partialorder %v2681_v6, 0.0004427343  ;;  %v2696_v29 = vmul.f32 -0.5, %v11604_v27 }
 0x202   :  { %v7783_v45 = vadd.f32 -0.6931472, %v3490_v52  ;;  %9205 = vlog2.f32 %v2702_v2  ;;  %v1836_v0 = vsub.f32 0.0, %v1708_v36  ;;  %v2690_v9 = vand.u32 2147483647, %v11589_v30 }
 0x203   :  { %9207 = vpow2.f32 %v2027_v14  ;;  %v2683_v13 = vsel %vm2682_vm5, %v2680_v54, %v2677_v55  ;;  %v2029_v49 = vmul.f32 1.442695, %v1835_v4  ;;  %v1710_v3 = vand.u32 2147483647, %v11627_v50 }
 0x204   :  { %8844 = vmatmul.mubr.f32.gmra.mxu1 %v7783_v45  ;;  %v3363_v18 = vadd.f32 %v2683_v13, %v1315_v37  ;;  %v2711_v16 = vadd.f32 1.0, %v11637_v57  ;;  %v1709_v1 = vand.u32 2147483647, %v11632_v60  ;;  %v11647_v48 = vadd.f32 %v11351_v15, %v968_v22 }
 0x205   :  { %v9198_v11 = vpop.eup %9197  ;;  %vm1443_vm6 = vcmp.ne.f32.partialorder %v11451_v38, %v11451_v38  ;;  %v2689_v21 = vmul.f32 %v11589_v30, %v2688_v32  ;;  %v2697_v40 = vadd.f32 1.0, %v2696_v29  ;;  %v1318_v53 = vmax.f32 %v11509_v23, 0.0 }
 0x206   :  { %v11652_v56 = vpop.eup %9199  ;;  %v3491_v17 = vsel %vm1443_vm6, %v11451_v38, %v3363_v18  ;;  %v2686_v43 = vmul.f32 0.6931472, %v9198_v11  ;;  %9209 = vlog2.f32 %v2711_v16  ;;  %vm2691_vm7 = vcmp.lt.f32.partialorder %v2690_v9, 0.0004427343  ;;  %v11661_v38 = vpop.f32.mrf.mxu0 }
 0x207   :  { %v7784_v62 = vadd.f32 -0.6931472, %v3491_v17  ;;  %v2705_v46 = vmul.f32 -0.5, %v11617_v39  ;;  %v11657_v24 = vpop.eup %9201  ;;  %v2031_v10 = vmul.f32 1.442695, %v1836_v0  ;;  %9211 = vpow2.f32 %v2029_v49 }
 0x208   :  { %v2692_v59 = vsel %vm2691_vm7, %v2689_v21, %v2686_v43  ;;  %v2699_v30 = vand.u32 2147483647, %v11604_v27  ;;  %v1317_v63 = vmax.f32 %v11495_v12, 0.0  ;;  %v1837_v41 = vsub.f32 0.0, %v1709_v1  ;;  %v978_v51 = vpop.f32.mrf.mxu0 }
 0x209   :  { %8846 = vmatprep.mubr.f32.mxu1 %v7784_v62  ;;  %v3364_v26 = vadd.f32 %v2692_v59, %v1316_v8  ;;  %v2720_v5 = vadd.f32 1.0, %v11652_v56  ;;  %v1838_v34 = vsub.f32 0.0, %v1710_v3  ;;  %v1711_v33 = vand.u32 2147483647, %v11647_v48 }
 0x20a   :  { %v9204_v25 = vpop.eup %9203  ;;  %vm1444_vm8 = vcmp.ne.f32.partialorder %v11480_v47, %v11480_v47  ;;  %v2698_v37 = vmul.f32 %v11604_v27, %v2697_v40  ;;  %v2706_v6 = vadd.f32 1.0, %v2705_v46  ;;  %vm2700_vm9 = vcmp.lt.f32.partialorder %v2699_v30, 0.0004427343  ;;  %v11686_v9 = vpop.f32.mrf.mxu0 }
 0x20b   :  { %v3492_v20 = vsel %vm1444_vm8, %v11480_v47, %v3364_v26  ;;  %v2695_v7 = vmul.f32 0.6931472, %v9204_v25  ;;  %9213 = vlog2.f32 %v2720_v5  ;;  %v2714_v8 = vmul.f32 -0.5, %v11637_v57 }
 0x20c   :  { %9215 = vpow2.f32 %v2031_v10  ;;  %v7785_v14 = vadd.f32 -0.6931472, %v3492_v20  ;;  %v2033_v36 = vmul.f32 1.442695, %v1837_v41  ;;  %v2708_v4 = vand.u32 2147483647, %v11617_v39  ;;  %v988_v46 = vpop.f32.mrf.mxu0 }
 0x20d   :  { %v2701_v28 = vsel %vm2700_vm9, %v2698_v37, %v2695_v7  ;;  %v2729_v2 = vadd.f32 1.0, %v11657_v24  ;;  %v2035_v52 = vmul.f32 1.442695, %v1838_v34  ;;  %v11676_v27 = vadd.f32 %v11351_v15, %v11622_v42 }
 0x20e   :  { %v1839_v47 = vsub.f32 0.0, %v1711_v33  ;;  %8847 = vmatmul.mubr.f32.gmra.mxu1 %v7785_v14  ;;  %v3365_v55 = vadd.f32 %v2701_v28, %v1317_v63  ;;  %v1319_v32 = vmax.f32 %v11513_v44, 0.0  ;;  %vm1445_vm10 = vcmp.ne.f32.partialorder %v11495_v12, %v11495_v12 }
 0x20f   :  { %v9206_v54 = vpop.eup %9205  ;;  %v2707_v22 = vmul.f32 %v11617_v39, %v2706_v6  ;;  %9217 = vlog2.f32 %v2729_v2  ;;  %v2715_v13 = vadd.f32 1.0, %v2714_v8  ;;  %v2717_v42 = vand.u32 2147483647, %v11637_v57  ;;  %v11726_v2 = vpop.f32.mrf.mxu0 }
 0x210   :  { %v11682_v45 = vpop.eup %9207  ;;  %v3493_v29 = vsel %vm1445_vm10, %v11495_v12, %v3365_v55  ;;  %v2704_v0 = vmul.f32 0.6931472, %v9206_v54  ;;  %9219 = vpow2.f32 %v2033_v36  ;;  %vm2709_vm11 = vcmp.lt.f32.partialorder %v2708_v4, 0.0004427343 }
 0x211   :  { %v7786_v49 = vadd.f32 -0.6931472, %v3493_v29  ;;  %v2723_v3 = vmul.f32 -0.5, %v11652_v56  ;;  %9221 = vpow2.f32 %v2035_v52  ;;  %v1712_v18 = vand.u32 2147483647, %v11676_v27 }
 0x212   :  { %v2037_v39 = vmul.f32 1.442695, %v1839_v47  ;;  %v2710_v16 = vsel %vm2709_vm11, %v2707_v22, %v2704_v0  ;;  %v11691_v1 = vadd.f32 %v11351_v15, %v978_v51  ;;  %vm1446_vm12 = vcmp.ne.f32.partialorder %v11509_v23, %v11509_v23 }
 0x213   :  { %v9210_v11 = vpop.eup %9209  ;;  %8849 = vmatprep.mubr.f32.mxu1 %v7786_v49  ;;  %v3366_v12 = vadd.f32 %v2710_v16, %v1318_v53  ;;  %v2738_v21 = vadd.f32 1.0, %v11682_v45  ;;  %v2716_v43 = vmul.f32 %v11637_v57, %v2715_v13  ;;  %vm2718_vm13 = vcmp.lt.f32.partialorder %v2717_v42, 0.0004427343 }
 0x214   :  { %v2713_v17 = vmul.f32 0.6931472, %v9210_v11  ;;  %v2726_v40 = vand.u32 2147483647, %v11652_v56  ;;  %v11698_v62 = vpop.eup %9211  ;;  %v2724_v59 = vadd.f32 1.0, %v2723_v3  ;;  %v2732_v30 = vmul.f32 -0.5, %v11657_v24  ;;  %v998_v3 = vpop.f32.mrf.mxu0 }
 0x215   :  { %v3494_v10 = vsel %vm1446_vm12, %v11509_v23, %v3366_v12  ;;  %9223 = vlog2.f32 %v2738_v21  ;;  %v1320_v63 = vmax.f32 %v11549_v31, 0.0  ;;  %v1840_v53 = vsub.f32 0.0, %v1712_v18 }
 0x216   :  { %v7787_v41 = vadd.f32 -0.6931472, %v3494_v10  ;;  %v2719_v26 = vsel %vm2718_vm13, %v2716_v43, %v2713_v17  ;;  %9225 = vpow2.f32 %v2037_v39  ;;  %v11705_v57 = vadd.f32 %v11351_v15, %v11661_v38 }
 0x217   :  { %v1713_v5 = vand.u32 2147483647, %v11691_v1  ;;  %v3367_v25 = vadd.f32 %v2719_v26, %v1319_v32  ;;  %v11709_v23 = vadd.f32 %v11351_v15, %v988_v46  ;;  %vm1447_vm14 = vcmp.ne.f32.partialorder %v11513_v44, %v11513_v44 }
 0x218   :  { %v9214_v34 = vpop.eup %9213  ;;  %8850 = vmatmul.mubr.f32.gmra.mxu1 %v7787_v41  ;;  %vm11713_vm15 = vcmp.lt.f32.partialorder %v2726_v40, 0.0004427343  ;;  %v2747_v37 = vadd.f32 1.0, %v11698_v62  ;;  %v2725_v6 = vmul.f32 %v11652_v56, %v2724_v59  ;;  %v2733_v14 = vadd.f32 1.0, %v2732_v30 }
 0x219   :  { %v11718_v20 = vpop.eup %9215  ;;  %v3495_v38 = vsel %vm1447_vm14, %v11513_v44, %v3367_v25  ;;  %v2722_v7 = vmul.f32 0.6931472, %v9214_v34  ;;  %v2735_v8 = vand.u32 2147483647, %v11657_v24  ;;  %v2741_v36 = vmul.f32 -0.5, %v11682_v45 }
 0x21a   :  { %v7788_v15 = vadd.f32 -0.6931472, %v3495_v38  ;;  %9227 = vlog2.f32 %v2747_v37  ;;  %v1322_v51 = vmax.f32 %v11585_v58, 0.0  ;;  %v1321_v28 = vmax.f32 %v11555_v61, 0.0 }
 0x21b   :  { %v2039_v4 = vmul.f32 1.442695, %v1840_v53  ;;  %v2728_v44 = vsel %vm11713_vm15, %v2725_v6, %v2722_v7  ;;  %v1714_v56 = vand.u32 2147483647, %v11705_v57  ;;  %v1841_v47 = vsub.f32 0.0, %v1713_v5 }
 0x21c   :  { %v9218_v52 = vpop.eup %9217  ;;  %8852 = vmatprep.mubr.f32.mxu1 %v7788_v15  ;;  %v3368_v55 = vadd.f32 %v2728_v44, %v1320_v63  ;;  %v2756_v54 = vadd.f32 1.0, %v11718_v20  ;;  %v1715_v32 = vand.u32 2147483647, %v11709_v23  ;;  %vm1448_vm0 = vcmp.ne.f32.partialorder %v11549_v31, %v11549_v31  ;;  %v8654_v15 = vpop.f32.mrf.mxu0 }
 0x21d   :  { %v2731_v22 = vmul.f32 0.6931472, %v9218_v52  ;;  %v2734_v29 = vmul.f32 %v11657_v24, %v2733_v14  ;;  %v11736_v0 = vpop.eup %9219  ;;  %vm2736_vm1 = vcmp.lt.f32.partialorder %v2735_v8, 0.0004427343  ;;  %v2742_v42 = vadd.f32 1.0, %v2741_v36 }
 0x21e   :  { %v3496_v13 = vsel %vm1448_vm0, %v11549_v31, %v3368_v55  ;;  %9229 = vlog2.f32 %v2756_v54  ;;  %v11739_v49 = vpop.eup %9221  ;;  %v2750_v16 = vmul.f32 -0.5, %v11698_v62  ;;  %v1842_v11 = vsub.f32 0.0, %v1714_v56  ;;  %v11746_v31 = vld [vmem:[%s16823_s2] ss:$0 sm:$0xff] }
 0x21f   :  { %9231 = vpow2.f32 %v2039_v4  ;;  %v7789_v18 = vadd.f32 -0.6931472, %v3496_v13  ;;  %v2737_v39 = vsel %vm2736_vm1, %v2734_v29, %v2731_v22  ;;  %v2041_v12 = vmul.f32 1.442695, %v1841_v47  ;;  %v1008_v13 = vpop.f32.mrf.mxu0 }
 0x220   :  { %v3369_v21 = vadd.f32 %v2737_v39, %v1321_v28  ;;  %v2744_v24 = vand.u32 2147483647, %v11682_v45  ;;  %v11750_v17 = vadd.f32 %v11746_v31, %v11686_v9  ;;  %v1843_v43 = vsub.f32 0.0, %v1715_v32 }
 0x221   :  { %8853 = vmatmul.mubr.f32.gmra.mxu1 %v7789_v18  ;;  %vm1449_vm2 = vcmp.ne.f32.partialorder %v11555_v61, %v11555_v61  ;;  %v2765_v40 = vadd.f32 1.0, %v11736_v0  ;;  %v11756_v10 = vadd.f32 %v11746_v31, %v998_v3  ;;  %v2743_v30 = vmul.f32 %v11682_v45, %v2742_v42 }
 0x222   :  { %v9224_v46 = vpop.eup %9223  ;;  %v3497_v59 = vsel %vm1449_vm2, %v11555_v61, %v3369_v21  ;;  %v2753_v63 = vand.u32 2147483647, %v11698_v62  ;;  %v2751_v41 = vadd.f32 1.0, %v2750_v16  ;;  %v1324_v5 = vmax.f32 %v11610_v35, 0.0 }
 0x223   :  { %v7790_v53 = vadd.f32 -0.6931472, %v3497_v59  ;;  %v2740_v9 = vmul.f32 0.6931472, %v9224_v46  ;;  %9233 = vlog2.f32 %v2765_v40  ;;  %v11761_v26 = vpop.eup %9225  ;;  %vm2745_vm3 = vcmp.lt.f32.partialorder %v2744_v24, 0.0004427343  ;;  %v8657_v59 = vpop.f32.mrf.mxu0 }
 0x224   :  { %9235 = vpow2.f32 %v2041_v12  ;;  %v2759_v25 = vmul.f32 -0.5, %v11718_v20  ;;  %v1323_v34 = vmax.f32 %v11598_v19, 0.0  ;;  %v2043_v33 = vmul.f32 1.442695, %v1842_v11 }
 0x225   :  { %8855 = vmatprep.mubr.f32.mxu1 %v7790_v53  ;;  %v2746_v61 = vsel %vm2745_vm3, %v2743_v30, %v2740_v9  ;;  %v2774_v45 = vadd.f32 1.0, %v11739_v49  ;;  %v1716_v37 = vand.u32 2147483647, %v11750_v17  ;;  %v2045_v38 = vmul.f32 1.442695, %v1843_v43 }
 0x226   :  { %v1717_v7 = vand.u32 2147483647, %v11756_v10  ;;  %v3370_v6 = vadd.f32 %v2746_v61, %v1322_v51  ;;  %vm1450_vm4 = vcmp.ne.f32.partialorder %v11585_v58, %v11585_v58  ;;  %v2752_v8 = vmul.f32 %v11698_v62, %v2751_v41 }
 0x227   :  { %v9228_v14 = vpop.eup %9227  ;;  %vm11772_vm5 = vcmp.lt.f32.partialorder %v2753_v63, 0.0004427343  ;;  %9237 = vlog2.f32 %v2774_v45  ;;  %v2760_v44 = vadd.f32 1.0, %v2759_v25  ;;  %v2768_v52 = vmul.f32 -0.5, %v11736_v0 }
 0x228   :  { %v3498_v28 = vsel %vm1450_vm4, %v11585_v58, %v3370_v6  ;;  %v2749_v4 = vmul.f32 0.6931472, %v9228_v14  ;;  %9239 = vpow2.f32 %v2043_v33  ;;  %v2762_v56 = vand.u32 2147483647, %v11718_v20 }
 0x229   :  { %v7791_v51 = vadd.f32 -0.6931472, %v3498_v28  ;;  %v2783_v47 = vadd.f32 1.0, %v11761_v26  ;;  %v1326_v55 = vmax.f32 %v11627_v50, 0.0  ;;  %v1325_v62 = vmax.f32 %v11632_v60, 0.0 }
 0x22a   :  { %v1844_v54 = vsub.f32 0.0, %v1716_v37  ;;  %v2755_v32 = vsel %vm11772_vm5, %v2752_v8, %v2749_v4  ;;  %v11786_v58 = vadd.f32 %v11746_v31, %v11726_v2  ;;  %v1845_v29 = vsub.f32 0.0, %v1717_v7 }
 0x22b   :  { %v9230_v22 = vpop.eup %9229  ;;  %8856 = vmatmul.mubr.f32.gmra.mxu1 %v7791_v51  ;;  %vm1451_vm6 = vcmp.ne.f32.partialorder %v11598_v19, %v11598_v19  ;;  %v3371_v42 = vadd.f32 %v2755_v32, %v1323_v34  ;;  %v2761_v39 = vmul.f32 %v11718_v20, %v2760_v44  ;;  %v2769_v16 = vadd.f32 1.0, %v2768_v52 }
 0x22c   :  { %v11790_v3 = vpop.eup %9231  ;;  %v2758_v18 = vmul.f32 0.6931472, %v9230_v22  ;;  %9241 = vlog2.f32 %v2783_v47  ;;  %vm2763_vm7 = vcmp.lt.f32.partialorder %v2762_v56, 0.0004427343  ;;  %v2777_v2 = vmul.f32 -0.5, %v11739_v49 }
 0x22d   :  { %9243 = vpow2.f32 %v2045_v38  ;;  %v3499_v11 = vsel %vm1451_vm6, %v11598_v19, %v3371_v42  ;;  %v2047_v12 = vmul.f32 1.442695, %v1844_v54  ;;  %v2771_v43 = vand.u32 2147483647, %v11736_v0 }
 0x22e   :  { %v7792_v21 = vadd.f32 -0.6931472, %v3499_v11  ;;  %v2764_v24 = vsel %vm2763_vm7, %v2761_v39, %v2758_v18  ;;  %v1718_v40 = vand.u32 2147483647, %v11786_v58  ;;  %v2049_v46 = vmul.f32 1.442695, %v1845_v29 }
 0x22f   :  { %v3372_v30 = vadd.f32 %v2764_v24, %v1324_v5  ;;  %v2792_v20 = vadd.f32 1.0, %v11790_v3  ;;  %v11799_v53 = vadd.f32 %v11746_v31, %v1008_v13  ;;  %vm1452_vm8 = vcmp.ne.f32.partialorder %v11610_v35, %v11610_v35 }
 0x230   :  { %v9234_v63 = vpop.eup %9233  ;;  %8858 = vmatprep.mubr.f32.mxu1 %v7792_v21  ;;  %v2770_v19 = vmul.f32 %v11736_v0, %v2769_v16  ;;  %v2780_v9 = vand.u32 2147483647, %v11739_v49  ;;  %v2778_v5 = vadd.f32 1.0, %v2777_v2  ;;  %vm2772_vm9 = vcmp.lt.f32.partialorder %v2771_v43, 0.0004427343  ;;  %v1018_v0 = vpop.f32.mrf.mxu0 }
 0x231   :  { %v11805_v41 = vpop.eup %9235  ;;  %v3500_v25 = vsel %vm1452_vm8, %v11610_v35, %v3372_v30  ;;  %v2767_v34 = vmul.f32 0.6931472, %v9234_v63  ;;  %9245 = vlog2.f32 %v2792_v20  ;;  %v2786_v61 = vmul.f32 -0.5, %v11761_v26 }
 0x232   :  { %9247 = vpow2.f32 %v2047_v12  ;;  %v7793_v33 = vadd.f32 -0.6931472, %v3500_v25  ;;  %v1328_v45 = vmax.f32 %v11676_v27, 0.0  ;;  %v1846_v37 = vsub.f32 0.0, %v1718_v40  ;;  %v11823_v56 = vpop.f32.mrf.mxu0 }
 0x233   :  { %v11811_v38 = vadd.f32 %v11746_v31, %v8654_v15  ;;  %v2773_v7 = vsel %vm2772_vm9, %v2770_v19, %v2767_v34  ;;  %9249 = vpow2.f32 %v2049_v46  ;;  %v1719_v35 = vand.u32 2147483647, %v11799_v53 }
 0x234   :  { %v9238_v6 = vpop.eup %9237  ;;  %8859 = vmatmul.mubr.f32.gmra.mxu1 %v7793_v33  ;;  %v3373_v14 = vadd.f32 %v2773_v7, %v1325_v62  ;;  %v2801_v8 = vadd.f32 1.0, %v11805_v41  ;;  %vm1453_vm10 = vcmp.ne.f32.partialorder %v11632_v60, %v11632_v60  ;;  %v2779_v28 = vmul.f32 %v11739_v49, %v2778_v5  ;;  %v1028_v12 = vpop.f32.mrf.mxu0 }
 0x235   :  { %v2776_v36 = vmul.f32 0.6931472, %v9238_v6  ;;  %vm2781_vm11 = vcmp.lt.f32.partialorder %v2780_v9, 0.0004427343  ;;  %v11818_v4 = vpop.eup %9239  ;;  %v2787_v44 = vadd.f32 1.0, %v2786_v61  ;;  %v2795_v52 = vmul.f32 -0.5, %v11790_v3 }
 0x236   :  { %v3501_v15 = vsel %vm1453_vm10, %v11632_v60, %v3373_v14  ;;  %9251 = vlog2.f32 %v2801_v8  ;;  %v1327_v51 = vmax.f32 %v11647_v48, 0.0  ;;  %v2789_v54 = vand.u32 2147483647, %v11761_v26 }
 0x237   :  { %v7794_v47 = vadd.f32 -0.6931472, %v3501_v15  ;;  %v2782_v62 = vsel %vm2781_vm11, %v2779_v28, %v2776_v36  ;;  %v2051_v32 = vmul.f32 1.442695, %v1846_v37  ;;  %v1720_v49 = vand.u32 2147483647, %v11811_v38 }
 0x238   :  { %v1847_v22 = vsub.f32 0.0, %v1719_v35  ;;  %v3374_v29 = vadd.f32 %v2782_v62, %v1326_v55  ;;  %v11830_v13 = vadd.f32 %v11746_v31, %v8657_v59  ;;  %v11833_v42 = vadd.f32 %v11746_v31, %v1018_v0 }
 0x239   :  { %v9242_v60 = vpop.eup %9241  ;;  %8861 = vmatprep.mubr.f32.mxu1 %v7794_v47  ;;  %vm1454_vm12 = vcmp.ne.f32.partialorder %v11627_v50, %v11627_v50  ;;  %v2810_v18 = vadd.f32 1.0, %v11818_v4  ;;  %v2788_v55 = vmul.f32 %v11761_v26, %v2787_v44  ;;  %v2796_v2 = vadd.f32 1.0, %v2795_v52 }
 0x23a   :  { %v11838_v39 = vpop.eup %9243  ;;  %v3502_v16 = vsel %vm1454_vm12, %v11627_v50, %v3374_v29  ;;  %v2785_v11 = vmul.f32 0.6931472, %v9242_v60  ;;  %vm2790_vm13 = vcmp.lt.f32.partialorder %v2789_v54, 0.0004427343  ;;  %v2804_v24 = vmul.f32 -0.5, %v11805_v41 }
 0x23b   :  { %v7795_v21 = vadd.f32 -0.6931472, %v3502_v16  ;;  %9253 = vlog2.f32 %v2810_v18  ;;  %v1848_v43 = vsub.f32 0.0, %v1720_v49  ;;  %v2798_v46 = vand.u32 2147483647, %v11790_v3 }
 0x23c   :  { %9255 = vpow2.f32 %v2051_v32  ;;  %v2791_v40 = vsel %vm2790_vm13, %v2788_v55, %v2785_v11  ;;  %v2053_v59 = vmul.f32 1.442695, %v1847_v22  ;;  %v1722_v30 = vand.u32 2147483647, %v11830_v13 }
 0x23d   :  { %8862 = vmatmul.mubr.f32.gmra.mxu1 %v7795_v21  ;;  %v3375_v50 = vadd.f32 %v2791_v40, %v1327_v51  ;;  %v2819_v20 = vadd.f32 1.0, %v11838_v39  ;;  %v1721_v63 = vand.u32 2147483647, %v11833_v42  ;;  %v11848_v19 = vadd.f32 %v11746_v31, %v1028_v12 }
 0x23e   :  { %v9246_v26 = vpop.eup %9245  ;;  %vm1455_vm14 = vcmp.ne.f32.partialorder %v11647_v48, %v11647_v48  ;;  %v2797_v9 = vmul.f32 %v11790_v3, %v2796_v2  ;;  %v2805_v33 = vadd.f32 1.0, %v2804_v24  ;;  %v1330_v61 = vmax.f32 %v11705_v57, 0.0 }
 0x23f   :  { %v11853_v25 = vpop.eup %9247  ;;  %v3503_v34 = vsel %vm1455_vm14, %v11647_v48, %v3375_v50  ;;  %v2794_v5 = vmul.f32 0.6931472, %v9246_v26  ;;  %9257 = vlog2.f32 %v2819_v20  ;;  %vm2799_vm15 = vcmp.lt.f32.partialorder %v2798_v46, 0.0004427343  ;;  %v11862_v48 = vpop.f32.mrf.mxu0 }
 0x240   :  { %v7796_v37 = vadd.f32 -0.6931472, %v3503_v34  ;;  %v2813_v0 = vmul.f32 -0.5, %v11818_v4  ;;  %v11858_v7 = vpop.eup %9249  ;;  %v2055_v6 = vmul.f32 1.442695, %v1848_v43  ;;  %9259 = vpow2.f32 %v2053_v59 }
 0x241   :  { %v2800_v35 = vsel %vm2799_vm15, %v2797_v9, %v2794_v5  ;;  %v2807_v3 = vand.u32 2147483647, %v11805_v41  ;;  %v1329_v14 = vmax.f32 %v11691_v1, 0.0  ;;  %v1849_v8 = vsub.f32 0.0, %v1721_v63  ;;  %v1038_v22 = vpop.f32.mrf.mxu0 }
 0x242   :  { %8864 = vmatprep.mubr.f32.mxu1 %v7796_v37  ;;  %v3376_v36 = vadd.f32 %v2800_v35, %v1328_v45  ;;  %v2828_v28 = vadd.f32 1.0, %v11853_v25  ;;  %v1850_v44 = vsub.f32 0.0, %v1722_v30  ;;  %v1723_v52 = vand.u32 2147483647, %v11848_v19 }
 0x243   :  { %v9252_v15 = vpop.eup %9251  ;;  %vm1456_vm0 = vcmp.ne.f32.partialorder %v11676_v27, %v11676_v27  ;;  %v2806_v51 = vmul.f32 %v11805_v41, %v2805_v33  ;;  %v2814_v54 = vadd.f32 1.0, %v2813_v0  ;;  %vm2808_vm1 = vcmp.lt.f32.partialorder %v2807_v3, 0.0004427343  ;;  %v11887_v46 = vpop.f32.mrf.mxu0 }
 0x244   :  { %v3504_v47 = vsel %vm1456_vm0, %v11676_v27, %v3376_v36  ;;  %v2803_v62 = vmul.f32 0.6931472, %v9252_v15  ;;  %9261 = vlog2.f32 %v2828_v28  ;;  %v2822_v45 = vmul.f32 -0.5, %v11838_v39 }
 0x245   :  { %9263 = vpow2.f32 %v2055_v6  ;;  %v7797_v32 = vadd.f32 -0.6931472, %v3504_v47  ;;  %v2057_v49 = vmul.f32 1.442695, %v1849_v8  ;;  %v2816_v60 = vand.u32 2147483647, %v11818_v4  ;;  %v1048_v0 = vpop.f32.mrf.mxu0 }
 0x246   :  { %v2809_v29 = vsel %vm2808_vm1, %v2806_v51, %v2803_v62  ;;  %v2837_v18 = vadd.f32 1.0, %v11858_v7  ;;  %v2059_v16 = vmul.f32 1.442695, %v1850_v44  ;;  %v11877_v41 = vadd.f32 %v11746_v31, %v11823_v56 }
 0x247   :  { %v1851_v27 = vsub.f32 0.0, %v1723_v52  ;;  %8865 = vmatmul.mubr.f32.gmra.mxu1 %v7797_v32  ;;  %v3377_v11 = vadd.f32 %v2809_v29, %v1329_v14  ;;  %v1331_v2 = vmax.f32 %v11709_v23, 0.0  ;;  %vm1457_vm2 = vcmp.ne.f32.partialorder %v11691_v1, %v11691_v1 }
 0x248   :  { %v9254_v55 = vpop.eup %9253  ;;  %v2815_v12 = vmul.f32 %v11818_v4, %v2814_v54  ;;  %9265 = vlog2.f32 %v2837_v18  ;;  %v2823_v40 = vadd.f32 1.0, %v2822_v45  ;;  %v2825_v56 = vand.u32 2147483647, %v11838_v39 }
 0x249   :  { %v11883_v21 = vpop.eup %9255  ;;  %v3505_v24 = vsel %vm1457_vm2, %v11691_v1, %v3377_v11  ;;  %v2812_v43 = vmul.f32 0.6931472, %v9254_v55  ;;  %9267 = vpow2.f32 %v2057_v49  ;;  %vm2817_vm3 = vcmp.lt.f32.partialorder %v2816_v60, 0.0004427343 }
 0x24a   :  { %v7798_v59 = vadd.f32 -0.6931472, %v3505_v24  ;;  %v2831_v30 = vmul.f32 -0.5, %v11853_v25  ;;  %9269 = vpow2.f32 %v2059_v16  ;;  %v1724_v50 = vand.u32 2147483647, %v11877_v41 }
 0x24b   :  { %v2061_v4 = vmul.f32 1.442695, %v1851_v27  ;;  %v2818_v20 = vsel %vm2817_vm3, %v2815_v12, %v2812_v43  ;;  %v11892_v63 = vadd.f32 %v11746_v31, %v1038_v22  ;;  %vm1458_vm4 = vcmp.ne.f32.partialorder %v11705_v57, %v11705_v57 }
 0x24c   :  { %v9258_v26 = vpop.eup %9257  ;;  %8867 = vmatprep.mubr.f32.mxu1 %v7798_v59  ;;  %v3378_v1 = vadd.f32 %v2818_v20, %v1330_v61  ;;  %v2846_v9 = vadd.f32 1.0, %v11883_v21  ;;  %v2824_v5 = vmul.f32 %v11838_v39, %v2823_v40  ;;  %vm2826_vm5 = vcmp.lt.f32.partialorder %v2825_v56, 0.0004427343  ;;  %v8669_v59 = vpop.f32.mrf.mxu0 }
 0x24d   :  { %v2821_v34 = vmul.f32 0.6931472, %v9258_v26  ;;  %v2834_v33 = vand.u32 2147483647, %v11853_v25  ;;  %v11899_v37 = vpop.eup %9259  ;;  %v2832_v35 = vadd.f32 1.0, %v2831_v30  ;;  %v2840_v3 = vmul.f32 -0.5, %v11858_v7 }
 0x24e   :  { %v3506_v6 = vsel %vm1458_vm4, %v11705_v57, %v3378_v1  ;;  %9271 = vlog2.f32 %v2846_v9  ;;  %v1332_v14 = vmax.f32 %v11750_v17, 0.0  ;;  %v1852_v61 = vsub.f32 0.0, %v1724_v50 }
 0x24f   :  { %v7799_v8 = vadd.f32 -0.6931472, %v3506_v6  ;;  %v2827_v36 = vsel %vm2826_vm5, %v2824_v5, %v2821_v34  ;;  %9273 = vpow2.f32 %v2061_v4  ;;  %v11906_v39 = vadd.f32 %v11746_v31, %v11862_v48 }
 0x250   :  { %v1725_v28 = vand.u32 2147483647, %v11892_v63  ;;  %v3379_v15 = vadd.f32 %v2827_v36, %v1331_v2  ;;  %v11910_v57 = vadd.f32 %v11746_v31, %v1048_v0  ;;  %vm1459_vm6 = vcmp.ne.f32.partialorder %v11709_v23, %v11709_v23 }
 0x251   :  { %v9262_v44 = vpop.eup %9261  ;;  %8868 = vmatmul.mubr.f32.gmra.mxu1 %v7799_v8  ;;  %vm11914_vm7 = vcmp.lt.f32.partialorder %v2834_v33, 0.0004427343  ;;  %v2855_v51 = vadd.f32 1.0, %v11899_v37  ;;  %v2833_v54 = vmul.f32 %v11853_v25, %v2832_v35  ;;  %v2841_v32 = vadd.f32 1.0, %v2840_v3  ;;  %v1058_v3 = vpop.f32.mrf.mxu0 }
 0x252   :  { %v11919_v47 = vpop.eup %9263  ;;  %v3507_v48 = vsel %vm1459_vm6, %v11709_v23, %v3379_v15  ;;  %v2830_v62 = vmul.f32 0.6931472, %v9262_v44  ;;  %v2843_v49 = vand.u32 2147483647, %v11858_v7  ;;  %v2849_v22 = vmul.f32 -0.5, %v11883_v21 }
 0x253   :  { %v7800_v45 = vadd.f32 -0.6931472, %v3507_v48  ;;  %9275 = vlog2.f32 %v2855_v51  ;;  %v1333_v29 = vmax.f32 %v11756_v10, 0.0  ;;  %v2063_v60 = vmul.f32 1.442695, %v1852_v61 }
 0x254   :  { %v2836_v18 = vsel %vm11914_vm7, %v2833_v54, %v2830_v62  ;;  %v1726_v27 = vand.u32 2147483647, %v11906_v39  ;;  %v1853_v23 = vsub.f32 0.0, %v1725_v28  ;;  %v2864_v25 = vadd.f32 1.0, %v11919_v47 }
 0x255   :  { %v9266_v16 = vpop.eup %9265  ;;  %8870 = vmatprep.mubr.f32.mxu1 %v7800_v45  ;;  %v3380_v11 = vadd.f32 %v2836_v18, %v1332_v14  ;;  %v1727_v55 = vand.u32 2147483647, %v11910_v57  ;;  %vm1460_vm8 = vcmp.ne.f32.partialorder %v11750_v17, %v11750_v17  ;;  %v2842_v12 = vmul.f32 %v11858_v7, %v2841_v32  ;;  %v8672_v18 = vpop.f32.mrf.mxu0 }
 0x256   :  { %v2839_v2 = vmul.f32 0.6931472, %v9266_v16  ;;  %v11934_v24 = vpop.eup %9267  ;;  %vm2844_vm9 = vcmp.lt.f32.partialorder %v2843_v49, 0.0004427343  ;;  %v2850_v40 = vadd.f32 1.0, %v2849_v22  ;;  %9277 = vlog2.f32 %v2864_v25 }
 0x257   :  { %v3508_v43 = vsel %vm1460_vm8, %v11750_v17, %v3380_v11  ;;  %v11937_v56 = vpop.eup %9269  ;;  %9279 = vpow2.f32 %v2063_v60  ;;  %v2858_v4 = vmul.f32 -0.5, %v11899_v37  ;;  %v1334_v20 = vmax.f32 %v11786_v58, 0.0 }
 0x258   :  { %v7801_v30 = vadd.f32 -0.6931472, %v3508_v43  ;;  %v2845_v50 = vsel %vm2844_vm9, %v2842_v12, %v2839_v2  ;;  %v2065_v26 = vmul.f32 1.442695, %v1853_v23  ;;  %v2852_v7 = vand.u32 2147483647, %v11883_v21 }
 0x259   :  { %v3381_v1 = vadd.f32 %v2845_v50, %v1333_v29  ;;  %v1854_v9 = vsub.f32 0.0, %v1726_v27  ;;  %v11944_v17 = vadd.f32 %v11746_v31, %v11887_v46  ;;  %vm1461_vm10 = vcmp.ne.f32.partialorder %v11756_v10, %v11756_v10 }
 0x25a   :  { %8871 = vmatmul.mubr.f32.gmra.mxu1 %v7801_v30  ;;  %v2873_v34 = vadd.f32 1.0, %v11934_v24  ;;  %v1855_v33 = vsub.f32 0.0, %v1727_v55  ;;  %v2851_v6 = vmul.f32 %v11883_v21, %v2850_v40  ;;  %v2861_v35 = vand.u32 2147483647, %v11899_v37 }
 0x25b   :  { %v9272_v5 = vpop.eup %9271  ;;  %v3509_v0 = vsel %vm1461_vm10, %v11756_v10, %v3381_v1  ;;  %v2859_v8 = vadd.f32 1.0, %v2858_v4  ;;  %v1335_v36 = vmax.f32 %v11799_v53, 0.0  ;;  %vm2853_vm11 = vcmp.lt.f32.partialorder %v2852_v7, 0.0004427343  ;;  %v1068_v4 = vpop.f32.mrf.mxu0 }
 0x25c   :  { %v7802_v14 = vadd.f32 -0.6931472, %v3509_v0  ;;  %v2848_v61 = vmul.f32 0.6931472, %v9272_v5  ;;  %9281 = vlog2.f32 %v2873_v34  ;;  %v11952_v46 = vpop.eup %9273  ;;  %v2867_v28 = vmul.f32 -0.5, %v11919_v47 }
 0x25d   :  { %9283 = vpow2.f32 %v2065_v26  ;;  %v2067_v15 = vmul.f32 1.442695, %v1854_v9  ;;  %v1728_v10 = vand.u32 2147483647, %v11944_v17  ;;  %v2882_v44 = vadd.f32 1.0, %v11937_v56 }
 0x25e   :  { %8873 = vmatprep.mubr.f32.mxu1 %v7802_v14  ;;  %v2854_v21 = vsel %vm2853_vm11, %v2851_v6, %v2848_v61  ;;  %v2069_v52 = vmul.f32 1.442695, %v1855_v33  ;;  %v11959_v51 = vadd.f32 %v11746_v31, %v8669_v59  ;;  %v11962_v48 = vadd.f32 %v11746_v31, %v1058_v3 }
 0x25f   :  { %v3382_v62 = vadd.f32 %v2854_v21, %v1334_v20  ;;  %vm1462_vm12 = vcmp.ne.f32.partialorder %v11786_v58, %v11786_v58  ;;  %v2860_v32 = vmul.f32 %v11899_v37, %v2859_v8  ;;  %vm11967_vm13 = vcmp.lt.f32.partialorder %v2861_v35, 0.0004427343 }
 0x260   :  { %v9276_v54 = vpop.eup %9275  ;;  %9285 = vlog2.f32 %v2882_v44  ;;  %v2868_v29 = vadd.f32 1.0, %v2867_v28  ;;  %v2876_v60 = vmul.f32 -0.5, %v11934_v24  ;;  %v2870_v27 = vand.u32 2147483647, %v11919_v47  ;;  %v8675_v28 = vpop.f32.mrf.mxu0 }
 0x261   :  { %v3510_v49 = vsel %vm1462_vm12, %v11786_v58, %v3382_v62  ;;  %v2857_v22 = vmul.f32 0.6931472, %v9276_v54  ;;  %9287 = vpow2.f32 %v2067_v15  ;;  %v2891_v23 = vadd.f32 1.0, %v11952_v46 }
 0x262   :  { %v7803_v16 = vadd.f32 -0.6931472, %v3510_v49  ;;  %v1336_v37 = vmax.f32 %v11811_v38, 0.0  ;;  %v1337_v11 = vmax.f32 %v11833_v42, 0.0  ;;  %v1856_v25 = vsub.f32 0.0, %v1728_v10 }
 0x263   :  { %v2863_v55 = vsel %vm11967_vm13, %v2860_v32, %v2857_v22  ;;  %v9278_v58 = vpop.eup %9277  ;;  %v1730_v2 = vand.u32 2147483647, %v11959_v51  ;;  %v1729_v12 = vand.u32 2147483647, %v11962_v48  ;;  %vm1463_vm14 = vcmp.ne.f32.partialorder %v11799_v53, %v11799_v53 }
 0x264   :  { %8874 = vmatmul.mubr.f32.gmra.mxu1 %v7803_v16  ;;  %v3383_v43 = vadd.f32 %v2863_v55, %v1335_v36  ;;  %v11983_v40 = vpop.eup %9279  ;;  %v2866_v59 = vmul.f32 0.6931472, %v9278_v58  ;;  %v2869_v30 = vmul.f32 %v11919_v47, %v2868_v29  ;;  %v2877_v50 = vadd.f32 1.0, %v2876_v60  ;;  %v1078_v60 = vpop.f32.mrf.mxu0 }
 0x265   :  { %9289 = vlog2.f32 %v2891_v23  ;;  %vm2871_vm15 = vcmp.lt.f32.partialorder %v2870_v27, 0.0004427343  ;;  %v2885_v26 = vmul.f32 -0.5, %v11937_v56  ;;  %v2071_v1 = vmul.f32 1.442695, %v1856_v25 }
 0x266   :  { %9291 = vpow2.f32 %v2069_v52  ;;  %v3511_v20 = vsel %vm1463_vm14, %v11799_v53, %v3383_v43  ;;  %v2872_v9 = vsel %vm2871_vm15, %v2869_v30, %v2866_v59  ;;  %v2879_v34 = vand.u32 2147483647, %v11934_v24 }
 0x267   :  { %v7804_v7 = vadd.f32 -0.6931472, %v3511_v20  ;;  %v1858_v5 = vsub.f32 0.0, %v1730_v2  ;;  %v1857_v33 = vsub.f32 0.0, %v1729_v12  ;;  %v3384_v0 = vadd.f32 %v2872_v9, %v1336_v37 }
 0x268   :  { %v2900_v6 = vadd.f32 1.0, %v11983_v40  ;;  %v11991_v35 = vadd.f32 %v11746_v31, %v1068_v4  ;;  %vm1464_vm0 = vcmp.ne.f32.partialorder %v11811_v38, %v11811_v38  ;;  %v2878_v53 = vmul.f32 %v11934_v24, %v2877_v50 }
 0x269   :  { %v9282_v47 = vpop.eup %9281  ;;  %8876 = vmatprep.mubr.f32.mxu1 %v7804_v7  ;;  %v2888_v3 = vand.u32 2147483647, %v11937_v56  ;;  %v3512_v61 = vsel %vm1464_vm0, %v11811_v38, %v3384_v0  ;;  %v2886_v36 = vadd.f32 1.0, %v2885_v26  ;;  %vm2880_vm1 = vcmp.lt.f32.partialorder %v2879_v34, 0.0004427343 }
 0x26a   :  { %v11997_v14 = vpop.eup %9283  ;;  %v2875_v8 = vmul.f32 0.6931472, %v9282_v47  ;;  %9293 = vlog2.f32 %v2900_v6  ;;  %v7805_v15 = vadd.f32 -0.6931472, %v3512_v61  ;;  %v2894_v10 = vmul.f32 -0.5, %v11952_v46 }
 0x26b   :  { %9295 = vpow2.f32 %v2071_v1  ;;  %v1338_v21 = vmax.f32 %v11830_v13, 0.0  ;;  %v2075_v44 = vmul.f32 1.442695, %v1858_v5  ;;  %v2073_v52 = vmul.f32 1.442695, %v1857_v33  ;;  %v12028_v1 = vpop.f32.mrf.mxu0 }
 0x26c   :  { %v2881_v24 = vsel %vm2880_vm1, %v2878_v53, %v2875_v8  ;;  %v12003_v54 = vadd.f32 %v11746_v31, %v8672_v18  ;;  %v1731_v38 = vand.u32 2147483647, %v11991_v35  ;;  %8877 = vmatmul.mubr.f32.gmra.mxu1 %v7805_v15  ;;  %v2909_v45 = vadd.f32 1.0, %v11997_v14 }
 0x26d   :  { %v9286_v62 = vpop.eup %9285  ;;  %v3385_v32 = vadd.f32 %v2881_v24, %v1337_v11  ;;  %vm1465_vm2 = vcmp.ne.f32.partialorder %v11833_v42, %v11833_v42  ;;  %v2887_v22 = vmul.f32 %v11937_v56, %v2886_v36  ;;  %vm2889_vm3 = vcmp.lt.f32.partialorder %v2888_v3, 0.0004427343  ;;  %v1088_v15 = vpop.f32.mrf.mxu0 }
 0x26e   :  { %v2884_v49 = vmul.f32 0.6931472, %v9286_v62  ;;  %v12010_v29 = vpop.eup %9287  ;;  %v2895_v18 = vadd.f32 1.0, %v2894_v10  ;;  %v2903_v27 = vmul.f32 -0.5, %v11983_v40  ;;  %9297 = vlog2.f32 %v2909_v45 }
 0x26f   :  { %v3513_v16 = vsel %vm1465_vm2, %v11833_v42, %v3385_v32  ;;  %9299 = vpow2.f32 %v2073_v52  ;;  %v2897_v11 = vand.u32 2147483647, %v11952_v46  ;;  %v1339_v25 = vmax.f32 %v11848_v19, 0.0 }
 0x270   :  { %v7806_v23 = vadd.f32 -0.6931472, %v3513_v16  ;;  %v2890_v37 = vsel %vm2889_vm3, %v2887_v22, %v2884_v49  ;;  %9301 = vpow2.f32 %v2075_v44  ;;  %v1732_v56 = vand.u32 2147483647, %v12003_v54 }
 0x271   :  { %v3386_v55 = vadd.f32 %v2890_v37, %v1338_v21  ;;  %v1859_v2 = vsub.f32 0.0, %v1731_v38  ;;  %v12018_v12 = vadd.f32 %v11746_v31, %v1078_v60  ;;  %vm1466_vm4 = vcmp.ne.f32.partialorder %v11830_v13, %v11830_v13 }
 0x272   :  { %v9290_v58 = vpop.eup %9289  ;;  %8879 = vmatprep.mubr.f32.mxu1 %v7806_v23  ;;  %v2918_v42 = vadd.f32 1.0, %v12010_v29  ;;  %v2896_v50 = vmul.f32 %v11952_v46, %v2895_v18  ;;  %v2904_v4 = vadd.f32 1.0, %v2903_v27  ;;  %vm2898_vm5 = vcmp.lt.f32.partialorder %v2897_v11, 0.0004427343 }
 0x273   :  { %v12023_v43 = vpop.eup %9291  ;;  %v3514_v59 = vsel %vm1466_vm4, %v11830_v13, %v3386_v55  ;;  %v2893_v30 = vmul.f32 0.6931472, %v9290_v58  ;;  %v2912_v26 = vmul.f32 -0.5, %v11997_v14  ;;  %v2906_v9 = vand.u32 2147483647, %v11983_v40 }
 0x274   :  { %v7807_v20 = vadd.f32 -0.6931472, %v3514_v59  ;;  %9303 = vlog2.f32 %v2918_v42  ;;  %v1860_v34 = vsub.f32 0.0, %v1732_v56  ;;  %v2077_v5 = vmul.f32 1.442695, %v1859_v2 }
 0x275   :  { %v2899_v7 = vsel %vm2898_vm5, %v2896_v50, %v2893_v30  ;;  %v2927_v13 = vadd.f32 1.0, %v12023_v43  ;;  %v12033_v46 = vadd.f32 %v11746_v31, %v8675_v28  ;;  %v1733_v6 = vand.u32 2147483647, %v12018_v12 }
 0x276   :  { %8880 = vmatmul.mubr.f32.gmra.mxu1 %v7807_v20  ;;  %v3387_v33 = vadd.f32 %v2899_v7, %v1339_v25  ;;  %vm1467_vm6 = vcmp.ne.f32.partialorder %v11848_v19, %v11848_v19  ;;  %v2905_v47 = vmul.f32 %v11983_v40, %v2904_v4  ;;  %v2913_v8 = vadd.f32 1.0, %v2912_v26  ;;  %v8681_v26 = vpop.f32.mrf.mxu0 }
 0x277   :  { %v9294_v0 = vpop.eup %9293  ;;  %9305 = vlog2.f32 %v2927_v13  ;;  %v1340_v36 = vmax.f32 %v11877_v41, 0.0  ;;  %vm2907_vm7 = vcmp.lt.f32.partialorder %v2906_v9, 0.0004427343  ;;  %v2921_v28 = vmul.f32 -0.5, %v12010_v29 }
 0x278   :  { %v12039_v53 = vpop.eup %9295  ;;  %v3515_v3 = vsel %vm1467_vm6, %v11848_v19, %v3387_v33  ;;  %v2902_v61 = vmul.f32 0.6931472, %v9294_v0  ;;  %v2079_v21 = vmul.f32 1.442695, %v1860_v34  ;;  %9307 = vpow2.f32 %v2077_v5 }
 0x279   :  { %v7808_v10 = vadd.f32 -0.6931472, %v3515_v3  ;;  %v2915_v52 = vand.u32 2147483647, %v11997_v14  ;;  %v1734_v40 = vand.u32 2147483647, %v12033_v46  ;;  %v12048_v32 = vadd.f32 %v11746_v31, %v1088_v15 }
 0x27a   :  { %v2908_v44 = vsel %vm2907_vm7, %v2905_v47, %v2902_v61  ;;  %v1861_v24 = vsub.f32 0.0, %v1733_v6  ;;  %v2936_v62 = vadd.f32 1.0, %v12039_v53  ;;  %vm1468_vm8 = vcmp.ne.f32.partialorder %v11877_v41, %v11877_v41 }
 0x27b   :  { %8882 = vmatprep.mubr.f32.mxu1 %v7808_v10  ;;  %v3388_v19 = vadd.f32 %v2908_v44, %v1340_v36  ;;  %v9298_v38 = vpop.eup %9297  ;;  %v2914_v45 = vmul.f32 %v11997_v14, %v2913_v8  ;;  %v2924_v49 = vand.u32 2147483647, %v12010_v29  ;;  %v2922_v18 = vadd.f32 1.0, %v2921_v28  ;;  %v1098_v36 = vpop.f32.mrf.mxu0 }
 0x27c   :  { %v12054_v22 = vpop.eup %9299  ;;  %v2911_v16 = vmul.f32 0.6931472, %v9298_v38  ;;  %9309 = vlog2.f32 %v2936_v62  ;;  %v1341_v23 = vmax.f32 %v11892_v63, 0.0  ;;  %vm2916_vm9 = vcmp.lt.f32.partialorder %v2915_v52, 0.0004427343 }
 0x27d   :  { %v3516_v60 = vsel %vm1468_vm8, %v11877_v41, %v3388_v19  ;;  %v12057_v27 = vpop.eup %9301  ;;  %v2930_v11 = vmul.f32 -0.5, %v12023_v43  ;;  %9311 = vpow2.f32 %v2079_v21  ;;  %v1862_v14 = vsub.f32 0.0, %v1734_v40 }
 0x27e   :  { %v7809_v37 = vadd.f32 -0.6931472, %v3516_v60  ;;  %v2917_v25 = vsel %vm2916_vm9, %v2914_v45, %v2911_v16  ;;  %v2081_v56 = vmul.f32 1.442695, %v1861_v24  ;;  %v2945_v58 = vadd.f32 1.0, %v12054_v22 }
 0x27f   :  { %v3389_v55 = vadd.f32 %v2917_v25, %v1341_v23  ;;  %v1735_v2 = vand.u32 2147483647, %v12048_v32  ;;  %vm1469_vm10 = vcmp.ne.f32.partialorder %v11892_v63, %v11892_v63  ;;  %v2923_v42 = vmul.f32 %v12010_v29, %v2922_v18 }
 0x280   :  { %8883 = vmatmul.mubr.f32.gmra.mxu1 %v7809_v37  ;;  %vm12066_vm11 = vcmp.lt.f32.partialorder %v2924_v49, 0.0004427343  ;;  %v2931_v4 = vadd.f32 1.0, %v2930_v11  ;;  %9313 = vlog2.f32 %v2945_v58  ;;  %v1342_v20 = vmax.f32 %v11906_v39, 0.0 }
 0x281   :  { %v9304_v41 = vpop.eup %9303  ;;  %v3517_v30 = vsel %vm1469_vm10, %v11892_v63, %v3389_v55  ;;  %v2933_v9 = vand.u32 2147483647, %v12023_v43  ;;  %v2939_v34 = vmul.f32 -0.5, %v12039_v53  ;;  %v1343_v5 = vmax.f32 %v11910_v57, 0.0 }
 0x282   :  { %v2920_v50 = vmul.f32 0.6931472, %v9304_v41  ;;  %v7810_v7 = vadd.f32 -0.6931472, %v3517_v30  ;;  %v2083_v29 = vmul.f32 1.442695, %v1862_v14  ;;  %9315 = vpow2.f32 %v2081_v56 }
 0x283   :  { %v2954_v13 = vadd.f32 1.0, %v12057_v27  ;;  %v12080_v0 = vadd.f32 %v11746_v31, %v12028_v1  ;;  %v1863_v6 = vsub.f32 0.0, %v1735_v2  ;;  %vm1470_vm12 = vcmp.ne.f32.partialorder %v11906_v39, %v11906_v39 }
 0x284   :  { %v2926_v33 = vsel %vm12066_vm11, %v2923_v42, %v2920_v50  ;;  %v9306_v63 = vpop.eup %9305  ;;  %8885 = vmatprep.mubr.f32.mxu1 %v7810_v7  ;;  %v2932_v61 = vmul.f32 %v12023_v43, %v2931_v4  ;;  %vm2934_vm13 = vcmp.lt.f32.partialorder %v2933_v9, 0.0004427343  ;;  %v2940_v10 = vadd.f32 1.0, %v2939_v34 }
 0x285   :  { %v3390_v47 = vadd.f32 %v2926_v33, %v1342_v20  ;;  %v2929_v3 = vmul.f32 0.6931472, %v9306_v63  ;;  %9317 = vlog2.f32 %v2954_v13  ;;  %v12085_v8 = vpop.eup %9307  ;;  %v2942_v1 = vand.u32 2147483647, %v12039_v53 }
 0x286   :  { %v2948_v44 = vmul.f32 -0.5, %v12054_v22  ;;  %v1344_v52 = vmax.f32 %v11944_v17, 0.0  ;;  %9319 = vpow2.f32 %v2083_v29  ;;  %v1736_v40 = vand.u32 2147483647, %v12080_v0 }
 0x287   :  { %v3518_v15 = vsel %vm1470_vm12, %v11906_v39, %v3390_v47  ;;  %v2935_v21 = vsel %vm2934_vm13, %v2932_v61, %v2929_v3  ;;  %v2085_v19 = vmul.f32 1.442695, %v1863_v6  ;;  %v12093_v62 = vadd.f32 %v11746_v31, %v1098_v36  ;;  %v8684_v36 = vpop.f32.mrf.mxu0 }
 0x288   :  { %v7811_v28 = vadd.f32 -0.6931472, %v3518_v15  ;;  %v3391_v43 = vadd.f32 %v2935_v21, %v1343_v5  ;;  %vm1471_vm14 = vcmp.ne.f32.partialorder %v11910_v57, %v11910_v57  ;;  %v2963_v39 = vadd.f32 1.0, %v12085_v8 }
 0x289   :  { %v9310_v24 = vpop.eup %9309  ;;  %v2941_v49 = vmul.f32 %v12039_v53, %v2940_v10  ;;  %vm2943_vm15 = vcmp.lt.f32.partialorder %v2942_v1, 0.0004427343  ;;  %v2949_v18 = vadd.f32 1.0, %v2948_v44  ;;  %v2957_v23 = vmul.f32 -0.5, %v12057_v27 }
 0x28a   :  { %8886 = vmatmul.mubr.f32.gmra.mxu1 %v7811_v28  ;;  %v3519_v38 = vsel %vm1471_vm14, %v11910_v57, %v3391_v43  ;;  %v2938_v45 = vmul.f32 0.6931472, %v9310_v24  ;;  %v12100_v60 = vpop.eup %9311  ;;  %9321 = vlog2.f32 %v2963_v39  ;;  %v2951_v37 = vand.u32 2147483647, %v12054_v22  ;;  %v12108_v57 = vld [vmem:[%s16823_s2] ss:$0 sm:$0xff]  ;;  %v1108_v39 = vpop.f32.mrf.mxu0 }
 0x28b   :  { %v7812_v16 = vadd.f32 -0.6931472, %v3519_v38  ;;  %v1345_v11 = vmax.f32 %v11962_v48, 0.0  ;;  %v1864_v25 = vsub.f32 0.0, %v1736_v40  ;;  %v12111_v53 = vadd.f32 %v12108_v57, %v8681_v26 }
 0x28c   :  { %v2944_v31 = vsel %vm2943_vm15, %v2941_v49, %v2938_v45  ;;  %9323 = vpow2.f32 %v2085_v19  ;;  %v1737_v55 = vand.u32 2147483647, %v12093_v62  ;;  %vm1472_vm0 = vcmp.ne.f32.partialorder %v11944_v17, %v11944_v17 }
 0x28d   :  { %8888 = vmatprep.mubr.f32.mxu1 %v7812_v16  ;;  %v3392_v14 = vadd.f32 %v2944_v31, %v1344_v52  ;;  %v9314_v56 = vpop.eup %9313  ;;  %v2972_v58 = vadd.f32 1.0, %v12100_v60  ;;  %v2950_v42 = vmul.f32 %v12054_v22, %v2949_v18  ;;  %v2958_v59 = vadd.f32 1.0, %v2957_v23 }
 0x28e   :  { %v2947_v2 = vmul.f32 0.6931472, %v9314_v56  ;;  %vm2952_vm1 = vcmp.lt.f32.partialorder %v2951_v37, 0.0004427343  ;;  %v2960_v50 = vand.u32 2147483647, %v12057_v27  ;;  %vm1473_vm2 = vcmp.ne.f32.partialorder %v11962_v48, %v11962_v48 }
 0x28f   :  { %v3520_v41 = vsel %vm1472_vm0, %v11944_v17, %v3392_v14  ;;  %9325 = vlog2.f32 %v2972_v58  ;;  %v12120_v4 = vpop.eup %9315  ;;  %v2966_v26 = vmul.f32 -0.5, %v12085_v8  ;;  %v2087_v9 = vmul.f32 1.442695, %v1864_v25 }
 0x290   :  { %v7813_v30 = vadd.f32 -0.6931472, %v3520_v41  ;;  %v2953_v20 = vsel %vm2952_vm1, %v2950_v42, %v2947_v2  ;;  %v1738_v17 = vand.u32 2147483647, %v12111_v53  ;;  %v2959_v5 = vmul.f32 %v12057_v27, %v2958_v59 }
 0x291   :  { %v3393_v34 = vadd.f32 %v2953_v20, %v1345_v11  ;;  %v1346_v29 = vmax.f32 %v11959_v51, 0.0  ;;  %v1865_v33 = vsub.f32 0.0, %v1737_v55  ;;  %vm2961_vm3 = vcmp.lt.f32.partialorder %v2960_v50, 0.0004427343 }
 0x292   :  { %v9318_v7 = vpop.eup %9317  ;;  %8889 = vmatmul.mubr.f32.gmra.mxu1 %v7813_v30  ;;  %v2967_v3 = vadd.f32 1.0, %v2966_v26  ;;  %v2975_v61 = vmul.f32 -0.5, %v12100_v60  ;;  %9327 = vpow2.f32 %v2087_v9  ;;  %v2969_v10 = vand.u32 2147483647, %v12085_v8 }
 0x293   :  { %v2956_v22 = vmul.f32 0.6931472, %v9318_v7  ;;  %v3521_v13 = vsel %vm1473_vm2, %v11962_v48, %v3393_v34  ;;  %v12129_v63 = vpop.eup %9319  ;;  %v2981_v27 = vadd.f32 1.0, %v12120_v4  ;;  %v1866_v1 = vsub.f32 0.0, %v1738_v17 }
 0x294   :  { %v7814_v6 = vadd.f32 -0.6931472, %v3521_v13  ;;  %vm1474_vm4 = vcmp.ne.f32.partialorder %v11959_v51, %v11959_v51  ;;  %v2089_v28 = vmul.f32 1.442695, %v1865_v33  ;;  %v2990_v44 = vadd.f32 1.0, %v12129_v63  ;;  %v8687_v33 = vpop.f32.mrf.mxu0 }
 0x295   :  { %v2962_v47 = vsel %vm2961_vm3, %v2959_v5, %v2956_v22  ;;  %9329 = vlog2.f32 %v2981_v27  ;;  %v2968_v43 = vmul.f32 %v12085_v8, %v2967_v3  ;;  %v2976_v24 = vadd.f32 1.0, %v2975_v61 }
 0x296   :  { %v3394_v15 = vadd.f32 %v2962_v47, %v1346_v29  ;;  %8891 = vmatprep.mubr.f32.mxu1 %v7814_v6  ;;  %v1347_v19 = vmax.f32 %v11991_v35, 0.0  ;;  %vm2970_vm5 = vcmp.lt.f32.partialorder %v2969_v10, 0.0004427343  ;;  %9331 = vlog2.f32 %v2990_v44 }
 0x297   :  { %v9322_v48 = vpop.eup %9321  ;;  %v2978_v49 = vand.u32 2147483647, %v12100_v60  ;;  %9333 = vpow2.f32 %v2089_v28  ;;  %v12144_v23 = vadd.f32 %v12108_v57, %v1108_v39  ;;  %vm1475_vm6 = vcmp.ne.f32.partialorder %v11991_v35, %v11991_v35 }
 0x298   :  { %v3522_v21 = vsel %vm1474_vm4, %v11959_v51, %v3394_v15  ;;  %v2965_v40 = vmul.f32 0.6931472, %v9322_v48  ;;  %v2091_v51 = vmul.f32 1.442695, %v1866_v1  ;;  %v2977_v8 = vmul.f32 %v12100_v60, %v2976_v24  ;;  %v1118_v1 = vpop.f32.mrf.mxu0 }
 0x299   :  { %v7815_v52 = vadd.f32 -0.6931472, %v3522_v21  ;;  %v12140_v38 = vpop.eup %9323  ;;  %v2984_v11 = vmul.f32 -0.5, %v12120_v4  ;;  %v1348_v14 = vmax.f32 %v12003_v54, 0.0  ;;  %vm2979_vm7 = vcmp.lt.f32.partialorder %v2978_v49, 0.0004427343 }
 0x29a   :  { %v2971_v45 = vsel %vm2970_vm5, %v2968_v43, %v2965_v40  ;;  %v2999_v25 = vadd.f32 1.0, %v12140_v38  ;;  %v2993_v55 = vmul.f32 -0.5, %v12129_v63  ;;  %v1739_v2 = vand.u32 2147483647, %v12144_v23 }
 0x29b   :  { %8892 = vmatmul.mubr.f32.gmra.mxu1 %v7815_v52  ;;  %v3395_v16 = vadd.f32 %v2971_v45, %v1347_v19  ;;  %vm1476_vm8 = vcmp.ne.f32.partialorder %v12003_v54, %v12003_v54  ;;  %v2987_v59 = vand.u32 2147483647, %v12120_v4  ;;  %v2996_v26 = vand.u32 2147483647, %v12129_v63 }
 0x29c   :  { %v9326_v18 = vpop.eup %9325  ;;  %9335 = vlog2.f32 %v2999_v25  ;;  %v2994_v30 = vadd.f32 1.0, %v2993_v55  ;;  %v1867_v7 = vsub.f32 0.0, %v1739_v2  ;;  %v1349_v5 = vmax.f32 %v12018_v12, 0.0 }
 0x29d   :  { %v3523_v31 = vsel %vm1475_vm6, %v11991_v35, %v3395_v16  ;;  %v2974_v37 = vmul.f32 0.6931472, %v9326_v18  ;;  %v2985_v35 = vadd.f32 1.0, %v2984_v11  ;;  %9337 = vpow2.f32 %v2091_v51 }
 0x29e   :  { %v7816_v56 = vadd.f32 -0.6931472, %v3523_v31  ;;  %v12166_v29 = vadd.f32 %v12108_v57, %v8684_v36  ;;  %vm2988_vm9 = vcmp.lt.f32.partialorder %v2987_v59, 0.0004427343  ;;  %v3002_v47 = vmul.f32 -0.5, %v12140_v38 }
 0x29f   :  { %v2980_v58 = vsel %vm2979_vm7, %v2977_v8, %v2974_v37  ;;  %v12157_v60 = vpop.eup %9327  ;;  %v2986_v34 = vmul.f32 %v12120_v4, %v2985_v35  ;;  %v1350_v3 = vmax.f32 %v12033_v46, 0.0  ;;  %vm2997_vm10 = vcmp.lt.f32.partialorder %v2996_v26, 0.0004427343 }
 0x2a0   :  { %8894 = vmatprep.mubr.f32.mxu1 %v7816_v56  ;;  %v3396_v41 = vadd.f32 %v2980_v58, %v1348_v14  ;;  %v3008_v17 = vadd.f32 1.0, %v12157_v60  ;;  %v2093_v15 = vmul.f32 1.442695, %v1867_v7  ;;  %vm1477_vm11 = vcmp.ne.f32.partialorder %v12018_v12, %v12018_v12 }
 0x2a1   :  { %v1740_v27 = vand.u32 2147483647, %v12166_v29  ;;  %vm1478_vm12 = vcmp.ne.f32.partialorder %v12033_v46, %v12033_v46  ;;  %v3003_v28 = vadd.f32 1.0, %v3002_v47  ;;  %v3005_v44 = vand.u32 2147483647, %v12140_v38 }
 0x2a2   :  { %v3524_v42 = vsel %vm1476_vm8, %v12003_v54, %v3396_v41  ;;  %v9330_v20 = vpop.eup %9329  ;;  %v2995_v54 = vmul.f32 %v12129_v63, %v2994_v30  ;;  %9339 = vlog2.f32 %v3008_v17  ;;  %v3011_v52 = vmul.f32 -0.5, %v12157_v60 }
 0x2a3   :  { %v7817_v50 = vadd.f32 -0.6931472, %v3524_v42  ;;  %v2983_v9 = vmul.f32 0.6931472, %v9330_v20  ;;  %v9332_v22 = vpop.eup %9331  ;;  %9341 = vpow2.f32 %v2093_v15  ;;  %v12184_v24 = vadd.f32 %v12108_v57, %v1118_v1 }
 0x2a4   :  { %v2992_v6 = vmul.f32 0.6931472, %v9332_v22  ;;  %v12171_v61 = vpop.eup %9333  ;;  %v1868_v39 = vsub.f32 0.0, %v1740_v27  ;;  %v1351_v49 = vmax.f32 %v12048_v32, 0.0  ;;  %vm3006_vm13 = vcmp.lt.f32.partialorder %v3005_v44, 0.0004427343 }
 0x2a5   :  { %8895 = vmatmul.mubr.f32.gmra.mxu1 %v7817_v50  ;;  %v2989_v13 = vsel %vm2988_vm9, %v2986_v34, %v2983_v9  ;;  %v3012_v51 = vadd.f32 1.0, %v3011_v52  ;;  %v1741_v18 = vand.u32 2147483647, %v12184_v24  ;;  %v3014_v31 = vand.u32 2147483647, %v12157_v60 }
 0x2a6   :  { %v3397_v4 = vadd.f32 %v2989_v13, %v1349_v5  ;;  %v2998_v36 = vsel %vm2997_vm10, %v2995_v54, %v2992_v6  ;;  %v2095_v11 = vmul.f32 1.442695, %v1868_v39  ;;  %vm1479_vm14 = vcmp.ne.f32.partialorder %v12048_v32, %v12048_v32 }
 0x2a7   :  { %v3398_v63 = vadd.f32 %v2998_v36, %v1350_v3  ;;  %v3013_v14 = vmul.f32 %v12157_v60, %v3012_v51  ;;  %v3020_v58 = vmul.f32 -0.5, %v12171_v61  ;;  %v1352_v41 = vmax.f32 %v12080_v0, 0.0 }
 0x2a8   :  { %v3525_v10 = vsel %vm1477_vm11, %v12018_v12, %v3397_v4  ;;  %v3017_v12 = vadd.f32 1.0, %v12171_v61  ;;  %v1869_v2 = vsub.f32 0.0, %v1741_v18  ;;  %vm3015_vm15 = vcmp.lt.f32.partialorder %v3014_v31, 0.0004427343  ;;  %v8690_v4 = vpop.f32.mrf.mxu0 }
 0x2a9   :  { %v7818_v48 = vadd.f32 -0.6931472, %v3525_v10  ;;  %v3526_v21 = vsel %vm1478_vm12, %v12033_v46, %v3398_v63  ;;  %v9336_v43 = vpop.eup %9335  ;;  %v3004_v46 = vmul.f32 %v12140_v38, %v3003_v28  ;;  %v12200_v59 = vadd.f32 %v12108_v57, %v8687_v33 }
 0x2aa   :  { %v7819_v40 = vadd.f32 -0.6931472, %v3526_v21  ;;  %v12186_v19 = vpop.eup %9337  ;;  %v3001_v45 = vmul.f32 0.6931472, %v9336_v43  ;;  %9343 = vlog2.f32 %v3017_v12  ;;  %vm1480_vm0 = vcmp.ne.f32.partialorder %v12080_v0, %v12080_v0  ;;  %v1128_v28 = vpop.f32.mrf.mxu0 }
 0x2ab   :  { %8897 = vmatprep.mubr.f32.mxu1 %v7818_v48  ;;  %v3026_v37 = vadd.f32 1.0, %v12186_v19  ;;  %v2097_v30 = vmul.f32 1.442695, %v1869_v2  ;;  %v3023_v20 = vand.u32 2147483647, %v12171_v61  ;;  %v3029_v9 = vmul.f32 -0.5, %v12186_v19 }
 0x2ac   :  { %8898 = vmatmul.mubr.f32.gmra.mxu1 %v7819_v40  ;;  %v3007_v16 = vsel %vm3006_vm13, %v3004_v46, %v3001_v45  ;;  %v1742_v34 = vand.u32 2147483647, %v12200_v59  ;;  %v1353_v54 = vmax.f32 %v12093_v62, 0.0  ;;  %vm1481_vm2 = vcmp.ne.f32.partialorder %v12093_v62, %v12093_v62  ;;  %v8693_v31 = vpop.f32.mrf.mxu0 }
 0x2ad   :  { %v3399_v8 = vadd.f32 %v3007_v16, %v1351_v49  ;;  %9345 = vlog2.f32 %v3026_v37  ;;  %vm3024_vm1 = vcmp.lt.f32.partialorder %v3023_v20, 0.0004427343  ;;  %v3030_v13 = vadd.f32 1.0, %v3029_v9 }
 0x2ae   :  { %9347 = vpow2.f32 %v2095_v11  ;;  %v1870_v6 = vsub.f32 0.0, %v1742_v34  ;;  %v3032_v47 = vand.u32 2147483647, %v12186_v19  ;;  %v1354_v27 = vmax.f32 %v12111_v53, 0.0 }
 0x2af   :  { %v9340_v25 = vpop.eup %9339  ;;  %v3527_v38 = vsel %vm1479_vm14, %v12048_v32, %v3399_v8  ;;  %v3021_v32 = vadd.f32 1.0, %v3020_v58  ;;  %9349 = vpow2.f32 %v2097_v30  ;;  %v3031_v63 = vmul.f32 %v12186_v19, %v3030_v13 }
 0x2b0   :  { %v7820_v56 = vadd.f32 -0.6931472, %v3527_v38  ;;  %v3010_v55 = vmul.f32 0.6931472, %v9340_v25  ;;  %v9342_v60 = vpop.eup %9341  ;;  %v2099_v1 = vmul.f32 1.442695, %v1870_v6  ;;  %vm1482_vm4 = vcmp.ne.f32.partialorder %v12111_v53, %v12111_v53 }
 0x2b1   :  { %v3022_v22 = vmul.f32 %v12171_v61, %v3021_v32  ;;  %v3035_v5 = vadd.f32 1.0, %v9342_v60  ;;  %vm3033_vm3 = vcmp.lt.f32.partialorder %v3032_v47, 0.0004427343  ;;  %v3038_v48 = vmul.f32 -0.5, %v9342_v60 }
 0x2b2   :  { %8900 = vmatprep.mubr.f32.mxu1 %v7820_v56  ;;  %v3016_v35 = vsel %vm3015_vm15, %v3013_v14, %v3010_v55  ;;  %v3041_v19 = vand.u32 2147483647, %v9342_v60  ;;  %v1355_v16 = vmax.f32 %v12144_v23, 0.0  ;;  %v12225_v25 = vadd.f32 %v12108_v57, %v8690_v4  ;;  %v1138_v14 = vpop.f32.mrf.mxu0 }
 0x2b3   :  { %v3400_v42 = vadd.f32 %v3016_v35, %v1352_v41  ;;  %9351 = vlog2.f32 %v3035_v5  ;;  %v3039_v12 = vadd.f32 1.0, %v3038_v48  ;;  %vm1483_vm6 = vcmp.ne.f32.partialorder %v12144_v23, %v12144_v23 }
 0x2b4   :  { %9353 = vpow2.f32 %v2099_v1  ;;  %vm3042_vm5 = vcmp.lt.f32.partialorder %v3041_v19, 0.0004427343  ;;  %v1744_v35 = vand.u32 2147483647, %v12225_v25  ;;  %v12232_v32 = vadd.f32 %v12108_v57, %v1138_v14  ;;  %v8696_v4 = vpop.f32.mrf.mxu0 }
 0x2b5   :  { %v3528_v50 = vsel %vm1480_vm0, %v12080_v0, %v3400_v42  ;;  %v3040_v51 = vmul.f32 %v9342_v60, %v3039_v12  ;;  %v1356_v20 = vmax.f32 %v12166_v29, 0.0  ;;  %vm1484_vm8 = vcmp.ne.f32.partialorder %v12166_v29, %v12166_v29 }
 0x2b6   :  { %v7821_v26 = vadd.f32 -0.6931472, %v3528_v50  ;;  %v1745_v9 = vand.u32 2147483647, %v12232_v32  ;;  %vm1485_vm10 = vcmp.ne.f32.partialorder %v12184_v24, %v12184_v24  ;;  %vm1486_vm12 = vcmp.ne.f32.partialorder %v12200_v59, %v12200_v59 }
 0x2b7   :  { %v9344_v7 = vpop.eup %9343  ;;  %vm1488_vm0 = vcmp.ne.f32.partialorder %v12225_v25, %v12225_v25 }
 0x2b8   :  { %8901 = vmatmul.mubr.f32.gmra.mxu1 %v7821_v26  ;;  %v3019_v17 = vmul.f32 0.6931472, %v9344_v7  ;;  %v1872_v26 = vsub.f32 0.0, %v1744_v35  ;;  %v1873_v13 = vsub.f32 0.0, %v1745_v9 }
 0x2ba   :  { %v3025_v33 = vsel %vm3024_vm1, %v3022_v22, %v3019_v17  ;;  %v9346_v3 = vpop.eup %9345 }
 0x2bb   :  { %v3401_v0 = vadd.f32 %v3025_v33, %v1353_v54  ;;  %v9348_v36 = vpop.eup %9347  ;;  %v3028_v10 = vmul.f32 0.6931472, %v9346_v3  ;;  %v2103_v33 = vmul.f32 1.442695, %v1872_v26  ;;  %v1357_v3 = vmax.f32 %v12184_v24, 0.0 }
 0x2bc   :  { %v3044_v52 = vadd.f32 1.0, %v9348_v36  ;;  %v9350_v39 = vpop.eup %9349  ;;  %v3047_v11 = vmul.f32 -0.5, %v9348_v36  ;;  %v3050_v41 = vand.u32 2147483647, %v9348_v36 }
 0x2bd   :  { %v3529_v15 = vsel %vm1481_vm2, %v12093_v62, %v3401_v0  ;;  %v3034_v21 = vsel %vm3033_vm3, %v3031_v63, %v3028_v10  ;;  %v12219_v62 = vadd.f32 %v12108_v57, %v1128_v28  ;;  %v3053_v18 = vadd.f32 1.0, %v9350_v39 }
 0x2be   :  { %v7822_v61 = vadd.f32 -0.6931472, %v3529_v15  ;;  %v3402_v44 = vadd.f32 %v3034_v21, %v1354_v27  ;;  %9355 = vlog2.f32 %v3044_v52  ;;  %v3048_v55 = vadd.f32 1.0, %v3047_v11  ;;  %v1148_v27 = vpop.f32.mrf.mxu0 }
 0x2bf   :  { %v1743_v46 = vand.u32 2147483647, %v12219_v62  ;;  %9357 = vlog2.f32 %v3053_v18  ;;  %v3056_v60 = vmul.f32 -0.5, %v9350_v39  ;;  %vm3051_vm7 = vcmp.lt.f32.partialorder %v3050_v41, 0.0004427343 }
 0x2c0   :  { %8903 = vmatprep.mubr.f32.mxu1 %v7822_v61  ;;  %v3530_v40 = vsel %vm1482_vm4, %v12111_v53, %v3402_v44  ;;  %v9352_v45 = vpop.eup %9351  ;;  %v3049_v50 = vmul.f32 %v9348_v36, %v3048_v55  ;;  %v3059_v22 = vand.u32 2147483647, %v9350_v39  ;;  %v12241_v61 = vadd.f32 %v12108_v57, %v8693_v31 }
 0x2c1   :  { %v7823_v43 = vadd.f32 -0.6931472, %v3530_v40  ;;  %v3037_v49 = vmul.f32 0.6931472, %v9352_v45  ;;  %v1871_v53 = vsub.f32 0.0, %v1743_v46  ;;  %v9354_v2 = vpop.eup %9353  ;;  %v3057_v17 = vadd.f32 1.0, %v3056_v60 }
 0x2c2   :  { %vm3060_vm9 = vcmp.lt.f32.partialorder %v3059_v22, 0.0004427343  ;;  %v2105_v10 = vmul.f32 1.442695, %v1873_v13  ;;  %v1746_v48 = vand.u32 2147483647, %v12241_v61  ;;  %v12248_v44 = vadd.f32 %v12108_v57, %v1148_v27 }
 0x2c3   :  { %8904 = vmatmul.mubr.f32.gmra.mxu1 %v7823_v43  ;;  %v3043_v8 = vsel %vm3042_vm5, %v3040_v51, %v3037_v49  ;;  %v2101_v58 = vmul.f32 1.442695, %v1871_v53  ;;  %v3058_v47 = vmul.f32 %v9350_v39, %v3057_v17  ;;  %v3068_v52 = vand.u32 2147483647, %v9354_v2 }
 0x2c4   :  { %v3403_v37 = vadd.f32 %v3043_v8, %v1355_v16  ;;  %v1874_v43 = vsub.f32 0.0, %v1746_v48  ;;  %v1747_v45 = vand.u32 2147483647, %v12248_v44  ;;  %v8699_v8 = vpop.f32.mrf.mxu0  ;;  %vm1487_vm14 = vcmp.ne.f32.partialorder %v12219_v62, %v12219_v62 }
 0x2c5   :  { %9359 = vpow2.f32 %v2101_v58  ;;  %vm3069_vm11 = vcmp.lt.f32.partialorder %v3068_v52, 0.0004427343  ;;  %vm1489_vm2 = vcmp.ne.f32.partialorder %v12232_v32, %v12232_v32  ;;  %vm1490_vm4 = vcmp.ne.f32.partialorder %v12241_v61, %v12241_v61 }
 0x2c6   :  { %v3531_v38 = vsel %vm1483_vm6, %v12144_v23, %v3403_v37  ;;  %v3062_v23 = vadd.f32 1.0, %v9354_v2  ;;  %v2107_v49 = vmul.f32 1.442695, %v1874_v43  ;;  %v1875_v18 = vsub.f32 0.0, %v1747_v45  ;;  %v1158_v55 = vpop.f32.mrf.mxu0 }
 0x2c7   :  { %v7824_v56 = vadd.f32 -0.6931472, %v3531_v38  ;;  %v12256_v37 = vadd.f32 %v12108_v57, %v8696_v4  ;;  %v12260_v35 = vadd.f32 %v12108_v57, %v1158_v55  ;;  %vm1491_vm6 = vcmp.ne.f32.partialorder %v12248_v44, %v12248_v44 }
 0x2c8   :  { %9361 = vlog2.f32 %v3062_v23 }
 0x2c9   :  { %8906 = vmatprep.mubr.f32.mxu1 %v7824_v56  ;;  %9363 = vpow2.f32 %v2103_v33  ;;  %v2109_v56 = vmul.f32 1.442695, %v1875_v18  ;;  %v1748_v58 = vand.u32 2147483647, %v12256_v37  ;;  %v1749_v23 = vand.u32 2147483647, %v12260_v35 }
 0x2ca   :  { %9365 = vpow2.f32 %v2105_v10 }
 0x2cb   :  { %v9356_v42 = vpop.eup %9355  ;;  %v1876_v60 = vsub.f32 0.0, %v1748_v58  ;;  %v1877_v22 = vsub.f32 0.0, %v1749_v23 }
 0x2cc   :  { %v3046_v30 = vmul.f32 0.6931472, %v9356_v42  ;;  %v9358_v54 = vpop.eup %9357 }
 0x2cd   :  { %v3055_v6 = vmul.f32 0.6931472, %v9358_v54  ;;  %v2111_v9 = vmul.f32 1.442695, %v1876_v60 }
 0x2ce   :  { %v3052_v7 = vsel %vm3051_vm7, %v3049_v50, %v3046_v30 }
 0x2cf   :  { %v3404_v34 = vadd.f32 %v3052_v7, %v1356_v20  ;;  %v3061_v15 = vsel %vm3060_vm9, %v3058_v47, %v3055_v6  ;;  %v1359_v20 = vmax.f32 %v12219_v62, 0.0  ;;  %v12270_v47 = vadd.f32 %v12108_v57, %v8699_v8 }
 0x2d0   :  { %v3405_v36 = vadd.f32 %v3061_v15, %v1357_v3  ;;  %v8702_v3 = vpop.f32.mrf.mxu0  ;;  %v2113_v15 = vmul.f32 1.442695, %v1877_v22 }
 0x2d1   :  { %v3532_v5 = vsel %vm1484_vm8, %v12166_v29, %v3404_v34  ;;  %v3065_v29 = vmul.f32 -0.5, %v9354_v2  ;;  %vm1492_vm8 = vcmp.ne.f32.partialorder %v12256_v37, %v12256_v37 }
 0x2d2   :  { %v7825_v0 = vadd.f32 -0.6931472, %v3532_v5  ;;  %v3533_v63 = vsel %vm1485_vm10, %v12184_v24, %v3405_v36  ;;  %v9360_v1 = vpop.eup %9359  ;;  %v1358_v24 = vmax.f32 %v12200_v59, 0.0  ;;  %vm1493_vm10 = vcmp.ne.f32.partialorder %v12260_v35, %v12260_v35 }
 0x2d3   :  { %v7826_v28 = vadd.f32 -0.6931472, %v3533_v63  ;;  %v3066_v21 = vadd.f32 1.0, %v3065_v29  ;;  %v3071_v40 = vadd.f32 1.0, %v9360_v1  ;;  %v3074_v53 = vmul.f32 -0.5, %v9360_v1 }
 0x2d4   :  { %8907 = vmatmul.mubr.f32.gmra.mxu1 %v7825_v0  ;;  %v1360_v29 = vmax.f32 %v12225_v25, 0.0 }
 0x2d5   :  { %8909 = vmatprep.mubr.f32.mxu1 %v7826_v28  ;;  %v9362_v12 = vpop.eup %9361  ;;  %v3067_v39 = vmul.f32 %v9354_v2, %v3066_v21  ;;  %9367 = vlog2.f32 %v3071_v40  ;;  %v3075_v41 = vadd.f32 1.0, %v3074_v53  ;;  %v3077_v2 = vand.u32 2147483647, %v9360_v1  ;;  %v1168_v21 = vpop.f32.mrf.mxu0 }
 0x2d6   :  { %v3064_v19 = vmul.f32 0.6931472, %v9362_v12  ;;  %v9364_v16 = vpop.eup %9363  ;;  %9369 = vpow2.f32 %v2107_v49  ;;  %v1750_v28 = vand.u32 2147483647, %v12270_v47 }
 0x2d7   :  { %v3080_v38 = vadd.f32 1.0, %v9364_v16  ;;  %v9366_v14 = vpop.eup %9365  ;;  %v3076_v50 = vmul.f32 %v9360_v1, %v3075_v41  ;;  %vm3078_vm13 = vcmp.lt.f32.partialorder %v3077_v2, 0.0004427343  ;;  %v3083_v7 = vmul.f32 -0.5, %v9364_v16  ;;  %v8705_v49 = vpop.f32.mrf.mxu0 }
 0x2d8   :  { %v3070_v46 = vsel %vm3069_vm11, %v3067_v39, %v3064_v19  ;;  %v3086_v0 = vand.u32 2147483647, %v9364_v16  ;;  %v3092_v13 = vmul.f32 -0.5, %v9366_v14  ;;  %v3095_v1 = vand.u32 2147483647, %v9366_v14 }
 0x2d9   :  { %v3406_v51 = vadd.f32 %v3070_v46, %v1358_v24  ;;  %9371 = vlog2.f32 %v3080_v38  ;;  %v3084_v54 = vadd.f32 1.0, %v3083_v7  ;;  %v1361_v39 = vmax.f32 %v12232_v32, 0.0 }
 0x2da   :  { %9373 = vpow2.f32 %v2109_v56  ;;  %vm3087_vm15 = vcmp.lt.f32.partialorder %v3086_v0, 0.0004427343  ;;  %vm3096_vm1 = vcmp.lt.f32.partialorder %v3095_v1, 0.0004427343  ;;  %v1878_v45 = vsub.f32 0.0, %v1750_v28 }
 0x2db   :  { %v3534_v31 = vsel %vm1486_vm12, %v12200_v59, %v3406_v51  ;;  %v3089_v59 = vadd.f32 1.0, %v9366_v14  ;;  %v3085_v10 = vmul.f32 %v9364_v16, %v3084_v54  ;;  %v12283_v46 = vadd.f32 %v12108_v57, %v1168_v21 }
 0x2dc   :  { %v7827_v11 = vadd.f32 -0.6931472, %v3534_v31  ;;  %v2115_v31 = vmul.f32 1.442695, %v1878_v45  ;;  %v12297_v41 = vadd.f32 %v12108_v57, %v8702_v3  ;;  %v1363_v1 = vmax.f32 %v12248_v44, 0.0 }
 0x2dd   :  { %9375 = vlog2.f32 %v3089_v59  ;;  %vm1494_vm12 = vcmp.ne.f32.partialorder %v12270_v47, %v12270_v47 }
 0x2de   :  { %8910 = vmatmul.mubr.f32.gmra.mxu1 %v7827_v11  ;;  %9377 = vpow2.f32 %v2111_v9  ;;  %v1751_v11 = vand.u32 2147483647, %v12283_v46  ;;  %v1752_v7 = vand.u32 2147483647, %v12297_v41 }
 0x2e2   :  { %v9368_v42 = vpop.eup %9367 }
 0x2e3   :  { %v3073_v30 = vmul.f32 0.6931472, %v9368_v42  ;;  %v12266_v17 = vpop.eup %9369  ;;  %v1879_v42 = vsub.f32 0.0, %v1751_v11 }
 0x2e4   :  { %v3098_v4 = vadd.f32 1.0, %v12266_v17  ;;  %v3101_v16 = vmul.f32 -0.5, %v12266_v17  ;;  %v3104_v55 = vand.u32 2147483647, %v12266_v17 }
 0x2e5   :  { %v3079_v26 = vsel %vm3078_vm13, %v3076_v50, %v3073_v30  ;;  %v2117_v22 = vmul.f32 1.442695, %v1879_v42 }
 0x2e6   :  { %v3407_v34 = vadd.f32 %v3079_v26, %v1359_v20  ;;  %v9372_v6 = vpop.eup %9371  ;;  %9379 = vlog2.f32 %v3098_v4  ;;  %v3102_v38 = vadd.f32 1.0, %v3101_v16  ;;  %vm3105_vm3 = vcmp.lt.f32.partialorder %v3104_v55, 0.0004427343 }
 0x2e7   :  { %v3082_v36 = vmul.f32 0.6931472, %v9372_v6  ;;  %v12274_v63 = vpop.eup %9373  ;;  %9381 = vpow2.f32 %v2113_v15  ;;  %v1880_v4 = vsub.f32 0.0, %v1752_v7 }
 0x2e8   :  { %v3535_v5 = vsel %vm1487_vm14, %v12219_v62, %v3407_v34  ;;  %v3093_v62 = vadd.f32 1.0, %v3092_v13  ;;  %v3107_v19 = vadd.f32 1.0, %v12274_v63  ;;  %v3103_v30 = vmul.f32 %v12266_v17, %v3102_v38 }
 0x2e9   :  { %v7828_v33 = vadd.f32 -0.6931472, %v3535_v5  ;;  %v3088_v27 = vsel %vm3087_vm15, %v3085_v10, %v3082_v36  ;;  %v3110_v20 = vmul.f32 -0.5, %v12274_v63  ;;  %v3113_v6 = vand.u32 2147483647, %v12274_v63 }
 0x2ea   :  { %v9376_v48 = vpop.eup %9375  ;;  %v3408_v52 = vadd.f32 %v3088_v27, %v1360_v29  ;;  %v3094_v43 = vmul.f32 %v9366_v14, %v3093_v62  ;;  %9383 = vlog2.f32 %v3107_v19  ;;  %v1178_v14 = vpop.f32.mrf.mxu0  ;;  %vm1495_vm14 = vcmp.ne.f32.partialorder %v12283_v46, %v12283_v46 }
 0x2eb   :  { %8912 = vmatprep.mubr.f32.mxu1 %v7828_v33  ;;  %v3091_v40 = vmul.f32 0.6931472, %v9376_v48  ;;  %v12291_v8 = vpop.eup %9377  ;;  %9385 = vpow2.f32 %v2115_v31  ;;  %v12310_v17 = vadd.f32 %v12108_v57, %v1178_v14  ;;  %v3111_v33 = vadd.f32 1.0, %v3110_v20 }
 0x2ec   :  { %v3536_v12 = vsel %vm1488_vm0, %v12225_v25, %v3408_v52  ;;  %v12287_v25 = vadd.f32 %v12108_v57, %v8705_v49  ;;  %v3116_v59 = vadd.f32 1.0, %v12291_v8  ;;  %v8708_v50 = vpop.f32.mrf.mxu0  ;;  %v3119_v36 = vmul.f32 -0.5, %v12291_v8 }
 0x2ed   :  { %v7829_v24 = vadd.f32 -0.6931472, %v3536_v12  ;;  %v3097_v51 = vsel %vm3096_vm1, %v3094_v43, %v3091_v40  ;;  %v1753_v29 = vand.u32 2147483647, %v12310_v17  ;;  %v12318_v62 = vadd.f32 %v12108_v57, %v8708_v50 }
 0x2ee   :  { %v3409_v18 = vadd.f32 %v3097_v51, %v1361_v39  ;;  %v1754_v2 = vand.u32 2147483647, %v12287_v25  ;;  %9387 = vlog2.f32 %v3116_v59  ;;  %v1188_v5 = vpop.f32.mrf.mxu0  ;;  %v3112_v27 = vmul.f32 %v12274_v63, %v3111_v33 }
 0x2ef   :  { %8913 = vmatmul.mubr.f32.gmra.mxu1 %v7829_v24  ;;  %9389 = vpow2.f32 %v2117_v22  ;;  %vm3114_vm5 = vcmp.lt.f32.partialorder %v3113_v6, 0.0004427343  ;;  %v2119_v48 = vmul.f32 1.442695, %v1880_v4  ;;  %v3120_v21 = vadd.f32 1.0, %v3119_v36 }
 0x2f0   :  { %v3537_v53 = vsel %vm1489_vm2, %v12232_v32, %v3409_v18  ;;  %v1362_v32 = vmax.f32 %v12241_v61, 0.0  ;;  %v1882_v9 = vsub.f32 0.0, %v1754_v2  ;;  %v3122_v12 = vand.u32 2147483647, %v12291_v8 }
 0x2f1   :  { %v7830_v56 = vadd.f32 -0.6931472, %v3537_v53  ;;  %v1881_v19 = vsub.f32 0.0, %v1753_v29  ;;  %v1756_v39 = vand.u32 2147483647, %v12318_v62  ;;  %v1364_v24 = vmax.f32 %v12256_v37, 0.0 }
 0x2f2   :  { %v2123_v15 = vmul.f32 1.442695, %v1882_v9  ;;  %v3121_v16 = vmul.f32 %v12291_v8, %v3120_v21  ;;  %vm3123_vm7 = vcmp.lt.f32.partialorder %v3122_v12, 0.0004427343  ;;  %vm1498_vm0 = vcmp.ne.f32.partialorder %v12287_v25, %v12287_v25 }
 0x2f3   :  { %v9380_v58 = vpop.eup %9379  ;;  %8915 = vmatprep.mubr.f32.mxu1 %v7830_v56  ;;  %v2121_v53 = vmul.f32 1.442695, %v1881_v19  ;;  %v1884_v38 = vsub.f32 0.0, %v1756_v39  ;;  %vm1496_vm1 = vcmp.ne.f32.partialorder %v12297_v41, %v12297_v41 }
 0x2f4   :  { %v3100_v60 = vmul.f32 0.6931472, %v9380_v58  ;;  %v12304_v23 = vpop.eup %9381 }
 0x2f5   :  { %v3125_v0 = vadd.f32 1.0, %v12304_v23  ;;  %v3128_v31 = vmul.f32 -0.5, %v12304_v23  ;;  %v2127_v42 = vmul.f32 1.442695, %v1884_v38 }
 0x2f6   :  { %v3106_v26 = vsel %vm3105_vm3, %v3103_v30, %v3100_v60 }
 0x2f7   :  { %v3410_v34 = vadd.f32 %v3106_v26, %v1362_v32  ;;  %v9384_v3 = vpop.eup %9383  ;;  %9391 = vlog2.f32 %v3125_v0  ;;  %v3129_v2 = vadd.f32 1.0, %v3128_v31  ;;  %v3131_v32 = vand.u32 2147483647, %v12304_v23 }
 0x2f8   :  { %v3109_v10 = vmul.f32 0.6931472, %v9384_v3  ;;  %9393 = vpow2.f32 %v2123_v15  ;;  %v12326_v43 = vpop.eup %9385 }
 0x2f9   :  { %v3538_v54 = vsel %vm1490_vm4, %v12241_v61, %v3410_v34  ;;  %v8711_v61 = vpop.f32.mrf.mxu0  ;;  %9395 = vpow2.f32 %v2119_v48  ;;  %v3134_v11 = vadd.f32 1.0, %v12326_v43  ;;  %v3137_v22 = vmul.f32 -0.5, %v12326_v43 }
 0x2fa   :  { %v7831_v13 = vadd.f32 -0.6931472, %v3538_v54  ;;  %v3115_v28 = vsel %vm3114_vm5, %v3112_v27, %v3109_v10  ;;  %v12323_v52 = vadd.f32 %v12108_v57, %v8711_v61  ;;  %vm3132_vm9 = vcmp.lt.f32.partialorder %v3131_v32, 0.0004427343 }
 0x2fb   :  { %v3411_v40 = vadd.f32 %v3115_v28, %v1363_v1  ;;  %v9388_v63 = vpop.eup %9387  ;;  %v1198_v14 = vpop.f32.mrf.mxu0  ;;  %9397 = vlog2.f32 %v3134_v11  ;;  %v3138_v15 = vadd.f32 1.0, %v3137_v22  ;;  %v3140_v10 = vand.u32 2147483647, %v12326_v43 }
 0x2fc   :  { %8916 = vmatmul.mubr.f32.gmra.mxu1 %v7831_v13  ;;  %v3118_v51 = vmul.f32 0.6931472, %v9388_v63  ;;  %v1758_v18 = vand.u32 2147483647, %v12323_v52  ;;  %v12343_v59 = vpop.eup %9389  ;;  %9399 = vpow2.f32 %v2121_v53  ;;  %v12367_v29 = vadd.f32 %v12108_v57, %v1198_v14 }
 0x2fd   :  { %v3539_v45 = vsel %vm1491_vm6, %v12248_v44, %v3411_v40  ;;  %v12338_v44 = vadd.f32 %v12108_v57, %v1188_v5  ;;  %v8714_v60 = vpop.f32.mrf.mxu0  ;;  %v1365_v5 = vmax.f32 %v12260_v35, 0.0  ;;  %9401 = vpow2.f32 %v2127_v42 }
 0x2fe   :  { %v7832_v49 = vadd.f32 -0.6931472, %v3539_v45  ;;  %v3124_v56 = vsel %vm3123_vm7, %v3121_v16, %v3118_v51  ;;  %v1886_v8 = vsub.f32 0.0, %v1758_v18  ;;  %v12350_v34 = vadd.f32 %v12108_v57, %v8714_v60  ;;  %v8761_v45 = vpop.f32.mrf.mxu1 }
 0x2ff   :  { %v3412_v55 = vadd.f32 %v3124_v56, %v1364_v24  ;;  %v1755_v20 = vand.u32 2147483647, %v12338_v44  ;;  %v3143_v54 = vadd.f32 1.0, %v12343_v59  ;;  %v12357_v6 = vpop.f32.mrf.mxu0  ;;  %v3139_v12 = vmul.f32 %v12326_v43, %v3138_v15 }
 0x300   :  { %8918 = vmatprep.mubr.f32.mxu1 %v7832_v49  ;;  %v2131_v9 = vmul.f32 1.442695, %v1886_v8  ;;  %vm3141_vm11 = vcmp.lt.f32.partialorder %v3140_v10, 0.0004427343  ;;  %v1757_v39 = vand.u32 2147483647, %v12367_v29  ;;  %vm1497_vm4 = vcmp.ne.f32.partialorder %v12310_v17, %v12310_v17 }
 0x301   :  { %v3540_v58 = vsel %vm1492_vm8, %v12256_v37, %v3412_v55  ;;  %v3130_v37 = vmul.f32 %v12304_v23, %v3129_v2  ;;  %v1883_v13 = vsub.f32 0.0, %v1755_v20  ;;  %v1760_v23 = vand.u32 2147483647, %v12350_v34  ;;  %v8717_v48 = vpop.f32.mrf.mxu0  ;;  %v12381_v49 = vld [vmem:[%s16825_s4] ss:$0 sm:$0xff] }
 0x302   :  { %v7833_v30 = vadd.f32 -0.6931472, %v3540_v58  ;;  %9403 = vpow2.f32 %v2131_v9  ;;  %v12376_v63 = vadd.f32 %v12108_v57, %v8717_v48  ;;  %v3146_v43 = vmul.f32 -0.5, %v12343_v59 }
 0x303   :  { %9405 = vlog2.f32 %v3143_v54  ;;  %v2125_v1 = vmul.f32 1.442695, %v1883_v13  ;;  %v1888_v21 = vsub.f32 0.0, %v1760_v23  ;;  %v1885_v53 = vsub.f32 0.0, %v1757_v39  ;;  %v12395_v55 = vpop.f32.mrf.mxu0  ;;  %v3778_v23 = vpop.f32.mrf.mxu1 }
 0x304   :  { %v9392_v50 = vpop.eup %9391  ;;  %8919 = vmatmul.mubr.f32.gmra.mxu1 %v7833_v30  ;;  %v1762_v38 = vand.u32 2147483647, %v12376_v63  ;;  %v12393_v14 = vadd.f32 %v8761_v45, %v12381_v49  ;;  %v3147_v8 = vadd.f32 1.0, %v3146_v43  ;;  %v1368_v60 = vmax.f32 %v12297_v41, 0.0 }
 0x305   :  { %v3127_v26 = vmul.f32 0.6931472, %v9392_v50  ;;  %v12347_v7 = vpop.eup %9393  ;;  %v2135_v18 = vmul.f32 1.442695, %v1888_v21  ;;  %v1367_v30 = vmax.f32 %v12283_v46, 0.0  ;;  %v1370_v20 = vmax.f32 %v12287_v25, 0.0 }
 0x306   :  { %v3170_v0 = vadd.f32 1.0, %v12347_v7  ;;  %v12359_v4 = vpop.eup %9395  ;;  %v3173_v16 = vmul.f32 -0.5, %v12347_v7  ;;  %v1890_v9 = vsub.f32 0.0, %v1762_v38  ;;  %v1369_v22 = vmax.f32 %v12310_v17, 0.0 }
 0x307   :  { %v3133_v33 = vsel %vm3132_vm9, %v3130_v37, %v3127_v26  ;;  %v3152_v28 = vadd.f32 1.0, %v12359_v4  ;;  %v3155_v58 = vmul.f32 -0.5, %v12359_v4  ;;  %v2129_v26 = vmul.f32 1.442695, %v1885_v53 }
 0x308   :  { %v3413_v3 = vadd.f32 %v3133_v33, %v1365_v5  ;;  %v9398_v27 = vpop.eup %9397  ;;  %9407 = vlog2.f32 %v3170_v0  ;;  %v3174_v2 = vadd.f32 1.0, %v3173_v16  ;;  %v4802_v37 = vand.u32 2147483647, %v12393_v14  ;;  %v8720_v5 = vpop.f32.mrf.mxu0 }
 0x309   :  { %v3136_v40 = vmul.f32 0.6931472, %v9398_v27  ;;  %9409 = vlog2.f32 %v3152_v28  ;;  %v12372_v19 = vpop.eup %9399  ;;  %v3148_v33 = vmul.f32 %v12343_v59, %v3147_v8  ;;  %v3156_v0 = vadd.f32 1.0, %v3155_v58 }
 0x30a   :  { %v3541_v36 = vsel %vm1493_vm10, %v12260_v35, %v3413_v3  ;;  %v1366_v35 = vmax.f32 %v12270_v47, 0.0  ;;  %9411 = vpow2.f32 %v2125_v1  ;;  %v3161_v31 = vadd.f32 1.0, %v12372_v19  ;;  %v12389_v11 = vpop.eup %9401 }
 0x30b   :  { %v7834_v61 = vadd.f32 -0.6931472, %v3541_v36  ;;  %v3142_v24 = vsel %vm3141_vm11, %v3139_v12, %v3136_v40  ;;  %9413 = vpow2.f32 %v2135_v18  ;;  %v3188_v32 = vadd.f32 1.0, %v12389_v11 }
 0x30c   :  { %v3414_v51 = vadd.f32 %v3142_v24, %v1366_v35  ;;  %9415 = vlog2.f32 %v3161_v31  ;;  %v3175_v13 = vmul.f32 %v12347_v7, %v3174_v2  ;;  %v3176_v3 = vand.u32 2147483647, %v12347_v7 }
 0x30d   :  { %8921 = vmatprep.mubr.f32.mxu1 %v7834_v61  ;;  %v3158_v15 = vand.u32 2147483647, %v12359_v4  ;;  %9417 = vlog2.f32 %v3188_v32  ;;  %v12415_v61 = vld [vmem:[%s16823_s2] ss:$0 sm:$0xff]  ;;  %v2139_v7 = vmul.f32 1.442695, %v1890_v9  ;;  %v12425_v21 = vadd.f32 %v12381_v49, %v3778_v23 }
 0x30e   :  { %v3542_v57 = vsel %vm1494_vm12, %v12270_v47, %v3414_v51  ;;  %v3149_v47 = vand.u32 2147483647, %v12343_v59  ;;  %v12419_v59 = vadd.f32 %v12415_v61, %v12357_v6  ;;  %9419 = vpow2.f32 %v2129_v26 }
 0x30f   :  { %v7835_v56 = vadd.f32 -0.6931472, %v3542_v57  ;;  %v12399_v42 = vpop.eup %9403  ;;  %v4930_v48 = vsub.f32 0.0, %v4802_v37  ;;  %v12422_v28 = vadd.f32 %v12415_v61, %v8720_v5  ;;  %v3157_v35 = vmul.f32 %v12359_v4, %v3156_v0 }
 0x310   :  { %v9406_v50 = vpop.eup %9405  ;;  %vm3150_vm13 = vcmp.lt.f32.partialorder %v3149_v47, 0.0004427343  ;;  %v3206_v10 = vadd.f32 1.0, %v12399_v42  ;;  %vm3159_vm15 = vcmp.lt.f32.partialorder %v3158_v15, 0.0004427343  ;;  %v3164_v6 = vmul.f32 -0.5, %v12372_v19 }
 0x311   :  { %8922 = vmatmul.mubr.f32.gmra.mxu1 %v7835_v56  ;;  %v3145_v54 = vmul.f32 0.6931472, %v9406_v50  ;;  %v1759_v45 = vand.u32 2147483647, %v12419_v59  ;;  %v3191_v16 = vmul.f32 -0.5, %v12389_v11  ;;  %v1372_v50 = vmax.f32 %v12318_v62, 0.0 }
 0x312   :  { %9421 = vlog2.f32 %v3206_v10  ;;  %v1764_v18 = vand.u32 2147483647, %v12422_v28  ;;  %v5059_v31 = vmul.f32 1.442695, %v4930_v48  ;;  %v4801_v53 = vand.u32 2147483647, %v12425_v21 }
 0x313   :  { %v3151_v27 = vsel %vm3150_vm13, %v3148_v33, %v3145_v54  ;;  %9423 = vpow2.f32 %v2139_v7  ;;  %vm12442_vm2 = vcmp.lt.f32.partialorder %v3176_v3, 0.0004427343  ;;  %v3165_v56 = vadd.f32 1.0, %v3164_v6  ;;  %v8764_v54 = vpop.f32.mrf.mxu1 }
 0x314   :  { %v3415_v40 = vadd.f32 %v3151_v27, %v1367_v30  ;;  %v1887_v47 = vsub.f32 0.0, %v1759_v45  ;;  %v3167_v30 = vand.u32 2147483647, %v12372_v19  ;;  %v1371_v26 = vmax.f32 %v12338_v44, 0.0 }
 0x315   :  { %v9408_v36 = vpop.eup %9407  ;;  %v1892_v9 = vsub.f32 0.0, %v1764_v18  ;;  %v3192_v37 = vadd.f32 1.0, %v3191_v16  ;;  %9425 = vpow2.f32 %v5059_v31  ;;  %v4929_v5 = vsub.f32 0.0, %v4801_v53 }
 0x316   :  { %v9410_v1 = vpop.eup %9409  ;;  %v3172_v39 = vmul.f32 0.6931472, %v9408_v36  ;;  %v3543_v51 = vsel %vm1495_vm14, %v12283_v46, %v3415_v40  ;;  %v3166_v3 = vmul.f32 %v12372_v19, %v3165_v56  ;;  %v1374_v23 = vmax.f32 %v12323_v52, 0.0 }
 0x317   :  { %v3154_v12 = vmul.f32 0.6931472, %v9410_v1  ;;  %v12431_v24 = vpop.eup %9411  ;;  %v7836_v4 = vadd.f32 -0.6931472, %v3543_v51  ;;  %v2133_v15 = vmul.f32 1.442695, %v1887_v47  ;;  %v12467_v1 = vadd.f32 %v8764_v54, %v12381_v49  ;;  %v12482_v51 = vpop.f32.mrf.mxu1 }
 0x318   :  { %v3179_v8 = vadd.f32 1.0, %v12431_v24  ;;  %v12448_v58 = vpop.eup %9413  ;;  %v3178_v2 = vsel %vm12442_vm2, %v3175_v13, %v3172_v39  ;;  %vm3168_vm3 = vcmp.lt.f32.partialorder %v3167_v30, 0.0004427343  ;;  %v2143_v27 = vmul.f32 1.442695, %v1892_v9 }
 0x319   :  { %v3160_v43 = vsel %vm3159_vm15, %v3157_v35, %v3154_v12  ;;  %8924 = vmatprep.mubr.f32.mxu1 %v7836_v4  ;;  %v9416_v32 = vpop.eup %9415  ;;  %v3418_v0 = vadd.f32 %v3178_v2, %v1370_v20  ;;  %v3224_v13 = vadd.f32 1.0, %v12448_v58  ;;  %v3193_v48 = vmul.f32 %v12389_v11, %v3192_v37  ;;  %v12504_v30 = vpop.f32.mrf.mxu1 }
 0x31a   :  { %v3416_v57 = vadd.f32 %v3160_v43, %v1368_v60  ;;  %v3163_v33 = vmul.f32 0.6931472, %v9416_v32  ;;  %9427 = vlog2.f32 %v3179_v8  ;;  %v9418_v36 = vpop.eup %9417  ;;  %v3194_v19 = vand.u32 2147483647, %v12389_v11 }
 0x31b   :  { %v12469_v20 = vpop.eup %9419  ;;  %v5057_v40 = vmul.f32 1.442695, %v4929_v5  ;;  %v3212_v35 = vand.u32 2147483647, %v12399_v42  ;;  %9429 = vlog2.f32 %v3224_v13  ;;  %v3546_v39 = vsel %vm1498_vm0, %v12287_v25, %v3418_v0 }
 0x31c   :  { %v3544_v46 = vsel %vm1496_vm1, %v12297_v41, %v3416_v57  ;;  %v12457_v41 = vadd.f32 %v12415_v61, %v12395_v55  ;;  %v3209_v55 = vmul.f32 -0.5, %v12399_v42  ;;  %v3169_v7 = vsel %vm3168_vm3, %v3166_v3, %v3163_v33  ;;  %v1228_v57 = vpop.f32.mrf.mxu0 }
 0x31d   :  { %v7837_v60 = vadd.f32 -0.6931472, %v3544_v46  ;;  %v3417_v12 = vadd.f32 %v3169_v7, %v1369_v22  ;;  %v3190_v6 = vmul.f32 0.6931472, %v9418_v36  ;;  %9431 = vpow2.f32 %v2133_v15 }
 0x31e   :  { %v1761_v10 = vand.u32 2147483647, %v12457_v41  ;;  %v3210_v45 = vadd.f32 1.0, %v3209_v55  ;;  %9433 = vpow2.f32 %v2143_v27  ;;  %v4804_v16 = vand.u32 2147483647, %v12467_v1  ;;  %v8723_v36 = vpop.f32.mrf.mxu0 }
 0x31f   :  { %8925 = vmatmul.mubr.f32.gmra.mxu1 %v7837_v60  ;;  %v3545_v11 = vsel %vm1497_vm4, %v12310_v17, %v3417_v12  ;;  %v9422_v43 = vpop.eup %9421  ;;  %v3227_v4 = vmul.f32 -0.5, %v12448_v58  ;;  %9435 = vpow2.f32 %v5057_v40  ;;  %v7839_v31 = vadd.f32 -0.6931472, %v3546_v39  ;;  %v12525_v40 = vpop.f32.mrf.mxu1 }
 0x320   :  { %v1889_v22 = vsub.f32 0.0, %v1761_v10  ;;  %v7838_v18 = vadd.f32 -0.6931472, %v3545_v11  ;;  %v3182_v25 = vmul.f32 -0.5, %v12431_v24  ;;  %v12488_v53 = vpop.eup %9423  ;;  %vm12490_vm5 = vcmp.lt.f32.partialorder %v3194_v19, 0.0004427343 }
 0x321   :  { %v1373_v17 = vmax.f32 %v12367_v29, 0.0  ;;  %v1376_v46 = vmax.f32 %v12350_v34, 0.0  ;;  %v3197_v56 = vadd.f32 1.0, %v12469_v20  ;;  %v3196_v8 = vsel %vm12490_vm5, %v3193_v48, %v3190_v6 }
 0x322   :  { %8927 = vmatprep.mubr.f32.mxu1 %v7838_v18  ;;  %v3208_v2 = vmul.f32 0.6931472, %v9422_v43  ;;  %vm12499_vm6 = vcmp.lt.f32.partialorder %v3212_v35, 0.0004427343  ;;  %v1375_v60 = vmax.f32 %v12419_v59, 0.0  ;;  %vm1500_vm7 = vcmp.ne.f32.partialorder %v12318_v62, %v12318_v62  ;;  %v12513_v13 = vpop.eup %9425 }
 0x323   :  { %8928 = vmatmul.mubr.f32.gmra.mxu1 %v7839_v31  ;;  %v2137_v32 = vmul.f32 1.442695, %v1889_v22  ;;  %v12509_v9 = vadd.f32 %v12415_v61, %v1228_v57  ;;  %v4932_v37 = vsub.f32 0.0, %v4804_v16  ;;  %9437 = vlog2.f32 %v3197_v56  ;;  %v1238_v56 = vpop.f32.mrf.mxu0 }
 0x324   :  { %v3211_v5 = vmul.f32 %v12399_v42, %v3210_v45  ;;  %v3228_v54 = vadd.f32 1.0, %v3227_v4  ;;  %v3242_v33 = vadd.f32 1.0, %v12488_v53  ;;  %v3183_v0 = vadd.f32 1.0, %v3182_v25 }
 0x325   :  { %v3420_v3 = vadd.f32 %v3196_v8, %v1372_v50  ;;  %v3230_v55 = vand.u32 2147483647, %v12448_v58  ;;  %v1378_v15 = vmax.f32 %v12376_v63, 0.0  ;;  %v3185_v10 = vand.u32 2147483647, %v12431_v24 }
 0x326   :  { %v3214_v42 = vsel %vm12499_vm6, %v3211_v5, %v3208_v2  ;;  %v3245_v7 = vmul.f32 -0.5, %v12488_v53  ;;  %v1377_v48 = vmax.f32 %v12457_v41, 0.0  ;;  %v4418_v19 = vmax.f32 %v12393_v14, 0.0 }
 0x327   :  { %v9428_v27 = vpop.eup %9427  ;;  %9439 = vpow2.f32 %v2137_v32  ;;  %v1763_v50 = vand.u32 2147483647, %v12509_v9  ;;  %v5063_v12 = vmul.f32 1.442695, %v4932_v37  ;;  %v12529_v39 = vmul.f32 %v12448_v58, %v3228_v54 }
 0x328   :  { %v3181_v35 = vmul.f32 0.6931472, %v9428_v27  ;;  %9441 = vlog2.f32 %v3242_v33  ;;  %v12532_v6 = vadd.f32 %v12415_v61, %v8723_v36  ;;  %v3184_v45 = vmul.f32 %v12431_v24, %v3183_v0  ;;  %v9430_v16 = vpop.eup %9429  ;;  %v12547_v24 = vpop.f32.mrf.mxu1 }
 0x329   :  { %v12537_v11 = vadd.f32 %v3214_v42, %v1374_v23  ;;  %vm12539_vm8 = vcmp.lt.f32.partialorder %v3230_v55, 0.0004427343  ;;  %v5322_v22 = vadd.f32 1.0, %v12513_v13  ;;  %vm3186_vm9 = vcmp.lt.f32.partialorder %v3185_v10, 0.0004427343  ;;  %v8726_v42 = vpop.f32.mrf.mxu0 }
 0x32a   :  { %v3200_v58 = vmul.f32 -0.5, %v12469_v20  ;;  %v3246_v18 = vadd.f32 1.0, %v3245_v7  ;;  %v1380_v4 = vmax.f32 %v12422_v28, 0.0  ;;  %v4417_v57 = vmax.f32 %v12425_v21, 0.0  ;;  %v12549_v23 = vpop.eup %9431  ;;  %v12576_v36 = vpop.f32.mrf.mxu1 }
 0x32b   :  { %v3187_v31 = vsel %vm3186_vm9, %v3184_v45, %v3181_v35  ;;  %v1379_v25 = vmax.f32 %v12509_v9, 0.0  ;;  %v1891_v38 = vsub.f32 0.0, %v1763_v50  ;;  %9443 = vpow2.f32 %v5063_v12  ;;  %v12554_v2 = vpop.eup %9433 }
 0x32c   :  { %v3419_v8 = vadd.f32 %v3187_v31, %v1371_v26  ;;  %v3248_v47 = vand.u32 2147483647, %v12488_v53  ;;  %v1766_v32 = vand.u32 2147483647, %v12532_v6  ;;  %vm1499_vm10 = vcmp.ne.f32.partialorder %v12338_v44, %v12338_v44  ;;  %v12564_v5 = vpop.eup %9435 }
 0x32d   :  { %v3548_v37 = vsel %vm1500_vm7, %v12318_v62, %v3420_v3  ;;  %vm1502_vm11 = vcmp.ne.f32.partialorder %v12323_v52, %v12323_v52  ;;  %v3226_v26 = vmul.f32 0.6931472, %v9430_v16  ;;  %9445 = vlog2.f32 %v5322_v22 }
 0x32e   :  { %v3547_v54 = vsel %vm1499_vm10, %v12338_v44, %v3419_v8  ;;  %v3201_v33 = vadd.f32 1.0, %v3200_v58  ;;  %v12570_v0 = vmul.f32 %v12488_v53, %v3246_v18  ;;  %v12574_v55 = vadd.f32 %v12381_v49, %v12482_v51 }
 0x32f   :  { %v7840_v62 = vadd.f32 -0.6931472, %v3547_v54  ;;  %v3203_v3 = vand.u32 2147483647, %v12469_v20  ;;  %v5325_v10 = vmul.f32 -0.5, %v12513_v13  ;;  %v3215_v44 = vadd.f32 1.0, %v12549_v23 }
 0x330   :  { %v2141_v27 = vmul.f32 1.442695, %v1891_v38  ;;  %v7841_v7 = vadd.f32 -0.6931472, %v3548_v37  ;;  %v9438_v50 = vpop.eup %9437  ;;  %v3260_v53 = vadd.f32 1.0, %v12554_v2  ;;  %v5313_v12 = vadd.f32 1.0, %v12564_v5  ;;  %v12598_v38 = vpop.f32.mrf.mxu1 }
 0x331   :  { %v1894_v35 = vsub.f32 0.0, %v1766_v32  ;;  %v12584_v51 = vadd.f32 %v12415_v61, %v1238_v56  ;;  %8930 = vmatprep.mubr.f32.mxu1 %v7840_v62  ;;  %v12588_v45 = vadd.f32 %v12504_v30, %v12381_v49  ;;  %v3199_v22 = vmul.f32 0.6931472, %v9438_v50 }
 0x332   :  { %8931 = vmatmul.mubr.f32.gmra.mxu1 %v7841_v7  ;;  %v3202_v58 = vmul.f32 %v12469_v20, %v3201_v33  ;;  %9447 = vlog2.f32 %v3215_v44  ;;  %v3232_v16 = vsel %vm12539_vm8, %v12529_v39, %v3226_v26  ;;  %v4803_v18 = vand.u32 2147483647, %v12574_v55 }
 0x333   :  { %v12596_v31 = vadd.f32 %v12415_v61, %v8726_v42  ;;  %vm3204_vm12 = vcmp.lt.f32.partialorder %v3203_v3, 0.0004427343  ;;  %vm12600_vm13 = vcmp.lt.f32.partialorder %v3248_v47, 0.0004427343  ;;  %v5328_v56 = vand.u32 2147483647, %v12513_v13 }
 0x334   :  { %9449 = vpow2.f32 %v2141_v27  ;;  %v4420_v20 = vmax.f32 %v12467_v1, 0.0  ;;  %v3205_v8 = vsel %vm3204_vm12, %v3202_v58, %v3199_v22  ;;  %v12606_v43 = vpop.eup %9439  ;;  %v2147_v39 = vmul.f32 1.442695, %v1894_v35  ;;  %v12617_v27 = vpop.f32.mrf.mxu1 }
 0x335   :  { %9451 = vlog2.f32 %v3260_v53  ;;  %v1765_v32 = vand.u32 2147483647, %v12584_v51  ;;  %v3421_v37 = vadd.f32 %v3205_v8, %v1373_v17  ;;  %v9442_v26 = vpop.eup %9441  ;;  %v12613_v47 = vadd.f32 %v3232_v16, %v1376_v46 }
 0x336   :  { %v5326_v54 = vadd.f32 1.0, %v5325_v10  ;;  %9453 = vlog2.f32 %v5313_v12  ;;  %v4806_v33 = vand.u32 2147483647, %v12588_v45  ;;  %v4931_v62 = vsub.f32 0.0, %v4803_v18 }
 0x337   :  { %v1768_v3 = vand.u32 2147483647, %v12596_v31  ;;  %vm1501_vm14 = vcmp.ne.f32.partialorder %v12367_v29, %v12367_v29  ;;  %v3550_v17 = vsel %vm1502_vm11, %v12323_v52, %v12537_v11  ;;  %v3263_v46 = vmul.f32 -0.5, %v12554_v2 }
 0x338   :  { %v1382_v10 = vmax.f32 %v12532_v6, 0.0  ;;  %v3549_v42 = vsel %vm1501_vm14, %v12367_v29, %v3421_v37  ;;  %v3218_v7 = vmul.f32 -0.5, %v12549_v23  ;;  %v12630_v44 = vpop.eup %9443  ;;  %v3244_v50 = vmul.f32 0.6931472, %v9442_v26  ;;  %v1248_v37 = vpop.f32.mrf.mxu0 }
 0x339   :  { %vm12632_vm15 = vcmp.lt.f32.partialorder %v5328_v56, 0.0004427343  ;;  %9455 = vpow2.f32 %v2147_v39  ;;  %v1893_v12 = vsub.f32 0.0, %v1765_v32  ;;  %v7842_v35 = vadd.f32 -0.6931472, %v3549_v42  ;;  %v12647_v39 = vpop.f32.mrf.mxu1 }
 0x33a   :  { %v12637_v52 = vmul.f32 %v12513_v13, %v5326_v54  ;;  %v4934_v11 = vsub.f32 0.0, %v4806_v33  ;;  %v12641_v22 = vadd.f32 %v12381_v49, %v12525_v40  ;;  %v7843_v29 = vadd.f32 -0.6931472, %v3550_v17  ;;  %v9446_v58 = vpop.eup %9445 }
 0x33b   :  { %vm1504_vm0 = vcmp.ne.f32.partialorder %v12350_v34, %v12350_v34  ;;  %v3266_v16 = vand.u32 2147483647, %v12554_v2  ;;  %v4419_v18 = vmax.f32 %v12574_v55, 0.0  ;;  %v5061_v56 = vmul.f32 1.442695, %v4931_v62  ;;  %8933 = vmatprep.mubr.f32.mxu1 %v7842_v35 }
 0x33c   :  { %v1896_v8 = vsub.f32 0.0, %v1768_v3  ;;  %v3264_v13 = vadd.f32 1.0, %v3263_v46  ;;  %v5340_v32 = vadd.f32 1.0, %v12630_v44  ;;  %8934 = vmatmul.mubr.f32.gmra.mxu1 %v7843_v29  ;;  %v3219_v40 = vadd.f32 1.0, %v3218_v7 }
 0x33d   :  { %v3233_v26 = vadd.f32 1.0, %v12606_v43  ;;  %v3250_v54 = vsel %vm12600_vm13, %v12570_v0, %v3244_v50  ;;  %v5316_v33 = vmul.f32 -0.5, %v12564_v5  ;;  %v2145_v17 = vmul.f32 1.442695, %v1893_v12  ;;  %v12664_v0 = vpop.f32.mrf.mxu1 }
 0x33e   :  { %v3221_v62 = vand.u32 2147483647, %v12549_v23  ;;  %v5324_v3 = vmul.f32 0.6931472, %v9446_v58  ;;  %v5067_v42 = vmul.f32 1.442695, %v4934_v11  ;;  %v12658_v7 = vadd.f32 %v12415_v61, %v1248_v37 }
 0x33f   :  { %v4805_v46 = vand.u32 2147483647, %v12641_v22  ;;  %9457 = vlog2.f32 %v3233_v26  ;;  %v9448_v35 = vpop.eup %9447  ;;  %v2151_v29 = vmul.f32 1.442695, %v1896_v8  ;;  %v12662_v30 = vadd.f32 %v12547_v24, %v12381_v49 }
 0x340   :  { %9459 = vpow2.f32 %v5061_v56  ;;  %v5319_v50 = vand.u32 2147483647, %v12564_v5  ;;  %v3217_v12 = vmul.f32 0.6931472, %v9448_v35  ;;  %v3220_v11 = vmul.f32 %v12549_v23, %v3219_v40 }
 0x341   :  { %9461 = vlog2.f32 %v5340_v32  ;;  %v12668_v58 = vpop.eup %9449  ;;  %v12672_v56 = vadd.f32 %v3250_v54, %v1378_v15  ;;  %vm4546_vm1 = vcmp.ne.f32.partialorder %v12393_v14, %v12393_v14  ;;  %v12677_v61 = vmul.f32 %v12554_v2, %v3264_v13  ;;  %v12688_v13 = vpop.f32.mrf.mxu1 }
 0x342   :  { %9463 = vpow2.f32 %v2145_v17  ;;  %vm3222_vm2 = vcmp.lt.f32.partialorder %v3221_v62, 0.0004427343  ;;  %v9452_v24 = vpop.eup %9451  ;;  %v5330_v8 = vsel %vm12632_vm15, %v12637_v52, %v5324_v3  ;;  %vm12682_vm3 = vcmp.lt.f32.partialorder %v3266_v16, 0.0004427343 }
 0x343   :  { %9465 = vpow2.f32 %v5067_v42  ;;  %v4933_v15 = vsub.f32 0.0, %v4805_v46  ;;  %v3223_v32 = vsel %vm3222_vm2, %v3220_v11, %v3217_v12  ;;  %v9454_v37 = vpop.eup %9453  ;;  %v1767_v40 = vand.u32 2147483647, %v12658_v7 }
 0x344   :  { %9467 = vpow2.f32 %v2151_v29  ;;  %v4808_v2 = vand.u32 2147483647, %v12662_v30  ;;  %v3423_v26 = vadd.f32 %v3223_v32, %v1375_v60  ;;  %v12694_v53 = vadd.f32 %v12381_v49, %v12576_v36 }
 0x345   :  { %vm1503_vm4 = vcmp.ne.f32.partialorder %v12419_v59, %v12419_v59  ;;  %v3552_v52 = vsel %vm1504_vm0, %v12350_v34, %v12613_v47  ;;  %v3236_v16 = vmul.f32 -0.5, %v12606_v43  ;;  %v5317_v54 = vadd.f32 1.0, %v5316_v33  ;;  %v12713_v33 = vpop.f32.mrf.mxu1 }
 0x346   :  { %v5343_v17 = vmul.f32 -0.5, %v12630_v44  ;;  %v3551_v60 = vsel %vm1503_vm4, %v12419_v59, %v3423_v26  ;;  %v3251_v62 = vadd.f32 1.0, %v12668_v58  ;;  %v12707_v36 = vpop.eup %9455  ;;  %v6466_v3 = vadd.f32 %v5330_v8, %v4418_v19 }
 0x347   :  { %v3262_v42 = vmul.f32 0.6931472, %v9452_v24  ;;  %v5315_v46 = vmul.f32 0.6931472, %v9454_v37  ;;  %v7844_v35 = vadd.f32 -0.6931472, %v3551_v60  ;;  %vm1506_vm5 = vcmp.ne.f32.partialorder %v12376_v63, %v12376_v63 }
 0x348   :  { %v5065_v34 = vmul.f32 1.442695, %v4933_v15  ;;  %v4936_v47 = vsub.f32 0.0, %v4808_v2  ;;  %v7845_v29 = vadd.f32 -0.6931472, %v3552_v52  ;;  %9469 = vlog2.f32 %v3251_v62 }
 0x349   :  { %vm12715_vm6 = vcmp.lt.f32.partialorder %v5319_v50, 0.0004427343  ;;  %v1895_v12 = vsub.f32 0.0, %v1767_v40  ;;  %v4807_v11 = vand.u32 2147483647, %v12694_v53  ;;  %8936 = vmatprep.mubr.f32.mxu1 %v7844_v35  ;;  %v3237_v19 = vadd.f32 1.0, %v3236_v16 }
 0x34a   :  { %v5318_v24 = vmul.f32 %v12564_v5, %v5317_v54  ;;  %v3278_v8 = vadd.f32 1.0, %v12707_v36  ;;  %v1381_v15 = vmax.f32 %v12584_v51, 0.0  ;;  %8937 = vmatmul.mubr.f32.gmra.mxu1 %v7845_v29  ;;  %v3239_v32 = vand.u32 2147483647, %v12606_v43  ;;  %v12737_v54 = vpop.f32.mrf.mxu1 }
 0x34b   :  { %v6594_v50 = vsel %vm4546_vm1, %v12393_v14, %v6466_v3  ;;  %vm4545_vm7 = vcmp.ne.f32.partialorder %v12425_v21, %v12425_v21  ;;  %v5344_v37 = vadd.f32 1.0, %v5343_v17  ;;  %v5346_v40 = vand.u32 2147483647, %v12630_v44 }
 0x34c   :  { %v4422_v5 = vmax.f32 %v12588_v45, 0.0  ;;  %v9458_v2 = vpop.eup %9457  ;;  %v3268_v26 = vsel %vm12682_vm3, %v12677_v61, %v3262_v42  ;;  %v5321_v52 = vsel %vm12715_vm6, %v5318_v24, %v5315_v46  ;;  %9471 = vpow2.f32 %v5065_v34 }
 0x34d   :  { %v5071_v16 = vmul.f32 1.442695, %v4936_v47  ;;  %v12739_v14 = vpop.eup %9459  ;;  %v2149_v60 = vmul.f32 1.442695, %v1895_v12  ;;  %v4935_v17 = vsub.f32 0.0, %v4807_v11  ;;  %v3238_v3 = vmul.f32 %v12606_v43, %v3237_v19  ;;  %v12767_v11 = vpop.f32.mrf.mxu1 }
 0x34e   :  { %v3235_v62 = vmul.f32 0.6931472, %v9458_v2  ;;  %v9462_v35 = vpop.eup %9461  ;;  %9473 = vlog2.f32 %v3278_v8  ;;  %v12744_v23 = vadd.f32 %v12598_v38, %v12381_v49  ;;  %vm3240_vm8 = vcmp.lt.f32.partialorder %v3239_v32, 0.0004427343 }
 0x34f   :  { %v3254_v61 = vmul.f32 -0.5, %v12668_v58  ;;  %v12747_v42 = vpop.eup %9463  ;;  %v12749_v46 = vadd.f32 -0.6931472, %v6594_v50  ;;  %v12753_v34 = vadd.f32 %v3268_v26, %v1380_v4  ;;  %v12756_v47 = vmul.f32 %v12630_v44, %v5344_v37 }
 0x350   :  { %v3241_v43 = vsel %vm3240_vm8, %v3238_v3, %v3235_v62  ;;  %v12758_v29 = vpop.eup %9465  ;;  %v6465_v38 = vadd.f32 %v5321_v52, %v4417_v57  ;;  %vm12762_vm9 = vcmp.lt.f32.partialorder %v5346_v40, 0.0004427343  ;;  %v5331_v12 = vadd.f32 1.0, %v12739_v14 }
 0x351   :  { %16958 = vst [vmem:[#allocation6_spill] sm:$0xff] %v12749_v46  ;;  %9475 = vpow2.f32 %v5071_v16  ;;  %v3425_v4 = vadd.f32 %v3241_v43, %v1377_v48  ;;  %v12771_v44 = vpop.eup %9467  ;;  %v5069_v19 = vmul.f32 1.442695, %v4935_v17  ;;  %vm1505_vm10 = vcmp.ne.f32.partialorder %v12457_v41, %v12457_v41 }
 0x352   :  { %9477 = vpow2.f32 %v2149_v60  ;;  %v3554_v57 = vsel %vm1506_vm5, %v12376_v63, %v12672_v56  ;;  %v4810_v24 = vand.u32 2147483647, %v12744_v23  ;;  %v12783_v8 = vadd.f32 %v12381_v49, %v12617_v27 }
 0x353   :  { %v3553_v48 = vsel %vm1505_vm10, %v12457_v41, %v3425_v4  ;;  %v3255_v32 = vadd.f32 1.0, %v3254_v61  ;;  %vm1508_vm11 = vcmp.ne.f32.partialorder %v12422_v28, %v12422_v28  ;;  %v3281_v50 = vmul.f32 -0.5, %v12707_v36  ;;  %v12796_v41 = vpop.f32.mrf.mxu1 }
 0x354   :  { %v7846_v37 = vadd.f32 -0.6931472, %v3553_v48  ;;  %v3257_v40 = vand.u32 2147483647, %v12668_v58  ;;  %v3269_v2 = vadd.f32 1.0, %v12747_v42  ;;  %v6593_v63 = vsel %vm4545_vm7, %v12425_v21, %v6465_v38 }
 0x355   :  { %v3284_v27 = vand.u32 2147483647, %v12707_v36  ;;  %9479 = vlog2.f32 %v5331_v12  ;;  %v7847_v56 = vadd.f32 -0.6931472, %v3554_v57  ;;  %v9470_v26 = vpop.eup %9469  ;;  %v5342_v52 = vmul.f32 0.6931472, %v9462_v35  ;;  %v12814_v12 = vpop.f32.mrf.mxu1 }
 0x356   :  { %v5358_v16 = vadd.f32 1.0, %v12758_v29  ;;  %v3296_v60 = vadd.f32 1.0, %v12771_v44  ;;  %v12802_v17 = vadd.f32 %v12647_v39, %v12381_v49  ;;  %8939 = vmatprep.mubr.f32.mxu1 %v7846_v37  ;;  %9481 = vpow2.f32 %v5069_v19 }
 0x357   :  { %v4809_v21 = vand.u32 2147483647, %v12783_v8  ;;  %8940 = vmatmul.mubr.f32.gmra.mxu1 %v7847_v56  ;;  %v3253_v62 = vmul.f32 0.6931472, %v9470_v26  ;;  %v3256_v3 = vmul.f32 %v12668_v58, %v3255_v32  ;;  %vm4548_vm12 = vcmp.ne.f32.partialorder %v12467_v1, %v12467_v1 }
 0x358   :  { %v4938_v35 = vsub.f32 0.0, %v4810_v24  ;;  %v12810_v61 = vadd.f32 %v12381_v49, %v12664_v0  ;;  %vm3258_vm13 = vcmp.lt.f32.partialorder %v3257_v40, 0.0004427343  ;;  %9483 = vlog2.f32 %v3269_v2 }
 0x359   :  { %v3282_v39 = vadd.f32 1.0, %v3281_v50  ;;  %v5334_v43 = vmul.f32 -0.5, %v12739_v14  ;;  %v1384_v38 = vmax.f32 %v12596_v31, 0.0  ;;  %v3259_v4 = vsel %vm3258_vm13, %v3256_v3, %v3253_v62  ;;  %v12816_v19 = vpop.eup %9471 }
 0x35a   :  { %v5348_v58 = vsel %vm12762_vm9, %v12756_v47, %v5342_v52  ;;  %vm12821_vm14 = vcmp.lt.f32.partialorder %v3284_v27, 0.0004427343  ;;  %v4421_v0 = vmax.f32 %v12641_v22, 0.0  ;;  %v4812_v24 = vand.u32 2147483647, %v12802_v17 }
 0x35b   :  { %v3427_v48 = vadd.f32 %v3259_v4, %v1379_v25  ;;  %v12829_v32 = vadd.f32 -0.6931472, %v6593_v63  ;;  %v5337_v50 = vand.u32 2147483647, %v12739_v14  ;;  %9485 = vlog2.f32 %v5358_v16  ;;  %v9474_v40 = vpop.eup %9473  ;;  %v12839_v25 = vpop.f32.mrf.mxu1 }
 0x35c   :  { %v4937_v37 = vsub.f32 0.0, %v4809_v21  ;;  %9487 = vlog2.f32 %v3296_v60  ;;  %v5075_v47 = vmul.f32 1.442695, %v4938_v35  ;;  %v4811_v59 = vand.u32 2147483647, %v12810_v61 }
 0x35d   :  { %16963 = vst [vmem:[#allocation7_spill] sm:$0xff] %v12829_v32  ;;  %v12835_v2 = vadd.f32 %v12688_v13, %v12381_v49  ;;  %v6468_v27 = vadd.f32 %v5348_v58, %v4420_v20  ;;  %v5335_v56 = vadd.f32 1.0, %v5334_v43  ;;  %vm1507_vm15 = vcmp.ne.f32.partialorder %v12509_v9, %v12509_v9  ;;  %v12868_v58 = vpop.f32.mrf.mxu1 }
 0x35e   :  { %v3556_v63 = vsel %vm1508_vm11, %v12422_v28, %v12753_v34  ;;  %v12848_v26 = vpop.eup %9475  ;;  %v5349_v13 = vadd.f32 1.0, %v12816_v19  ;;  %v4940_v52 = vsub.f32 0.0, %v4812_v24  ;;  %v3555_v16 = vsel %vm1507_vm15, %v12509_v9, %v3427_v48 }
 0x35f   :  { %v3272_v20 = vmul.f32 -0.5, %v12747_v42  ;;  %v12853_v60 = vpop.eup %9477  ;;  %v3280_v21 = vmul.f32 0.6931472, %v9474_v40  ;;  %v3283_v62 = vmul.f32 %v12707_v36, %v3282_v39  ;;  %v5073_v3 = vmul.f32 1.442695, %v4937_v37 }
 0x360   :  { %v7848_v35 = vadd.f32 -0.6931472, %v3555_v16  ;;  %9489 = vpow2.f32 %v5075_v47  ;;  %v4939_v43 = vsub.f32 0.0, %v4811_v59  ;;  %v4814_v28 = vand.u32 2147483647, %v12835_v2 }
 0x361   :  { %v7849_v34 = vadd.f32 -0.6931472, %v3556_v63  ;;  %v6596_v4 = vsel %vm4548_vm12, %v12467_v1, %v6468_v27  ;;  %vm1510_vm0 = vcmp.ne.f32.partialorder %v12532_v6, %v12532_v6  ;;  %v12864_v9 = vmul.f32 %v12739_v14, %v5335_v56 }
 0x362   :  { %v5364_v36 = vand.u32 2147483647, %v12758_v29  ;;  %v5376_v39 = vadd.f32 1.0, %v12848_v26  ;;  %8942 = vmatprep.mubr.f32.mxu1 %v7848_v35  ;;  %v9480_v24 = vpop.eup %9479  ;;  %9491 = vlog2.f32 %v5349_v13  ;;  %v5079_v48 = vmul.f32 1.442695, %v4940_v52 }
 0x363   :  { %8943 = vmatmul.mubr.f32.gmra.mxu1 %v7849_v34  ;;  %v3273_v37 = vadd.f32 1.0, %v3272_v20  ;;  %v3287_v1 = vadd.f32 1.0, %v12853_v60  ;;  %v3286_v40 = vsel %vm12821_vm14, %v3283_v62, %v3280_v21  ;;  %v5361_v14 = vmul.f32 -0.5, %v12758_v29  ;;  %v12875_v59 = vpop.eup %9481  ;;  %v12889_v21 = vpop.f32.mrf.mxu1 }
 0x364   :  { %9493 = vpow2.f32 %v5073_v3  ;;  %v3275_v47 = vand.u32 2147483647, %v12747_v42  ;;  %v1383_v27 = vmax.f32 %v12658_v7, 0.0  ;;  %v5077_v56 = vmul.f32 1.442695, %v4939_v43 }
 0x365   :  { %v4942_v63 = vsub.f32 0.0, %v4814_v28  ;;  %9495 = vlog2.f32 %v3287_v1  ;;  %v9484_v13 = vpop.eup %9483  ;;  %v12878_v52 = vadd.f32 -0.6931472, %v6596_v4  ;;  %vm12880_vm1 = vcmp.lt.f32.partialorder %v5337_v50, 0.0004427343 }
 0x366   :  { %v3299_v57 = vmul.f32 -0.5, %v12771_v44  ;;  %9497 = vlog2.f32 %v5376_v39  ;;  %v12887_v20 = vadd.f32 %v12381_v49, %v12713_v33  ;;  %v3430_v62 = vadd.f32 %v3286_v40, %v1382_v10 }
 0x367   :  { %16964 = vst [vmem:[#allocation8_spill] sm:$0xff] %v12878_v52  ;;  %vm12893_vm2 = vcmp.lt.f32.partialorder %v5364_v36, 0.0004427343  ;;  %9499 = vpow2.f32 %v5079_v48  ;;  %v3271_v50 = vmul.f32 0.6931472, %v9484_v13  ;;  %v3274_v35 = vmul.f32 %v12747_v42, %v3273_v37  ;;  %v12905_v42 = vpop.f32.mrf.mxu1 }
 0x368   :  { %v5333_v43 = vmul.f32 0.6931472, %v9480_v24  ;;  %v5362_v28 = vadd.f32 1.0, %v5361_v14  ;;  %v5367_v34 = vadd.f32 1.0, %v12875_v59  ;;  %vm3276_vm3 = vcmp.lt.f32.partialorder %v3275_v47, 0.0004427343  ;;  %v9486_v33 = vpop.eup %9485 }
 0x369   :  { %9501 = vpow2.f32 %v5077_v56  ;;  %v5083_v4 = vmul.f32 1.442695, %v4942_v63  ;;  %v12901_v39 = vadd.f32 %v12737_v54, %v12381_v49  ;;  %v3277_v10 = vsel %vm3276_vm3, %v3274_v35, %v3271_v50  ;;  %v9488_v36 = vpop.eup %9487 }
 0x36a   :  { %v3300_v1 = vadd.f32 1.0, %v3299_v57  ;;  %v3302_v48 = vand.u32 2147483647, %v12771_v44  ;;  %v4813_v40 = vand.u32 2147483647, %v12887_v20  ;;  %v3429_v24 = vadd.f32 %v3277_v10, %v1381_v15 }
 0x36b   :  { %v5352_v37 = vmul.f32 -0.5, %v12816_v19  ;;  %vm1509_vm4 = vcmp.ne.f32.partialorder %v12584_v51, %v12584_v51  ;;  %v3558_v54 = vsel %vm1510_vm0, %v12532_v6, %v3430_v62  ;;  %v3290_v14 = vmul.f32 -0.5, %v12853_v60 }
 0x36c   :  { %v5360_v47 = vmul.f32 0.6931472, %v9486_v33  ;;  %9503 = vlog2.f32 %v5367_v34  ;;  %v12919_v56 = vadd.f32 %v12381_v49, %v12767_v11  ;;  %v3557_v15 = vsel %vm1509_vm4, %v12584_v51, %v3429_v24  ;;  %v12927_v33 = vpop.f32.mrf.mxu1 }
 0x36d   :  { %v3298_v63 = vmul.f32 0.6931472, %v9488_v36  ;;  %9505 = vpow2.f32 %v5083_v4  ;;  %v4816_v13 = vand.u32 2147483647, %v12901_v39  ;;  %v7850_v57 = vadd.f32 -0.6931472, %v3557_v15  ;;  %v12923_v50 = vpop.eup %9489 }
 0x36e   :  { %v5363_v35 = vmul.f32 %v12758_v29, %v5362_v28  ;;  %v5355_v6 = vand.u32 2147483647, %v12816_v19  ;;  %v4941_v62 = vsub.f32 0.0, %v4813_v40  ;;  %v7851_v34 = vadd.f32 -0.6931472, %v3558_v54 }
 0x36f   :  { %v5339_v49 = vsel %vm12880_vm1, %v12864_v9, %v5333_v43  ;;  %vm1512_vm5 = vcmp.ne.f32.partialorder %v12596_v31, %v12596_v31  ;;  %v3301_v51 = vmul.f32 %v12771_v44, %v3300_v1  ;;  %v4424_v11 = vmax.f32 %v12662_v30, 0.0  ;;  %8945 = vmatprep.mubr.f32.mxu1 %v7850_v57  ;;  %v9492_v29 = vpop.eup %9491 }
 0x370   :  { %v3291_v4 = vadd.f32 1.0, %v3290_v14  ;;  %vm4547_vm6 = vcmp.ne.f32.partialorder %v12574_v55, %v12574_v55  ;;  %v5366_v28 = vsel %vm12893_vm2, %v5363_v35, %v5360_v47  ;;  %vm12940_vm7 = vcmp.lt.f32.partialorder %v3302_v48, 0.0004427343  ;;  %8946 = vmatmul.mubr.f32.gmra.mxu1 %v7851_v34  ;;  %v12960_v47 = vpop.f32.mrf.mxu1 }
 0x371   :  { %v4815_v9 = vand.u32 2147483647, %v12919_v56  ;;  %v3293_v44 = vand.u32 2147483647, %v12853_v60  ;;  %v12946_v16 = vpop.eup %9493  ;;  %vm4550_vm8 = vcmp.ne.f32.partialorder %v12588_v45, %v12588_v45  ;;  %v3304_v43 = vsel %vm12940_vm7, %v3301_v51, %v3298_v63 }
 0x372   :  { %v5353_v36 = vadd.f32 1.0, %v5352_v37  ;;  %v5394_v3 = vadd.f32 1.0, %v12923_v50  ;;  %v4944_v1 = vsub.f32 0.0, %v4816_v13  ;;  %v9496_v48 = vpop.eup %9495  ;;  %v6467_v40 = vadd.f32 %v5339_v49, %v4419_v18 }
 0x373   :  { %vm12955_vm9 = vcmp.lt.f32.partialorder %v5355_v6, 0.0004427343  ;;  %v5379_v54 = vmul.f32 -0.5, %v12848_v26  ;;  %v5081_v14 = vmul.f32 1.442695, %v4941_v62  ;;  %v9498_v15 = vpop.eup %9497  ;;  %v6470_v37 = vadd.f32 %v5366_v28, %v4422_v5 }
 0x374   :  { %v5351_v63 = vmul.f32 0.6931472, %v9492_v29  ;;  %v3289_v57 = vmul.f32 0.6931472, %v9496_v48  ;;  %v3292_v13 = vmul.f32 %v12853_v60, %v3291_v4  ;;  %v12965_v35 = vpop.eup %9499  ;;  %v3432_v18 = vadd.f32 %v3304_v43, %v1384_v38  ;;  %v12976_v4 = vpop.f32.mrf.mxu1 }
 0x375   :  { %v5385_v6 = vadd.f32 1.0, %v12946_v16  ;;  %v4943_v34 = vsub.f32 0.0, %v4815_v9  ;;  %vm3294_vm10 = vcmp.lt.f32.partialorder %v3293_v44, 0.0004427343  ;;  %v5354_v62 = vmul.f32 %v12816_v19, %v5353_v36 }
 0x376   :  { %9507 = vlog2.f32 %v5394_v3  ;;  %v5087_v49 = vmul.f32 1.442695, %v4944_v1  ;;  %v3295_v51 = vsel %vm3294_vm10, %v3292_v13, %v3289_v57  ;;  %v12971_v10 = vpop.eup %9501  ;;  %vm4549_vm11 = vcmp.ne.f32.partialorder %v12641_v22, %v12641_v22 }
 0x377   :  { %v5380_v5 = vadd.f32 1.0, %v5379_v54  ;;  %v5382_v60 = vand.u32 2147483647, %v12848_v26  ;;  %9509 = vpow2.f32 %v5081_v14  ;;  %v3431_v38 = vadd.f32 %v3295_v51, %v1383_v27 }
 0x378   :  { %v5357_v19 = vsel %vm12955_vm9, %v5354_v62, %v5351_v63  ;;  %v5378_v29 = vmul.f32 0.6931472, %v9498_v15  ;;  %v5370_v28 = vmul.f32 -0.5, %v12875_v59  ;;  %v5412_v9 = vadd.f32 1.0, %v12965_v35 }
 0x379   :  { %9511 = vlog2.f32 %v5385_v6  ;;  %v5085_v44 = vmul.f32 1.442695, %v4943_v34  ;;  %vm1511_vm12 = vcmp.ne.f32.partialorder %v12658_v7, %v12658_v7  ;;  %v3560_v43 = vsel %vm1512_vm5, %v12596_v31, %v3432_v18  ;;  %v9504_v36 = vpop.eup %9503 }
 0x37a   :  { %v6595_v27 = vsel %vm4547_vm6, %v12574_v55, %v6467_v40  ;;  %v5403_v3 = vadd.f32 1.0, %v12971_v10  ;;  %9513 = vpow2.f32 %v5087_v49  ;;  %v3559_v1 = vsel %vm1511_vm12, %v12658_v7, %v3431_v38  ;;  %v12996_v48 = vpop.eup %9505  ;;  %v13009_v55 = vpop.f32.mrf.mxu1 }
 0x37b   :  { %v6598_v24 = vsel %vm4550_vm8, %v12588_v45, %v6470_v37  ;;  %vm4552_vm13 = vcmp.ne.f32.partialorder %v12662_v30, %v12662_v30  ;;  %v5381_v31 = vmul.f32 %v12848_v26, %v5380_v5  ;;  %vm13005_vm14 = vcmp.lt.f32.partialorder %v5382_v60, 0.0004427343  ;;  %v13019_v26 = vld [vmem:[%s16825_s4] ss:$0 sm:$0xff] }
 0x37c   :  { %v7852_v40 = vadd.f32 -0.6931472, %v3559_v1  ;;  %v6469_v7 = vadd.f32 %v5357_v19, %v4421_v0  ;;  %v5371_v14 = vadd.f32 1.0, %v5370_v28  ;;  %9515 = vlog2.f32 %v5412_v9 }
 0x37d   :  { %v7853_v15 = vadd.f32 -0.6931472, %v3560_v43  ;;  %v5384_v45 = vsel %vm13005_vm14, %v5381_v31, %v5378_v29  ;;  %v5373_v37 = vand.u32 2147483647, %v12875_v59  ;;  %9517 = vpow2.f32 %v5085_v44 }
 0x37e   :  { %v13023_v63 = vadd.f32 %v13019_v26, %v12796_v41  ;;  %8948 = vmatprep.mubr.f32.mxu1 %v7852_v40  ;;  %v5369_v0 = vmul.f32 0.6931472, %v9504_v36  ;;  %v5397_v57 = vmul.f32 -0.5, %v12923_v50  ;;  %9519 = vlog2.f32 %v5403_v3  ;;  %v13035_v41 = vpop.f32.mrf.mxu1 }
 0x37f   :  { %v5430_v13 = vadd.f32 1.0, %v12996_v48  ;;  %8949 = vmatmul.mubr.f32.gmra.mxu1 %v7853_v15  ;;  %v13027_v18 = vadd.f32 -0.6931472, %v6595_v27  ;;  %v4423_v6 = vmax.f32 %v12694_v53, 0.0  ;;  %v4426_v34 = vmax.f32 %v12744_v23, 0.0 }
 0x380   :  { %16975 = vst [vmem:[#allocation9_spill] sm:$0xff] %v13023_v63  ;;  %v13033_v62 = vadd.f32 %v13019_v26, %v12814_v12  ;;  %v13037_v49 = vadd.f32 -0.6931472, %v6598_v24  ;;  %v6597_v51 = vsel %vm4549_vm11, %v12641_v22, %v6469_v7  ;;  %v6472_v5 = vadd.f32 %v5384_v45, %v4424_v11  ;;  %v13066_v27 = vpop.f32.mrf.mxu1 }
 0x381   :  { %16976 = vst [vmem:[#allocation10_spill] sm:$0xff] %v13027_v18  ;;  %vm4551_vm15 = vcmp.ne.f32.partialorder %v12694_v53, %v12694_v53  ;;  %v5372_v60 = vmul.f32 %v12875_v59, %v5371_v14  ;;  %vm13048_vm0 = vcmp.lt.f32.partialorder %v5373_v37, 0.0004427343  ;;  %v4425_v38 = vmax.f32 %v12783_v8, 0.0 }
 0x382   :  { %16977 = vst [vmem:[#allocation11_spill] sm:$0xff] %v13033_v62  ;;  %16978 = vst [vmem:[#allocation12_spill] sm:$0xff] %v13037_v49  ;;  %v5388_v19 = vmul.f32 -0.5, %v12946_v16  ;;  %v4818_v29 = vand.u32 2147483647, %v13023_v63  ;;  %v5398_v28 = vadd.f32 1.0, %v5397_v57  ;;  %9521 = vlog2.f32 %v5430_v13 }
 0x383   :  { %v5375_v22 = vsel %vm13048_vm0, %v5372_v60, %v5369_v0  ;;  %v5400_v11 = vand.u32 2147483647, %v12923_v50  ;;  %v9508_v9 = vpop.eup %9507  ;;  %v13058_v44 = vadd.f32 -0.6931472, %v6597_v51  ;;  %v4428_v59 = vmax.f32 %v12802_v17, 0.0 }
 0x384   :  { %v4817_v43 = vand.u32 2147483647, %v13033_v62  ;;  %v13064_v36 = vadd.f32 %v13019_v26, %v12839_v25  ;;  %v13068_v3 = vpop.eup %9509  ;;  %v6600_v1 = vsel %vm4552_vm13, %v12662_v30, %v6472_v5  ;;  %v5391_v24 = vand.u32 2147483647, %v12946_v16  ;;  %v13092_v5 = vpop.f32.mrf.mxu1 }
 0x385   :  { %16981 = vst [vmem:[#allocation13_spill] sm:$0xff] %v13058_v44  ;;  %v13078_v54 = vadd.f32 %v13019_v26, %v12868_v58  ;;  %v6471_v40 = vadd.f32 %v5375_v22, %v4423_v6  ;;  %v5389_v25 = vadd.f32 1.0, %v5388_v19  ;;  %v5415_v7 = vmul.f32 -0.5, %v12965_v35 }
 0x386   :  { %16982 = vst [vmem:[#allocation14_spill] sm:$0xff] %v13064_v36  ;;  %v4946_v14 = vsub.f32 0.0, %v4818_v29  ;;  %v9512_v15 = vpop.eup %9511  ;;  %v5396_v45 = vmul.f32 0.6931472, %v9508_v9  ;;  %v5399_v37 = vmul.f32 %v12923_v50, %v5398_v28  ;;  %vm13082_vm1 = vcmp.lt.f32.partialorder %v5400_v11, 0.0004427343 }
 0x387   :  { %16983 = vst [vmem:[#allocation15_spill] sm:$0xff] %v13078_v54  ;;  %v5418_v30 = vand.u32 2147483647, %v12965_v35  ;;  %v13087_v57 = vpop.eup %9513  ;;  %v5406_v58 = vmul.f32 -0.5, %v12971_v10  ;;  %v5421_v13 = vadd.f32 1.0, %v13068_v3  ;;  %v4945_v6 = vsub.f32 0.0, %v4817_v43 }
 0x388   :  { %v4820_v51 = vand.u32 2147483647, %v13064_v36  ;;  %v13094_v60 = vadd.f32 -0.6931472, %v6600_v1  ;;  %vm13096_vm2 = vcmp.lt.f32.partialorder %v5391_v24, 0.0004427343  ;;  %v13103_v19 = vadd.f32 %v13019_v26, %v12889_v21 }
 0x389   :  { %v4819_v12 = vand.u32 2147483647, %v13078_v54  ;;  %v9516_v29 = vpop.eup %9515  ;;  %v6599_v22 = vsel %vm4551_vm15, %v12694_v53, %v6471_v40  ;;  %v5390_v28 = vmul.f32 %v12946_v16, %v5389_v25  ;;  %v5416_v11 = vadd.f32 1.0, %v5415_v7  ;;  %v13121_v7 = vpop.f32.mrf.mxu1 }
 0x38a   :  { %16986 = vst [vmem:[#allocation16_spill] sm:$0xff] %v13094_v60  ;;  %16989 = vst [vmem:[#allocation17_spill] sm:$0xff] %v13103_v19  ;;  %v5091_v9 = vmul.f32 1.442695, %v4946_v14  ;;  %v13110_v43 = vpop.eup %9517  ;;  %vm4554_vm3 = vcmp.ne.f32.partialorder %v12744_v23, %v12744_v23  ;;  %v5402_v1 = vsel %vm13082_vm1, %v5399_v37, %v5396_v45  ;;  %v5387_v21 = vmul.f32 0.6931472, %v9512_v15 }
 0x38b   :  { %vm13116_vm4 = vcmp.lt.f32.partialorder %v5418_v30, 0.0004427343  ;;  %v5448_v31 = vadd.f32 1.0, %v13087_v57  ;;  %v9520_v53 = vpop.eup %9519  ;;  %v5407_v40 = vadd.f32 1.0, %v5406_v58  ;;  %9523 = vlog2.f32 %v5421_v13 }
 0x38c   :  { %v5089_v16 = vmul.f32 1.442695, %v4945_v6  ;;  %v4948_v25 = vsub.f32 0.0, %v4820_v51  ;;  %vm4553_vm5 = vcmp.ne.f32.partialorder %v12783_v8, %v12783_v8  ;;  %v5414_v14 = vmul.f32 0.6931472, %v9516_v29 }
 0x38d   :  { %v5433_v45 = vmul.f32 -0.5, %v12996_v48  ;;  %v4947_v15 = vsub.f32 0.0, %v4819_v12  ;;  %v4822_v37 = vand.u32 2147483647, %v13103_v19  ;;  %v5417_v0 = vmul.f32 %v12965_v35, %v5416_v11 }
 0x38e   :  { %v5409_v30 = vand.u32 2147483647, %v12971_v10  ;;  %v5439_v58 = vadd.f32 1.0, %v13110_v43  ;;  %9525 = vpow2.f32 %v5091_v9  ;;  %v5393_v13 = vsel %vm13096_vm2, %v5390_v28, %v5387_v21  ;;  %v8806_v9 = vpop.f32.mrf.mxu1 }
 0x38f   :  { %vm4556_vm6 = vcmp.ne.f32.partialorder %v12802_v17, %v12802_v17  ;;  %v5405_v6 = vmul.f32 0.6931472, %v9520_v53  ;;  %9527 = vlog2.f32 %v5448_v31  ;;  %v13136_v51 = vadd.f32 %v13019_v26, %v12905_v42  ;;  %v9522_v12 = vpop.eup %9521 }
 0x390   :  { %v6474_v35 = vadd.f32 %v5402_v1, %v4426_v34  ;;  %v5408_v29 = vmul.f32 %v12971_v10, %v5407_v40  ;;  %9529 = vpow2.f32 %v5089_v16  ;;  %v5095_v11 = vmul.f32 1.442695, %v4948_v25 }
 0x391   :  { %16992 = vst [vmem:[#allocation18_spill] sm:$0xff] %v13136_v51  ;;  %v5420_v50 = vsel %vm13116_vm4, %v5417_v0, %v5414_v14  ;;  %vm4555_vm7 = vcmp.ne.f32.partialorder %v12810_v61, %v12810_v61  ;;  %v5434_v31 = vadd.f32 1.0, %v5433_v45  ;;  %v5093_v28 = vmul.f32 1.442695, %v4947_v15 }
 0x392   :  { %v4950_v21 = vsub.f32 0.0, %v4822_v37  ;;  %v6473_v42 = vadd.f32 %v5393_v13, %v4425_v38  ;;  %vm13147_vm8 = vcmp.lt.f32.partialorder %v5409_v30, 0.0004427343  ;;  %v5436_v10 = vand.u32 2147483647, %v12996_v48 }
 0x393   :  { %9531 = vlog2.f32 %v5439_v58  ;;  %v5411_v34 = vsel %vm13147_vm8, %v5408_v29, %v5405_v6  ;;  %v5432_v1 = vmul.f32 0.6931472, %v9522_v12  ;;  %v4821_v24 = vand.u32 2147483647, %v13136_v51 }
 0x394   :  { %v13156_v40 = vadd.f32 %v13019_v26, %v8806_v9  ;;  %v13158_v16 = vadd.f32 -0.6931472, %v6599_v22  ;;  %v6602_v38 = vsel %vm4554_vm3, %v12744_v23, %v6474_v35  ;;  %v6476_v25 = vadd.f32 %v5420_v50, %v4428_v59 }
 0x395   :  { %9533 = vpow2.f32 %v5095_v11  ;;  %v5435_v14 = vmul.f32 %v12996_v48, %v5434_v31  ;;  %v5424_v45 = vmul.f32 -0.5, %v13068_v3  ;;  %v5099_v15 = vmul.f32 1.442695, %v4950_v21 }
 0x396   :  { %16995 = vst [vmem:[#allocation19_spill] sm:$0xff] %v13158_v16  ;;  %9535 = vpow2.f32 %v5093_v28  ;;  %v6601_v22 = vsel %vm4553_vm5, %v12783_v8, %v6473_v42  ;;  %v16996_v37 = vmax.f32 %v12810_v61, 0.0  ;;  %v4430_v23 = vmax.f32 %v12835_v2, 0.0 }
 0x397   :  { %vm5437_vm9 = vcmp.lt.f32.partialorder %v5436_v10, 0.0004427343  ;;  %vm4558_vm10 = vcmp.ne.f32.partialorder %v12835_v2, %v12835_v2  ;;  %v4949_v48 = vsub.f32 0.0, %v4821_v24  ;;  %v4832_v30 = vand.u32 2147483647, %v13156_v40 }
 0x398   :  { %v6475_v0 = vadd.f32 %v5411_v34, %v16996_v37  ;;  %v5438_v59 = vsel %vm5437_vm9, %v5435_v14, %v5432_v1  ;;  %v13178_v58 = vadd.f32 -0.6931472, %v6602_v38  ;;  %v6604_v8 = vsel %vm4556_vm6, %v12802_v17, %v6476_v25  ;;  %v9524_v12 = vpop.eup %9523  ;;  %v3928_v34 = vpop.f32.mrf.mxu1 }
 0x399   :  { %v4429_v13 = vmax.f32 %v12887_v20, 0.0  ;;  %v5427_v6 = vand.u32 2147483647, %v13068_v3  ;;  %v13186_v35 = vadd.f32 -0.6931472, %v6601_v22  ;;  %v5425_v29 = vadd.f32 1.0, %v5424_v45 }
 0x39a   :  { %16997 = vst [vmem:[#allocation20_spill] sm:$0xff] %v13178_v58  ;;  %v5451_v11 = vmul.f32 -0.5, %v13087_v57  ;;  %9537 = vpow2.f32 %v5099_v15  ;;  %v6603_v9 = vsel %vm4555_vm7, %v12810_v61, %v6475_v0  ;;  %v6478_v50 = vadd.f32 %v5438_v59, %v4430_v23 }
 0x39b   :  { %16998 = vst [vmem:[#allocation21_spill] sm:$0xff] %v13186_v35  ;;  %v4432_v31 = vmax.f32 %v12901_v39, 0.0  ;;  %v13196_v17 = vadd.f32 %v13019_v26, %v12927_v33  ;;  %v13198_v28 = vpop.eup %9525  ;;  %v13200_v21 = vadd.f32 -0.6931472, %v6604_v8  ;;  %v5442_v42 = vmul.f32 -0.5, %v13110_v43 }
 0x39c   :  { %v5097_v53 = vmul.f32 1.442695, %v4949_v48  ;;  %v4960_v10 = vsub.f32 0.0, %v4832_v30  ;;  %v9528_v1 = vpop.eup %9527  ;;  %v5423_v24 = vmul.f32 0.6931472, %v9524_v12  ;;  %v4431_v38 = vmax.f32 %v12919_v56, 0.0 }
 0x39d   :  { %vm13203_vm11 = vcmp.lt.f32.partialorder %v5427_v6, 0.0004427343  ;;  %v13209_v25 = vpop.eup %9529  ;;  %v13211_v14 = vadd.f32 -0.6931472, %v6603_v9  ;;  %v5426_v45 = vmul.f32 %v13068_v3, %v5425_v29  ;;  %v5452_v15 = vadd.f32 1.0, %v5451_v11 }
 0x39e   :  { %v5454_v22 = vand.u32 2147483647, %v13087_v57  ;;  %v6606_v37 = vsel %vm4558_vm10, %v12835_v2, %v6478_v50  ;;  %vm4557_vm12 = vcmp.ne.f32.partialorder %v12887_v20, %v12887_v20  ;;  %v5466_v0 = vadd.f32 1.0, %v13198_v28 }
 0x39f   :  { %v4824_v23 = vand.u32 2147483647, %v13196_v17  ;;  %v13224_v59 = vadd.f32 %v13019_v26, %v3928_v34  ;;  %v5443_v3 = vadd.f32 1.0, %v5442_v42  ;;  %9539 = vpow2.f32 %v5097_v53 }
 0x3a0   :  { %v9532_v48 = vpop.eup %9531  ;;  %v13228_v30 = vadd.f32 %v13019_v26, %v12960_v47  ;;  %v5119_v8 = vmul.f32 1.442695, %v4960_v10  ;;  %v5429_v2 = vsel %vm13203_vm11, %v5426_v45, %v5423_v24  ;;  %v5450_v6 = vmul.f32 0.6931472, %v9528_v1 }
 0x3a1   :  { %v5457_v29 = vadd.f32 1.0, %v13209_v25  ;;  %v13236_v9 = vadd.f32 -0.6931472, %v6606_v37  ;;  %v5453_v50 = vmul.f32 %v13087_v57, %v5452_v15  ;;  %vm13239_vm13 = vcmp.lt.f32.partialorder %v5454_v22, 0.0004427343 }
 0x3a2   :  { %v13234_v11 = vpop.eup %9533  ;;  %v5445_v47 = vand.u32 2147483647, %v13110_v43  ;;  %vm4560_vm14 = vcmp.ne.f32.partialorder %v12901_v39, %v12901_v39  ;;  %v5441_v10 = vmul.f32 0.6931472, %v9532_v48  ;;  %9541 = vlog2.f32 %v5466_v0 }
 0x3a3   :  { %v13244_v53 = vpop.eup %9535  ;;  %v4952_v34 = vsub.f32 0.0, %v4824_v23  ;;  %v4831_v1 = vand.u32 2147483647, %v13224_v59  ;;  %v6477_v24 = vadd.f32 %v5429_v2, %v4429_v13  ;;  %v5444_v61 = vmul.f32 %v13110_v43, %v5443_v3 }
 0x3a4   :  { %v4823_v57 = vand.u32 2147483647, %v13228_v30  ;;  %9543 = vpow2.f32 %v5119_v8  ;;  %v5456_v45 = vsel %vm13239_vm13, %v5453_v50, %v5450_v6  ;;  %vm4559_vm15 = vcmp.ne.f32.partialorder %v12919_v56, %v12919_v56 }
 0x3a5   :  { %9545 = vlog2.f32 %v5457_v29  ;;  %v5484_v15 = vadd.f32 1.0, %v13234_v11  ;;  %v13258_v22 = vadd.f32 %v13019_v26, %v12976_v4  ;;  %vm13260_vm0 = vcmp.lt.f32.partialorder %v5445_v47, 0.0004427343 }
 0x3a6   :  { %v5475_v37 = vadd.f32 1.0, %v13244_v53  ;;  %v13268_v0 = vadd.f32 %v13019_v26, %v13009_v55  ;;  %v5447_v48 = vsel %vm13260_vm0, %v5444_v61, %v5441_v10  ;;  %v5103_v3 = vmul.f32 1.442695, %v4952_v34 }
 0x3a7   :  { %v13270_v23 = vpop.eup %9537  ;;  %v13276_v4 = vadd.f32 %v13019_v26, %v13092_v5  ;;  %v4959_v8 = vsub.f32 0.0, %v4831_v1  ;;  %v6605_v2 = vsel %vm4557_vm12, %v12887_v20, %v6477_v24  ;;  %v6480_v55 = vadd.f32 %v5456_v45, %v4432_v31 }
 0x3a8   :  { %v4951_v29 = vsub.f32 0.0, %v4823_v57  ;;  %v5469_v50 = vmul.f32 -0.5, %v13198_v28  ;;  %v5472_v42 = vand.u32 2147483647, %v13198_v28  ;;  %9547 = vlog2.f32 %v5484_v15 }
 0x3a9   :  { %v4826_v5 = vand.u32 2147483647, %v13258_v22  ;;  %v6479_v47 = vadd.f32 %v5447_v48, %v4431_v38  ;;  %9549 = vlog2.f32 %v5475_v37  ;;  %v5502_v10 = vadd.f32 1.0, %v13270_v23 }
 0x3aa   :  { %v4825_v34 = vand.u32 2147483647, %v13268_v0  ;;  %v5460_v20 = vmul.f32 -0.5, %v13209_v25  ;;  %9551 = vpow2.f32 %v5103_v3  ;;  %v4830_v31 = vand.u32 2147483647, %v13276_v4  ;;  %v13306_v3 = vpop.f32.mrf.mxu1 }
 0x3ab   :  { %v5117_v1 = vmul.f32 1.442695, %v4959_v8  ;;  %v13292_v24 = vadd.f32 -0.6931472, %v6605_v2  ;;  %v6608_v61 = vsel %vm4560_vm14, %v12901_v39, %v6480_v55  ;;  %v5463_v38 = vand.u32 2147483647, %v13209_v25 }
 0x3ac   :  { %v5101_v57 = vmul.f32 1.442695, %v4951_v29  ;;  %v13299_v45 = vpop.eup %9539  ;;  %v5470_v15 = vadd.f32 1.0, %v5469_v50  ;;  %v4954_v37 = vsub.f32 0.0, %v4826_v5  ;;  %v13304_v48 = vadd.f32 %v13019_v26, %v13035_v41 }
 0x3ad   :  { %v6607_v39 = vsel %vm4559_vm15, %v12919_v56, %v6479_v47  ;;  %vm13312_vm1 = vcmp.lt.f32.partialorder %v5472_v42, 0.0004427343  ;;  %9553 = vlog2.f32 %v5502_v10  ;;  %v4953_v2 = vsub.f32 0.0, %v4825_v34 }
 0x3ae   :  { %v13318_v55 = vadd.f32 %v13019_v26, %v13121_v7  ;;  %v13320_v29 = vadd.f32 -0.6931472, %v6608_v61  ;;  %v5461_v41 = vadd.f32 1.0, %v5460_v20  ;;  %v4958_v50 = vsub.f32 0.0, %v4830_v31  ;;  %v13336_v20 = vpop.f32.mrf.mxu1 }
 0x3af   :  { %9555 = vpow2.f32 %v5117_v1  ;;  %v9542_v5 = vpop.eup %9541  ;;  %vm13322_vm2 = vcmp.lt.f32.partialorder %v5463_v38, 0.0004427343  ;;  %v5493_v56 = vadd.f32 1.0, %v13299_v45  ;;  %v13329_v42 = vadd.f32 %v13019_v26, %v13066_v27 }
 0x3b0   :  { %9557 = vpow2.f32 %v5101_v57  ;;  %v13333_v7 = vadd.f32 -0.6931472, %v6607_v39  ;;  %v5107_v10 = vmul.f32 1.442695, %v4954_v37  ;;  %v4828_v34 = vand.u32 2147483647, %v13304_v48 }
 0x3b1   :  { %v13331_v47 = vpop.eup %9543  ;;  %v5471_v1 = vmul.f32 %v13198_v28, %v5470_v15  ;;  %v5487_v61 = vmul.f32 -0.5, %v13234_v11  ;;  %v5105_v38 = vmul.f32 1.442695, %v4953_v2  ;;  %v4829_v57 = vand.u32 2147483647, %v13318_v55  ;;  %v13347_v2 = vpop.f32.mrf.mxu1 }
 0x3b2   :  { %v9546_v31 = vpop.eup %9545  ;;  %v5468_v6 = vmul.f32 0.6931472, %v9542_v5  ;;  %v5462_v27 = vmul.f32 %v13209_v25, %v5461_v41  ;;  %v5490_v43 = vand.u32 2147483647, %v13234_v11  ;;  %v5115_v39 = vmul.f32 1.442695, %v4958_v50 }
 0x3b3   :  { %v5478_v37 = vmul.f32 -0.5, %v13244_v53  ;;  %9559 = vlog2.f32 %v5493_v56  ;;  %v4827_v12 = vand.u32 2147483647, %v13329_v42  ;;  %v5592_v33 = vadd.f32 1.0, %v13331_v47  ;;  %v13363_v8 = vpop.f32.mrf.mxu1 }
 0x3b4   :  { %v5459_v32 = vmul.f32 0.6931472, %v9546_v31  ;;  %9561 = vpow2.f32 %v5107_v10  ;;  %v4956_v15 = vsub.f32 0.0, %v4828_v34  ;;  %v5488_v46 = vadd.f32 1.0, %v5487_v61 }
 0x3b5   :  { %v9548_v5 = vpop.eup %9547  ;;  %9563 = vpow2.f32 %v5105_v38  ;;  %v4957_v41 = vsub.f32 0.0, %v4829_v57  ;;  %v5474_v56 = vsel %vm13312_vm1, %v5471_v1, %v5468_v6  ;;  %vm13352_vm3 = vcmp.lt.f32.partialorder %v5490_v43, 0.0004427343  ;;  %v13393_v13 = vpop.f32.mrf.mxu1 }
 0x3b6   :  { %v9550_v50 = vpop.eup %9549  ;;  %v5481_v31 = vand.u32 2147483647, %v13244_v53  ;;  %9565 = vpow2.f32 %v5115_v39  ;;  %v5479_v34 = vadd.f32 1.0, %v5478_v37  ;;  %v5505_v61 = vmul.f32 -0.5, %v13270_v23 }
 0x3b7   :  { %v13357_v10 = vpop.eup %9551  ;;  %v4955_v28 = vsub.f32 0.0, %v4827_v12  ;;  %9567 = vlog2.f32 %v5592_v33  ;;  %v5465_v38 = vsel %vm13322_vm2, %v5462_v27, %v5459_v32  ;;  %v5486_v57 = vmul.f32 0.6931472, %v9548_v5 }
 0x3b8   :  { %v5508_v6 = vand.u32 2147483647, %v13270_v23  ;;  %v5111_v43 = vmul.f32 1.442695, %v4956_v15  ;;  %v17011_v1 = vmax.f32 %v13023_v63, 0.0  ;;  %v5489_v39 = vmul.f32 %v13234_v11, %v5488_v46 }
 0x3b9   :  { %v5477_v37 = vmul.f32 0.6931472, %v9550_v50  ;;  %v5113_v52 = vmul.f32 1.442695, %v4957_v41  ;;  %vm13370_vm4 = vcmp.lt.f32.partialorder %v5481_v31, 0.0004427343  ;;  %v5480_v46 = vmul.f32 %v13244_v53, %v5479_v34 }
 0x3ba   :  { %v13367_v25 = vadd.f32 %v5474_v56, %v17011_v1  ;;  %v9554_v44 = vpop.eup %9553  ;;  %v5496_v32 = vmul.f32 -0.5, %v13299_v45  ;;  %v5520_v12 = vadd.f32 1.0, %v13357_v10  ;;  %v17015_v15 = vmax.f32 %v13033_v62, 0.0 }
 0x3bb   :  { %v5506_v11 = vadd.f32 1.0, %v5505_v61  ;;  %v5109_v41 = vmul.f32 1.442695, %v4955_v28  ;;  %v5492_v56 = vsel %vm13352_vm3, %v5489_v39, %v5486_v57  ;;  %vm13388_vm5 = vcmp.lt.f32.partialorder %v5508_v6, 0.0004427343 }
 0x3bc   :  { %17012 = vst [vmem:[#allocation22_spill] sm:$0xff] %v13367_v25  ;;  %v13377_v27 = vpop.eup %9555  ;;  %v13381_v5 = vadd.f32 %v5465_v38, %v17015_v15  ;;  %v5499_v1 = vand.u32 2147483647, %v13299_v45  ;;  %9569 = vpow2.f32 %v5111_v43  ;;  %v5483_v38 = vsel %vm13370_vm4, %v5480_v46, %v5477_v37 }
 0x3bd   :  { %v13384_v50 = vpop.eup %9557  ;;  %v5504_v53 = vmul.f32 0.6931472, %v9554_v44  ;;  %v5523_v28 = vmul.f32 -0.5, %v13357_v10  ;;  %9571 = vpow2.f32 %v5113_v52  ;;  %v5497_v34 = vadd.f32 1.0, %v5496_v32 }
 0x3be   :  { %17016 = vst [vmem:[#allocation23_spill] sm:$0xff] %v13381_v5  ;;  %9573 = vlog2.f32 %v5520_v12  ;;  %v5583_v18 = vadd.f32 1.0, %v13377_v27  ;;  %v13401_v61 = vadd.f32 %v13019_v26, %v13306_v3  ;;  %v5507_v57 = vmul.f32 %v13270_v23, %v5506_v11  ;;  %v3958_v12 = vpop.f32.mrf.mxu1 }
 0x3bf   :  { %v5511_v6 = vadd.f32 1.0, %v13384_v50  ;;  %v5514_v43 = vmul.f32 -0.5, %v13384_v50  ;;  %9575 = vpow2.f32 %v5109_v41  ;;  %v17019_v44 = vmax.f32 %v13064_v36, 0.0 }
 0x3c0   :  { %v9560_v39 = vpop.eup %9559  ;;  %v17021_v52 = vmax.f32 %v13078_v54, 0.0  ;;  %v5510_v15 = vsel %vm13388_vm5, %v5507_v57, %v5504_v53  ;;  %vm13420_vm6 = vcmp.lt.f32.partialorder %v5499_v1, 0.0004427343  ;;  %v5524_v11 = vadd.f32 1.0, %v5523_v28 }
 0x3c1   :  { %v13408_v37 = vadd.f32 %v5492_v56, %v17019_v44  ;;  %v13416_v23 = vpop.eup %9561  ;;  %v5595_v41 = vmul.f32 -0.5, %v13331_v47  ;;  %9577 = vlog2.f32 %v5583_v18  ;;  %v4834_v44 = vand.u32 2147483647, %v13401_v61 }
 0x3c2   :  { %v13412_v33 = vadd.f32 %v5483_v38, %v17021_v52  ;;  %v13425_v56 = vpop.eup %9563  ;;  %v5498_v38 = vmul.f32 %v13299_v45, %v5497_v34  ;;  %v13431_v52 = vadd.f32 %v13019_v26, %v13336_v20  ;;  %v5526_v1 = vand.u32 2147483647, %v13357_v10  ;;  %v13443_v20 = vpop.f32.mrf.mxu1 }
 0x3c3   :  { %17020 = vst [vmem:[#allocation24_spill] sm:$0xff] %v13408_v37  ;;  %v13433_v31 = vpop.eup %9565  ;;  %9579 = vlog2.f32 %v5511_v6  ;;  %v5515_v53 = vadd.f32 1.0, %v5514_v43  ;;  %v17025_v3 = vmax.f32 %v13103_v19, 0.0  ;;  %v5495_v45 = vmul.f32 0.6931472, %v9560_v39 }
 0x3c4   :  { %17022 = vst [vmem:[#allocation25_spill] sm:$0xff] %v13412_v33  ;;  %v9568_v57 = vpop.eup %9567  ;;  %v5517_v34 = vand.u32 2147483647, %v13384_v50  ;;  %v5538_v18 = vadd.f32 1.0, %v13416_v23  ;;  %v13446_v5 = vmul.f32 %v13357_v10, %v5524_v11  ;;  %v5529_v6 = vadd.f32 1.0, %v13425_v56 }
 0x3c5   :  { %v13439_v32 = vadd.f32 %v5510_v15, %v17025_v3  ;;  %v5596_v43 = vadd.f32 1.0, %v5595_v41  ;;  %v13451_v28 = vadd.f32 %v13019_v26, %v13347_v2  ;;  %v5598_v39 = vand.u32 2147483647, %v13331_v47 }
 0x3c6   :  { %v4962_v15 = vsub.f32 0.0, %v4834_v44  ;;  %v4833_v25 = vand.u32 2147483647, %v13431_v52  ;;  %v13457_v62 = vmul.f32 %v13384_v50, %v5515_v53  ;;  %v5541_v10 = vmul.f32 -0.5, %v13416_v23  ;;  %v13468_v44 = vpop.f32.mrf.mxu1 }
 0x3c7   :  { %17026 = vst [vmem:[#allocation26_spill] sm:$0xff] %v13439_v32  ;;  %v5574_v11 = vadd.f32 1.0, %v13433_v31  ;;  %v5594_v33 = vmul.f32 0.6931472, %v9568_v57  ;;  %v5501_v41 = vsel %vm13420_vm6, %v5498_v38, %v5495_v45  ;;  %9581 = vlog2.f32 %v5538_v18 }
 0x3c8   :  { %v13466_v3 = vadd.f32 %v13019_v26, %v13363_v8  ;;  %9583 = vlog2.f32 %v5529_v6  ;;  %v5532_v50 = vmul.f32 -0.5, %v13425_v56  ;;  %v5597_v53 = vmul.f32 %v13331_v47, %v5596_v43  ;;  %v13501_v37 = vpop.f32.mrf.mxu1 }
 0x3c9   :  { %v13470_v63 = vpop.eup %9569  ;;  %v4836_v57 = vand.u32 2147483647, %v13451_v28  ;;  %vm13477_vm7 = vcmp.lt.f32.partialorder %v5526_v1, 0.0004427343  ;;  %vm13481_vm8 = vcmp.lt.f32.partialorder %v5598_v39, 0.0004427343  ;;  %v13487_v6 = vadd.f32 %v13019_v26, %v13393_v13 }
 0x3ca   :  { %v13475_v46 = vpop.eup %9571  ;;  %v5123_v45 = vmul.f32 1.442695, %v4962_v15  ;;  %v4961_v18 = vsub.f32 0.0, %v4833_v25  ;;  %v5535_v47 = vand.u32 2147483647, %v13425_v56  ;;  %9585 = vlog2.f32 %v5574_v11 }
 0x3cb   :  { %v9574_v2 = vpop.eup %9573  ;;  %v5600_v1 = vsel %vm13481_vm8, %v5597_v53, %v5594_v33  ;;  %v13493_v43 = vadd.f32 %v13019_v26, %v3958_v12  ;;  %v5556_v54 = vadd.f32 1.0, %v13470_v63  ;;  %v4448_v25 = vmax.f32 %v13156_v40, 0.0 }
 0x3cc   :  { %v13495_v39 = vpop.eup %9575  ;;  %v5586_v15 = vmul.f32 -0.5, %v13377_v27  ;;  %v4835_v13 = vand.u32 2147483647, %v13466_v3  ;;  %v17031_v11 = vmax.f32 %v13136_v51, 0.0  ;;  %v5542_v33 = vadd.f32 1.0, %v5541_v10 }
 0x3cd   :  { %v5565_v12 = vadd.f32 1.0, %v13475_v46  ;;  %v4964_v53 = vsub.f32 0.0, %v4836_v57  ;;  %v6496_v8 = vadd.f32 %v5600_v1, %v4448_v25  ;;  %9587 = vpow2.f32 %v5123_v45 }
 0x3ce   :  { %v13505_v36 = vadd.f32 %v5501_v41, %v17031_v11  ;;  %v5121_v49 = vmul.f32 1.442695, %v4961_v18  ;;  %v4838_v32 = vand.u32 2147483647, %v13487_v6  ;;  %v9578_v16 = vpop.eup %9577  ;;  %v5522_v19 = vmul.f32 0.6931472, %v9574_v2  ;;  %v13517_v18 = vpop.f32.mrf.mxu1 }
 0x3cf   :  { %vm13509_vm9 = vcmp.lt.f32.partialorder %v5517_v34, 0.0004427343  ;;  %v5533_v35 = vadd.f32 1.0, %v5532_v50  ;;  %v5547_v51 = vadd.f32 1.0, %v13495_v39  ;;  %v4837_v41 = vand.u32 2147483647, %v13493_v43 }
 0x3d0   :  { %17032 = vst [vmem:[#allocation27_spill] sm:$0xff] %v13505_v36  ;;  %v9580_v10 = vpop.eup %9579  ;;  %9589 = vlog2.f32 %v5556_v54  ;;  %vm4576_vm10 = vcmp.ne.f32.partialorder %v13156_v40, %v13156_v40  ;;  %v5587_v57 = vadd.f32 1.0, %v5586_v15  ;;  %v4963_v45 = vsub.f32 0.0, %v4835_v13  ;;  %v13530_v58 = vpop.f32.mrf.mxu1 }
 0x3d1   :  { %9591 = vlog2.f32 %v5565_v12  ;;  %v5589_v34 = vand.u32 2147483647, %v13377_v27  ;;  %v5127_v2 = vmul.f32 1.442695, %v4964_v53  ;;  %v13522_v50 = vadd.f32 %v13019_v26, %v13443_v20 }
 0x3d2   :  { %v5585_v1 = vmul.f32 0.6931472, %v9578_v16  ;;  %9593 = vpow2.f32 %v5121_v49  ;;  %v4966_v25 = vsub.f32 0.0, %v4838_v32  ;;  %v6624_v54 = vsel %vm4576_vm10, %v13156_v40, %v6496_v8 }
 0x3d3   :  { %v5528_v15 = vsel %vm13477_vm7, %v13446_v5, %v5522_v19  ;;  %v5513_v13 = vmul.f32 0.6931472, %v9580_v10  ;;  %9595 = vlog2.f32 %v5547_v51  ;;  %v4965_v11 = vsub.f32 0.0, %v4837_v41 }
 0x3d4   :  { %v5577_v12 = vmul.f32 -0.5, %v13433_v31  ;;  %v5588_v53 = vmul.f32 %v13377_v27, %v5587_v57  ;;  %v5125_v36 = vmul.f32 1.442695, %v4963_v45  ;;  %vm6852_vm11 = vcmask 523264   ;;  %v9582_v16 = vpop.eup %9581 }
 0x3d5   :  { %vm13532_vm12 = vcmp.lt.f32.partialorder %v5589_v34, 0.0004427343  ;;  %9597 = vpow2.f32 %v5127_v2  ;;  %v4840_v40 = vand.u32 2147483647, %v13522_v50  ;;  %v7886_v19 = vadd.f32 -0.6931472, %v6624_v54  ;;  %v9584_v5 = vpop.eup %9583 }
 0x3d6   :  { %v13538_v51 = vmul.f32 %v13416_v23, %v5542_v33  ;;  %v17037_v32 = vand.u32 2147483647, %v13416_v23  ;;  %v5559_v20 = vmul.f32 -0.5, %v13470_v63  ;;  %v5591_v38 = vsel %vm13532_vm12, %v5588_v53, %v5585_v1  ;;  %v13568_v1 = vpop.f32.mrf.mxu1 }
 0x3d7   :  { %v5131_v8 = vmul.f32 1.442695, %v4966_v25  ;;  %v13550_v41 = vmul.f32 %v13425_v56, %v5533_v35  ;;  %vm13552_vm14 = vcmp.lt.f32.partialorder %v5535_v47, 0.0004427343  ;;  %v4446_v33 = vmax.f32 %v13276_v4, 0.0  ;;  %8391 = vmatprep.subr.msk.mxu0 %vm6852_vm11, %v7886_v19  ;;  %v9586_v45 = vpop.eup %9585 }
 0x3d8   :  { %vm13542_vm13 = vcmp.lt.f32.partialorder %v17037_v32, 0.0004427343  ;;  %v4447_v23 = vmax.f32 %v13224_v59, 0.0  ;;  %v5129_v57 = vmul.f32 1.442695, %v4965_v11  ;;  %v17042_v34 = vmax.f32 %v13196_v17, 0.0  ;;  %8392 = vmatpush3.xpose.msk.msra.mxu0 %vm6852_vm11, %v13320_v29  ;;  %v13587_v32 = vpop.f32.mrf.mxu1 }
 0x3d9   :  { %v5519_v35 = vsel %vm13509_vm9, %v13457_v62, %v5513_v13  ;;  %v5580_v56 = vand.u32 2147483647, %v13433_v31  ;;  %v4445_v47 = vmax.f32 %v13318_v55, 0.0  ;;  %v5578_v25 = vadd.f32 1.0, %v5577_v12 }
 0x3da   :  { %v13561_v2 = vadd.f32 %v5528_v15, %v17042_v34  ;;  %v6495_v54 = vadd.f32 %v5591_v38, %v4447_v23  ;;  %9599 = vpow2.f32 %v5125_v36  ;;  %v4968_v11 = vsub.f32 0.0, %v4840_v40  ;;  %v13577_v60 = vpop.eup %9587  ;;  %v13622_v27 = vpop.f32.mrf.mxu1 }
 0x3db   :  { %v5560_v53 = vadd.f32 1.0, %v5559_v20  ;;  %v5562_v15 = vand.u32 2147483647, %v13470_v63  ;;  %9601 = vpow2.f32 %v5131_v8  ;;  %v13575_v62 = vadd.f32 %v13019_v26, %v13468_v44 }
 0x3dc   :  { %v5540_v13 = vmul.f32 0.6931472, %v9582_v16  ;;  %v5576_v49 = vmul.f32 0.6931472, %v9586_v45  ;;  %v5568_v19 = vmul.f32 -0.5, %v13475_v46  ;;  %9603 = vpow2.f32 %v5129_v57 }
 0x3dd   :  { %v17043_v29 = vmax.f32 %v13228_v30, 0.0  ;;  %v5531_v36 = vmul.f32 0.6931472, %v9584_v5  ;;  %v5550_v40 = vmul.f32 -0.5, %v13495_v39  ;;  %vm4575_vm15 = vcmp.ne.f32.partialorder %v13224_v59, %v13224_v59  ;;  %v9590_v44 = vpop.eup %9589 }
 0x3de   :  { %vm4574_vm0 = vcmp.ne.f32.partialorder %v13276_v4, %v13276_v4  ;;  %v5579_v16 = vmul.f32 %v13433_v31, %v5578_v25  ;;  %vm13592_vm1 = vcmp.lt.f32.partialorder %v5580_v56, 0.0004427343  ;;  %v5135_v38 = vmul.f32 1.442695, %v4968_v11  ;;  %v9592_v8 = vpop.eup %9591 }
 0x3df   :  { %v13582_v12 = vadd.f32 %v5519_v35, %v17043_v29  ;;  %v6623_v5 = vsel %vm4575_vm15, %v13224_v59, %v6495_v54  ;;  %v13598_v23 = vmul.f32 %v13470_v63, %v5560_v53  ;;  %vm13600_vm2 = vcmp.lt.f32.partialorder %v5562_v15, 0.0004427343  ;;  %v13606_v35 = vpop.eup %9593 }
 0x3e0   :  { %v5610_v45 = vadd.f32 1.0, %v13577_v60  ;;  %v4839_v34 = vand.u32 2147483647, %v13575_v62  ;;  %v7885_v31 = vadd.f32 -0.6931472, %v6623_v5  ;;  %v5546_v56 = vsel %vm13542_vm13, %v13538_v51, %v5540_v13  ;;  %v9596_v54 = vpop.eup %9595 }
 0x3e1   :  { %v5553_v59 = vand.u32 2147483647, %v13495_v39  ;;  %v5582_v63 = vsel %vm13592_vm1, %v5579_v16, %v5576_v49  ;;  %v5569_v25 = vadd.f32 1.0, %v5568_v19  ;;  %v5537_v11 = vsel %vm13552_vm14, %v13550_v41, %v5531_v36 }
 0x3e2   :  { %v5551_v53 = vadd.f32 1.0, %v5550_v40  ;;  %v5571_v15 = vand.u32 2147483647, %v13475_v46  ;;  %v13620_v29 = vadd.f32 %v13019_v26, %v13501_v37  ;;  %8393 = vmatprep.subr.msk.mxu0 %vm6852_vm11, %v7885_v31  ;;  %v5567_v51 = vmul.f32 0.6931472, %v9592_v8  ;;  %v13635_v10 = vpop.eup %9597 }
 0x3e3   :  { %9605 = vpow2.f32 %v5135_v38  ;;  %v13627_v13 = vadd.f32 %v13019_v26, %v13517_v18  ;;  %v13631_v41 = vadd.f32 %v13019_v26, %v13530_v58  ;;  %8394 = vmatpush3.xpose.msk.msra.mxu0 %vm6852_vm11, %v13333_v7  ;;  %v6494_v37 = vadd.f32 %v5582_v63, %v4446_v33  ;;  %v13658_v38 = vpop.f32.mrf.mxu1 }
 0x3e4   :  { %9607 = vlog2.f32 %v5610_v45  ;;  %v5601_v49 = vadd.f32 1.0, %v13606_v35  ;;  %v4967_v19 = vsub.f32 0.0, %v4839_v34  ;;  %v17048_v36 = vmax.f32 %v13258_v22, 0.0 }
 0x3e5   :  { %v5558_v18 = vmul.f32 0.6931472, %v9590_v44  ;;  %vm13642_vm3 = vcmp.lt.f32.partialorder %v5553_v59, 0.0004427343  ;;  %v5570_v26 = vmul.f32 %v13475_v46, %v5569_v25  ;;  %v17051_v58 = vmax.f32 %v13268_v0, 0.0 }
 0x3e6   :  { %v13640_v40 = vadd.f32 %v5546_v56, %v17048_v36  ;;  %v5549_v33 = vmul.f32 0.6931472, %v9596_v54  ;;  %vm4573_vm4 = vcmp.ne.f32.partialorder %v13318_v55, %v13318_v55  ;;  %vm13653_vm5 = vcmp.lt.f32.partialorder %v5571_v15, 0.0004427343 }
 0x3e7   :  { %v13649_v7 = vadd.f32 %v5537_v11, %v17051_v58  ;;  %v4842_v44 = vand.u32 2147483647, %v13620_v29  ;;  %v5552_v5 = vmul.f32 %v13495_v39, %v5551_v53  ;;  %v5573_v46 = vsel %vm13653_vm5, %v5570_v26, %v5567_v51  ;;  %v13665_v34 = vpop.eup %9599 }
 0x3e8   :  { %v5628_v8 = vadd.f32 1.0, %v13635_v10  ;;  %v4841_v45 = vand.u32 2147483647, %v13627_v13  ;;  %9609 = vlog2.f32 %v5601_v49  ;;  %v5133_v31 = vmul.f32 1.442695, %v4967_v19  ;;  %v13672_v63 = vpop.eup %9601 }
 0x3e9   :  { %v4844_v56 = vand.u32 2147483647, %v13631_v41  ;;  %v6622_v59 = vsel %vm4574_vm0, %v13276_v4, %v6494_v37  ;;  %v5564_v39 = vsel %vm13600_vm2, %v13598_v23, %v5558_v18  ;;  %v4450_v25 = vmax.f32 %v13401_v61, 0.0  ;;  %v13679_v53 = vpop.eup %9603  ;;  %v13689_v23 = vld [vmem:[%s16825_s4] ss:$0 sm:$0xff]  ;;  %v13695_v37 = vpop.f32.mrf.mxu1 }
 0x3ea   :  { %v4449_v54 = vmax.f32 %v13431_v52, 0.0  ;;  %v7884_v11 = vadd.f32 -0.6931472, %v6622_v59  ;;  %vm4572_vm6 = vcmp.ne.f32.partialorder %v13304_v48, %v13304_v48  ;;  %v5555_v15 = vsel %vm13642_vm3, %v5552_v5, %v5549_v33 }
 0x3eb   :  { %v4452_v4 = vmax.f32 %v13451_v28, 0.0  ;;  %v4970_v51 = vsub.f32 0.0, %v4842_v44  ;;  %v13693_v57 = vadd.f32 %v13689_v23, %v13568_v1  ;;  %v6493_v49 = vadd.f32 %v5573_v46, %v4445_v47 }
 0x3ec   :  { %9611 = vlog2.f32 %v5628_v8  ;;  %v5619_v19 = vadd.f32 1.0, %v13665_v34  ;;  %v4969_v36 = vsub.f32 0.0, %v4841_v45  ;;  %8395 = vmatprep.subr.msk.mxu0 %vm6852_vm11, %v7884_v11  ;;  %v5613_v18 = vmul.f32 -0.5, %v13577_v60  ;;  %v13713_v45 = vpop.f32.mrf.mxu1 }
 0x3ed   :  { %v5646_v16 = vadd.f32 1.0, %v13672_v63  ;;  %9613 = vpow2.f32 %v5133_v31  ;;  %v4972_v26 = vsub.f32 0.0, %v4844_v56  ;;  %8396 = vmatpush3.xpose.msk.msra.mxu0 %vm6852_vm11, %v13236_v9  ;;  %v5637_v33 = vadd.f32 1.0, %v13679_v53 }
 0x3ee   :  { %v17054_v20 = vmax.f32 %v13304_v48, 0.0  ;;  %v5616_v5 = vand.u32 2147483647, %v13577_v60  ;;  %v5139_v46 = vmul.f32 1.442695, %v4970_v51  ;;  %vm4571_vm7 = vcmp.ne.f32.partialorder %v13329_v42, %v13329_v42 }
 0x3ef   :  { %v4843_v8 = vand.u32 2147483647, %v13693_v57  ;;  %v17055_v9 = vmax.f32 %v13329_v42, 0.0  ;;  %9615 = vlog2.f32 %v5619_v19  ;;  %v5137_v56 = vmul.f32 1.442695, %v4969_v36  ;;  %v13733_v36 = vpop.f32.mrf.mxu1 }
 0x3f0   :  { %v6492_v44 = vadd.f32 %v5564_v39, %v17054_v20  ;;  %v6621_v59 = vsel %vm4573_vm4, %v13318_v55, %v6493_v49  ;;  %v13723_v39 = vpop.eup %9605  ;;  %v5614_v11 = vadd.f32 1.0, %v5613_v18  ;;  %9617 = vlog2.f32 %v5646_v16 }
 0x3f1   :  { %v6491_v31 = vadd.f32 %v5555_v15, %v17055_v9  ;;  %v5143_v51 = vmul.f32 1.442695, %v4972_v26  ;;  %v7883_v20 = vadd.f32 -0.6931472, %v6621_v59  ;;  %v9608_v47 = vpop.eup %9607  ;;  %v5604_v58 = vmul.f32 -0.5, %v13606_v35 }
 0x3f2   :  { %v5607_v1 = vand.u32 2147483647, %v13606_v35  ;;  %9619 = vlog2.f32 %v5637_v33  ;;  %vm13728_vm8 = vcmp.lt.f32.partialorder %v5616_v5, 0.0004427343  ;;  %v4971_v49 = vsub.f32 0.0, %v4843_v8 }
 0x3f3   :  { %9621 = vpow2.f32 %v5139_v46  ;;  %8397 = vmatprep.subr.msk.mxu0 %vm6852_vm11, %v7883_v20  ;;  %v5664_v18 = vadd.f32 1.0, %v13723_v39  ;;  %v6620_v26 = vsel %vm4572_vm6, %v13304_v48, %v6492_v44  ;;  %v5612_v33 = vmul.f32 0.6931472, %v9608_v47 }
 0x3f4   :  { %9623 = vpow2.f32 %v5137_v56  ;;  %8398 = vmatpush3.xpose.msk.msra.mxu0 %vm6852_vm11, %v13292_v24  ;;  %v5615_v5 = vmul.f32 %v13577_v60, %v5614_v11  ;;  %v13747_v46 = vadd.f32 %v13689_v23, %v13587_v32  ;;  %v5605_v9 = vadd.f32 1.0, %v5604_v58  ;;  %v13759_v32 = vpop.f32.mrf.mxu1 }
 0x3f5   :  { %9625 = vpow2.f32 %v5143_v51  ;;  %v9610_v8 = vpop.eup %9609  ;;  %vm13749_vm9 = vcmp.lt.f32.partialorder %v5607_v1, 0.0004427343  ;;  %v5631_v24 = vmul.f32 -0.5, %v13635_v10  ;;  %vm4578_vm10 = vcmp.ne.f32.partialorder %v13401_v61, %v13401_v61 }
 0x3f6   :  { %v5622_v48 = vmul.f32 -0.5, %v13665_v34  ;;  %v5649_v60 = vmul.f32 -0.5, %v13672_v63  ;;  %v5141_v47 = vmul.f32 1.442695, %v4971_v49  ;;  %v7882_v44 = vadd.f32 -0.6931472, %v6620_v26 }
 0x3f7   :  { %v5634_v1 = vand.u32 2147483647, %v13635_v10  ;;  %v5625_v58 = vand.u32 2147483647, %v13665_v34  ;;  %v5652_v11 = vand.u32 2147483647, %v13672_v63  ;;  %9627 = vlog2.f32 %v5664_v18 }
 0x3f8   :  { %v5618_v20 = vsel %vm13728_vm8, %v5615_v5, %v5612_v33  ;;  %v5603_v59 = vmul.f32 0.6931472, %v9610_v8  ;;  %v4846_v16 = vand.u32 2147483647, %v13747_v46  ;;  %8399 = vmatprep.subr.msk.mxu0 %vm6852_vm11, %v7882_v44  ;;  %v6619_v49 = vsel %vm4571_vm7, %v13329_v42, %v6491_v31  ;;  %v13784_v31 = vpop.f32.mrf.mxu1 }
 0x3f9   :  { %v9612_v51 = vpop.eup %9611  ;;  %v5632_v55 = vadd.f32 1.0, %v5631_v24  ;;  %v5640_v15 = vmul.f32 -0.5, %v13679_v53  ;;  %v13777_v18 = vadd.f32 %v13689_v23, %v13622_v27  ;;  %8400 = vmatpush3.xpose.msk.msra.mxu0 %vm6852_vm11, %v13200_v21  ;;  %v7881_v19 = vadd.f32 -0.6931472, %v6619_v49 }
 0x3fa   :  { %v13772_v26 = vpop.eup %9613  ;;  %vm4577_vm12 = vcmp.ne.f32.partialorder %v13431_v52, %v13431_v52  ;;  %v5606_v33 = vmul.f32 %v13606_v35, %v5605_v9  ;;  %v5623_v5 = vadd.f32 1.0, %v5622_v48  ;;  %v5650_v42 = vadd.f32 1.0, %v5649_v60 }
 0x3fb   :  { %9629 = vpow2.f32 %v5141_v47  ;;  %v6498_v8 = vadd.f32 %v5618_v20, %v4450_v25  ;;  %v5630_v24 = vmul.f32 0.6931472, %v9612_v51  ;;  %vm13788_vm13 = vcmp.lt.f32.partialorder %v5634_v1, 0.0004427343  ;;  %8401 = vmatprep.subr.msk.mxu0 %vm6852_vm11, %v7881_v19 }
 0x3fc   :  { %vm13792_vm14 = vcmp.lt.f32.partialorder %v5625_v58, 0.0004427343  ;;  %v9616_v35 = vpop.eup %9615  ;;  %v5609_v9 = vsel %vm13749_vm9, %v5606_v33, %v5603_v59  ;;  %vm13799_vm15 = vcmp.lt.f32.partialorder %v5652_v11, 0.0004427343  ;;  %v5667_v25 = vmul.f32 -0.5, %v13723_v39 }
 0x3fd   :  { %v5655_v60 = vadd.f32 1.0, %v13772_v26  ;;  %v4974_v47 = vsub.f32 0.0, %v4846_v16  ;;  %v9618_v44 = vpop.eup %9617  ;;  %vm4580_vm0 = vcmp.ne.f32.partialorder %v13451_v28, %v13451_v28  ;;  %v5633_v1 = vmul.f32 %v13635_v10, %v5632_v55  ;;  %8402 = vmatpush3.xpose.msk.msra.mxu0 %vm6852_vm11, %v13211_v14 }
 0x3fe   :  { %v5641_v58 = vadd.f32 1.0, %v5640_v15  ;;  %v5643_v51 = vand.u32 2147483647, %v13679_v53  ;;  %v4845_v56 = vand.u32 2147483647, %v13777_v18  ;;  %vm4570_vm1 = vcmp.ne.f32.partialorder %v13258_v22, %v13258_v22  ;;  %v13818_v15 = vpop.f32.mrf.mxu1 }
 0x3ff   :  { %v9620_v59 = vpop.eup %9619  ;;  %v5624_v16 = vmul.f32 %v13665_v34, %v5623_v5  ;;  %v5651_v11 = vmul.f32 %v13672_v63, %v5650_v42  ;;  %v5670_v20 = vand.u32 2147483647, %v13723_v39  ;;  %v6626_v14 = vsel %vm4578_vm10, %v13401_v61, %v6498_v8 }
 0x400   :  { %v13820_v55 = vpop.eup %9621  ;;  %v6497_v49 = vadd.f32 %v5609_v9, %v4449_v54  ;;  %v5636_v34 = vsel %vm13788_vm13, %v5633_v1, %v5630_v24  ;;  %v5621_v63 = vmul.f32 0.6931472, %v9616_v35  ;;  %v5668_v33 = vadd.f32 1.0, %v5667_v25  ;;  %v13854_v25 = vpop.f32.mrf.mxu1 }
 0x401   :  { %v13830_v19 = vpop.eup %9623  ;;  %9631 = vlog2.f32 %v5655_v60  ;;  %v5147_v5 = vmul.f32 1.442695, %v4974_v47  ;;  %v13834_v42 = vadd.f32 %v13689_v23, %v13658_v38  ;;  %vm4579_vm2 = vcmp.ne.f32.partialorder %v13466_v3, %v13466_v3 }
 0x402   :  { %v13836_v10 = vpop.eup %9625  ;;  %v5648_v61 = vmul.f32 0.6931472, %v9618_v44  ;;  %v5642_v54 = vmul.f32 %v13679_v53, %v5641_v58  ;;  %vm13841_vm3 = vcmp.lt.f32.partialorder %v5643_v51, 0.0004427343  ;;  %v4973_v24 = vsub.f32 0.0, %v4845_v56 }
 0x403   :  { %v13845_v27 = vadd.f32 -0.6931472, %v6626_v14  ;;  %v6500_v35 = vadd.f32 %v5636_v34, %v4452_v4  ;;  %vm13849_vm4 = vcmp.lt.f32.partialorder %v5670_v20, 0.0004427343  ;;  %v5682_v9 = vadd.f32 1.0, %v13820_v55 }
 0x404   :  { %v6625_v53 = vsel %vm4577_vm12, %v13431_v52, %v6497_v49  ;;  %v5627_v60 = vsel %vm13792_vm14, %v5624_v16, %v5621_v63  ;;  %vm4582_vm5 = vcmp.ne.f32.partialorder %v13487_v6, %v13487_v6  ;;  %v5639_v4 = vmul.f32 0.6931472, %v9620_v59  ;;  %v9628_v44 = vpop.eup %9627 }
 0x405   :  { %17068 = vst [vmem:[#allocation28_spill] sm:$0xff] %v13845_v27  ;;  %v5673_v47 = vadd.f32 1.0, %v13830_v19  ;;  %v5669_v1 = vmul.f32 %v13723_v39, %v5668_v33  ;;  %v5700_v58 = vadd.f32 1.0, %v13836_v10  ;;  %9633 = vpow2.f32 %v5147_v5 }
 0x406   :  { %v4848_v51 = vand.u32 2147483647, %v13834_v42  ;;  %v5654_v52 = vsel %vm13799_vm15, %v5651_v11, %v5648_v61  ;;  %vm4581_vm6 = vcmp.ne.f32.partialorder %v13493_v43, %v13493_v43  ;;  %v5658_v21 = vmul.f32 -0.5, %v13772_v26  ;;  %v13884_v11 = vpop.f32.mrf.mxu1 }
 0x407   :  { %v5145_v56 = vmul.f32 1.442695, %v4973_v24  ;;  %v13875_v59 = vadd.f32 %v13689_v23, %v13695_v37  ;;  %v6628_v39 = vsel %vm4580_vm0, %v13451_v28, %v6500_v35  ;;  %v17071_v16 = vmax.f32 %v13466_v3, 0.0 }
 0x408   :  { %v5661_v48 = vand.u32 2147483647, %v13772_v26  ;;  %9635 = vlog2.f32 %v5682_v9  ;;  %v13886_v14 = vpop.eup %9629  ;;  %v5645_v49 = vsel %vm13841_vm3, %v5642_v54, %v5639_v4  ;;  %v5666_v37 = vmul.f32 0.6931472, %v9628_v44 }
 0x409   :  { %v6499_v20 = vadd.f32 %v5627_v60, %v17071_v16  ;;  %9637 = vlog2.f32 %v5673_v47  ;;  %v6618_v28 = vsel %vm4570_vm1, %v13258_v22, %v13640_v40  ;;  %v17072_v34 = vmax.f32 %v13487_v6, 0.0  ;;  %v13913_v60 = vpop.f32.mrf.mxu1 }
 0x40a   :  { %v5685_v33 = vmul.f32 -0.5, %v13820_v55  ;;  %9639 = vlog2.f32 %v5700_v58  ;;  %v4976_v5 = vsub.f32 0.0, %v4848_v51  ;;  %vm4584_vm7 = vcmp.ne.f32.partialorder %v13522_v50, %v13522_v50 }
 0x40b   :  { %v6502_v63 = vadd.f32 %v5654_v52, %v17072_v34  ;;  %9641 = vpow2.f32 %v5145_v56  ;;  %v4847_v61 = vand.u32 2147483647, %v13875_v59  ;;  %v13903_v54 = vadd.f32 %v13689_v23, %v13713_v45  ;;  %v17079_v52 = vld [vmem:[#allocation20_spill] sm:$0xff] }
 0x40c   :  { %v7880_v8 = vadd.f32 -0.6931472, %v6618_v28  ;;  %v6627_v22 = vsel %vm4579_vm2, %v13466_v3, %v6499_v20  ;;  %v17074_v40 = vmax.f32 %v13493_v43, 0.0  ;;  %v4459_v35 = vmax.f32 %v13693_v57, 0.0 }
 0x40d   :  { %17073 = vst [vmem:[#allocation29_spill] sm:$0xff] %v13903_v54  ;;  %v5691_v9 = vadd.f32 1.0, %v13886_v14  ;;  %vm4569_vm8 = vcmp.ne.f32.partialorder %v13268_v0, %v13268_v0  ;;  %v13917_v45 = vadd.f32 -0.6931472, %v6625_v53  ;;  %v5672_v4 = vsel %vm13849_vm4, %v5669_v1, %v5666_v37 }
 0x40e   :  { %v6501_v24 = vadd.f32 %v5645_v49, %v17074_v40  ;;  %v5659_v47 = vadd.f32 1.0, %v5658_v21  ;;  %v5676_v3 = vmul.f32 -0.5, %v13830_v19  ;;  %8403 = vmatprep.subr.msk.mxu0 %vm6852_vm11, %v7880_v8  ;;  %v13923_v44 = vadd.f32 -0.6931472, %v6628_v39  ;;  %v9632_v38 = vpop.eup %9631  ;;  %v13948_v49 = vpop.f32.mrf.mxu1 }
 0x40f   :  { %17075 = vst [vmem:[#allocation30_spill] sm:$0xff] %v13917_v45  ;;  %v6630_v58 = vsel %vm4582_vm5, %v13487_v6, %v6502_v63  ;;  %vm13929_vm9 = vcmp.lt.f32.partialorder %v5661_v48, 0.0004427343  ;;  %v5151_v53 = vmul.f32 1.442695, %v4976_v5  ;;  %8404 = vmatpush3.xpose.msk.msra.mxu0 %vm6852_vm11, %v17079_v52  ;;  %v5686_v21 = vadd.f32 1.0, %v5685_v33 }
 0x410   :  { %17076 = vst [vmem:[#allocation31_spill] sm:$0xff] %v13923_v44  ;;  %v13935_v1 = vadd.f32 -0.6931472, %v6627_v22  ;;  %v4975_v56 = vsub.f32 0.0, %v4847_v61  ;;  %v4850_v39 = vand.u32 2147483647, %v13903_v54  ;;  %v6629_v6 = vsel %vm4581_vm6, %v13493_v43, %v6501_v24 }
 0x411   :  { %v17081_v16 = vmax.f32 %v13522_v50, 0.0  ;;  %9643 = vlog2.f32 %v5691_v9  ;;  %v13946_v48 = vadd.f32 %v13689_v23, %v13733_v36  ;;  %v13950_v37 = vadd.f32 -0.6931472, %v6630_v58  ;;  %v17122_v45 = vld [vmem:[#allocation27_spill] sm:$0xff] }
 0x412   :  { %17080 = vst [vmem:[#allocation20_spill] sm:$0xff] %v13935_v1  ;;  %v5688_v28 = vand.u32 2147483647, %v13820_v55  ;;  %v5677_v34 = vadd.f32 1.0, %v5676_v3  ;;  %vm4568_vm10 = vcmp.ne.f32.partialorder %v13196_v17, %v13196_v17  ;;  %v5657_v43 = vmul.f32 0.6931472, %v9632_v38  ;;  %v13961_v5 = vpop.eup %9633  ;;  %v13975_v3 = vpop.f32.mrf.mxu1 }
 0x413   :  { %v6504_v20 = vadd.f32 %v5672_v4, %v17081_v16  ;;  %17082 = vst [vmem:[#allocation32_spill] sm:$0xff] %v13946_v48  ;;  %17083 = vst [vmem:[#allocation33_spill] sm:$0xff] %v13950_v37  ;;  %v5679_v33 = vand.u32 2147483647, %v13830_v19  ;;  %9645 = vpow2.f32 %v5151_v53  ;;  %v13959_v36 = vadd.f32 %v13689_v23, %v13759_v32 }
 0x414   :  { %v13963_v61 = vadd.f32 -0.6931472, %v6629_v6  ;;  %v5660_v8 = vmul.f32 %v13772_v26, %v5659_v47  ;;  %v5149_v22 = vmul.f32 1.442695, %v4975_v56  ;;  %v4978_v40 = vsub.f32 0.0, %v4850_v39 }
 0x415   :  { %17084 = vst [vmem:[#allocation34_spill] sm:$0xff] %v13959_v36  ;;  %v6632_v24 = vsel %vm4584_vm7, %v13522_v50, %v6504_v20  ;;  %v13971_v9 = vmul.f32 %v13820_v55, %v5686_v21  ;;  %v5703_v4 = vmul.f32 -0.5, %v13836_v10  ;;  %v4849_v32 = vand.u32 2147483647, %v13946_v48  ;;  %v9636_v58 = vpop.eup %9635 }
 0x416   :  { %17085 = vst [vmem:[#allocation35_spill] sm:$0xff] %v13963_v61  ;;  %vm4583_vm12 = vcmp.ne.f32.partialorder %v13575_v62, %v13575_v62  ;;  %vm13979_vm13 = vcmp.lt.f32.partialorder %v5688_v28, 0.0004427343  ;;  %v13984_v47 = vmul.f32 %v13830_v19, %v5677_v34  ;;  %v5706_v50 = vand.u32 2147483647, %v13836_v10  ;;  %v9638_v52 = vpop.eup %9637 }
 0x417   :  { %v5663_v38 = vsel %vm13929_vm9, %v5660_v8, %v5657_v43  ;;  %vm13991_vm14 = vcmp.lt.f32.partialorder %v5679_v33, 0.0004427343  ;;  %v5718_v56 = vadd.f32 1.0, %v13961_v5  ;;  %v4852_v39 = vand.u32 2147483647, %v13959_v36  ;;  %v9640_v6 = vpop.eup %9639 }
 0x418   :  { %v6617_v19 = vsel %vm4569_vm8, %v13268_v0, %v13649_v7  ;;  %v14002_v16 = vadd.f32 -0.6931472, %v6632_v24  ;;  %9647 = vpow2.f32 %v5149_v22  ;;  %v5155_v51 = vmul.f32 1.442695, %v4978_v40  ;;  %v14008_v28 = vpop.eup %9641  ;;  %v14017_v7 = vpop.f32.mrf.mxu1 }
 0x419   :  { %v14006_v20 = vadd.f32 %v13689_v23, %v13784_v31  ;;  %vm4567_vm15 = vcmp.ne.f32.partialorder %v13228_v30, %v13228_v30  ;;  %v5704_v34 = vadd.f32 1.0, %v5703_v4  ;;  %v5694_v43 = vmul.f32 -0.5, %v13886_v14 }
 0x41a   :  { %17090 = vst [vmem:[#allocation36_spill] sm:$0xff] %v14002_v16  ;;  %v4977_v33 = vsub.f32 0.0, %v4849_v32  ;;  %v14015_v0 = vadd.f32 %v13689_v23, %v13818_v15  ;;  %v17093_v8 = vmax.f32 %v13575_v62, 0.0  ;;  %v5684_v31 = vmul.f32 0.6931472, %v9636_v58 }
 0x41b   :  { %17091 = vst [vmem:[#allocation37_spill] sm:$0xff] %v14006_v20  ;;  %v5697_v40 = vand.u32 2147483647, %v13886_v14  ;;  %v7879_v24 = vadd.f32 -0.6931472, %v6617_v19  ;;  %9649 = vlog2.f32 %v5718_v56  ;;  %v4980_v4 = vsub.f32 0.0, %v4852_v39  ;;  %v14037_v56 = vpop.f32.mrf.mxu1 }
 0x41c   :  { %17092 = vst [vmem:[#allocation38_spill] sm:$0xff] %v14015_v0  ;;  %v6503_v22 = vadd.f32 %v5663_v38, %v17093_v8  ;;  %v5675_v53 = vmul.f32 0.6931472, %v9638_v52  ;;  %v5702_v55 = vmul.f32 0.6931472, %v9640_v6  ;;  %v5709_v63 = vadd.f32 1.0, %v14008_v28 }
 0x41d   :  { %9651 = vpow2.f32 %v5155_v51  ;;  %v4851_v32 = vand.u32 2147483647, %v14006_v20  ;;  %8405 = vmatprep.subr.msk.mxu0 %vm6852_vm11, %v7879_v24  ;;  %v6616_v15 = vsel %vm4568_vm10, %v13196_v17, %v13561_v2  ;;  %vm4586_vm0 = vcmp.ne.f32.partialorder %v13620_v29, %v13620_v29  ;;  %v17095_v39 = vld [vmem:[#allocation21_spill] sm:$0xff] }
 0x41e   :  { %v5153_v58 = vmul.f32 1.442695, %v4977_v33  ;;  %v4854_v52 = vand.u32 2147483647, %v14015_v0  ;;  %v14035_v38 = vadd.f32 %v13689_v23, %v13854_v25  ;;  %8406 = vmatpush3.xpose.msk.msra.mxu0 %vm6852_vm11, %v17095_v39  ;;  %v7878_v19 = vadd.f32 -0.6931472, %v6616_v15  ;;  %v9644_v6 = vpop.eup %9643 }
 0x41f   :  { %vm4585_vm1 = vcmp.ne.f32.partialorder %v13627_v13, %v13627_v13  ;;  %vm4588_vm2 = vcmp.ne.f32.partialorder %v13631_v41, %v13631_v41  ;;  %v5705_v17 = vmul.f32 %v13836_v10, %v5704_v34  ;;  %vm14046_vm3 = vcmp.lt.f32.partialorder %v5706_v50, 0.0004427343 }
 0x420   :  { %17094 = vst [vmem:[#allocation39_spill] sm:$0xff] %v14035_v38  ;;  %v5695_v25 = vadd.f32 1.0, %v5694_v43  ;;  %v6631_v33 = vsel %vm4583_vm12, %v13575_v62, %v6503_v22  ;;  %v5690_v8 = vsel %vm13979_vm13, %v13971_v9, %v5684_v31  ;;  %vm14058_vm4 = vcmp.lt.f32.partialorder %v5697_v40, 0.0004427343  ;;  %8407 = vmatprep.subr.msk.mxu0 %vm6852_vm11, %v7878_v19  ;;  %v14063_v50 = vpop.eup %9645  ;;  %v14071_v31 = vpop.f32.mrf.mxu1  ;;  %v17100_v40 = vld [vmem:[#allocation16_spill] sm:$0xff] }
 0x421   :  { %v5159_v10 = vmul.f32 1.442695, %v4980_v4  ;;  %v5681_v34 = vsel %vm13991_vm14, %v13984_v47, %v5675_v53  ;;  %v5708_v62 = vsel %vm14046_vm3, %v5705_v17, %v5702_v55  ;;  %9653 = vlog2.f32 %v5709_v63 }
 0x422   :  { %v4979_v43 = vsub.f32 0.0, %v4851_v32  ;;  %v5693_v26 = vmul.f32 0.6931472, %v9644_v6  ;;  %9655 = vpow2.f32 %v5153_v58  ;;  %v4982_v9 = vsub.f32 0.0, %v4854_v52  ;;  %8408 = vmatpush3.xpose.msk.msra.mxu0 %vm6852_vm11, %v17100_v40 }
 0x423   :  { %v4853_v22 = vand.u32 2147483647, %v14035_v38  ;;  %v17101_v4 = vmax.f32 %v13620_v29, 0.0  ;;  %v5696_v47 = vmul.f32 %v13886_v14, %v5695_v25  ;;  %v5721_v53 = vmul.f32 -0.5, %v13961_v5 }
 0x424   :  { %v6615_v63 = vsel %vm4567_vm15, %v13228_v30, %v13582_v12  ;;  %v17102_v55 = vmax.f32 %v13627_v13, 0.0  ;;  %v17103_v32 = vmax.f32 %v13631_v41, 0.0  ;;  %vm4587_vm5 = vcmp.ne.f32.partialorder %v13693_v57, %v13693_v57  ;;  %v17105_v12 = vld [vmem:[#allocation17_spill] sm:$0xff] }
 0x425   :  { %v6506_v15 = vadd.f32 %v5690_v8, %v17101_v4  ;;  %v5736_v52 = vadd.f32 1.0, %v14063_v50  ;;  %9657 = vpow2.f32 %v5159_v10  ;;  %v14091_v14 = vadd.f32 -0.6931472, %v6631_v33  ;;  %v14095_v30 = vpop.eup %9647  ;;  %v14101_v8 = vpop.f32.mrf.mxu1 }
 0x426   :  { %v6505_v21 = vadd.f32 %v5681_v34, %v17102_v55  ;;  %v6508_v58 = vadd.f32 %v5708_v62, %v17103_v32  ;;  %v5157_v6 = vmul.f32 1.442695, %v4979_v43  ;;  %vm4566_vm6 = vcmp.ne.f32.partialorder %v17105_v12, %v17105_v12 }
 0x427   :  { %17104 = vst [vmem:[#allocation21_spill] sm:$0xff] %v14091_v14  ;;  %v5699_v17 = vsel %vm14058_vm4, %v5696_v47, %v5693_v26  ;;  %v5163_v2 = vmul.f32 1.442695, %v4982_v9  ;;  %v4981_v25 = vsub.f32 0.0, %v4853_v22  ;;  %v7877_v10 = vadd.f32 -0.6931472, %v6615_v63  ;;  %v8854_v63 = vpop.f32.mrf.mxu1 }
 0x428   :  { %v6634_v33 = vsel %vm4586_vm0, %v13620_v29, %v6506_v15  ;;  %v5724_v34 = vand.u32 2147483647, %v13961_v5  ;;  %v5712_v62 = vmul.f32 -0.5, %v14008_v28  ;;  %v6633_v24 = vsel %vm4585_vm1, %v13627_v13, %v6505_v21  ;;  %v9650_v29 = vpop.eup %9649  ;;  %v17107_v13 = vld [vmem:[#allocation19_spill] sm:$0xff] }
 0x429   :  { %v6636_v26 = vsel %vm4588_vm2, %v13631_v41, %v6508_v58  ;;  %v5722_v9 = vadd.f32 1.0, %v5721_v53  ;;  %9659 = vlog2.f32 %v5736_v52  ;;  %8409 = vmatprep.subr.msk.mxu0 %vm6852_vm11, %v7877_v10  ;;  %v6507_v22 = vadd.f32 %v5699_v17, %v4459_v35  ;;  %v17113_v17 = vld [vmem:[#allocation18_spill] sm:$0xff] }
 0x42a   :  { %v5727_v40 = vadd.f32 1.0, %v14095_v30  ;;  %9661 = vpow2.f32 %v5157_v6  ;;  %v14124_v4 = vadd.f32 %v13689_v23, %v13884_v11  ;;  %8410 = vmatpush3.xpose.msk.msra.mxu0 %vm6852_vm11, %v17107_v13  ;;  %v14128_v15 = vpop.eup %9651  ;;  %v5715_v41 = vand.u32 2147483647, %v14008_v28 }
 0x42b   :  { %v5739_v47 = vmul.f32 -0.5, %v14063_v50  ;;  %9663 = vpow2.f32 %v5163_v2  ;;  %v5161_v53 = vmul.f32 1.442695, %v4981_v25  ;;  %v14132_v35 = vadd.f32 -0.6931472, %v6634_v33 }
 0x42c   :  { %17106 = vst [vmem:[#allocation16_spill] sm:$0xff] %v14124_v4  ;;  %vm14134_vm7 = vcmp.lt.f32.partialorder %v5724_v34, 0.0004427343  ;;  %v5713_v11 = vadd.f32 1.0, %v5712_v62  ;;  %v14139_v32 = vadd.f32 -0.6931472, %v6633_v24  ;;  %v5723_v6 = vmul.f32 %v13961_v5, %v5722_v9  ;;  %v4088_v24 = vpop.f32.mrf.mxu1 }
 0x42d   :  { %17108 = vst [vmem:[#allocation17_spill] sm:$0xff] %v14132_v35  ;;  %v14141_v58 = vadd.f32 -0.6931472, %v6636_v26  ;;  %v5720_v52 = vmul.f32 0.6931472, %v9650_v29  ;;  %vm4565_vm8 = vcmp.ne.f32.partialorder %v17113_v17, %v17113_v17  ;;  %v6635_v2 = vsel %vm4587_vm5, %v13693_v57, %v6507_v22  ;;  %v17116_v22 = vld [vmem:[#allocation26_spill] sm:$0xff] }
 0x42e   :  { %17111 = vst [vmem:[#allocation19_spill] sm:$0xff] %v14139_v32  ;;  %9665 = vlog2.f32 %v5727_v40  ;;  %v5730_v25 = vmul.f32 -0.5, %v14095_v30  ;;  %v4856_v10 = vand.u32 2147483647, %v14124_v4  ;;  %v9654_v33 = vpop.eup %9653  ;;  %vm4590_vm9 = vcmp.ne.f32.partialorder %v13747_v46, %v13747_v46 }
 0x42f   :  { %17112 = vst [vmem:[#allocation40_spill] sm:$0xff] %v14141_v58  ;;  %vm14154_vm10 = vcmp.lt.f32.partialorder %v5715_v41, 0.0004427343  ;;  %v5740_v5 = vadd.f32 1.0, %v5739_v47  ;;  %v5754_v62 = vadd.f32 1.0, %v14128_v15  ;;  %9667 = vpow2.f32 %v5161_v53  ;;  %v14159_v26 = vpop.eup %9655 }
 0x430   :  { %v5714_v57 = vmul.f32 %v14008_v28, %v5713_v11  ;;  %v5742_v9 = vand.u32 2147483647, %v14063_v50  ;;  %v6614_v40 = vsel %vm4566_vm6, %v17105_v12, %v17116_v22  ;;  %v14169_v13 = vadd.f32 -0.6931472, %v6635_v2 }
 0x431   :  { %v5726_v41 = vsel %vm14134_vm7, %v5723_v6, %v5720_v52  ;;  %v14174_v47 = vadd.f32 %v13689_v23, %v8854_v63  ;;  %v7876_v53 = vadd.f32 -0.6931472, %v6614_v40  ;;  %v5711_v11 = vmul.f32 0.6931472, %v9654_v33  ;;  %v14184_v52 = vpop.f32.mrf.mxu1 }
 0x432   :  { %17117 = vst [vmem:[#allocation18_spill] sm:$0xff] %v14169_v13  ;;  %v14176_v28 = vpop.eup %9657  ;;  %v5731_v21 = vadd.f32 1.0, %v5730_v25  ;;  %v5757_v29 = vmul.f32 -0.5, %v14128_v15  ;;  %v4984_v43 = vsub.f32 0.0, %v4856_v10  ;;  %v14180_v19 = vmul.f32 %v14063_v50, %v5740_v5  ;;  %v17119_v10 = vld [vmem:[#allocation12_spill] sm:$0xff] }
 0x433   :  { %v5733_v12 = vand.u32 2147483647, %v14095_v30  ;;  %9669 = vlog2.f32 %v5754_v62  ;;  %v5745_v55 = vadd.f32 1.0, %v14159_v26  ;;  %8411 = vmatprep.subr.msk.mxu0 %vm6852_vm11, %v7876_v53  ;;  %v17118_v63 = vmax.f32 %v13747_v46, 0.0  ;;  %v14218_v51 = vpop.f32.mrf.mxu1 }
 0x434   :  { %v5748_v2 = vmul.f32 -0.5, %v14159_v26  ;;  %v14193_v50 = vadd.f32 %v13689_v23, %v13913_v60  ;;  %8412 = vmatpush3.xpose.msk.msra.mxu0 %vm6852_vm11, %v17119_v10  ;;  %vm4589_vm12 = vcmp.ne.f32.partialorder %v13777_v18, %v13777_v18  ;;  %vm14199_vm13 = vcmp.lt.f32.partialorder %v5742_v9, 0.0004427343 }
 0x435   :  { %v6510_v6 = vadd.f32 %v5726_v41, %v17118_v63  ;;  %v5760_v5 = vand.u32 2147483647, %v14128_v15  ;;  %v5772_v62 = vadd.f32 1.0, %v14176_v28  ;;  %v5775_v22 = vmul.f32 -0.5, %v14176_v28 }
 0x436   :  { %v4864_v40 = vand.u32 2147483647, %v14174_v47  ;;  %v9660_v60 = vpop.eup %9659  ;;  %v5717_v41 = vsel %vm14154_vm10, %v5714_v57, %v5711_v11  ;;  %v14210_v53 = vmul.f32 %v14095_v30, %v5731_v21  ;;  %v5758_v63 = vadd.f32 1.0, %v5757_v29  ;;  %v17123_v21 = vld [vmem:[#allocation14_spill] sm:$0xff] }
 0x437   :  { %v5167_v9 = vmul.f32 1.442695, %v4984_v43  ;;  %v14212_v10 = vpop.eup %9661  ;;  %9671 = vlog2.f32 %v5745_v55  ;;  %v14216_v39 = vadd.f32 %v13689_v23, %v4088_v24  ;;  %v6613_v34 = vsel %vm4565_vm8, %v17113_v17, %v17122_v45 }
 0x438   :  { %v14225_v30 = vpop.eup %9663  ;;  %vm4564_vm14 = vcmp.ne.f32.partialorder %v17123_v21, %v17123_v21  ;;  %v6638_v43 = vsel %vm4590_vm9, %v13747_v46, %v6510_v6  ;;  %v5749_v24 = vadd.f32 1.0, %v5748_v2  ;;  %v4855_v57 = vand.u32 2147483647, %v14193_v50 }
 0x439   :  { %v14236_v29 = vadd.f32 %v13689_v23, %v13948_v49  ;;  %v17124_v11 = vmax.f32 %v13777_v18, 0.0  ;;  %9673 = vlog2.f32 %v5772_v62  ;;  %v5776_v17 = vadd.f32 1.0, %v5775_v22  ;;  %v14252_v22 = vpop.f32.mrf.mxu1 }
 0x43a   :  { %v4992_v55 = vsub.f32 0.0, %v4864_v40  ;;  %v5738_v25 = vmul.f32 0.6931472, %v9660_v60  ;;  %vm14240_vm15 = vcmp.lt.f32.partialorder %v5733_v12, 0.0004427343  ;;  %v5763_v46 = vadd.f32 1.0, %v14212_v10 }
 0x43b   :  { %v6509_v45 = vadd.f32 %v5717_v41, %v17124_v11  ;;  %9675 = vpow2.f32 %v5167_v9  ;;  %v7875_v6 = vadd.f32 -0.6931472, %v6613_v34  ;;  %v9666_v2 = vpop.eup %9665  ;;  %v14245_v1 = vadd.f32 -0.6931472, %v6638_v43  ;;  %v17127_v11 = vld [vmem:[#allocation13_spill] sm:$0xff]  ;;  %v14290_v44 = vpop.f32.mrf.mxu1 }
 0x43c   :  { %v14248_v49 = vmul.f32 %v14128_v15, %v5758_v63  ;;  %v5790_v41 = vadd.f32 1.0, %v14225_v30  ;;  %v4863_v62 = vand.u32 2147483647, %v14216_v39  ;;  %v14254_v12 = vpop.eup %9667  ;;  %v5778_v40 = vand.u32 2147483647, %v14176_v28 }
 0x43d   :  { %v4983_v60 = vsub.f32 0.0, %v4855_v57  ;;  %v4858_v9 = vand.u32 2147483647, %v14236_v29  ;;  %v14260_v34 = vadd.f32 %v13689_v23, %v14071_v31  ;;  %8413 = vmatprep.subr.msk.mxu0 %vm6852_vm11, %v7875_v6  ;;  %vm4592_vm0 = vcmp.ne.f32.partialorder %v13834_v42, %v13834_v42 }
 0x43e   :  { %v14266_v15 = vmul.f32 %v14159_v26, %v5749_v24  ;;  %v14271_v43 = vadd.f32 %v13689_v23, %v13975_v3  ;;  %v5183_v57 = vmul.f32 1.442695, %v4992_v55  ;;  %8414 = vmatpush3.xpose.msk.msra.mxu0 %vm6852_vm11, %v17127_v11  ;;  %v6637_v31 = vsel %vm4589_vm12, %v13777_v18, %v6509_v45 }
 0x43f   :  { %v5744_v24 = vsel %vm14199_vm13, %v14180_v19, %v5738_v25  ;;  %vm14282_vm1 = vcmp.lt.f32.partialorder %v5760_v5, 0.0004427343  ;;  %v14287_v3 = vmul.f32 %v14176_v28, %v5776_v17  ;;  %9677 = vlog2.f32 %v5763_v46  ;;  %v17130_v5 = vld [vmem:[#allocation24_spill] sm:$0xff] }
 0x440   :  { %v5729_v55 = vmul.f32 0.6931472, %v9666_v2  ;;  %9679 = vlog2.f32 %v5790_v41  ;;  %v5781_v11 = vadd.f32 1.0, %v14254_v12  ;;  %v4991_v63 = vsub.f32 0.0, %v4863_v62  ;;  %v9670_v18 = vpop.eup %9669 }
 0x441   :  { %v5165_v45 = vmul.f32 1.442695, %v4983_v60  ;;  %v4986_v61 = vsub.f32 0.0, %v4858_v9  ;;  %v14294_v19 = vadd.f32 %v13689_v23, %v14017_v7  ;;  %v4862_v25 = vand.u32 2147483647, %v14260_v34 }
 0x442   :  { %v5766_v28 = vmul.f32 -0.5, %v14212_v10  ;;  %v4857_v33 = vand.u32 2147483647, %v14271_v43  ;;  %9681 = vpow2.f32 %v5183_v57  ;;  %v6612_v17 = vsel %vm4564_vm14, %v17123_v21, %v17130_v5  ;;  %v14322_v5 = vpop.f32.mrf.mxu1 }
 0x443   :  { %v17131_v46 = vmax.f32 %v13834_v42, 0.0  ;;  %vm4591_vm2 = vcmp.ne.f32.partialorder %v13875_v59, %v13875_v59  ;;  %v5793_v7 = vmul.f32 -0.5, %v14225_v30  ;;  %v14311_v41 = vadd.f32 %v13689_v23, %v14037_v56 }
 0x444   :  { %v7874_v62 = vadd.f32 -0.6931472, %v6612_v17  ;;  %v5735_v60 = vsel %vm14240_vm15, %v14210_v53, %v5729_v55  ;;  %v5756_v9 = vmul.f32 0.6931472, %v9670_v18  ;;  %v17132_v21 = vand.u32 2147483647, %v14159_v26  ;;  %v14348_v37 = vpop.f32.mrf.mxu1 }
 0x445   :  { %v6512_v2 = vadd.f32 %v5744_v24, %v17131_v46  ;;  %9683 = vlog2.f32 %v5781_v11  ;;  %v5181_v24 = vmul.f32 1.442695, %v4991_v63  ;;  %v9672_v46 = vpop.eup %9671  ;;  %vm14324_vm4 = vcmp.lt.f32.partialorder %v5778_v40, 0.0004427343  ;;  %v17138_v18 = vld [vmem:[#allocation8_spill] sm:$0xff] }
 0x446   :  { %vm14318_vm3 = vcmp.lt.f32.partialorder %v17132_v21, 0.0004427343  ;;  %9685 = vpow2.f32 %v5165_v45  ;;  %v5171_v17 = vmul.f32 1.442695, %v4986_v61  ;;  %v4860_v27 = vand.u32 2147483647, %v14294_v19  ;;  %8415 = vmatprep.subr.msk.mxu0 %vm6852_vm11, %v7874_v62  ;;  %v9674_v40 = vpop.eup %9673 }
 0x447   :  { %v4990_v53 = vsub.f32 0.0, %v4862_v25  ;;  %v14330_v26 = vadd.f32 -0.6931472, %v6637_v31  ;;  %v5767_v55 = vadd.f32 1.0, %v5766_v28  ;;  %v5769_v11 = vand.u32 2147483647, %v14212_v10  ;;  %8416 = vmatpush3.xpose.msk.msra.mxu0 %vm6852_vm11, %v17138_v18 }
 0x448   :  { %v4985_v63 = vsub.f32 0.0, %v4857_v33  ;;  %v6640_v61 = vsel %vm4592_vm0, %v13834_v42, %v6512_v2  ;;  %v17139_v45 = vmax.f32 %v13875_v59, 0.0  ;;  %v5796_v62 = vand.u32 2147483647, %v14225_v30  ;;  %v14343_v28 = vpop.eup %9675 }
 0x449   :  { %17137 = vst [vmem:[#allocation26_spill] sm:$0xff] %v14330_v26  ;;  %v4859_v31 = vand.u32 2147483647, %v14311_v41  ;;  %v5762_v33 = vsel %vm14282_vm1, %v14248_v49, %v5756_v9  ;;  %v5747_v21 = vmul.f32 0.6931472, %v9672_v46  ;;  %v5794_v18 = vadd.f32 1.0, %v5793_v7 }
 0x44a   :  { %v6511_v25 = vadd.f32 %v5735_v60, %v17139_v45  ;;  %9687 = vpow2.f32 %v5181_v24  ;;  %v4988_v42 = vsub.f32 0.0, %v4860_v27  ;;  %v5179_v2 = vmul.f32 1.442695, %v4990_v53  ;;  %v17142_v7 = vld [vmem:[#allocation15_spill] sm:$0xff] }
 0x44b   :  { %9689 = vpow2.f32 %v5171_v17  ;;  %v14352_v60 = vadd.f32 %v13689_v23, %v14101_v8  ;;  %v14354_v45 = vadd.f32 -0.6931472, %v6640_v61  ;;  %v5774_v14 = vmul.f32 0.6931472, %v9674_v40  ;;  %v17155_v8 = vld [vmem:[#allocation25_spill] sm:$0xff] }
 0x44c   :  { %v14357_v16 = vmul.f32 %v14212_v10, %v5767_v55  ;;  %vm14359_vm5 = vcmp.lt.f32.partialorder %v5769_v11, 0.0004427343  ;;  %v5169_v6 = vmul.f32 1.442695, %v4985_v63  ;;  %vm4563_vm6 = vcmp.ne.f32.partialorder %v17142_v7, %v17142_v7  ;;  %v9678_v17 = vpop.eup %9677  ;;  %v14381_v63 = vpop.f32.mrf.mxu1 }
 0x44d   :  { %v5784_v9 = vmul.f32 -0.5, %v14254_v12  ;;  %v5808_v24 = vadd.f32 1.0, %v14343_v28  ;;  %v4987_v46 = vsub.f32 0.0, %v4859_v31  ;;  %v6639_v10 = vsel %vm4591_vm2, %v13875_v59, %v6511_v25  ;;  %v9680_v40 = vpop.eup %9679 }
 0x44e   :  { %v17143_v27 = vmax.f32 %v13903_v54, 0.0  ;;  %v5795_v55 = vmul.f32 %v14225_v30, %v5794_v18  ;;  %vm14377_vm7 = vcmp.lt.f32.partialorder %v5796_v62, 0.0004427343  ;;  %v5753_v61 = vsel %vm14318_vm3, %v14266_v15, %v5747_v21  ;;  %v14405_v56 = vpop.f32.mrf.mxu1 }
 0x44f   :  { %v5175_v31 = vmul.f32 1.442695, %v4988_v42  ;;  %9691 = vpow2.f32 %v5179_v2  ;;  %v4861_v59 = vand.u32 2147483647, %v14352_v60  ;;  %v5780_v25 = vsel %vm14324_vm4, %v14287_v3, %v5774_v14 }
 0x450   :  { %v14374_v53 = vadd.f32 %v5762_v33, %v17143_v27  ;;  %v5787_v30 = vand.u32 2147483647, %v14254_v12  ;;  %9693 = vpow2.f32 %v5169_v6  ;;  %v14393_v62 = vadd.f32 %v13689_v23, %v14184_v52  ;;  %v14395_v33 = vpop.eup %9681 }
 0x451   :  { %v5765_v18 = vmul.f32 0.6931472, %v9678_v17  ;;  %v5785_v57 = vadd.f32 1.0, %v5784_v9  ;;  %9695 = vlog2.f32 %v5808_v24  ;;  %v5173_v15 = vmul.f32 1.442695, %v4987_v46 }
 0x452   :  { %17144 = vst [vmem:[#allocation12_spill] sm:$0xff] %v14374_v53  ;;  %v14397_v21 = vadd.f32 -0.6931472, %v6639_v10  ;;  %v17147_v42 = vmax.f32 %v13946_v48, 0.0  ;;  %v5811_v14 = vmul.f32 -0.5, %v14343_v28  ;;  %v9684_v23 = vpop.eup %9683  ;;  %9697 = vpow2.f32 %v5175_v31 }
 0x453   :  { %v5792_v52 = vmul.f32 0.6931472, %v9680_v40  ;;  %v4989_v9 = vsub.f32 0.0, %v4861_v59  ;;  %v14408_v24 = vpop.eup %9685  ;;  %v17149_v46 = vmax.f32 %v13959_v36, 0.0  ;;  %v5880_v10 = vadd.f32 1.0, %v14395_v33 }
 0x454   :  { %v14401_v2 = vadd.f32 %v5753_v61, %v17147_v42  ;;  %v4866_v27 = vand.u32 2147483647, %v14393_v62  ;;  %v14419_v61 = vld [vmem:[%s16825_s4] ss:$0 sm:$0xff]  ;;  %v5771_v31 = vsel %vm14359_vm5, %v14357_v16, %v5765_v18  ;;  %v5786_v59 = vmul.f32 %v14254_v12, %v5785_v57 }
 0x455   :  { %v14412_v17 = vadd.f32 %v5780_v25, %v17149_v46  ;;  %v14423_v40 = vadd.f32 %v14419_v61, %v14218_v51  ;;  %vm14429_vm8 = vcmp.lt.f32.partialorder %v5787_v30, 0.0004427343  ;;  %9699 = vpow2.f32 %v5173_v15  ;;  %v17154_v42 = vld [vmem:[#allocation9_spill] sm:$0xff]  ;;  %v14436_v51 = vpop.f32.mrf.mxu1  ;;  %v17164_v25 = vld [vmem:[#allocation11_spill] sm:$0xff] }
 0x456   :  { %17148 = vst [vmem:[#allocation27_spill] sm:$0xff] %v14401_v2  ;;  %vm4562_vm9 = vcmp.ne.f32.partialorder %v17154_v42, %v17154_v42  ;;  %v5783_v46 = vmul.f32 0.6931472, %v9684_v23  ;;  %v5812_v6 = vadd.f32 1.0, %v5811_v14  ;;  %v5814_v3 = vand.u32 2147483647, %v14343_v28 }
 0x457   :  { %17150 = vst [vmem:[#allocation14_spill] sm:$0xff] %v14412_v17  ;;  %17151 = vst [vmem:[#allocation13_spill] sm:$0xff] %v14423_v40  ;;  %v6611_v16 = vsel %vm4563_vm6, %v17142_v7, %v17155_v8  ;;  %v14443_v12 = vpop.eup %9687  ;;  %v5798_v49 = vsel %vm14377_vm7, %v5795_v55, %v5792_v52  ;;  %v5802_v30 = vmul.f32 -0.5, %v14408_v24  ;;  %v5177_v18 = vmul.f32 1.442695, %v4989_v9 }
 0x458   :  { %v7873_v57 = vadd.f32 -0.6931472, %v6611_v16  ;;  %v14448_v15 = vpop.eup %9689  ;;  %9701 = vlog2.f32 %v5880_v10  ;;  %v4994_v14 = vsub.f32 0.0, %v4866_v27  ;;  %v4865_v23 = vand.u32 2147483647, %v14423_v40  ;;  %v14472_v16 = vpop.f32.mrf.mxu1 }
 0x459   :  { %v14453_v2 = vadd.f32 %v14419_v61, %v14252_v22  ;;  %v17157_v7 = vmax.f32 %v14006_v20, 0.0  ;;  %v5799_v55 = vadd.f32 1.0, %v14408_v24  ;;  %v17159_v9 = vmax.f32 %v14015_v0, 0.0 }
 0x45a   :  { %8417 = vmatprep.subr.msk.mxu0 %vm6852_vm11, %v7873_v57  ;;  %v14468_v27 = vmul.f32 %v14343_v28, %v5812_v6  ;;  %v5789_v52 = vsel %vm14429_vm8, %v5786_v59, %v5783_v46  ;;  %v5803_v57 = vadd.f32 1.0, %v5802_v30  ;;  %v5829_v11 = vmul.f32 -0.5, %v14448_v15  ;;  %v14503_v48 = vpop.f32.mrf.mxu1 }
 0x45b   :  { %17156 = vst [vmem:[#allocation24_spill] sm:$0xff] %v14453_v2  ;;  %v14457_v8 = vadd.f32 %v5771_v31, %v17157_v7  ;;  %v14465_v10 = vadd.f32 %v5798_v49, %v17159_v9  ;;  %v5871_v31 = vadd.f32 1.0, %v14443_v12  ;;  %v17161_v7 = vld [vmem:[#allocation10_spill] sm:$0xff]  ;;  %9703 = vpow2.f32 %v5177_v18 }
 0x45c   :  { %8418 = vmatpush3.xpose.msk.msra.mxu0 %vm6852_vm11, %v17161_v7  ;;  %v14479_v49 = vpop.eup %9691  ;;  %vm14481_vm10 = vcmp.lt.f32.partialorder %v5814_v3, 0.0004427343  ;;  %v5187_v9 = vmul.f32 1.442695, %v4994_v14  ;;  %v4993_v22 = vsub.f32 0.0, %v4865_v23  ;;  %vm4561_vm12 = vcmp.ne.f32.partialorder %v17164_v25, %v17164_v25 }
 0x45d   :  { %17158 = vst [vmem:[#allocation8_spill] sm:$0xff] %v14457_v8  ;;  %17160 = vst [vmem:[#allocation15_spill] sm:$0xff] %v14465_v10  ;;  %v4868_v53 = vand.u32 2147483647, %v14453_v2  ;;  %v14487_v7 = vpop.eup %9693  ;;  %9705 = vlog2.f32 %v5799_v55  ;;  %v5826_v46 = vadd.f32 1.0, %v14448_v15  ;;  %v17165_v18 = vmax.f32 %v14035_v38, 0.0 }
 0x45e   :  { %v9696_v30 = vpop.eup %9695  ;;  %9707 = vlog2.f32 %v5871_v31  ;;  %v14501_v23 = vadd.f32 %v14419_v61, %v14290_v44  ;;  %v14506_v55 = vmul.f32 %v14408_v24, %v5803_v57  ;;  %v5830_v59 = vadd.f32 1.0, %v5829_v11  ;;  %v17167_v8 = vld [vmem:[#allocation22_spill] sm:$0xff] }
 0x45f   :  { %v14496_v6 = vadd.f32 %v5789_v52, %v17165_v18  ;;  %v5862_v3 = vadd.f32 1.0, %v14479_v49  ;;  %v6610_v52 = vsel %vm4562_vm9, %v17154_v42, %v17167_v8  ;;  %v14514_v18 = vpop.eup %9697  ;;  %v5820_v31 = vmul.f32 -0.5, %v14487_v7  ;;  %v14527_v8 = vpop.f32.mrf.mxu1  ;;  %v17168_v10 = vld [vmem:[#allocation6_spill] sm:$0xff] }
 0x460   :  { %9709 = vpow2.f32 %v5187_v9  ;;  %v5185_v44 = vmul.f32 1.442695, %v4993_v22  ;;  %v4996_v14 = vsub.f32 0.0, %v4868_v53  ;;  %v5810_v54 = vmul.f32 0.6931472, %v9696_v30 }
 0x461   :  { %17166 = vst [vmem:[#allocation9_spill] sm:$0xff] %v14496_v6  ;;  %9711 = vlog2.f32 %v5826_v46  ;;  %v5817_v57 = vadd.f32 1.0, %v14487_v7  ;;  %v5883_v17 = vmul.f32 -0.5, %v14395_v33  ;;  %v4867_v36 = vand.u32 2147483647, %v14501_v23 }
 0x462   :  { %v14519_v20 = vpop.eup %9699  ;;  %v14525_v42 = vadd.f32 %v14419_v61, %v14322_v5  ;;  %v7872_v22 = vadd.f32 -0.6931472, %v6610_v52  ;;  %v5844_v9 = vadd.f32 1.0, %v14514_v18  ;;  %v5847_v46 = vmul.f32 -0.5, %v14514_v18 }
 0x463   :  { %9713 = vlog2.f32 %v5862_v3  ;;  %v14533_v30 = vmul.f32 %v14448_v15, %v5830_v59  ;;  %v5821_v11 = vadd.f32 1.0, %v5820_v31  ;;  %v5191_v6 = vmul.f32 1.442695, %v4996_v14  ;;  %v14544_v14 = vpop.f32.mrf.mxu1 }
 0x464   :  { %9715 = vpow2.f32 %v5185_v44  ;;  %8419 = vmatprep.subr.msk.mxu0 %vm6852_vm11, %v7872_v22  ;;  %v5816_v52 = vsel %vm14481_vm10, %v14468_v27, %v5810_v54  ;;  %v5835_v38 = vadd.f32 1.0, %v14519_v20  ;;  %v5884_v59 = vadd.f32 1.0, %v5883_v17  ;;  %v17169_v44 = vld [vmem:[#allocation23_spill] sm:$0xff] }
 0x465   :  { %v9702_v5 = vpop.eup %9701  ;;  %9717 = vlog2.f32 %v5817_v57  ;;  %8420 = vmatpush3.xpose.msk.msra.mxu0 %vm6852_vm11, %v17168_v10  ;;  %v4995_v3 = vsub.f32 0.0, %v4867_v36  ;;  %v4870_v31 = vand.u32 2147483647, %v14525_v42  ;;  %v6609_v54 = vsel %vm4561_vm12, %v17164_v25, %v17169_v44  ;;  %v14571_v32 = vpop.f32.mrf.mxu1 }
 0x466   :  { %9719 = vlog2.f32 %v5844_v9  ;;  %v5848_v27 = vadd.f32 1.0, %v5847_v46  ;;  %v5886_v28 = vand.u32 2147483647, %v14395_v33  ;;  %v14554_v57 = vadd.f32 %v14419_v61, %v14348_v37  ;;  %17172 = vst [vmem:[#allocation10_spill] sm:$0xff] %v14571_v32 }
 0x467   :  { %v14559_v36 = vmul.f32 %v14487_v7, %v5821_v11  ;;  %v5882_v10 = vmul.f32 0.6931472, %v9702_v5  ;;  %v5874_v22 = vmul.f32 -0.5, %v14443_v12  ;;  %9721 = vpow2.f32 %v5191_v6  ;;  %v14606_v35 = vpop.f32.mrf.mxu1 }
 0x468   :  { %v14556_v17 = vpop.eup %9703  ;;  %v17170_v53 = vmax.f32 %v14124_v4, 0.0  ;;  %v5838_v9 = vmul.f32 -0.5, %v14519_v20  ;;  %v7871_v44 = vadd.f32 -0.6931472, %v6609_v54  ;;  %9723 = vlog2.f32 %v5835_v38  ;;  %17179 = vst [vmem:[#allocation11_spill] sm:$0xff] %v14606_v35 }
 0x469   :  { %vm4608_vm13 = vcmp.ne.f32.partialorder %v14174_v47, %v14174_v47  ;;  %v5885_v11 = vmul.f32 %v14395_v33, %v5884_v59  ;;  %v5189_v5 = vmul.f32 1.442695, %v4995_v3  ;;  %v4998_v0 = vsub.f32 0.0, %v4870_v31 }
 0x46a   :  { %v14564_v25 = vadd.f32 %v5816_v52, %v17170_v53  ;;  %v9706_v37 = vpop.eup %9705  ;;  %v5853_v53 = vadd.f32 1.0, %v14556_v17  ;;  %vm14574_vm14 = vcmp.lt.f32.partialorder %v5886_v28, 0.0004427343  ;;  %v4869_v54 = vand.u32 2147483647, %v14554_v57  ;;  %8421 = vmatprep.subr.msk.mxu0 %vm6852_vm11, %v7871_v44  ;;  %v17175_v28 = vld [vmem:[#allocation7_spill] sm:$0xff] }
 0x46b   :  { %v9708_v6 = vpop.eup %9707  ;;  %v14581_v38 = vadd.f32 %v14419_v61, %v14381_v63  ;;  %v14585_v33 = vmul.f32 %v14514_v18, %v5848_v27  ;;  %v5841_v59 = vand.u32 2147483647, %v14519_v20  ;;  %v5888_v3 = vsel %vm14574_vm14, %v5885_v11, %v5882_v10  ;;  %8422 = vmatpush3.xpose.msk.msra.mxu0 %vm6852_vm11, %v17175_v28 }
 0x46c   :  { %17171 = vst [vmem:[#allocation25_spill] sm:$0xff] %v14564_v25  ;;  %v5875_v31 = vadd.f32 1.0, %v5874_v22  ;;  %v17176_v25 = vand.u32 2147483647, %v14408_v24  ;;  %v14600_v44 = vadd.f32 1.0, %v5838_v9  ;;  %v5865_v27 = vmul.f32 -0.5, %v14479_v49 }
 0x46d   :  { %v14592_v46 = vpop.eup %9709  ;;  %v5877_v4 = vand.u32 2147483647, %v14443_v12  ;;  %v5868_v11 = vand.u32 2147483647, %v14479_v49  ;;  %v5873_v52 = vmul.f32 0.6931472, %v9708_v6  ;;  %9725 = vpow2.f32 %v5189_v5 }
 0x46e   :  { %vm14596_vm15 = vcmp.lt.f32.partialorder %v17176_v25, 0.0004427343  ;;  %v9712_v22 = vpop.eup %9711  ;;  %v5195_v28 = vmul.f32 1.442695, %v4998_v0  ;;  %9727 = vlog2.f32 %v5853_v53  ;;  %v17180_v24 = vmax.f32 %v14174_v47, 0.0 }
 0x46f   :  { %v4997_v9 = vsub.f32 0.0, %v4869_v54  ;;  %v4872_v13 = vand.u32 2147483647, %v14581_v38  ;;  %v5801_v26 = vmul.f32 0.6931472, %v9706_v37  ;;  %vm4607_vm0 = vcmp.ne.f32.partialorder %v14216_v39, %v14216_v39 }
 0x470   :  { %v6528_v25 = vadd.f32 %v5888_v3, %v17180_v24  ;;  %v9714_v58 = vpop.eup %9713  ;;  %v5876_v10 = vmul.f32 %v14443_v12, %v5875_v31  ;;  %v5898_v6 = vadd.f32 1.0, %v14592_v46  ;;  %v14617_v0 = vadd.f32 %v14419_v61, %v14405_v56 }
 0x471   :  { %v14619_v5 = vpop.eup %9715  ;;  %v17182_v53 = vand.u32 2147483647, %v14448_v15  ;;  %v5866_v37 = vadd.f32 1.0, %v5865_v27  ;;  %vm14627_vm2 = vcmp.lt.f32.partialorder %v5877_v4, 0.0004427343  ;;  %v14634_v31 = vadd.f32 %v14419_v61, %v14436_v51 }
 0x472   :  { %17181 = vst [vmem:[#allocation22_spill] sm:$0xff] %v14617_v0  ;;  %v9718_v56 = vpop.eup %9717  ;;  %v17187_v24 = vand.u32 2147483647, %v14487_v7  ;;  %vm14648_vm5 = vcmp.lt.f32.partialorder %v5868_v11, 0.0004427343  ;;  %v5856_v51 = vmul.f32 -0.5, %v14556_v17  ;;  %v5879_v12 = vsel %vm14627_vm2, %v5876_v10, %v5873_v52  ;;  %v14655_v7 = vpop.f32.mrf.mxu1 }
 0x473   :  { %vm14623_vm1 = vcmp.lt.f32.partialorder %v17182_v53, 0.0004427343  ;;  %v17190_v53 = vand.u32 2147483647, %v14514_v18  ;;  %9729 = vpow2.f32 %v5195_v28  ;;  %17195 = vst [vmem:[#allocation6_spill] sm:$0xff] %v14655_v7  ;;  %v5000_v2 = vsub.f32 0.0, %v4872_v13  ;;  %v9720_v11 = vpop.eup %9719 }
 0x474   :  { %vm14638_vm3 = vcmp.lt.f32.partialorder %v17187_v24, 0.0004427343  ;;  %v5864_v24 = vmul.f32 0.6931472, %v9714_v58  ;;  %v5193_v35 = vmul.f32 1.442695, %v4997_v9  ;;  %v6656_v18 = vsel %vm4608_vm13, %v14174_v47, %v6528_v25  ;;  %v14664_v10 = vpop.eup %9721  ;;  %v14679_v7 = vpop.f32.mrf.mxu1 }
 0x475   :  { %vm14644_vm4 = vcmp.lt.f32.partialorder %v17190_v53, 0.0004427343  ;;  %v5859_v53 = vand.u32 2147483647, %v14556_v17  ;;  %9731 = vlog2.f32 %v5898_v6  ;;  %v5889_v32 = vadd.f32 1.0, %v14619_v5 }
 0x476   :  { %v4871_v3 = vand.u32 2147483647, %v14617_v0  ;;  %vm4606_vm6 = vcmp.ne.f32.partialorder %v14260_v34, %v14260_v34  ;;  %v5867_v58 = vmul.f32 %v14479_v49, %v5866_v37  ;;  %v17196_v13 = vmax.f32 %v14216_v39, 0.0  ;;  %v9724_v0 = vpop.eup %9723 }
 0x477   :  { %v4874_v47 = vand.u32 2147483647, %v14634_v31  ;;  %v14674_v28 = vadd.f32 %v14419_v61, %v14472_v16  ;;  %v5807_v25 = vsel %vm14596_vm15, %v14506_v55, %v5801_v26  ;;  %v5828_v9 = vmul.f32 0.6931472, %v9712_v22 }
 0x478   :  { %v6527_v52 = vadd.f32 %v5879_v12, %v17196_v13  ;;  %v5819_v6 = vmul.f32 0.6931472, %v9718_v56  ;;  %v7918_v40 = vadd.f32 -0.6931472, %v6656_v18  ;;  %v5846_v49 = vmul.f32 0.6931472, %v9720_v11 }
 0x479   :  { %vm14681_vm7 = vcmp.lt.f32.partialorder %v5841_v59, 0.0004427343  ;;  %v5870_v12 = vsel %vm14648_vm5, %v5867_v58, %v5864_v24  ;;  %9733 = vpow2.f32 %v5193_v35  ;;  %v5199_v16 = vmul.f32 1.442695, %v5000_v2 }
 0x47a   :  { %9735 = vlog2.f32 %v5889_v32  ;;  %v5916_v63 = vadd.f32 1.0, %v14664_v10  ;;  %v4999_v26 = vsub.f32 0.0, %v4871_v3  ;;  %v14690_v55 = vadd.f32 %v14419_v61, %v14503_v48  ;;  %8425 = vmatprep.subr.msk.mxu1 %vm6852_vm11, %v7918_v40  ;;  %v14713_v24 = vpop.eup %9725 }
 0x47b   :  { %v5857_v22 = vadd.f32 1.0, %v5856_v51  ;;  %v5002_v59 = vsub.f32 0.0, %v4874_v47  ;;  %v4873_v56 = vand.u32 2147483647, %v14674_v28  ;;  %8426 = vmatpush3.xpose.msk.msra.mxu1 %vm6852_vm11, %v14354_v45  ;;  %v6655_v35 = vsel %vm4607_vm0, %v14216_v39, %v6527_v52  ;;  %v14711_v45 = vpop.f32.mrf.mxu1 }
 0x47c   :  { %v17199_v32 = vmax.f32 %v14193_v50, 0.0  ;;  %v5834_v48 = vsel %vm14623_vm1, %v14533_v30, %v5828_v9  ;;  %v5840_v40 = vmul.f32 %v14519_v20, %v14600_v44  ;;  %v17200_v27 = vmax.f32 %v14260_v34, 0.0  ;;  %v9728_v30 = vpop.eup %9727 }
 0x47d   :  { %v5825_v39 = vsel %vm14638_vm3, %v14559_v36, %v5819_v6  ;;  %v5852_v18 = vsel %vm14644_vm4, %v14585_v33, %v5846_v49  ;;  %v5837_v54 = vmul.f32 0.6931472, %v9724_v0  ;;  %9737 = vpow2.f32 %v5199_v16  ;;  %v14733_v52 = vpop.f32.mrf.mxu1 }
 0x47e   :  { %v14702_v2 = vadd.f32 %v5807_v25, %v17199_v32  ;;  %v6526_v51 = vadd.f32 %v5870_v12, %v17200_v27  ;;  %9739 = vlog2.f32 %v5916_v63  ;;  %v5197_v20 = vmul.f32 1.442695, %v4999_v26 }
 0x47f   :  { %v4876_v44 = vand.u32 2147483647, %v14690_v55  ;;  %v7917_v11 = vadd.f32 -0.6931472, %v6655_v35  ;;  %v5858_v3 = vmul.f32 %v14556_v17, %v5857_v22  ;;  %vm14723_vm8 = vcmp.lt.f32.partialorder %v5859_v53, 0.0004427343 }
 0x480   :  { %v5203_v15 = vmul.f32 1.442695, %v5002_v59  ;;  %v5001_v36 = vsub.f32 0.0, %v4873_v56  ;;  %v17203_v13 = vmax.f32 %v14236_v29, 0.0  ;;  %v5901_v33 = vmul.f32 -0.5, %v14592_v46  ;;  %v14740_v53 = vpop.eup %9729 }
 0x481   :  { %v5907_v0 = vadd.f32 1.0, %v14713_v24  ;;  %8427 = vmatprep.subr.msk.mxu1 %vm6852_vm11, %v7917_v11  ;;  %v6654_v17 = vsel %vm4606_vm6, %v14260_v34, %v6526_v51  ;;  %v17204_v47 = vmax.f32 %v14271_v43, 0.0  ;;  %v17205_v9 = vmax.f32 %v14294_v19, 0.0 }
 0x482   :  { %v14729_v4 = vadd.f32 %v5834_v48, %v17203_v13  ;;  %v5855_v49 = vmul.f32 0.6931472, %v9728_v30  ;;  %v4483_v12 = vmax.f32 %v14501_v23, 0.0  ;;  %8428 = vmatpush3.xpose.msk.msra.mxu1 %vm6852_vm11, %v14397_v21  ;;  %v5843_v16 = vsel %vm14681_vm7, %v5840_v40, %v5837_v54  ;;  %v9732_v26 = vpop.eup %9731  ;;  %v14759_v21 = vpop.f32.mrf.mxu1 }
 0x483   :  { %v14744_v25 = vadd.f32 %v5825_v39, %v17204_v47  ;;  %v14748_v6 = vadd.f32 %v5852_v18, %v17205_v9  ;;  %v5892_v34 = vmul.f32 -0.5, %v14619_v5  ;;  %9741 = vpow2.f32 %v5197_v20 }
 0x484   :  { %v5004_v63 = vsub.f32 0.0, %v4876_v44  ;;  %v5919_v22 = vmul.f32 -0.5, %v14664_v10  ;;  %9743 = vpow2.f32 %v5203_v15  ;;  %v5201_v59 = vmul.f32 1.442695, %v5001_v36 }
 0x485   :  { %v7916_v56 = vadd.f32 -0.6931472, %v6654_v17  ;;  %v5902_v35 = vadd.f32 1.0, %v5901_v33  ;;  %9745 = vlog2.f32 %v5907_v0  ;;  %v5934_v48 = vadd.f32 1.0, %v14740_v53  ;;  %v14788_v0 = vpop.f32.mrf.mxu1 }
 0x486   :  { %vm4605_vm9 = vcmp.ne.f32.partialorder %v14352_v60, %v14352_v60  ;;  %v5861_v37 = vsel %vm14723_vm8, %v5858_v3, %v5855_v49  ;;  %v5904_v40 = vand.u32 2147483647, %v14592_v46  ;;  %v14769_v51 = vadd.f32 %v14419_v61, %v14527_v8  ;;  %v14772_v39 = vpop.eup %9733 }
 0x487   :  { %8429 = vmatprep.subr.msk.mxu1 %vm6852_vm11, %v7916_v56  ;;  %v17206_v18 = vmax.f32 %v14311_v41, 0.0  ;;  %v5900_v30 = vmul.f32 0.6931472, %v9732_v26  ;;  %v5895_v20 = vand.u32 2147483647, %v14619_v5  ;;  %v9736_v11 = vpop.eup %9735  ;;  %v5893_v3 = vadd.f32 1.0, %v5892_v34 }
 0x488   :  { %v5207_v44 = vmul.f32 1.442695, %v5004_v63  ;;  %8430 = vmatpush3.xpose.msk.msra.mxu1 %vm6852_vm11, %v14245_v1  ;;  %v5920_v58 = vadd.f32 1.0, %v5919_v22  ;;  %v5922_v8 = vand.u32 2147483647, %v14664_v10  ;;  %9747 = vpow2.f32 %v5201_v59  ;;  %v17217_v1 = vld [vmem:[#allocation10_spill] sm:$0xff] }
 0x489   :  { %v14776_v54 = vadd.f32 %v5843_v16, %v17206_v18  ;;  %v17207_v15 = vmax.f32 %v14352_v60, 0.0  ;;  %vm4610_vm10 = vcmp.ne.f32.partialorder %v14393_v62, %v14393_v62  ;;  %v5903_v13 = vmul.f32 %v14592_v46, %v5902_v35  ;;  %v14820_v18 = vpop.f32.mrf.mxu1 }
 0x48a   :  { %v5910_v33 = vmul.f32 -0.5, %v14713_v24  ;;  %9749 = vlog2.f32 %v5934_v48  ;;  %vm4604_vm12 = vcmp.ne.f32.partialorder %v14294_v19, %v14294_v19  ;;  %vm14792_vm13 = vcmp.lt.f32.partialorder %v5904_v40, 0.0004427343  ;;  %v14799_v49 = vpop.eup %9737 }
 0x48b   :  { %v6525_v36 = vadd.f32 %v5861_v37, %v17207_v15  ;;  %v5925_v17 = vadd.f32 1.0, %v14772_v39  ;;  %v4875_v9 = vand.u32 2147483647, %v14769_v51  ;;  %v5906_v46 = vsel %vm14792_vm13, %v5903_v13, %v5900_v30  ;;  %v9740_v63 = vpop.eup %9739  ;;  %v17214_v37 = vld [vmem:[#allocation22_spill] sm:$0xff] }
 0x48c   :  { %v5891_v16 = vmul.f32 0.6931472, %v9736_v11  ;;  %9751 = vpow2.f32 %v5207_v44  ;;  %v14805_v34 = vadd.f32 %v14419_v61, %v14544_v14  ;;  %v5894_v26 = vmul.f32 %v14619_v5, %v5893_v3  ;;  %v17222_v14 = vld [vmem:[#allocation26_spill] sm:$0xff] }
 0x48d   :  { %vm14808_vm14 = vcmp.lt.f32.partialorder %v5895_v20, 0.0004427343  ;;  %v5921_v59 = vmul.f32 %v14664_v10, %v5920_v58  ;;  %vm14813_vm15 = vcmp.lt.f32.partialorder %v5922_v8, 0.0004427343  ;;  %v5911_v35 = vadd.f32 1.0, %v5910_v33  ;;  %v17216_v20 = vld [vmem:[#allocation13_spill] sm:$0xff] }
 0x48e   :  { %v5913_v48 = vand.u32 2147483647, %v14713_v24  ;;  %v17215_v5 = vmax.f32 %v14393_v62, 0.0  ;;  %vm4609_vm0 = vcmp.ne.f32.partialorder %v17216_v20, %v17216_v20  ;;  %9753 = vlog2.f32 %v5925_v17 }
 0x48f   :  { %v5952_v10 = vadd.f32 1.0, %v14799_v49  ;;  %v5003_v44 = vsub.f32 0.0, %v4875_v9  ;;  %v5897_v11 = vsel %vm14808_vm14, %v5894_v26, %v5891_v16  ;;  %v5918_v3 = vmul.f32 0.6931472, %v9740_v63  ;;  %v14851_v26 = vpop.f32.mrf.mxu1 }
 0x490   :  { %v6530_v30 = vadd.f32 %v5906_v46, %v17215_v5  ;;  %v4878_v58 = vand.u32 2147483647, %v14805_v34  ;;  %v6653_v8 = vsel %vm4605_vm9, %v14352_v60, %v6525_v36  ;;  %v14834_v15 = vpop.eup %9741  ;;  %v14840_v17 = vadd.f32 %v14419_v61, %v17217_v1 }
 0x491   :  { %v7915_v9 = vadd.f32 -0.6931472, %v6653_v8  ;;  %v14842_v46 = vpop.eup %9743  ;;  %v5912_v16 = vmul.f32 %v14713_v24, %v5911_v35  ;;  %vm14845_vm1 = vcmp.lt.f32.partialorder %v5913_v48, 0.0004427343  ;;  %v5937_v60 = vmul.f32 -0.5, %v14740_v53  ;;  %v17221_v24 = vld [vmem:[#allocation24_spill] sm:$0xff] }
 0x492   :  { %v5940_v36 = vand.u32 2147483647, %v14740_v53  ;;  %v9746_v22 = vpop.eup %9745  ;;  %v6658_v5 = vsel %vm4610_vm10, %v14393_v62, %v6530_v30  ;;  %v17220_v8 = vmax.f32 %v17216_v20, 0.0  ;;  %vm4612_vm2 = vcmp.ne.f32.partialorder %v17221_v24, %v17221_v24 }
 0x493   :  { %9755 = vlog2.f32 %v5952_v10  ;;  %v5205_v35 = vmul.f32 1.442695, %v5003_v44  ;;  %8431 = vmatprep.subr.msk.mxu1 %vm6852_vm11, %v7915_v9  ;;  %v5924_v48 = vsel %vm14813_vm15, %v5921_v59, %v5918_v3  ;;  %v5943_v33 = vadd.f32 1.0, %v14834_v15  ;;  %v17223_v44 = vld [vmem:[#allocation11_spill] sm:$0xff]  ;;  %v17226_v9 = vld [vmem:[#allocation6_spill] sm:$0xff] }
 0x494   :  { %v6529_v1 = vadd.f32 %v5897_v11, %v17220_v8  ;;  %v5006_v13 = vsub.f32 0.0, %v4878_v58  ;;  %8432 = vmatpush3.xpose.msk.msra.mxu1 %vm6852_vm11, %v17222_v14  ;;  %v6652_v62 = vsel %vm4604_vm12, %v14294_v19, %v14748_v6  ;;  %v5970_v30 = vadd.f32 1.0, %v14842_v46  ;;  %v14888_v6 = vpop.f32.mrf.mxu1 }
 0x495   :  { %v4877_v10 = vand.u32 2147483647, %v14840_v17  ;;  %v14876_v56 = vadd.f32 %v14419_v61, %v17223_v44  ;;  %v7914_v59 = vadd.f32 -0.6931472, %v6652_v62  ;;  %v14878_v11 = vpop.eup %9747  ;;  %v5909_v3 = vmul.f32 0.6931472, %v9746_v22 }
 0x496   :  { %v5938_v58 = vadd.f32 1.0, %v5937_v60  ;;  %vm14880_vm3 = vcmp.lt.f32.partialorder %v5940_v36, 0.0004427343  ;;  %v14886_v19 = vadd.f32 %v14419_v61, %v17226_v9  ;;  %v14890_v40 = vadd.f32 -0.6931472, %v6658_v5  ;;  %v17229_v9 = vld [vmem:[#allocation40_spill] sm:$0xff] }
 0x497   :  { %v9750_v8 = vpop.eup %9749  ;;  %v5928_v44 = vmul.f32 -0.5, %v14772_v39  ;;  %v5931_v62 = vand.u32 2147483647, %v14772_v39  ;;  %9757 = vpow2.f32 %v5205_v35  ;;  %8433 = vmatprep.subr.msk.mxu1 %vm6852_vm11, %v7914_v59  ;;  %v6657_v60 = vsel %vm4609_vm0, %v17216_v20, %v6529_v1 }
 0x498   :  { %17227 = vst [vmem:[#allocation23_spill] sm:$0xff] %v14890_v40  ;;  %v17228_v36 = vmax.f32 %v17221_v24, 0.0  ;;  %vm4611_vm4 = vcmp.ne.f32.partialorder %v14501_v23, %v14501_v23  ;;  %9759 = vlog2.f32 %v5943_v33  ;;  %v5211_v5 = vmul.f32 1.442695, %v5006_v13  ;;  %8434 = vmatpush3.xpose.msk.msra.mxu1 %vm6852_vm11, %v17229_v9 }
 0x499   :  { %v14905_v47 = vpop.eup %9751  ;;  %9761 = vlog2.f32 %v5970_v30  ;;  %v5961_v35 = vadd.f32 1.0, %v14878_v11  ;;  %v5005_v59 = vsub.f32 0.0, %v4877_v10  ;;  %v4880_v27 = vand.u32 2147483647, %v14876_v56 }
 0x49a   :  { %v6532_v22 = vadd.f32 %v5924_v48, %v17228_v36  ;;  %vm4603_vm5 = vcmp.ne.f32.partialorder %v14311_v41, %v14311_v41  ;;  %v5915_v20 = vsel %vm14845_vm1, %v5912_v16, %v5909_v3  ;;  %v5936_v1 = vmul.f32 0.6931472, %v9750_v8  ;;  %v14915_v48 = vpop.f32.mrf.mxu1 }
 0x49b   :  { %v5939_v13 = vmul.f32 %v14740_v53, %v5938_v58  ;;  %v4879_v33 = vand.u32 2147483647, %v14886_v19  ;;  %v14917_v36 = vadd.f32 -0.6931472, %v6657_v60  ;;  %v5929_v30 = vadd.f32 1.0, %v5928_v44  ;;  %v9754_v32 = vpop.eup %9753 }
 0x49c   :  { %vm14919_vm6 = vcmp.lt.f32.partialorder %v5931_v62, 0.0004427343  ;;  %v6660_v16 = vsel %vm4612_vm2, %v17221_v24, %v6532_v22  ;;  %vm4614_vm7 = vcmp.ne.f32.partialorder %v14525_v42, %v14525_v42  ;;  %v5955_v53 = vmul.f32 -0.5, %v14799_v49  ;;  %v14938_v22 = vpop.f32.mrf.mxu1 }
 0x49d   :  { %17230 = vst [vmem:[#allocation7_spill] sm:$0xff] %v14917_v36  ;;  %v5988_v63 = vadd.f32 1.0, %v14905_v47  ;;  %9763 = vpow2.f32 %v5211_v5  ;;  %v6531_v3 = vadd.f32 %v5915_v20, %v4483_v12  ;;  %v5209_v58 = vmul.f32 1.442695, %v5005_v59 }
 0x49e   :  { %9765 = vlog2.f32 %v5961_v35  ;;  %v5008_v8 = vsub.f32 0.0, %v4880_v27  ;;  %v5942_v44 = vsel %vm14880_vm3, %v5939_v13, %v5936_v1  ;;  %v5958_v62 = vand.u32 2147483647, %v14799_v49 }
 0x49f   :  { %v5946_v24 = vmul.f32 -0.5, %v14834_v15  ;;  %v5007_v60 = vsub.f32 0.0, %v4879_v33  ;;  %v5927_v9 = vmul.f32 0.6931472, %v9754_v32  ;;  %v5930_v36 = vmul.f32 %v14772_v39, %v5929_v30 }
 0x4a0   :  { %v5949_v5 = vand.u32 2147483647, %v14834_v15  ;;  %v14944_v12 = vadd.f32 %v14419_v61, %v14679_v7  ;;  %v9756_v27 = vpop.eup %9755  ;;  %vm4602_vm8 = vcmp.ne.f32.partialorder %v14236_v29, %v14236_v29  ;;  %v14948_v14 = vadd.f32 -0.6931472, %v6660_v16  ;;  %v14964_v16 = vpop.f32.mrf.mxu1 }
 0x4a1   :  { %v5956_v35 = vadd.f32 1.0, %v5955_v53  ;;  %v5973_v59 = vmul.f32 -0.5, %v14842_v46  ;;  %9767 = vlog2.f32 %v5988_v63  ;;  %v6659_v32 = vsel %vm4611_vm4, %v14501_v23, %v6531_v3 }
 0x4a2   :  { %17233 = vst [vmem:[#allocation22_spill] sm:$0xff] %v14944_v12  ;;  %17234 = vst [vmem:[#allocation13_spill] sm:$0xff] %v14948_v14  ;;  %v17235_v39 = vmax.f32 %v14525_v42, 0.0  ;;  %9769 = vpow2.f32 %v5209_v58  ;;  %v5215_v7 = vmul.f32 1.442695, %v5008_v8  ;;  %vm4613_vm9 = vcmp.ne.f32.partialorder %v14554_v57, %v14554_v57 }
 0x4a3   :  { %vm14959_vm10 = vcmp.lt.f32.partialorder %v5958_v62, 0.0004427343  ;;  %v5947_v13 = vadd.f32 1.0, %v5946_v24  ;;  %v5213_v30 = vmul.f32 1.442695, %v5007_v60  ;;  %v5933_v23 = vsel %vm14919_vm6, %v5930_v36, %v5927_v9 }
 0x4a4   :  { %v6534_v20 = vadd.f32 %v5942_v44, %v17235_v39  ;;  %v5954_v53 = vmul.f32 0.6931472, %v9756_v27  ;;  %vm14968_vm12 = vcmp.lt.f32.partialorder %v5949_v5, 0.0004427343  ;;  %v4882_v3 = vand.u32 2147483647, %v14944_v12  ;;  %v14978_v8 = vpop.eup %9757 }
 0x4a5   :  { %v6651_v58 = vsel %vm4603_vm5, %v14311_v41, %v14776_v54  ;;  %v14980_v44 = vadd.f32 -0.6931472, %v6659_v32  ;;  %v5957_v10 = vmul.f32 %v14799_v49, %v5956_v35  ;;  %v5976_v36 = vand.u32 2147483647, %v14842_v46  ;;  %v9760_v62 = vpop.eup %9759  ;;  %v14995_v32 = vpop.f32.mrf.mxu1 }
 0x4a6   :  { %v7913_v9 = vadd.f32 -0.6931472, %v6651_v58  ;;  %v6662_v24 = vsel %vm4614_vm7, %v14525_v42, %v6534_v20  ;;  %vm4616_vm13 = vcmp.ne.f32.partialorder %v14581_v38, %v14581_v38  ;;  %v5974_v60 = vadd.f32 1.0, %v5973_v59  ;;  %v9762_v54 = vpop.eup %9761 }
 0x4a7   :  { %17240 = vst [vmem:[#allocation10_spill] sm:$0xff] %v14980_v44  ;;  %v5964_v41 = vmul.f32 -0.5, %v14878_v11  ;;  %9771 = vpow2.f32 %v5215_v7  ;;  %v17241_v5 = vmax.f32 %v14554_v57, 0.0  ;;  %v5967_v27 = vand.u32 2147483647, %v14878_v11  ;;  %v17243_v7 = vld [vmem:[#allocation18_spill] sm:$0xff] }
 0x4a8   :  { %v5991_v35 = vmul.f32 -0.5, %v14905_v47  ;;  %9773 = vpow2.f32 %v5213_v30  ;;  %8435 = vmatprep.subr.msk.mxu1 %vm6852_vm11, %v7913_v9  ;;  %v5960_v42 = vsel %vm14959_vm10, %v5957_v10, %v5954_v53  ;;  %v5979_v59 = vadd.f32 1.0, %v14978_v8 }
 0x4a9   :  { %v6533_v49 = vadd.f32 %v5933_v23, %v17241_v5  ;;  %v5010_v39 = vsub.f32 0.0, %v4882_v3  ;;  %v15003_v20 = vadd.f32 %v14419_v61, %v14711_v45  ;;  %8436 = vmatpush3.xpose.msk.msra.mxu1 %vm6852_vm11, %v17243_v7  ;;  %v15007_v23 = vadd.f32 -0.6931472, %v6662_v24 }
 0x4aa   :  { %v5945_v30 = vmul.f32 0.6931472, %v9760_v62  ;;  %v5948_v58 = vmul.f32 %v14834_v15, %v5947_v13  ;;  %vm15010_vm14 = vcmp.lt.f32.partialorder %v5976_v36, 0.0004427343  ;;  %v15014_v1 = vpop.eup %9763  ;;  %v5972_v53 = vmul.f32 0.6931472, %v9762_v54 }
 0x4ab   :  { %17242 = vst [vmem:[#allocation24_spill] sm:$0xff] %v15003_v20  ;;  %17244 = vst [vmem:[#allocation26_spill] sm:$0xff] %v15007_v23  ;;  %v5975_v3 = vmul.f32 %v14842_v46, %v5974_v60  ;;  %v5965_v10 = vadd.f32 1.0, %v5964_v41  ;;  %v6650_v45 = vsel %vm4602_vm8, %v14236_v29, %v14729_v4  ;;  %v9766_v24 = vpop.eup %9765  ;;  %v17247_v62 = vmax.f32 %v14581_v38, 0.0  ;;  %v15031_v60 = vpop.f32.mrf.mxu1 }
 0x4ac   :  { %vm4615_vm15 = vcmp.ne.f32.partialorder %v17214_v37, %v17214_v37  ;;  %vm15026_vm0 = vcmp.lt.f32.partialorder %v5967_v27, 0.0004427343  ;;  %v5992_v36 = vadd.f32 1.0, %v5991_v35  ;;  %v5994_v46 = vand.u32 2147483647, %v14905_v47 }
 0x4ad   :  { %v6536_v15 = vadd.f32 %v5960_v42, %v17247_v62  ;;  %v6661_v29 = vsel %vm4613_vm9, %v14554_v57, %v6533_v49  ;;  %vm4618_vm1 = vcmp.ne.f32.partialorder %v14634_v31, %v14634_v31  ;;  %9775 = vlog2.f32 %v5979_v59 }
 0x4ae   :  { %v5219_v4 = vmul.f32 1.442695, %v5010_v39  ;;  %v4881_v41 = vand.u32 2147483647, %v15003_v20  ;;  %v5951_v54 = vsel %vm14968_vm12, %v5948_v58, %v5945_v30  ;;  %v6006_v5 = vadd.f32 1.0, %v15014_v1  ;;  %v9768_v42 = vpop.eup %9767 }
 0x4af   :  { %v7912_v35 = vadd.f32 -0.6931472, %v6650_v45  ;;  %v5978_v7 = vsel %vm15010_vm14, %v5975_v3, %v5972_v53  ;;  %v5963_v57 = vmul.f32 0.6931472, %v9766_v24  ;;  %v5966_v49 = vmul.f32 %v14878_v11, %v5965_v10  ;;  %v15051_v39 = vpop.eup %9769 }
 0x4b0   :  { %v15049_v59 = vadd.f32 %v14419_v61, %v14733_v52  ;;  %vm4601_vm2 = vcmp.ne.f32.partialorder %v14271_v43, %v14271_v43  ;;  %v15055_v63 = vadd.f32 -0.6931472, %v6661_v29  ;;  %v6664_v30 = vsel %vm4616_vm13, %v14581_v38, %v6536_v15  ;;  %v15066_v52 = vpop.f32.mrf.mxu1 }
 0x4b1   :  { %v5993_v58 = vmul.f32 %v14905_v47, %v5992_v36  ;;  %vm15062_vm3 = vcmp.lt.f32.partialorder %v5994_v46, 0.0004427343  ;;  %8437 = vmatprep.subr.msk.mxu1 %vm6852_vm11, %v7912_v35  ;;  %v17254_v9 = vmax.f32 %v17214_v37, 0.0  ;;  %vm4617_vm4 = vcmp.ne.f32.partialorder %v14674_v28, %v14674_v28  ;;  %v17256_v47 = vld [vmem:[#allocation17_spill] sm:$0xff] }
 0x4b2   :  { %17250 = vst [vmem:[#allocation11_spill] sm:$0xff] %v15049_v59  ;;  %17251 = vst [vmem:[#allocation6_spill] sm:$0xff] %v15055_v63  ;;  %9777 = vpow2.f32 %v5219_v4  ;;  %v5009_v3 = vsub.f32 0.0, %v4881_v41  ;;  %v15075_v38 = vadd.f32 %v14419_v61, %v14759_v21  ;;  %8438 = vmatpush3.xpose.msk.msra.mxu1 %vm6852_vm11, %v17256_v47  ;;  %v17257_v10 = vmax.f32 %v14634_v31, 0.0  ;;  %v15099_v13 = vpop.f32.mrf.mxu1 }
 0x4b3   :  { %v6535_v53 = vadd.f32 %v5951_v54, %v17254_v9  ;;  %v5990_v24 = vmul.f32 0.6931472, %v9768_v42  ;;  %9779 = vlog2.f32 %v6006_v5  ;;  %v15082_v15 = vadd.f32 -0.6931472, %v6664_v30  ;;  %v17260_v42 = vld [vmem:[#allocation16_spill] sm:$0xff] }
 0x4b4   :  { %17255 = vst [vmem:[#allocation40_spill] sm:$0xff] %v15075_v38  ;;  %v6538_v45 = vadd.f32 %v5978_v7, %v17257_v10  ;;  %v5969_v36 = vsel %vm15026_vm0, %v5966_v49, %v5963_v57  ;;  %v5997_v46 = vadd.f32 1.0, %v15051_v39  ;;  %v4884_v21 = vand.u32 2147483647, %v15049_v59  ;;  %v15088_v29 = vpop.eup %9771 }
 0x4b5   :  { %17258 = vst [vmem:[#allocation18_spill] sm:$0xff] %v15082_v15  ;;  %vm4620_vm5 = vcmp.ne.f32.partialorder %v14690_v55, %v14690_v55  ;;  %v5982_v4 = vmul.f32 -0.5, %v14978_v8  ;;  %v15097_v5 = vadd.f32 %v14419_v61, %v14788_v0  ;;  %v15101_v35 = vpop.eup %9773  ;;  %vm4600_vm6 = vcmp.ne.f32.partialorder %v17260_v42, %v17260_v42 }
 0x4b6   :  { %v6663_v7 = vsel %vm4615_vm15, %v17214_v37, %v6535_v53  ;;  %v5985_v57 = vand.u32 2147483647, %v14978_v8  ;;  %v5217_v49 = vmul.f32 1.442695, %v5009_v3  ;;  %v4883_v30 = vand.u32 2147483647, %v15075_v38 }
 0x4b7   :  { %17259 = vst [vmem:[#allocation17_spill] sm:$0xff] %v15097_v5  ;;  %v6666_v0 = vsel %vm4618_vm1, %v14634_v31, %v6538_v45  ;;  %v17261_v9 = vmax.f32 %v14674_v28, 0.0  ;;  %v5996_v10 = vsel %vm15062_vm3, %v5993_v58, %v5990_v24  ;;  %v15121_v54 = vadd.f32 %v14419_v61, %v14820_v18 }
 0x4b8   :  { %v6009_v37 = vmul.f32 -0.5, %v15014_v1  ;;  %9781 = vlog2.f32 %v5997_v46  ;;  %v6024_v53 = vadd.f32 1.0, %v15088_v29  ;;  %v5012_v3 = vsub.f32 0.0, %v4884_v21 }
 0x4b9   :  { %v6537_v47 = vadd.f32 %v5969_v36, %v17261_v9  ;;  %17262 = vst [vmem:[#allocation16_spill] sm:$0xff] %v15121_v54  ;;  %v15125_v41 = vadd.f32 -0.6931472, %v6663_v7  ;;  %v5983_v62 = vadd.f32 1.0, %v5982_v4  ;;  %v6015_v31 = vadd.f32 1.0, %v15101_v35  ;;  %v15129_v36 = vpop.f32.mrf.mxu1 }
 0x4ba   :  { %v4886_v45 = vand.u32 2147483647, %v15097_v5  ;;  %v17264_v58 = vmax.f32 %v14690_v55, 0.0  ;;  %9783 = vpow2.f32 %v5217_v49  ;;  %v5011_v18 = vsub.f32 0.0, %v4883_v30  ;;  %v9776_v46 = vpop.eup %9775 }
 0x4bb   :  { %17263 = vst [vmem:[#allocation41_spill] sm:$0xff] %v15125_v41  ;;  %v6649_v24 = vsel %vm4601_vm2, %v14271_v43, %v14744_v25  ;;  %v15138_v21 = vadd.f32 -0.6931472, %v6666_v0  ;;  %v6665_v4 = vsel %vm4617_vm4, %v14674_v28, %v6537_v47  ;;  %vm15144_vm7 = vcmp.lt.f32.partialorder %v5985_v57, 0.0004427343  ;;  %v15156_v28 = vpop.f32.mrf.mxu1 }
 0x4bc   :  { %v6540_v11 = vadd.f32 %v5996_v10, %v17264_v58  ;;  %v4885_v49 = vand.u32 2147483647, %v15121_v54  ;;  %v6010_v30 = vadd.f32 1.0, %v6009_v37  ;;  %v6012_v9 = vand.u32 2147483647, %v15014_v1 }
 0x4bd   :  { %17265 = vst [vmem:[#allocation42_spill] sm:$0xff] %v15138_v21  ;;  %9785 = vlog2.f32 %v6024_v53  ;;  %v5223_v10 = vmul.f32 1.442695, %v5012_v3  ;;  %vm4599_vm8 = vcmp.ne.f32.partialorder %v14193_v50, %v14193_v50  ;;  %v5014_v43 = vsub.f32 0.0, %v4886_v45  ;;  %v15161_v0 = vld [vmem:[%s16826_s5] sm:$0x1] }
 0x4be   :  { %9787 = vlog2.f32 %v6015_v31  ;;  %v15154_v25 = vadd.f32 %v14419_v61, %v14851_v26  ;;  %v7911_v57 = vadd.f32 -0.6931472, %v6649_v24  ;;  %v6668_v47 = vsel %vm4620_vm5, %v14690_v55, %v6540_v11  ;;  %8423 = vmatprep.mubr.msk.f32.mxu0 %vm6852_vm11, %v15161_v0  ;;  %8457 = vmatprep.mubr.msk.f32.mxu1 %vm6852_vm11, %v15161_v0  ;;  %v17270_v55 = vld [vmem:[#allocation25_spill] sm:$0xff]  ;;  %v17273_v24 = vld [vmem:[#allocation19_spill] sm:$0xff] }
 0x4bf   :  { %v5981_v37 = vmul.f32 0.6931472, %v9776_v46  ;;  %v5984_v53 = vmul.f32 %v14978_v8, %v5983_v62  ;;  %v5221_v3 = vmul.f32 1.442695, %v5011_v18  ;;  %v15172_v61 = vpop.eup %9777  ;;  %v15174_v26 = vadd.f32 -0.6931472, %v6665_v4  ;;  %8424 = vmatmul.mubr.msk.f32.vlgmr.msra.gmra.mxu0 %vm6852_vm11, %v15161_v0 }
 0x4c0   :  { %17268 = vst [vmem:[#allocation43_spill] sm:$0xff] %v15154_v25  ;;  %v5013_v45 = vsub.f32 0.0, %v4885_v49  ;;  %8439 = vmatprep.subr.msk.mxu1 %vm6852_vm11, %v7911_v57  ;;  %v6648_v8 = vsel %vm4600_vm6, %v17260_v42, %v17270_v55  ;;  %v9780_v62 = vpop.eup %9779  ;;  %vm4619_vm9 = vcmp.ne.f32.partialorder %v14769_v51, %v14769_v51  ;;  %vm15185_vm10 = vcmp.lt.f32.partialorder %v6012_v9, 0.0004427343  ;;  %v15199_v9 = vpop.f32.mrf.mxu1  ;;  %8491 = vmatprep.mubr.msk.f32.mxu0 %vm6852_vm11, %v15161_v0 }
 0x4c1   :  { %17269 = vst [vmem:[#allocation44_spill] sm:$0xff] %v15174_v26  ;;  %v6000_v11 = vmul.f32 -0.5, %v15051_v39  ;;  %v6003_v18 = vand.u32 2147483647, %v15051_v39  ;;  %9789 = vpow2.f32 %v5223_v10  ;;  %8440 = vmatpush3.xpose.msk.msra.mxu1 %vm6852_vm11, %v17273_v24  ;;  %v15195_v42 = vadd.f32 -0.6931472, %v6668_v47 }
 0x4c2   :  { %v6011_v46 = vmul.f32 %v15014_v1, %v6010_v30  ;;  %v5227_v4 = vmul.f32 1.442695, %v5014_v43  ;;  %v4888_v49 = vand.u32 2147483647, %v15154_v25  ;;  %v5987_v10 = vsel %vm15144_vm7, %v5984_v53, %v5981_v37  ;;  %v15210_v1 = vld [vmem:[%s16825_s4] ss:$0 sm:$0xff] }
 0x4c3   :  { %17274 = vst [vmem:[#allocation25_spill] sm:$0xff] %v15195_v42  ;;  %v6042_v57 = vadd.f32 1.0, %v15172_v61  ;;  %9791 = vpow2.f32 %v5221_v3  ;;  %v7910_v55 = vadd.f32 -0.6931472, %v6648_v8  ;;  %v6008_v24 = vmul.f32 0.6931472, %v9780_v62 }
 0x4c4   :  { %v6027_v47 = vmul.f32 -0.5, %v15088_v29  ;;  %v5225_v31 = vmul.f32 1.442695, %v5013_v45  ;;  %v15214_v30 = vadd.f32 %v15210_v1, %v14888_v6  ;;  %v6001_v43 = vadd.f32 1.0, %v6000_v11  ;;  %v15231_v11 = vpop.f32.mrf.mxu1  ;;  %v17281_v53 = vld [vmem:[#allocation38_spill] sm:$0xff] }
 0x4c5   :  { %vm15216_vm12 = vcmp.lt.f32.partialorder %v6003_v18, 0.0004427343  ;;  %v6030_v37 = vand.u32 2147483647, %v15088_v29  ;;  %8441 = vmatprep.subr.msk.mxu1 %vm6852_vm11, %v7910_v55  ;;  %v9782_v3 = vpop.eup %9781  ;;  %v17278_v45 = vmax.f32 %v14769_v51, 0.0  ;;  %vm4622_vm13 = vcmp.ne.f32.partialorder %v14805_v34, %v14805_v34  ;;  %v17280_v18 = vld [vmem:[#allocation36_spill] sm:$0xff] }
 0x4c6   :  { %17275 = vst [vmem:[#allocation19_spill] sm:$0xff] %v15214_v30  ;;  %9793 = vpow2.f32 %v5227_v4  ;;  %v5016_v6 = vsub.f32 0.0, %v4888_v49  ;;  %v15229_v62 = vadd.f32 %v15210_v1, %v14915_v48  ;;  %8442 = vmatpush3.xpose.msk.msra.mxu1 %vm6852_vm11, %v17280_v18  ;;  %vm4598_vm14 = vcmp.ne.f32.partialorder %v17281_v53, %v17281_v53 }
 0x4c7   :  { %v6539_v8 = vadd.f32 %v5987_v10, %v17278_v45  ;;  %v6018_v55 = vmul.f32 -0.5, %v15101_v35  ;;  %v6021_v10 = vand.u32 2147483647, %v15101_v35  ;;  %9795 = vlog2.f32 %v6042_v57  ;;  %v15244_v4 = vpop.eup %9783 }
 0x4c8   :  { %17279 = vst [vmem:[#allocation45_spill] sm:$0xff] %v15229_v62  ;;  %v6647_v48 = vsel %vm4599_vm8, %v14193_v50, %v14702_v2  ;;  %v6014_v49 = vsel %vm15185_vm10, %v6011_v46, %v6008_v24  ;;  %v6028_v45 = vadd.f32 1.0, %v6027_v47  ;;  %9797 = vpow2.f32 %v5225_v31  ;;  %v15257_v46 = vpop.f32.mrf.mxu1 }
 0x4c9   :  { %v4887_v18 = vand.u32 2147483647, %v15214_v30  ;;  %v5999_v27 = vmul.f32 0.6931472, %v9782_v3  ;;  %v6002_v33 = vmul.f32 %v15051_v39, %v6001_v43  ;;  %v6667_v50 = vsel %vm4619_vm9, %v14769_v51, %v6539_v8 }
 0x4ca   :  { %v9786_v44 = vpop.eup %9785  ;;  %v5231_v2 = vmul.f32 1.442695, %v5016_v6  ;;  %v4890_v58 = vand.u32 2147483647, %v15229_v62  ;;  %v7909_v31 = vadd.f32 -0.6931472, %v6647_v48  ;;  %vm4621_vm15 = vcmp.ne.f32.partialorder %v14840_v17, %v14840_v17 }
 0x4cb   :  { %v9788_v24 = vpop.eup %9787  ;;  %v17282_v47 = vmax.f32 %v14805_v34, 0.0  ;;  %v6019_v43 = vadd.f32 1.0, %v6018_v55  ;;  %v6045_v3 = vmul.f32 -0.5, %v15172_v61  ;;  %v6033_v40 = vadd.f32 1.0, %v15244_v4 }
 0x4cc   :  { %v6029_v51 = vmul.f32 %v15088_v29, %v6028_v45  ;;  %vm15266_vm0 = vcmp.lt.f32.partialorder %v6030_v37, 0.0004427343  ;;  %vm15270_vm1 = vcmp.lt.f32.partialorder %v6021_v10, 0.0004427343  ;;  %v5015_v48 = vsub.f32 0.0, %v4887_v18  ;;  %8443 = vmatprep.subr.msk.mxu1 %vm6852_vm11, %v7909_v31  ;;  %v17288_v37 = vld [vmem:[#allocation21_spill] sm:$0xff] }
 0x4cd   :  { %v6542_v39 = vadd.f32 %v6014_v49, %v17282_v47  ;;  %v15275_v49 = vadd.f32 -0.6931472, %v6667_v50  ;;  %v6005_v55 = vsel %vm15216_vm12, %v6002_v33, %v5999_v27  ;;  %v6026_v47 = vmul.f32 0.6931472, %v9786_v44  ;;  %8444 = vmatpush3.xpose.msk.msra.mxu1 %vm6852_vm11, %v17288_v37  ;;  %v15288_v50 = vpop.f32.mrf.mxu1  ;;  %v17290_v37 = vld [vmem:[#allocation15_spill] sm:$0xff] }
 0x4ce   :  { %v15281_v29 = vadd.f32 %v15210_v1, %v14938_v22  ;;  %v15285_v10 = vpop.eup %9789  ;;  %v6017_v45 = vmul.f32 0.6931472, %v9788_v24  ;;  %v6048_v18 = vand.u32 2147483647, %v15172_v61  ;;  %9799 = vpow2.f32 %v5231_v2 }
 0x4cf   :  { %17287 = vst [vmem:[#allocation36_spill] sm:$0xff] %v15275_v49  ;;  %v5018_v31 = vsub.f32 0.0, %v4890_v58  ;;  %v6670_v33 = vsel %vm4622_vm13, %v14805_v34, %v6542_v39  ;;  %vm4624_vm2 = vcmp.ne.f32.partialorder %v14876_v56, %v14876_v56  ;;  %v6020_v22 = vmul.f32 %v15101_v35, %v6019_v43  ;;  %v15326_v8 = vpop.f32.mrf.mxu1 }
 0x4d0   :  { %v6046_v44 = vadd.f32 1.0, %v6045_v3  ;;  %9801 = vlog2.f32 %v6033_v40  ;;  %v15297_v27 = vpop.eup %9791  ;;  %v17289_v7 = vmax.f32 %v14840_v17, 0.0  ;;  %vm4623_vm3 = vcmp.ne.f32.partialorder %v14886_v19, %v14886_v19 }
 0x4d1   :  { %v5229_v24 = vmul.f32 1.442695, %v5015_v48  ;;  %v6646_v34 = vsel %vm4598_vm14, %v17281_v53, %v17290_v37  ;;  %v6032_v40 = vsel %vm15266_vm0, %v6029_v51, %v6026_v47  ;;  %v6060_v35 = vadd.f32 1.0, %v15285_v10 }
 0x4d2   :  { %v6541_v2 = vadd.f32 %v6005_v55, %v17289_v7  ;;  %v4889_v39 = vand.u32 2147483647, %v15281_v29  ;;  %v15315_v43 = vadd.f32 %v15210_v1, %v14964_v16  ;;  %v15317_v3 = vadd.f32 -0.6931472, %v6670_v33 }
 0x4d3   :  { %v6023_v48 = vsel %vm15270_vm1, %v6020_v22, %v6017_v45  ;;  %vm15321_vm4 = vcmp.lt.f32.partialorder %v6048_v18, 0.0004427343  ;;  %v6036_v53 = vmul.f32 -0.5, %v15244_v4  ;;  %v5235_v51 = vmul.f32 1.442695, %v5018_v31  ;;  %v15328_v47 = vpop.eup %9793 }
 0x4d4   :  { %17291 = vst [vmem:[#allocation38_spill] sm:$0xff] %v15317_v3  ;;  %v6047_v7 = vmul.f32 %v15172_v61, %v6046_v44  ;;  %v6039_v16 = vand.u32 2147483647, %v15244_v4  ;;  %v6051_v33 = vadd.f32 1.0, %v15297_v27  ;;  %v7908_v37 = vadd.f32 -0.6931472, %v6646_v34  ;;  %v9796_v6 = vpop.eup %9795 }
 0x4d5   :  { %v6669_v45 = vsel %vm4621_vm15, %v14840_v17, %v6541_v2  ;;  %v17294_v18 = vmax.f32 %v14876_v56, 0.0  ;;  %9803 = vpow2.f32 %v5229_v24  ;;  %v15341_v22 = vadd.f32 %v15210_v1, %v15099_v13  ;;  %v15343_v61 = vpop.eup %9797  ;;  %v17296_v17 = vld [vmem:[#allocation39_spill] sm:$0xff] }
 0x4d6   :  { %v17295_v44 = vmax.f32 %v14886_v19, 0.0  ;;  %9805 = vlog2.f32 %v6060_v35  ;;  %v5017_v34 = vsub.f32 0.0, %v4889_v39  ;;  %v4892_v57 = vand.u32 2147483647, %v15315_v43  ;;  %8445 = vmatprep.subr.msk.mxu1 %vm6852_vm11, %v7908_v37 }
 0x4d7   :  { %v6544_v31 = vadd.f32 %v6032_v40, %v17294_v18  ;;  %vm4597_vm5 = vcmp.ne.f32.partialorder %v17296_v17, %v17296_v17  ;;  %v6037_v2 = vadd.f32 1.0, %v6036_v53  ;;  %v6078_v24 = vadd.f32 1.0, %v15328_v47  ;;  %v15353_v40 = vpop.f32.mrf.mxu1  ;;  %v17297_v18 = vld [vmem:[#allocation33_spill] sm:$0xff] }
 0x4d8   :  { %v6543_v58 = vadd.f32 %v6023_v48, %v17295_v44  ;;  %9807 = vpow2.f32 %v5235_v51  ;;  %8446 = vmatpush3.xpose.msk.msra.mxu1 %vm6852_vm11, %v17297_v18  ;;  %v15357_v35 = vadd.f32 -0.6931472, %v6669_v45  ;;  %v6044_v39 = vmul.f32 0.6931472, %v9796_v6 }
 0x4d9   :  { %9809 = vlog2.f32 %v6051_v33  ;;  %v15361_v48 = vadd.f32 %v15210_v1, %v14995_v32  ;;  %v6672_v53 = vsel %vm4624_vm2, %v14876_v56, %v6544_v31  ;;  %v6063_v51 = vmul.f32 -0.5, %v15285_v10  ;;  %v15387_v14 = vpop.f32.mrf.mxu1 }
 0x4da   :  { %17298 = vst [vmem:[#allocation21_spill] sm:$0xff] %v15357_v35  ;;  %v6069_v37 = vadd.f32 1.0, %v15343_v61  ;;  %v4896_v44 = vand.u32 2147483647, %v15341_v22  ;;  %v6671_v33 = vsel %vm4623_vm3, %v14886_v19, %v6543_v58  ;;  %v5233_v6 = vmul.f32 1.442695, %v5017_v34 }
 0x4db   :  { %v5020_v45 = vsub.f32 0.0, %v4892_v57  ;;  %v15376_v32 = vadd.f32 %v15210_v1, %v15031_v60  ;;  %v15379_v18 = vmul.f32 %v15244_v4, %v6037_v2  ;;  %vm15381_vm6 = vcmp.lt.f32.partialorder %v6039_v16, 0.0004427343  ;;  %v15389_v19 = vpop.eup %9799  ;;  %v15408_v23 = vpop.f32.mrf.mxu1 }
 0x4dc   :  { %9811 = vlog2.f32 %v6078_v24  ;;  %v15391_v57 = vadd.f32 -0.6931472, %v6672_v53  ;;  %v6050_v60 = vsel %vm15321_vm4, %v6047_v7, %v6044_v39  ;;  %v6066_v4 = vand.u32 2147483647, %v15285_v10 }
 0x4dd   :  { %v4891_v58 = vand.u32 2147483647, %v15361_v48  ;;  %v9802_v16 = vpop.eup %9801  ;;  %v15397_v34 = vadd.f32 -0.6931472, %v6671_v33  ;;  %v6064_v2 = vadd.f32 1.0, %v6063_v51  ;;  %9813 = vlog2.f32 %v6069_v37  ;;  %v15437_v26 = vpop.f32.mrf.mxu1 }
 0x4de   :  { %v5024_v24 = vsub.f32 0.0, %v4896_v44  ;;  %v6054_v13 = vmul.f32 -0.5, %v15297_v27  ;;  %9815 = vpow2.f32 %v5233_v6  ;;  %v5239_v31 = vmul.f32 1.442695, %v5020_v45  ;;  %v17303_v6 = vld [vmem:[#allocation9_spill] sm:$0xff]  ;;  %v17304_v45 = vld [vmem:[#allocation34_spill] sm:$0xff] }
 0x4df   :  { %v4894_v53 = vand.u32 2147483647, %v15376_v32  ;;  %v17301_v63 = vmax.f32 %v14944_v12, 0.0  ;;  %v6057_v7 = vand.u32 2147483647, %v15297_v27  ;;  %v6081_v39 = vmul.f32 -0.5, %v15328_v47 }
 0x4e0   :  { %v6096_v33 = vadd.f32 1.0, %v15389_v19  ;;  %v6035_v51 = vmul.f32 0.6931472, %v9802_v16  ;;  %v5019_v37 = vsub.f32 0.0, %v4891_v58  ;;  %v15412_v44 = vadd.f32 %v15210_v1, %v15129_v36 }
 0x4e1   :  { %v15403_v55 = vadd.f32 %v6050_v60, %v17301_v63  ;;  %v6645_v63 = vsel %vm4597_vm5, %v17296_v17, %v17303_v6  ;;  %vm4596_vm7 = vcmp.ne.f32.partialorder %v17304_v45, %v17304_v45  ;;  %v15422_v60 = vmul.f32 %v15285_v10, %v6064_v2 }
 0x4e2   :  { %v15427_v58 = vadd.f32 %v15210_v1, %v15066_v52  ;;  %v5247_v36 = vmul.f32 1.442695, %v5024_v24  ;;  %v15429_v16 = vpop.eup %9803  ;;  %vm15431_vm8 = vcmp.lt.f32.partialorder %v6066_v4, 0.0004427343  ;;  %v6055_v17 = vadd.f32 1.0, %v6054_v13 }
 0x4e3   :  { %17302 = vst [vmem:[#allocation15_spill] sm:$0xff] %v15403_v55  ;;  %v6072_v55 = vmul.f32 -0.5, %v15343_v61  ;;  %v6084_v6 = vand.u32 2147483647, %v15328_v47  ;;  %9817 = vpow2.f32 %v5239_v31  ;;  %v5022_v41 = vsub.f32 0.0, %v4894_v53  ;;  %v9806_v10 = vpop.eup %9805 }
 0x4e4   :  { %v6082_v2 = vadd.f32 1.0, %v6081_v39  ;;  %9819 = vlog2.f32 %v6096_v33  ;;  %v7907_v52 = vadd.f32 -0.6931472, %v6645_v63  ;;  %v6041_v4 = vsel %vm15381_vm6, %v15379_v18, %v6035_v51  ;;  %v17311_v51 = vld [vmem:[#allocation35_spill] sm:$0xff] }
 0x4e5   :  { %v15439_v24 = vpop.eup %9807  ;;  %v6075_v13 = vand.u32 2147483647, %v15343_v61  ;;  %v5237_v21 = vmul.f32 1.442695, %v5019_v37  ;;  %v4895_v31 = vand.u32 2147483647, %v15412_v44  ;;  %9821 = vpow2.f32 %v5247_v36 }
 0x4e6   :  { %v9810_v53 = vpop.eup %9809  ;;  %v6073_v49 = vadd.f32 1.0, %v6072_v55  ;;  %v6087_v39 = vadd.f32 1.0, %v15429_v16  ;;  %v4893_v33 = vand.u32 2147483647, %v15427_v58  ;;  %8447 = vmatprep.subr.msk.mxu1 %vm6852_vm11, %v7907_v52  ;;  %v6056_v63 = vmul.f32 %v15297_v27, %v6055_v17  ;;  %v17326_v18 = vld [vmem:[#allocation31_spill] sm:$0xff] }
 0x4e7   :  { %vm15450_vm9 = vcmp.lt.f32.partialorder %v6057_v7, 0.0004427343  ;;  %vm15454_vm10 = vcmp.lt.f32.partialorder %v6084_v6, 0.0004427343  ;;  %v5243_v56 = vmul.f32 1.442695, %v5022_v41  ;;  %8448 = vmatpush3.xpose.msk.msra.mxu1 %vm6852_vm11, %v17311_v51  ;;  %v6083_v52 = vmul.f32 %v15328_v47, %v6082_v2  ;;  %v15466_v7 = vpop.f32.mrf.mxu1 }
 0x4e8   :  { %v17312_v55 = vmax.f32 %v15003_v20, 0.0  ;;  %v6062_v36 = vmul.f32 0.6931472, %v9806_v10  ;;  %v6114_v27 = vadd.f32 1.0, %v15439_v24  ;;  %v6053_v6 = vmul.f32 0.6931472, %v9810_v53 }
 0x4e9   :  { %v9812_v17 = vpop.eup %9811  ;;  %vm15468_vm12 = vcmp.lt.f32.partialorder %v6075_v13, 0.0004427343  ;;  %v6099_v41 = vmul.f32 -0.5, %v15389_v19  ;;  %9823 = vpow2.f32 %v5237_v21  ;;  %v5023_v51 = vsub.f32 0.0, %v4895_v31  ;;  %v17316_v13 = vld [vmem:[#allocation14_spill] sm:$0xff] }
 0x4ea   :  { %v15462_v37 = vadd.f32 %v6041_v4, %v17312_v55  ;;  %v6074_v4 = vmul.f32 %v15343_v61, %v6073_v49  ;;  %9825 = vlog2.f32 %v6087_v39  ;;  %v5021_v47 = vsub.f32 0.0, %v4893_v33  ;;  %v9814_v2 = vpop.eup %9813  ;;  %v15488_v39 = vpop.f32.mrf.mxu1  ;;  %v17317_v33 = vld [vmem:[#allocation37_spill] sm:$0xff] }
 0x4eb   :  { %v6090_v55 = vmul.f32 -0.5, %v15429_v16  ;;  %9827 = vpow2.f32 %v5243_v56  ;;  %v6644_v53 = vsel %vm4596_vm7, %v17304_v45, %v17316_v13  ;;  %v15482_v21 = vpop.eup %9815  ;;  %v6068_v49 = vsel %vm15431_vm8, %v15422_v60, %v6062_v36 }
 0x4ec   :  { %17313 = vst [vmem:[#allocation39_spill] sm:$0xff] %v15462_v37  ;;  %v6080_v61 = vmul.f32 0.6931472, %v9812_v17  ;;  %9829 = vlog2.f32 %v6114_v27  ;;  %v6117_v31 = vmul.f32 -0.5, %v15439_v24  ;;  %vm4595_vm13 = vcmp.ne.f32.partialorder %v17317_v33, %v17317_v33 }
 0x4ed   :  { %v6059_v56 = vsel %vm15450_vm9, %v6056_v63, %v6053_v6  ;;  %v6100_v37 = vadd.f32 1.0, %v6099_v41  ;;  %v6102_v45 = vand.u32 2147483647, %v15389_v19  ;;  %v5245_v13 = vmul.f32 1.442695, %v5023_v51 }
 0x4ee   :  { %v6071_v10 = vmul.f32 0.6931472, %v9814_v2  ;;  %v5241_v20 = vmul.f32 1.442695, %v5021_v47  ;;  %v15497_v12 = vadd.f32 %v15210_v1, %v15156_v28  ;;  %v7906_v60 = vadd.f32 -0.6931472, %v6644_v53  ;;  %v15517_v2 = vpop.f32.mrf.mxu1 }
 0x4ef   :  { %v17319_v36 = vmax.f32 %v15049_v59, 0.0  ;;  %v6091_v17 = vadd.f32 1.0, %v6090_v55  ;;  %v6108_v35 = vmul.f32 -0.5, %v15482_v21  ;;  %v17321_v6 = vmax.f32 %v15075_v38, 0.0 }
 0x4f0   :  { %17318 = vst [vmem:[#allocation33_spill] sm:$0xff] %v15497_v12  ;;  %v15505_v63 = vpop.eup %9817  ;;  %v6086_v28 = vsel %vm15454_vm10, %v6083_v52, %v6080_v61  ;;  %v6118_v51 = vadd.f32 1.0, %v6117_v31  ;;  %v15515_v47 = vadd.f32 %v15210_v1, %v15231_v11  ;;  %8449 = vmatprep.subr.msk.mxu1 %vm6852_vm11, %v7906_v60  ;;  %v6101_v53 = vmul.f32 %v15389_v19, %v6100_v37 }
 0x4f1   :  { %v15501_v27 = vadd.f32 %v6068_v49, %v17319_v36  ;;  %v15509_v41 = vadd.f32 %v6059_v56, %v17321_v6  ;;  %v9820_v55 = vpop.eup %9819  ;;  %vm15521_vm14 = vcmp.lt.f32.partialorder %v6102_v45, 0.0004427343  ;;  %v6093_v56 = vand.u32 2147483647, %v15429_v16  ;;  %8450 = vmatpush3.xpose.msk.msra.mxu1 %vm6852_vm11, %v17326_v18  ;;  %v17329_v6 = vld [vmem:[#allocation29_spill] sm:$0xff] }
 0x4f2   :  { %17323 = vst [vmem:[#allocation35_spill] sm:$0xff] %v15515_v47  ;;  %9831 = vpow2.f32 %v5245_v13  ;;  %v6077_v11 = vsel %vm15468_vm12, %v6074_v4, %v6071_v10  ;;  %v6120_v52 = vand.u32 2147483647, %v15439_v24  ;;  %v4898_v61 = vand.u32 2147483647, %v15497_v12  ;;  %v15532_v31 = vpop.eup %9821  ;;  %v15547_v10 = vpop.f32.mrf.mxu1  ;;  %v17334_v12 = vld [vmem:[#allocation8_spill] sm:$0xff] }
 0x4f3   :  { %17320 = vst [vmem:[#allocation9_spill] sm:$0xff] %v15501_v27  ;;  %17322 = vst [vmem:[#allocation34_spill] sm:$0xff] %v15509_v41  ;;  %9833 = vpow2.f32 %v5241_v20  ;;  %v17327_v19 = vmax.f32 %v15097_v5, 0.0  ;;  %v15539_v45 = vmul.f32 %v15429_v16, %v6091_v17  ;;  %v6105_v13 = vadd.f32 1.0, %v15482_v21 }
 0x4f4   :  { %v6109_v60 = vadd.f32 1.0, %v6108_v35  ;;  %v6098_v36 = vmul.f32 0.6931472, %v9820_v55  ;;  %v15543_v42 = vmul.f32 %v15439_v24, %v6118_v51  ;;  %v6132_v20 = vadd.f32 1.0, %v15505_v63 }
 0x4f5   :  { %v15536_v37 = vadd.f32 %v6086_v28, %v17327_v19  ;;  %v4900_v4 = vand.u32 2147483647, %v15515_v47  ;;  %vm4594_vm15 = vcmp.ne.f32.partialorder %v17329_v6, %v17329_v6  ;;  %v17330_v28 = vmax.f32 %v15121_v54, 0.0 }
 0x4f6   :  { %v6135_v17 = vmul.f32 -0.5, %v15505_v63  ;;  %v15558_v51 = vpop.eup %9823  ;;  %vm15560_vm0 = vcmp.lt.f32.partialorder %v6093_v56, 0.0004427343  ;;  %v6168_v19 = vadd.f32 1.0, %v15532_v31  ;;  %v5026_v15 = vsub.f32 0.0, %v4898_v61 }
 0x4f7   :  { %17328 = vst [vmem:[#allocation14_spill] sm:$0xff] %v15536_v37  ;;  %v15553_v16 = vadd.f32 %v6077_v11, %v17330_v28  ;;  %v6643_v11 = vsel %vm4595_vm13, %v17317_v33, %v17334_v12  ;;  %v9826_v28 = vpop.eup %9825  ;;  %vm15571_vm1 = vcmp.lt.f32.partialorder %v6120_v52, 0.0004427343  ;;  %9835 = vlog2.f32 %v6105_v13  ;;  %v15591_v13 = vpop.f32.mrf.mxu1 }
 0x4f8   :  { %v15576_v56 = vmul.f32 %v15482_v21, %v6109_v60  ;;  %v15580_v24 = vadd.f32 %v15210_v1, %v15199_v9  ;;  %v15584_v61 = vadd.f32 %v15210_v1, %v15353_v40  ;;  %v15586_v18 = vpop.eup %9827  ;;  %v6104_v33 = vsel %vm15521_vm14, %v6101_v53, %v6098_v36 }
 0x4f9   :  { %17331 = vst [vmem:[#allocation37_spill] sm:$0xff] %v15553_v16  ;;  %9837 = vlog2.f32 %v6132_v20  ;;  %v5028_v52 = vsub.f32 0.0, %v4900_v4  ;;  %v9830_v60 = vpop.eup %9829  ;;  %v6136_v41 = vadd.f32 1.0, %v6135_v17  ;;  %v6123_v9 = vadd.f32 1.0, %v15558_v51  ;;  %v17342_v16 = vld [vmem:[#allocation20_spill] sm:$0xff] }
 0x4fa   :  { %17337 = vst [vmem:[#allocation31_spill] sm:$0xff] %v15580_v24  ;;  %v15596_v27 = vadd.f32 %v15210_v1, %v15408_v23  ;;  %v7905_v40 = vadd.f32 -0.6931472, %v6643_v11  ;;  %9839 = vlog2.f32 %v6168_v19  ;;  %v5251_v49 = vmul.f32 1.442695, %v5026_v15 }
 0x4fb   :  { %v15601_v53 = vadd.f32 %v15210_v1, %v15288_v50  ;;  %v17339_v36 = vmax.f32 %v15154_v25, 0.0  ;;  %v6089_v4 = vmul.f32 0.6931472, %v9826_v28  ;;  %v6150_v17 = vadd.f32 1.0, %v15586_v18  ;;  %v15615_v50 = vpop.f32.mrf.mxu1 }
 0x4fc   :  { %v4904_v12 = vand.u32 2147483647, %v15584_v61  ;;  %8451 = vmatprep.subr.msk.mxu1 %vm6852_vm11, %v7905_v40  ;;  %v6116_v23 = vmul.f32 0.6931472, %v9830_v60  ;;  %v4897_v19 = vand.u32 2147483647, %v15580_v24  ;;  %v15613_v15 = vadd.f32 %v15210_v1, %v15326_v8 }
 0x4fd   :  { %17338 = vst [vmem:[#allocation29_spill] sm:$0xff] %v15601_v53  ;;  %v15605_v20 = vadd.f32 %v6104_v33, %v17339_v36  ;;  %v5255_v11 = vmul.f32 1.442695, %v5028_v52  ;;  %8452 = vmatpush3.xpose.msk.msra.mxu1 %vm6852_vm11, %v17342_v16  ;;  %v15620_v28 = vmul.f32 %v15505_v63, %v6136_v41  ;;  %9841 = vlog2.f32 %v6123_v9  ;;  %v17344_v40 = vld [vmem:[#allocation32_spill] sm:$0xff]  ;;  %v15651_v59 = vpop.f32.mrf.mxu1 }
 0x4fe   :  { %17341 = vst [vmem:[#allocation46_spill] sm:$0xff] %v15613_v15  ;;  %v15624_v33 = vadd.f32 %v15210_v1, %v15257_v46  ;;  %v4906_v60 = vand.u32 2147483647, %v15596_v27  ;;  %vm4593_vm2 = vcmp.ne.f32.partialorder %v17344_v40, %v17344_v40  ;;  %9843 = vpow2.f32 %v5251_v49  ;;  %v17346_v41 = vld [vmem:[#allocation12_spill] sm:$0xff] }
 0x4ff   :  { %17340 = vst [vmem:[#allocation8_spill] sm:$0xff] %v15605_v20  ;;  %v15627_v52 = vpop.eup %9831  ;;  %v4902_v8 = vand.u32 2147483647, %v15601_v53  ;;  %v15634_v16 = vadd.f32 %v15210_v1, %v15387_v14  ;;  %v6642_v46 = vsel %vm4594_vm15, %v17329_v6, %v17346_v41  ;;  %v6095_v36 = vsel %vm15560_vm0, %v15539_v45, %v6089_v4  ;;  %17347 = vst [vmem:[#allocation12_spill] sm:$0xff] %v15651_v59 }
 0x500   :  { %17343 = vst [vmem:[#allocation20_spill] sm:$0xff] %v15624_v33  ;;  %v15641_v9 = vpop.eup %9833  ;;  %v6126_v49 = vmul.f32 -0.5, %v15558_v51  ;;  %9845 = vlog2.f32 %v6150_v17  ;;  %v5032_v24 = vsub.f32 0.0, %v4904_v12  ;;  %v6122_v14 = vsel %vm15571_vm1, %v15543_v42, %v6116_v23 }
 0x501   :  { %17345 = vst [vmem:[#allocation32_spill] sm:$0xff] %v15634_v16  ;;  %v5025_v38 = vsub.f32 0.0, %v4897_v19  ;;  %9847 = vpow2.f32 %v5255_v11  ;;  %v4901_v37 = vand.u32 2147483647, %v15613_v15  ;;  %v6159_v6 = vadd.f32 1.0, %v15627_v52  ;;  %v17426_v15 = vld [vmem:[#allocation25_spill] sm:$0xff] }
 0x502   :  { %v4899_v41 = vand.u32 2147483647, %v15624_v33  ;;  %v5034_v55 = vsub.f32 0.0, %v4906_v60  ;;  %v7904_v45 = vadd.f32 -0.6931472, %v6642_v46  ;;  %v6141_v12 = vadd.f32 1.0, %v15641_v9 }
 0x503   :  { %v6129_v4 = vand.u32 2147483647, %v15558_v51  ;;  %v5030_v17 = vsub.f32 0.0, %v4902_v8  ;;  %v4903_v35 = vand.u32 2147483647, %v15634_v16  ;;  %v17348_v42 = vmax.f32 %v15214_v30, 0.0  ;;  %v15675_v30 = vpop.f32.mrf.mxu1 }
 0x504   :  { %v17350_v19 = vmax.f32 %v15229_v62, 0.0  ;;  %v17352_v54 = vand.u32 2147483647, %v15482_v21  ;;  %v6127_v46 = vadd.f32 1.0, %v6126_v49  ;;  %v5263_v20 = vmul.f32 1.442695, %v5032_v24  ;;  %8453 = vmatprep.subr.msk.mxu1 %vm6852_vm11, %v7904_v45  ;;  %v9836_v8 = vpop.eup %9835 }
 0x505   :  { %v15660_v23 = vadd.f32 %v6095_v36, %v17348_v42  ;;  %v6153_v5 = vmul.f32 -0.5, %v15586_v18  ;;  %v6171_v36 = vmul.f32 -0.5, %v15532_v31  ;;  %v5249_v42 = vmul.f32 1.442695, %v5025_v38  ;;  %17355 = vst [vmem:[#allocation49_spill] sm:$0xff] %v15675_v30  ;;  %v15697_v62 = vpop.f32.mrf.mxu1 }
 0x506   :  { %v15664_v11 = vadd.f32 %v6122_v14, %v17350_v19  ;;  %vm15668_vm3 = vcmp.lt.f32.partialorder %v17352_v54, 0.0004427343  ;;  %v17356_v14 = vld [vmem:[#allocation28_spill] sm:$0xff]  ;;  %v9838_v54 = vpop.eup %9837  ;;  %v17357_v21 = vand.u32 2147483647, %v15505_v63  ;;  %9849 = vlog2.f32 %v6159_v6 }
 0x507   :  { %17349 = vst [vmem:[#allocation47_spill] sm:$0xff] %v15660_v23  ;;  %v5029_v23 = vsub.f32 0.0, %v4901_v37  ;;  %8454 = vmatpush3.xpose.msk.msra.mxu1 %vm6852_vm11, %v17356_v14  ;;  %v5027_v24 = vsub.f32 0.0, %v4899_v41  ;;  %v5267_v45 = vmul.f32 1.442695, %v5034_v55  ;;  %v15687_v19 = vadd.f32 %v15210_v1, %v15437_v26  ;;  %v9840_v14 = vpop.eup %9839 }
 0x508   :  { %17351 = vst [vmem:[#allocation48_spill] sm:$0xff] %v15664_v11  ;;  %vm15681_vm4 = vcmp.lt.f32.partialorder %v17357_v21, 0.0004427343  ;;  %v6156_v38 = vand.u32 2147483647, %v15586_v18  ;;  %9851 = vlog2.f32 %v6141_v12  ;;  %v5031_v11 = vsub.f32 0.0, %v4903_v35 }
 0x509   :  { %v5259_v37 = vmul.f32 1.442695, %v5030_v17  ;;  %v6107_v25 = vmul.f32 0.6931472, %v9836_v8  ;;  %v6144_v63 = vmul.f32 -0.5, %v15641_v9  ;;  %9853 = vpow2.f32 %v5263_v20  ;;  %v17360_v21 = vld [vmem:[#allocation27_spill] sm:$0xff] }
 0x50a   :  { %v6641_v6 = vsel %vm4593_vm2, %v17344_v40, %v17360_v21  ;;  %v6172_v41 = vadd.f32 1.0, %v6171_v36  ;;  %v6174_v26 = vand.u32 2147483647, %v15532_v31  ;;  %9855 = vpow2.f32 %v5249_v42  ;;  %v9842_v8 = vpop.eup %9841 }
 0x50b   :  { %v5257_v55 = vmul.f32 1.442695, %v5029_v23  ;;  %v6134_v12 = vmul.f32 0.6931472, %v9838_v54  ;;  %v5253_v17 = vmul.f32 1.442695, %v5027_v24  ;;  %9857 = vpow2.f32 %v5267_v45  ;;  %v15700_v3 = vpop.eup %9843 }
 0x50c   :  { %v4905_v35 = vand.u32 2147483647, %v15687_v19  ;;  %v6170_v20 = vmul.f32 0.6931472, %v9840_v14  ;;  %9859 = vpow2.f32 %v5259_v37  ;;  %v5261_v30 = vmul.f32 1.442695, %v5031_v11 }
 0x50d   :  { %v7903_v59 = vadd.f32 -0.6931472, %v6641_v6  ;;  %17361 = vst [vmem:[#allocation28_spill] sm:$0xff] %v15700_v3  ;;  %v6128_v40 = vmul.f32 %v15558_v51, %v6127_v46  ;;  %vm15703_vm5 = vcmp.lt.f32.partialorder %v6129_v4, 0.0004427343  ;;  %v6154_v23 = vadd.f32 1.0, %v6153_v5  ;;  %v9846_v54 = vpop.eup %9845  ;;  %v15716_v51 = vpop.f32.mrf.mxu1 }
 0x50e   :  { %v6113_v24 = vsel %vm15668_vm3, %v15576_v56, %v6107_v25  ;;  %v6147_v45 = vand.u32 2147483647, %v15641_v9  ;;  %vm4640_vm6 = vcmp.ne.f32.partialorder %v15341_v22, %v15341_v22  ;;  %v6173_v11 = vmul.f32 %v15532_v31, %v6172_v41  ;;  %v15718_v5 = vpop.eup %9847  ;;  %v17366_v56 = vld [vmem:[#allocation30_spill] sm:$0xff] }
 0x50f   :  { %9861 = vpow2.f32 %v5257_v55  ;;  %8455 = vmatprep.subr.msk.mxu1 %vm6852_vm11, %v7903_v59  ;;  %v6145_v4 = vadd.f32 1.0, %v6144_v63  ;;  %vm15720_vm7 = vcmp.lt.f32.partialorder %v6174_v26, 0.0004427343  ;;  %v5033_v25 = vsub.f32 0.0, %v4905_v35  ;;  %v15747_v26 = vpop.f32.mrf.mxu1 }
 0x510   :  { %9863 = vpow2.f32 %v5253_v17  ;;  %8456 = vmatpush3.xpose.msk.msra.mxu1 %vm6852_vm11, %v17366_v56  ;;  %v6140_v31 = vsel %vm15681_vm4, %v15620_v28, %v6134_v12  ;;  %vm15729_vm8 = vcmp.lt.f32.partialorder %v6156_v38, 0.0004427343  ;;  %v6176_v60 = vsel %vm15720_vm7, %v6173_v11, %v6170_v20 }
 0x511   :  { %9865 = vpow2.f32 %v5261_v30  ;;  %v6125_v37 = vmul.f32 0.6931472, %v9842_v8  ;;  %v6162_v14 = vmul.f32 -0.5, %v15627_v52  ;;  %v6186_v63 = vadd.f32 1.0, %v15700_v3  ;;  %v15782_v56 = vpop.f32.mrf.mxu1 }
 0x512   :  { %v15739_v21 = vadd.f32 %v15210_v1, %v15466_v7  ;;  %v17369_v49 = vmax.f32 %v15281_v29, 0.0  ;;  %v6152_v38 = vmul.f32 0.6931472, %v9846_v54  ;;  %v6155_v6 = vmul.f32 %v15586_v18, %v6154_v23 }
 0x513   :  { %v6204_v41 = vadd.f32 1.0, %v15718_v5  ;;  %8458 = vmatmul.mubr.msk.f32.vlgmr.msra.gmra.mxu1 %vm6852_vm11, %v15161_v0  ;;  %v15752_v30 = vmul.f32 %v15641_v9, %v6145_v4  ;;  %vm15754_vm9 = vcmp.lt.f32.partialorder %v6147_v45, 0.0004427343  ;;  %v17372_v55 = vmax.f32 %v15341_v22, 0.0  ;;  %v9850_v35 = vpop.eup %9849 }
 0x514   :  { %v15743_v28 = vadd.f32 %v6113_v24, %v17369_v49  ;;  %v5265_v17 = vmul.f32 1.442695, %v5033_v25  ;;  %v15762_v18 = vadd.f32 %v15210_v1, %v15488_v39  ;;  %8525 = vmatprep.mubr.msk.f32.mxu1 %vm6852_vm11, %v15161_v0  ;;  %v17373_v8 = vmax.f32 %v15315_v43, 0.0 }
 0x515   :  { %v6560_v12 = vadd.f32 %v6176_v60, %v17372_v55  ;;  %v6165_v20 = vand.u32 2147483647, %v15627_v52  ;;  %v6189_v23 = vmul.f32 -0.5, %v15700_v3  ;;  %v9852_v24 = vpop.eup %9851  ;;  %v6131_v45 = vsel %vm15703_vm5, %v6128_v40, %v6125_v37 }
 0x516   :  { %v15768_v9 = vadd.f32 %v6140_v31, %v17373_v8  ;;  %v6163_v39 = vadd.f32 1.0, %v6162_v14  ;;  %9867 = vlog2.f32 %v6186_v63  ;;  %v4908_v11 = vand.u32 2147483647, %v15739_v21  ;;  %v15776_v0 = vpop.eup %9853 }
 0x517   :  { %v6158_v4 = vsel %vm15729_vm8, %v6155_v6, %v6152_v38  ;;  %9869 = vlog2.f32 %v6204_v41  ;;  %v15784_v31 = vpop.eup %9855  ;;  %v6161_v36 = vmul.f32 0.6931472, %v9850_v35  ;;  %v4907_v40 = vand.u32 2147483647, %v15762_v18 }
 0x518   :  { %17374 = vst [vmem:[#allocation27_spill] sm:$0xff] %v15784_v31  ;;  %9871 = vpow2.f32 %v5265_v17  ;;  %v6688_v60 = vsel %vm4640_vm6, %v15341_v22, %v6560_v12  ;;  %v15791_v59 = vpop.eup %9857  ;;  %v17375_v37 = vmax.f32 %v15361_v48, 0.0  ;;  %v6143_v63 = vmul.f32 0.6931472, %v9852_v24 }
 0x519   :  { %v6190_v49 = vadd.f32 1.0, %v6189_v23  ;;  %v7950_v38 = vadd.f32 -0.6931472, %v6688_v60  ;;  %v15797_v6 = vpop.eup %9859  ;;  %vm4639_vm10 = vcmp.ne.f32.partialorder %v15412_v44, %v15412_v44  ;;  %v6164_v41 = vmul.f32 %v15627_v52, %v6163_v39  ;;  %v15815_v52 = vpop.f32.mrf.mxu1 }
 0x51a   :  { %v15795_v14 = vadd.f32 %v6131_v45, %v17375_v37  ;;  %vm15802_vm12 = vcmp.lt.f32.partialorder %v6165_v20, 0.0004427343  ;;  %v6240_v22 = vadd.f32 1.0, %v15776_v0  ;;  %v5036_v12 = vsub.f32 0.0, %v4908_v11 }
 0x51b   :  { %v17378_v17 = vmax.f32 %v15376_v32, 0.0  ;;  %v6177_v23 = vadd.f32 1.0, %v15784_v31  ;;  %v6207_v24 = vmul.f32 -0.5, %v15718_v5  ;;  %8459 = vmatprep.subr.msk.mxu0 %vm6852_vm11, %v7950_v38  ;;  %v6167_v45 = vsel %vm15802_vm12, %v6164_v41, %v6161_v36  ;;  %v15847_v54 = vpop.f32.mrf.mxu1 }
 0x51c   :  { %v15817_v20 = vpop.eup %9861  ;;  %v6258_v11 = vadd.f32 1.0, %v15791_v59  ;;  %8460 = vmatpush3.xpose.msk.msra.mxu0 %vm6852_vm11, %v15391_v57  ;;  %v6149_v37 = vsel %vm15754_vm9, %v15752_v30, %v6143_v63  ;;  %v15831_v38 = vmul.f32 %v15700_v3, %v6190_v49  ;;  %v6222_v55 = vadd.f32 1.0, %v15797_v6 }
 0x51d   :  { %v15809_v35 = vadd.f32 %v6158_v4, %v17378_v17  ;;  %17379 = vst [vmem:[#allocation30_spill] sm:$0xff] %v15817_v20  ;;  %v5035_v4 = vsub.f32 0.0, %v4907_v40  ;;  %v15825_v60 = vpop.eup %9863  ;;  %v15836_v36 = vadd.f32 %v15210_v1, %v15517_v2  ;;  %v15841_v40 = vmul.f32 -0.5, %v15784_v31 }
 0x51e   :  { %17380 = vst [vmem:[#allocation50_spill] sm:$0xff] %v15825_v60  ;;  %17381 = vst [vmem:[#allocation51_spill] sm:$0xff] %v15831_v38  ;;  %v15838_v41 = vpop.eup %9865  ;;  %v6210_v57 = vand.u32 2147483647, %v15718_v5  ;;  %9873 = vlog2.f32 %v6240_v22  ;;  %v5271_v17 = vmul.f32 1.442695, %v5036_v12  ;;  %v15855_v8 = vadd.f32 %v15210_v1, %v15591_v13 }
 0x51f   :  { %17382 = vst [vmem:[#allocation52_spill] sm:$0xff] %v15841_v40  ;;  %v17383_v30 = vmax.f32 %v15412_v44, 0.0  ;;  %9875 = vlog2.f32 %v6177_v23  ;;  %v6208_v63 = vadd.f32 1.0, %v6207_v24  ;;  %v6213_v49 = vadd.f32 1.0, %v15817_v20 }
 0x520   :  { %v17384_v2 = vmax.f32 %v15427_v58, 0.0  ;;  %9877 = vlog2.f32 %v6258_v11  ;;  %v5269_v25 = vmul.f32 1.442695, %v5035_v4  ;;  %v6198_v22 = vmul.f32 -0.5, %v15825_v60 }
 0x521   :  { %v6559_v7 = vadd.f32 %v6167_v45, %v17383_v30  ;;  %9879 = vlog2.f32 %v6222_v55  ;;  %v6231_v12 = vadd.f32 1.0, %v15838_v41  ;;  %v4910_v23 = vand.u32 2147483647, %v15836_v36  ;;  %v15880_v30 = vpop.f32.mrf.mxu1 }
 0x522   :  { %v15851_v42 = vadd.f32 %v6149_v37, %v17384_v2  ;;  %vm15860_vm13 = vcmp.lt.f32.partialorder %v6210_v57, 0.0004427343  ;;  %v17385_v24 = vmov 0  ;;  %v6195_v45 = vadd.f32 1.0, %v15825_v60 }
 0x523   :  { %v17386_v24 = vsel %vm15860_vm13, 4294967295, %v17385_v24  ;;  %v6225_v11 = vmul.f32 -0.5, %v15797_v6  ;;  %9881 = vpow2.f32 %v5271_v17  ;;  %v9868_v13 = vpop.eup %9867  ;;  %vm4638_vm14 = vcmp.ne.f32.partialorder %v15376_v32, %v15376_v32 }
 0x524   :  { %17387 = vst [vmem:[#allocation53_spill] sm:$0xff] %v17386_v24  ;;  %v15870_v37 = vmul.f32 %v15718_v5, %v6208_v63  ;;  %9883 = vlog2.f32 %v6213_v49  ;;  %v15874_v55 = vadd.f32 %v15210_v1, %v15615_v50  ;;  %v6687_v57 = vsel %vm4639_vm10, %v15412_v44, %v6559_v7  ;;  %v9870_v17 = vpop.eup %9869 }
 0x525   :  { %9885 = vpow2.f32 %v5269_v25  ;;  %v4912_v46 = vand.u32 2147483647, %v15855_v8  ;;  %v7949_v5 = vadd.f32 -0.6931472, %v6687_v57  ;;  %v15884_v63 = vpop.eup %9871  ;;  %v6199_v49 = vadd.f32 1.0, %v6198_v22 }
 0x526   :  { %17388 = vst [vmem:[#allocation54_spill] sm:$0xff] %v15870_v37  ;;  %9887 = vlog2.f32 %v6231_v12  ;;  %v5038_v4 = vsub.f32 0.0, %v4910_v23  ;;  %v15887_v39 = vmul.f32 0.6931472, %v9868_v13  ;;  %v6226_v44 = vadd.f32 1.0, %v6225_v11  ;;  %v15898_v12 = vpop.f32.mrf.mxu1 }
 0x527   :  { %9889 = vlog2.f32 %v6195_v45  ;;  %v6216_v7 = vmul.f32 -0.5, %v15817_v20  ;;  %8461 = vmatprep.subr.msk.mxu0 %vm6852_vm11, %v7949_v5  ;;  %v15891_v2 = vmul.f32 0.6931472, %v9870_v17  ;;  %v6243_v25 = vmul.f32 -0.5, %v15776_v0 }
 0x528   :  { %17389 = vst [vmem:[#allocation55_spill] sm:$0xff] %v15887_v39  ;;  %v4911_v22 = vand.u32 2147483647, %v15874_v55  ;;  %8462 = vmatpush3.xpose.msk.msra.mxu0 %vm6852_vm11, %v15397_v34  ;;  %v6228_v23 = vand.u32 2147483647, %v15797_v6  ;;  %v6249_v45 = vadd.f32 1.0, %v15884_v63  ;;  %v15904_v11 = vadd.f32 %v15210_v1, %v15547_v10 }
 0x529   :  { %17390 = vst [vmem:[#allocation56_spill] sm:$0xff] %v15891_v2  ;;  %v5040_v13 = vsub.f32 0.0, %v4912_v46  ;;  %v15907_v17 = vmul.f32 %v15825_v60, %v6199_v49  ;;  %v6246_v5 = vand.u32 2147483647, %v15776_v0  ;;  %v6234_v50 = vmul.f32 -0.5, %v15838_v41 }
 0x52a   :  { %v5275_v57 = vmul.f32 1.442695, %v5038_v4  ;;  %v15912_v34 = vmul.f32 %v15797_v6, %v6226_v44  ;;  %v6217_v33 = vadd.f32 1.0, %v6216_v7  ;;  %v6261_v39 = vmul.f32 -0.5, %v15791_v59  ;;  %v15923_v6 = vpop.f32.mrf.mxu1 }
 0x52b   :  { %17391 = vst [vmem:[#allocation57_spill] sm:$0xff] %v15907_v17  ;;  %v9874_v31 = vpop.eup %9873  ;;  %vm4637_vm15 = vcmp.ne.f32.partialorder %v15427_v58, %v15427_v58  ;;  %v6244_v10 = vadd.f32 1.0, %v6243_v25  ;;  %v5039_v4 = vsub.f32 0.0, %v4911_v22  ;;  %vm15927_vm0 = vcmp.lt.f32.partialorder %v6228_v23, 0.0004427343 }
 0x52c   :  { %17392 = vst [vmem:[#allocation58_spill] sm:$0xff] %v15912_v34  ;;  %v15925_v49 = vpop.eup %9875  ;;  %v17394_v44 = vmov 0  ;;  %9891 = vlog2.f32 %v6249_v45  ;;  %v4909_v7 = vand.u32 2147483647, %v15904_v11  ;;  %v5279_v38 = vmul.f32 1.442695, %v5040_v13 }
 0x52d   :  { %17393 = vst [vmem:[#allocation59_spill] sm:$0xff] %v15925_v49  ;;  %v17395_v44 = vsel %vm15927_vm0, 4294967295, %v17394_v44  ;;  %v6686_v25 = vsel %vm4638_vm14, %v15376_v32, %v15809_v35  ;;  %v9878_v1 = vpop.eup %9877  ;;  %vm15937_vm1 = vcmp.lt.f32.partialorder %v6246_v5, 0.0004427343  ;;  %v6235_v46 = vadd.f32 1.0, %v6234_v50  ;;  %v15950_v50 = vpop.f32.mrf.mxu1 }
 0x52e   :  { %17396 = vst [vmem:[#allocation60_spill] sm:$0xff] %v17395_v44  ;;  %v6237_v23 = vand.u32 2147483647, %v15838_v41  ;;  %9893 = vpow2.f32 %v5275_v57  ;;  %v9880_v49 = vpop.eup %9879  ;;  %v15943_v45 = vmul.f32 %v15817_v20, %v6217_v33  ;;  %v6242_v13 = vmul.f32 0.6931472, %v9874_v31 }
 0x52f   :  { %v6262_v40 = vadd.f32 1.0, %v6261_v39  ;;  %v6264_v17 = vand.u32 2147483647, %v15791_v59  ;;  %v6245_v32 = vmul.f32 %v15776_v0, %v6244_v10  ;;  %v6252_v35 = vmul.f32 -0.5, %v15884_v63  ;;  %v17420_v10 = vld [vmem:[#allocation21_spill] sm:$0xff] }
 0x530   :  { %17399 = vst [vmem:[#allocation61_spill] sm:$0xff] %v15943_v45  ;;  %v15946_v60 = vpop.eup %9881  ;;  %v5277_v5 = vmul.f32 1.442695, %v5039_v4  ;;  %v7948_v2 = vadd.f32 -0.6931472, %v6686_v25  ;;  %v5037_v33 = vsub.f32 0.0, %v4909_v7  ;;  %9895 = vpow2.f32 %v5279_v38 }
 0x531   :  { %v9884_v37 = vpop.eup %9883  ;;  %v6260_v57 = vmul.f32 0.6931472, %v9878_v1  ;;  %v15955_v39 = vmul.f32 0.6931472, %v9880_v49  ;;  %v15958_v47 = vmul.f32 %v15838_v41, %v6235_v46  ;;  %vm15960_vm2 = vcmp.lt.f32.partialorder %v6237_v23, 0.0004427343 }
 0x532   :  { %v15953_v31 = vpop.eup %9885  ;;  %v17402_v0 = vmov 0  ;;  %8463 = vmatprep.subr.msk.mxu0 %vm6852_vm11, %v7948_v2  ;;  %vm4636_vm3 = vcmp.ne.f32.partialorder %v15315_v43, %v15315_v43  ;;  %vm4650_vm4 = vcmp.ne.f32.partialorder %v15596_v27, %v15596_v27  ;;  %v6263_v38 = vmul.f32 %v15791_v59, %v6262_v40  ;;  %v17407_v49 = vld [vmem:[#allocation38_spill] sm:$0xff]  ;;  %v8947_v59 = vpop.f32.mrf.mxu1 }
 0x533   :  { %17400 = vst [vmem:[#allocation62_spill] sm:$0xff] %v15955_v39  ;;  %17401 = vst [vmem:[#allocation63_spill] sm:$0xff] %v15958_v47  ;;  %v17403_v0 = vsel %vm15960_vm2, 4294967295, %v17402_v0  ;;  %v9888_v1 = vpop.eup %9887  ;;  %vm15971_vm5 = vcmp.lt.f32.partialorder %v6264_v17, 0.0004427343  ;;  %v6276_v46 = vadd.f32 1.0, %v15946_v60  ;;  %8464 = vmatpush3.xpose.msk.msra.mxu0 %vm6852_vm11, %v17407_v49  ;;  %v6248_v7 = vsel %vm15937_vm1, %v6245_v32, %v6242_v13 }
 0x534   :  { %17404 = vst [vmem:[#allocation64_spill] sm:$0xff] %v17403_v0  ;;  %v6279_v4 = vmul.f32 -0.5, %v15946_v60  ;;  %v15979_v2 = vpop.eup %9889  ;;  %v6253_v25 = vadd.f32 1.0, %v6252_v35  ;;  %v6255_v23 = vand.u32 2147483647, %v15884_v63  ;;  %9897 = vpow2.f32 %v5277_v5 }
 0x535   :  { %17408 = vst [vmem:[#allocation38_spill] sm:$0xff] %v15979_v2  ;;  %v6266_v40 = vsel %vm15971_vm5, %v6263_v38, %v6260_v57  ;;  %v6270_v17 = vmul.f32 -0.5, %v15953_v31  ;;  %v5273_v24 = vmul.f32 1.442695, %v5037_v33  ;;  %v6685_v49 = vsel %vm4637_vm15, %v15427_v58, %v15851_v42 }
 0x536   :  { %v15996_v13 = vmul.f32 0.6931472, %v9884_v37  ;;  %v15998_v32 = vmul.f32 0.6931472, %v9888_v1  ;;  %v17411_v5 = vmax.f32 %v15584_v61, 0.0  ;;  %9899 = vlog2.f32 %v6276_v46  ;;  %v17414_v1 = vld [vmem:[#allocation12_spill] sm:$0xff]  ;;  %v4398_v46 = vpop.f32.mrf.mxu1 }
 0x537   :  { %v6280_v33 = vadd.f32 1.0, %v6279_v4  ;;  %v17413_v58 = vmax.f32 %v15596_v27, 0.0  ;;  %v16011_v37 = vld [vmem:[%s16825_s4] ss:$0 sm:$0xff]  ;;  %v7947_v22 = vadd.f32 -0.6931472, %v6685_v49  ;;  %v16021_v4 = vmul.f32 %v15884_v63, %v6253_v25 }
 0x538   :  { %17409 = vst [vmem:[#allocation65_spill] sm:$0xff] %v15996_v13  ;;  %17410 = vst [vmem:[#allocation66_spill] sm:$0xff] %v15998_v32  ;;  %v16003_v57 = vadd.f32 %v6248_v7, %v17411_v5  ;;  %v16015_v41 = vadd.f32 %v16011_v37, %v17414_v1  ;;  %v16018_v7 = vadd.f32 %v16011_v37, %v8947_v59  ;;  %vm16023_vm6 = vcmp.lt.f32.partialorder %v6255_v23, 0.0004427343  ;;  %v17418_v25 = vld [vmem:[#allocation49_spill] sm:$0xff] }
 0x539   :  { %v6570_v42 = vadd.f32 %v6266_v40, %v17413_v58  ;;  %v6267_v40 = vadd.f32 1.0, %v15953_v31  ;;  %v6271_v58 = vadd.f32 1.0, %v6270_v17  ;;  %9901 = vpow2.f32 %v5273_v24  ;;  %v9892_v35 = vpop.eup %9891  ;;  %8465 = vmatprep.subr.msk.mxu0 %vm6852_vm11, %v7947_v22 }
 0x53a   :  { %17412 = vst [vmem:[#allocation67_spill] sm:$0xff] %v16003_v57  ;;  %17415 = vst [vmem:[#allocation12_spill] sm:$0xff] %v16015_v41  ;;  %vm4635_vm7 = vcmp.ne.f32.partialorder %v15361_v48, %v15361_v48  ;;  %v6282_v63 = vand.u32 2147483647, %v15946_v60  ;;  %v16037_v23 = vadd.f32 %v16011_v37, %v17418_v25  ;;  %v16041_v49 = vadd.f32 %v16011_v37, %v15923_v6 }
 0x53b   :  { %v16044_v24 = vpop.eup %9893  ;;  %v16047_v17 = vmul.f32 %v15946_v60, %v6280_v33  ;;  %v4926_v59 = vand.u32 2147483647, %v16018_v7  ;;  %8466 = vmatpush3.xpose.msk.msra.mxu0 %vm6852_vm11, %v17420_v10  ;;  %v16054_v25 = vadd.f32 %v16011_v37, %v4398_v46  ;;  %v16060_v6 = vsel %vm4650_vm4, %v15596_v27, %v6570_v42  ;;  %v8950_v10 = vpop.f32.mrf.mxu1 }
 0x53c   :  { %17419 = vst [vmem:[#allocation49_spill] sm:$0xff] %v16037_v23  ;;  %17421 = vst [vmem:[#allocation21_spill] sm:$0xff] %v16060_v6  ;;  %v4914_v60 = vand.u32 2147483647, %v16015_v41  ;;  %v6684_v33 = vsel %vm4636_vm3, %v15315_v43, %v15768_v9  ;;  %v16069_v1 = vmul.f32 0.6931472, %v9892_v35  ;;  %9903 = vlog2.f32 %v6267_v40 }
 0x53d   :  { %v16072_v46 = vmul.f32 %v15953_v31, %v6271_v58  ;;  %v5054_v38 = vsub.f32 0.0, %v4926_v59  ;;  %v16074_v27 = vpop.eup %9895  ;;  %v6294_v42 = vadd.f32 1.0, %v16044_v24  ;;  %v6297_v22 = vmul.f32 -0.5, %v16044_v24  ;;  %v17422_v58 = vld [vmem:[#allocation45_spill] sm:$0xff]  ;;  %v17430_v6 = vld [vmem:[#allocation19_spill] sm:$0xff] }
 0x53e   :  { %v4913_v41 = vand.u32 2147483647, %v16037_v23  ;;  %v4924_v2 = vand.u32 2147483647, %v16041_v49  ;;  %v16082_v43 = vadd.f32 %v16011_v37, %v15950_v50  ;;  %v4925_v9 = vand.u32 2147483647, %v16054_v25 }
 0x53f   :  { %v7946_v35 = vadd.f32 -0.6931472, %v6684_v33  ;;  %v16086_v40 = vadd.f32 %v16011_v37, %v8950_v10  ;;  %vm4634_vm8 = vcmp.ne.f32.partialorder %v17422_v58, %v17422_v58  ;;  %v5042_v3 = vsub.f32 0.0, %v4914_v60 }
 0x540   :  { %v16093_v23 = vadd.f32 %v16011_v37, %v15747_v26  ;;  %v5307_v45 = vmul.f32 1.442695, %v5054_v38  ;;  %vm4633_vm9 = vcmp.ne.f32.partialorder %v15281_v29, %v15281_v29  ;;  %v6312_v50 = vadd.f32 1.0, %v16074_v27 }
 0x541   :  { %v16095_v13 = vpop.eup %9897  ;;  %v16102_v33 = vadd.f32 %v16011_v37, %v15815_v52  ;;  %v16106_v10 = vadd.f32 %v16011_v37, %v15880_v30  ;;  %v5053_v60 = vsub.f32 0.0, %v4925_v9  ;;  %8467 = vmatprep.subr.msk.mxu0 %vm6852_vm11, %v7946_v35  ;;  %v16113_v38 = vsub.f32 0.0, %v4913_v41  ;;  %v4408_v41 = vpop.f32.mrf.mxu1  ;;  %v17437_v30 = vld [vmem:[#allocation8_spill] sm:$0xff] }
 0x542   :  { %17423 = vst [vmem:[#allocation45_spill] sm:$0xff] %v16093_v23  ;;  %v16117_v59 = vadd.f32 %v16011_v37, %v15697_v62  ;;  %v5052_v52 = vsub.f32 0.0, %v4924_v2  ;;  %8468 = vmatpush3.xpose.msk.msra.mxu0 %vm6852_vm11, %v17426_v15  ;;  %vm16121_vm10 = vcmp.lt.f32.partialorder %v6282_v63, 0.0004427343  ;;  %9905 = vlog2.f32 %v6294_v42  ;;  %v17429_v42 = vld [vmem:[#allocation43_spill] sm:$0xff] }
 0x543   :  { %17424 = vst [vmem:[#allocation68_spill] sm:$0xff] %v16102_v33  ;;  %v4923_v9 = vand.u32 2147483647, %v16082_v43  ;;  %v4928_v35 = vand.u32 2147483647, %v16086_v40  ;;  %v6683_v62 = vsel %vm4635_vm7, %v15361_v48, %v15795_v14  ;;  %v9900_v2 = vpop.eup %9899  ;;  %v6303_v26 = vadd.f32 1.0, %v16095_v13 }
 0x544   :  { %17425 = vst [vmem:[#allocation69_spill] sm:$0xff] %v16117_v59  ;;  %v16135_v15 = vadd.f32 %v16011_v37, %v15898_v12  ;;  %9907 = vpow2.f32 %v5307_v45  ;;  %v5305_v63 = vmul.f32 1.442695, %v5053_v60  ;;  %vm4632_vm12 = vcmp.ne.f32.partialorder %v17429_v42, %v17429_v42 }
 0x545   :  { %9909 = vlog2.f32 %v6312_v50  ;;  %v4918_v39 = vand.u32 2147483647, %v16093_v23  ;;  %v4920_v34 = vand.u32 2147483647, %v16102_v33  ;;  %v4922_v48 = vand.u32 2147483647, %v16106_v10 }
 0x546   :  { %v16142_v14 = vpop.eup %9901  ;;  %v5303_v44 = vmul.f32 1.442695, %v5052_v52  ;;  %v5056_v32 = vsub.f32 0.0, %v4928_v35  ;;  %v7945_v47 = vadd.f32 -0.6931472, %v6683_v62  ;;  %v16145_v12 = vadd.f32 %v16011_v37, %v4408_v41  ;;  %v17431_v62 = vld [vmem:[#allocation36_spill] sm:$0xff] }
 0x547   :  { %v6278_v45 = vmul.f32 0.6931472, %v9900_v2  ;;  %v6298_v60 = vadd.f32 1.0, %v6297_v22  ;;  %v5283_v0 = vmul.f32 1.442695, %v5042_v3  ;;  %v5051_v57 = vsub.f32 0.0, %v4923_v9 }
 0x548   :  { %v4921_v50 = vand.u32 2147483647, %v16135_v15  ;;  %9911 = vpow2.f32 %v5305_v63  ;;  %v5311_v23 = vmul.f32 1.442695, %v5056_v32  ;;  %8469 = vmatprep.subr.msk.mxu0 %vm6852_vm11, %v7945_v47  ;;  %v4927_v53 = vand.u32 2147483647, %v16145_v12 }
 0x549   :  { %vm4631_vm14 = vcmp.ne.f32.partialorder %v17430_v6, %v17430_v6  ;;  %v6285_v52 = vadd.f32 1.0, %v16142_v14  ;;  %9913 = vlog2.f32 %v6303_v26  ;;  %v5048_v35 = vsub.f32 0.0, %v4920_v34  ;;  %8470 = vmatpush3.xpose.msk.msra.mxu0 %vm6852_vm11, %v17431_v62  ;;  %v17432_v3 = vld [vmem:[#allocation48_spill] sm:$0xff]  ;;  %v16160_v22 = vpop.eup %9903  ;;  %v17433_v63 = vld [vmem:[#allocation17_spill] sm:$0xff]  ;;  %v17477_v33 = vld [vmem:[#allocation23_spill] sm:$0xff] }
 0x54a   :  { %v6682_v32 = vsel %vm4634_vm8, %v17422_v58, %v17432_v3  ;;  %v5046_v47 = vsub.f32 0.0, %v4918_v39  ;;  %v5050_v9 = vsub.f32 0.0, %v4922_v48  ;;  %9915 = vpow2.f32 %v5303_v44 }
 0x54b   :  { %v6681_v34 = vsel %vm4633_vm9, %v15281_v29, %v15743_v28  ;;  %v5301_v26 = vmul.f32 1.442695, %v5051_v57  ;;  %9917 = vpow2.f32 %v5311_v23  ;;  %v5055_v41 = vsub.f32 0.0, %v4927_v53 }
 0x54c   :  { %v7944_v2 = vadd.f32 -0.6931472, %v6682_v32  ;;  %vm4652_vm15 = vcmp.ne.f32.partialorder %v15739_v21, %v15739_v21  ;;  %v6284_v58 = vsel %vm16121_vm10, %v16047_v17, %v6278_v45  ;;  %9919 = vpow2.f32 %v5283_v0  ;;  %v17436_v17 = vld [vmem:[#allocation42_spill] sm:$0xff] }
 0x54d   :  { %v4916_v44 = vand.u32 2147483647, %v16117_v59  ;;  %v5049_v39 = vsub.f32 0.0, %v4921_v50  ;;  %vm4630_vm1 = vcmp.ne.f32.partialorder %v17433_v63, %v17433_v63  ;;  %9921 = vlog2.f32 %v6285_v52  ;;  %v17457_v59 = vld [vmem:[#allocation41_spill] sm:$0xff] }
 0x54e   :  { %v5295_v29 = vmul.f32 1.442695, %v5048_v35  ;;  %v5309_v28 = vmul.f32 1.442695, %v5055_v41  ;;  %8471 = vmatprep.subr.msk.mxu0 %vm6852_vm11, %v7944_v2  ;;  %v7943_v53 = vadd.f32 -0.6931472, %v6681_v34  ;;  %v16178_v57 = vadd.f32 %v16011_v37, %v15716_v51 }
 0x54f   :  { %v5291_v23 = vmul.f32 1.442695, %v5046_v47  ;;  %v16182_v0 = vadd.f32 %v16011_v37, %v15847_v54  ;;  %8472 = vmatpush3.xpose.msk.msra.mxu0 %vm6852_vm11, %v17436_v17  ;;  %v6680_v48 = vsel %vm4632_vm12, %v17429_v42, %v17437_v30  ;;  %v6315_v45 = vmul.f32 -0.5, %v16074_v27  ;;  %v9906_v54 = vpop.eup %9905  ;;  %v17438_v42 = vld [vmem:[#allocation16_spill] sm:$0xff] }
 0x550   :  { %17434 = vst [vmem:[#allocation25_spill] sm:$0xff] %v16178_v57  ;;  %v16193_v50 = vmul.f32 1.442695, %v16113_v38  ;;  %v5299_v51 = vmul.f32 1.442695, %v5050_v9  ;;  %9923 = vpow2.f32 %v5301_v26  ;;  %8473 = vmatprep.subr.msk.mxu0 %vm6852_vm11, %v7943_v53  ;;  %v16197_v52 = vmul.f32 %v16044_v24, %v6298_v60 }
 0x551   :  { %17435 = vst [vmem:[#allocation43_spill] sm:$0xff] %v16182_v0  ;;  %v6288_v35 = vmul.f32 -0.5, %v16142_v14  ;;  %v5297_v62 = vmul.f32 1.442695, %v5049_v39  ;;  %9925 = vpow2.f32 %v5309_v28  ;;  %v16200_v3 = vpop.eup %9907  ;;  %vm4629_vm3 = vcmp.ne.f32.partialorder %v17438_v42, %v17438_v42  ;;  %v17443_v39 = vld [vmem:[#allocation44_spill] sm:$0xff]  ;;  %v17444_v28 = vld [vmem:[#allocation47_spill] sm:$0xff] }
 0x552   :  { %v17439_v38 = vmax.f32 %v15739_v21, 0.0  ;;  %v17440_v47 = vand.u32 2147483647, %v16044_v24  ;;  %v5044_v60 = vsub.f32 0.0, %v4916_v44  ;;  %9927 = vpow2.f32 %v5295_v29  ;;  %v9910_v26 = vpop.eup %9909 }
 0x553   :  { %v7942_v34 = vadd.f32 -0.6931472, %v6680_v48  ;;  %v4915_v41 = vand.u32 2147483647, %v16178_v57  ;;  %9929 = vpow2.f32 %v5291_v23  ;;  %v4919_v2 = vand.u32 2147483647, %v16182_v0  ;;  %8474 = vmatpush3.xpose.msk.msra.mxu0 %vm6852_vm11, %v17443_v39 }
 0x554   :  { %v6572_v32 = vadd.f32 %v6284_v58, %v17439_v38  ;;  %vm16208_vm4 = vcmp.lt.f32.partialorder %v17440_v47, 0.0004427343  ;;  %v6679_v24 = vsel %vm4631_vm14, %v17430_v6, %v17444_v28  ;;  %v6316_v58 = vadd.f32 1.0, %v6315_v45  ;;  %v17446_v6 = vld [vmem:[#allocation11_spill] sm:$0xff]  ;;  %v17448_v39 = vld [vmem:[#allocation14_spill] sm:$0xff] }
 0x555   :  { %v6306_v44 = vmul.f32 -0.5, %v16095_v13  ;;  %v16224_v29 = vadd.f32 %v16011_v37, %v15782_v56  ;;  %9931 = vpow2.f32 %v5299_v51  ;;  %8475 = vmatprep.subr.msk.mxu0 %vm6852_vm11, %v7942_v34  ;;  %v6291_v53 = vand.u32 2147483647, %v16142_v14  ;;  %v16230_v30 = vpop.eup %9911  ;;  %v17447_v34 = vld [vmem:[#allocation18_spill] sm:$0xff] }
 0x556   :  { %v6318_v23 = vand.u32 2147483647, %v16074_v27  ;;  %9933 = vpow2.f32 %v5297_v62  ;;  %v6438_v17 = vadd.f32 1.0, %v16200_v3  ;;  %vm4628_vm5 = vcmp.ne.f32.partialorder %v17446_v6, %v17446_v6  ;;  %v9914_v51 = vpop.eup %9913 }
 0x557   :  { %17445 = vst [vmem:[#allocation19_spill] sm:$0xff] %v16224_v29  ;;  %v16238_v56 = vsel %vm4652_vm15, %v15739_v21, %v6572_v32  ;;  %v6289_v37 = vadd.f32 1.0, %v6288_v35  ;;  %v6314_v48 = vmul.f32 0.6931472, %v9910_v26  ;;  %v7941_v45 = vadd.f32 -0.6931472, %v6679_v24  ;;  %8476 = vmatpush3.xpose.msk.msra.mxu0 %vm6852_vm11, %v17447_v34  ;;  %v16247_v57 = vpop.eup %9915 }
 0x558   :  { %v6296_v38 = vmul.f32 0.6931472, %v9906_v54  ;;  %v5287_v47 = vmul.f32 1.442695, %v5044_v60  ;;  %v5047_v62 = vsub.f32 0.0, %v4919_v2  ;;  %v6678_v28 = vsel %vm4630_vm1, %v17433_v63, %v17448_v39  ;;  %v16254_v60 = vpop.eup %9917 }
 0x559   :  { %vm4656_vm7 = vcmp.ne.f32.partialorder %v15855_v8, %v15855_v8  ;;  %v6317_v21 = vmul.f32 %v16074_v27, %v6316_v58  ;;  %v6307_v35 = vadd.f32 1.0, %v6306_v44  ;;  %v5043_v54 = vsub.f32 0.0, %v4915_v41  ;;  %8477 = vmatprep.subr.msk.mxu0 %vm6852_vm11, %v7941_v45  ;;  %v16262_v24 = vpop.eup %9919  ;;  %v17451_v27 = vld [vmem:[#allocation40_spill] sm:$0xff] }
 0x55a   :  { %v4917_v32 = vand.u32 2147483647, %v16224_v29  ;;  %vm16256_vm8 = vcmp.lt.f32.partialorder %v6318_v23, 0.0004427343  ;;  %v6309_v63 = vand.u32 2147483647, %v16095_v13  ;;  %9935 = vlog2.f32 %v6438_v17  ;;  %v9922_v34 = vpop.eup %9921 }
 0x55b   :  { %v6429_v2 = vadd.f32 1.0, %v16230_v30  ;;  %vm4627_vm9 = vcmp.ne.f32.partialorder %v17451_v27, %v17451_v27  ;;  %v17452_v41 = vand.u32 2147483647, %v15953_v31  ;;  %vm4654_vm12 = vcmp.ne.f32.partialorder %v15836_v36, %v15836_v36  ;;  %8478 = vmatpush3.xpose.msk.msra.mxu0 %vm6852_vm11, %v17457_v59 }
 0x55c   :  { %v6320_v44 = vsel %vm16256_vm8, %v6317_v21, %v6314_v48  ;;  %v6305_v23 = vmul.f32 0.6931472, %v9914_v51  ;;  %v6456_v17 = vadd.f32 1.0, %v16254_v60  ;;  %v7940_v45 = vadd.f32 -0.6931472, %v6678_v28  ;;  %v17458_v48 = vld [vmem:[#allocation37_spill] sm:$0xff] }
 0x55d   :  { %vm16268_vm10 = vcmp.lt.f32.partialorder %v17452_v41, 0.0004427343  ;;  %v6302_v39 = vsel %vm16208_vm4, %v16197_v52, %v6296_v38  ;;  %vm16280_vm14 = vcmp.lt.f32.partialorder %v6291_v53, 0.0004427343  ;;  %9937 = vpow2.f32 %v16193_v50  ;;  %v16297_v50 = vpop.eup %9923  ;;  %v17462_v28 = vld [vmem:[#allocation22_spill] sm:$0xff] }
 0x55e   :  { %v5293_v41 = vmul.f32 1.442695, %v5047_v62  ;;  %v6677_v51 = vsel %vm4629_vm3, %v17438_v42, %v17458_v48  ;;  %vm4655_vm15 = vcmp.ne.f32.partialorder %v15874_v55, %v15874_v55  ;;  %v6308_v52 = vmul.f32 %v16095_v13, %v6307_v35  ;;  %8479 = vmatprep.subr.msk.mxu0 %vm6852_vm11, %v7940_v45  ;;  %v16308_v13 = vpop.eup %9925  ;;  %v17468_v42 = vld [vmem:[#allocation6_spill] sm:$0xff] }
 0x55f   :  { %v5045_v9 = vsub.f32 0.0, %v4917_v32  ;;  %v6420_v53 = vadd.f32 1.0, %v16247_v57  ;;  %9939 = vlog2.f32 %v6456_v17  ;;  %v16300_v59 = vmul.f32 0.6931472, %v16160_v22  ;;  %v16314_v32 = vpop.eup %9927  ;;  %v17465_v17 = vld [vmem:[#allocation9_spill] sm:$0xff] }
 0x560   :  { %v17459_v38 = vmax.f32 %v15855_v8, 0.0  ;;  %vm16304_vm1 = vcmp.lt.f32.partialorder %v6309_v63, 0.0004427343  ;;  %9941 = vlog2.f32 %v6429_v2  ;;  %vm4626_vm3 = vcmp.ne.f32.partialorder %v17462_v28, %v17462_v28  ;;  %v17464_v2 = vld [vmem:[#allocation26_spill] sm:$0xff] }
 0x561   :  { %v6311_v21 = vsel %vm16304_vm1, %v6308_v52, %v6305_v23  ;;  %9943 = vpow2.f32 %v5287_v47  ;;  %v5285_v35 = vmul.f32 1.442695, %v5043_v54  ;;  %v7939_v22 = vadd.f32 -0.6931472, %v6677_v51  ;;  %8480 = vmatpush3.xpose.msk.msra.mxu0 %vm6852_vm11, %v17464_v2  ;;  %v16326_v47 = vpop.eup %9929 }
 0x562   :  { %v6576_v62 = vadd.f32 %v6320_v44, %v17459_v38  ;;  %v17463_v26 = vmax.f32 %v15836_v36, 0.0  ;;  %9945 = vpow2.f32 %v5293_v41  ;;  %v6447_v44 = vadd.f32 1.0, %v16308_v13  ;;  %v16334_v41 = vpop.eup %9931 }
 0x563   :  { %v6676_v23 = vsel %vm4628_vm5, %v17446_v6, %v17465_v17  ;;  %v16328_v54 = vmul.f32 0.6931472, %v9922_v34  ;;  %v16331_v45 = vmul.f32 %v16142_v14, %v6289_v37  ;;  %9947 = vlog2.f32 %v6420_v53  ;;  %8481 = vmatprep.subr.msk.mxu0 %vm6852_vm11, %v7939_v22  ;;  %v16343_v52 = vpop.eup %9933  ;;  %v17467_v14 = vld [vmem:[#allocation24_spill] sm:$0xff] }
 0x564   :  { %v6574_v63 = vadd.f32 %v6302_v39, %v17463_v26  ;;  %v5289_v39 = vmul.f32 1.442695, %v5045_v9  ;;  %v6704_v48 = vsel %vm4656_vm7, %v15855_v8, %v6576_v62  ;;  %v17466_v6 = vmax.f32 %v15874_v55, 0.0 }
 0x565   :  { %v6411_v34 = vadd.f32 1.0, %v16297_v50  ;;  %9949 = vlog2.f32 %v6447_v44  ;;  %vm4625_vm4 = vcmp.ne.f32.partialorder %v17467_v14, %v17467_v14  ;;  %v6384_v37 = vadd.f32 1.0, %v16314_v32  ;;  %8482 = vmatpush3.xpose.msk.msra.mxu0 %vm6852_vm11, %v17468_v42  ;;  %v17470_v42 = vld [vmem:[#allocation13_spill] sm:$0xff] }
 0x566   :  { %v6575_v51 = vadd.f32 %v6311_v21, %v17466_v6  ;;  %v6441_v9 = vmul.f32 -0.5, %v16200_v3  ;;  %v6459_v53 = vmul.f32 -0.5, %v16254_v60  ;;  %v7938_v38 = vadd.f32 -0.6931472, %v6676_v23  ;;  %v17469_v21 = vld [vmem:[#allocation34_spill] sm:$0xff] }
 0x567   :  { %v16358_v62 = vsel %vm4654_vm12, %v15836_v36, %v6574_v63  ;;  %9951 = vpow2.f32 %v5285_v35  ;;  %v6675_v22 = vsel %vm4627_vm9, %v17451_v27, %v17469_v21  ;;  %v16371_v44 = vadd.f32 -0.6931472, %v6704_v48  ;;  %v9936_v2 = vpop.eup %9935 }
 0x568   :  { %9953 = vpow2.f32 %v5289_v39  ;;  %v6402_v36 = vadd.f32 1.0, %v16334_v41  ;;  %8483 = vmatprep.subr.msk.mxu0 %vm6852_vm11, %v7938_v38  ;;  %v16379_v35 = vsel %vm4655_vm15, %v15874_v55, %v6575_v51  ;;  %v16382_v27 = vadd.f32 1.0, %v16326_v47  ;;  %v17471_v55 = vld [vmem:[#allocation15_spill] sm:$0xff] }
 0x569   :  { %v6393_v63 = vadd.f32 1.0, %v16343_v52  ;;  %9955 = vlog2.f32 %v6411_v34  ;;  %v6442_v17 = vadd.f32 1.0, %v6441_v9  ;;  %v6460_v23 = vadd.f32 1.0, %v6459_v53  ;;  %8484 = vmatpush3.xpose.msk.msra.mxu0 %vm6852_vm11, %v17470_v42 }
 0x56a   :  { %9957 = vlog2.f32 %v6384_v37  ;;  %v7937_v39 = vadd.f32 -0.6931472, %v6675_v22  ;;  %v6432_v48 = vmul.f32 -0.5, %v16230_v30  ;;  %v6462_v6 = vand.u32 2147483647, %v16254_v60  ;;  %v16395_v34 = vpop.eup %9937 }
 0x56b   :  { %v6450_v38 = vmul.f32 -0.5, %v16308_v13  ;;  %v6674_v51 = vsel %vm4626_vm3, %v17462_v28, %v17471_v55  ;;  %17472 = vst [vmem:[#allocation36_spill] sm:$0xff] %v16395_v34  ;;  %9959 = vlog2.f32 %v6402_v36  ;;  %v4542_v37 = vmax.f32 %v16018_v7, 0.0  ;;  %v17473_v34 = vld [vmem:[#allocation10_spill] sm:$0xff] }
 0x56c   :  { %v6444_v9 = vand.u32 2147483647, %v16200_v3  ;;  %v4544_v53 = vmax.f32 %v16086_v40, 0.0  ;;  %8485 = vmatprep.subr.msk.mxu0 %vm6852_vm11, %v7937_v39  ;;  %v9940_v21 = vpop.eup %9939  ;;  %9961 = vlog2.f32 %v6393_v63  ;;  %v6423_v22 = vmul.f32 -0.5, %v16247_v57  ;;  %v17474_v63 = vld [vmem:[#allocation39_spill] sm:$0xff] }
 0x56d   :  { %v6440_v42 = vmul.f32 0.6931472, %v9936_v2  ;;  %vm4672_vm5 = vcmp.ne.f32.partialorder %v16086_v40, %v16086_v40  ;;  %v9942_v28 = vpop.eup %9941  ;;  %v6443_v55 = vmul.f32 %v16200_v3, %v6442_v17  ;;  %v6458_v36 = vmul.f32 0.6931472, %v9940_v21  ;;  %8486 = vmatpush3.xpose.msk.msra.mxu0 %vm6852_vm11, %v17473_v34 }
 0x56e   :  { %v6461_v8 = vmul.f32 %v16254_v60, %v6460_v23  ;;  %v7936_v26 = vadd.f32 -0.6931472, %v6674_v51  ;;  %v16406_v29 = vpop.eup %9943  ;;  %v6433_v0 = vadd.f32 1.0, %v6432_v48  ;;  %vm6463_vm7 = vcmp.lt.f32.partialorder %v6462_v6, 0.0004427343 }
 0x56f   :  { %v6451_v39 = vadd.f32 1.0, %v6450_v38  ;;  %v6673_v2 = vsel %vm4625_vm4, %v17467_v14, %v17474_v63  ;;  %v16415_v16 = vpop.eup %9945  ;;  %vm16417_vm8 = vcmp.lt.f32.partialorder %v6444_v9, 0.0004427343  ;;  %v6435_v60 = vand.u32 2147483647, %v16230_v30 }
 0x570   :  { %v6464_v17 = vsel %vm6463_vm7, %v6461_v8, %v6458_v36  ;;  %v6453_v23 = vand.u32 2147483647, %v16308_v13  ;;  %8487 = vmatprep.subr.msk.mxu0 %vm6852_vm11, %v7936_v26  ;;  %v9948_v48 = vpop.eup %9947  ;;  %v6446_v6 = vsel %vm16417_vm8, %v6443_v55, %v6440_v42  ;;  %v6431_v38 = vmul.f32 0.6931472, %v9942_v28 }
 0x571   :  { %v6592_v51 = vadd.f32 %v6464_v17, %v4544_v53  ;;  %v4543_v14 = vmax.f32 %v16145_v12, 0.0  ;;  %v6424_v9 = vadd.f32 1.0, %v6423_v22  ;;  %v6426_v21 = vand.u32 2147483647, %v16247_v57  ;;  %8488 = vmatpush3.xpose.msk.msra.mxu0 %vm6852_vm11, %v17477_v33 }
 0x572   :  { %v9950_v34 = vpop.eup %9949  ;;  %v6414_v63 = vmul.f32 -0.5, %v16297_v50  ;;  %v7935_v20 = vadd.f32 -0.6931472, %v6673_v2  ;;  %v6434_v8 = vmul.f32 %v16230_v30, %v6433_v0  ;;  %v6452_v26 = vmul.f32 %v16308_v13, %v6451_v39 }
 0x573   :  { %v6449_v36 = vmul.f32 0.6931472, %v9950_v34  ;;  %v6720_v53 = vsel %vm4672_vm5, %v16086_v40, %v6592_v51  ;;  %v6590_v22 = vadd.f32 %v6446_v6, %v4542_v37  ;;  %vm16439_vm9 = vcmp.lt.f32.partialorder %v6435_v60, 0.0004427343 }
 0x574   :  { %v16437_v42 = vpop.eup %9951  ;;  %vm6454_vm12 = vcmp.lt.f32.partialorder %v6453_v23, 0.0004427343  ;;  %8489 = vmatprep.subr.msk.mxu0 %vm6852_vm11, %v7935_v20  ;;  %v7982_v0 = vadd.f32 -0.6931472, %v6720_v53  ;;  %vm4653_vm15 = vcmp.ne.f32.partialorder %v15904_v11, %v15904_v11  ;;  %v6375_v33 = vadd.f32 1.0, %v16415_v16 }
 0x575   :  { %v16444_v30 = vpop.eup %9953  ;;  %v6422_v13 = vmul.f32 0.6931472, %v9948_v48  ;;  %v6437_v40 = vsel %vm16439_vm9, %v6434_v8, %v6431_v38  ;;  %v6455_v37 = vsel %vm6454_vm12, %v6452_v26, %v6449_v36  ;;  %v6405_v39 = vmul.f32 -0.5, %v16334_v41  ;;  %v17482_v48 = vld [vmem:[#allocation7_spill] sm:$0xff]  ;;  %v16488_v26 = vld [vmem:[%s16826_s5] sm:$0x1] }
 0x576   :  { %v9956_v55 = vpop.eup %9955  ;;  %vm4670_vm1 = vcmp.ne.f32.partialorder %v16018_v7, %v16018_v7  ;;  %v4541_v20 = vmax.f32 %v16054_v25, 0.0  ;;  %v6591_v2 = vadd.f32 %v6455_v37, %v4543_v14  ;;  %8493 = vmatprep.subr.msk.mxu1 %vm6852_vm11, %v7982_v0  ;;  %v6425_v60 = vmul.f32 %v16247_v57, %v6424_v9  ;;  %8490 = vmatpush3.xpose.msk.msra.mxu0 %vm6852_vm11, %v17482_v48 }
 0x577   :  { %v16456_v3 = vpop.eup %9957  ;;  %vm16459_vm3 = vcmp.lt.f32.partialorder %v6426_v21, 0.0004427343  ;;  %v6415_v23 = vadd.f32 1.0, %v6414_v63  ;;  %vm4671_vm4 = vcmp.ne.f32.partialorder %v16145_v12, %v16145_v12  ;;  %8494 = vmatpush3.xpose.msk.msra.mxu1 %vm6852_vm11, %v16371_v44  ;;  %v6417_v6 = vand.u32 2147483647, %v16297_v50 }
 0x578   :  { %v6589_v38 = vadd.f32 %v6437_v40, %v4541_v20  ;;  %v6719_v51 = vsel %vm4671_vm4, %v16145_v12, %v6591_v2  ;;  %v6718_v57 = vsel %vm4670_vm1, %v16018_v7, %v6590_v22  ;;  %v9960_v14 = vpop.eup %9959  ;;  %9963 = vlog2.f32 %v6375_v33  ;;  %v17528_v2 = vld [vmem:[#allocation19_spill] sm:$0xff] }
 0x579   :  { %v6428_v34 = vsel %vm16459_vm3, %v6425_v60, %v6422_v13  ;;  %v6413_v9 = vmul.f32 0.6931472, %v9956_v55  ;;  %v7981_v21 = vadd.f32 -0.6931472, %v6719_v51  ;;  %v9962_v63 = vpop.eup %9961  ;;  %v17483_v8 = vmax.f32 %v15904_v11, 0.0  ;;  %8492 = vmatmul.mubr.msk.f32.vlgmr.msra.gmra.mxu0 %vm6852_vm11, %v16488_v26 }
 0x57a   :  { %v17484_v44 = vsel %vm16280_vm14, %v16331_v45, %v16328_v54  ;;  %v7965_v12 = vadd.f32 -0.6931472, %v16379_v35  ;;  %v4540_v7 = vmax.f32 %v16041_v49, 0.0  ;;  %vm4669_vm5 = vcmp.ne.f32.partialorder %v16054_v25, %v16054_v25 }
 0x57b   :  { %v6573_v36 = vadd.f32 %v17484_v44, %v17483_v8  ;;  %v6406_v31 = vadd.f32 1.0, %v6405_v39  ;;  %v6396_v53 = vmul.f32 -0.5, %v16343_v52  ;;  %v6416_v54 = vmul.f32 %v16297_v50, %v6415_v23  ;;  %8495 = vmatprep.subr.msk.mxu1 %vm6852_vm11, %v7981_v21 }
 0x57c   :  { %v7980_v45 = vadd.f32 -0.6931472, %v6718_v57  ;;  %v6408_v35 = vand.u32 2147483647, %v16334_v41  ;;  %v6588_v22 = vadd.f32 %v6428_v34, %v4540_v7  ;;  %vm16496_vm14 = vcmp.lt.f32.partialorder %v6417_v6, 0.0004427343  ;;  %8496 = vmatpush3.xpose.msk.msra.mxu1 %vm6852_vm11, %v7965_v12 }
 0x57d   :  { %v6717_v0 = vsel %vm4669_vm5, %v16054_v25, %v6589_v38  ;;  %vm4651_vm7 = vcmp.ne.f32.partialorder %v15762_v18, %v15762_v18  ;;  %9965 = vlog2.f32 %v16382_v27  ;;  %v6357_v50 = vadd.f32 1.0, %v16444_v30 }
 0x57e   :  { %v6404_v33 = vmul.f32 0.6931472, %v9960_v14  ;;  %v6419_v13 = vsel %vm16496_vm14, %v6416_v54, %v6413_v9  ;;  %8497 = vmatprep.subr.msk.mxu1 %vm6852_vm11, %v7980_v45  ;;  %v7964_v40 = vadd.f32 -0.6931472, %v16358_v62  ;;  %v6701_v25 = vsel %vm4653_vm15, %v15904_v11, %v6573_v36 }
 0x57f   :  { %vm4668_vm8 = vcmp.ne.f32.partialorder %v16041_v49, %v16041_v49  ;;  %v4539_v27 = vmax.f32 %v16082_v43, 0.0  ;;  %v6387_v37 = vmul.f32 -0.5, %v16314_v32  ;;  %v6407_v55 = vmul.f32 %v16334_v41, %v6406_v31 }
 0x580   :  { %v6397_v39 = vadd.f32 1.0, %v6396_v53  ;;  %v7979_v20 = vadd.f32 -0.6931472, %v6717_v0  ;;  %vm16519_vm9 = vcmp.lt.f32.partialorder %v6408_v35, 0.0004427343  ;;  %8498 = vmatpush3.xpose.msk.msra.mxu1 %vm6852_vm11, %v7964_v40  ;;  %v6716_v11 = vsel %vm4668_vm8, %v16041_v49, %v6588_v22  ;;  %v17497_v40 = vld [vmem:[#allocation68_spill] sm:$0xff] }
 0x581   :  { %v6399_v62 = vand.u32 2147483647, %v16343_v52  ;;  %v6587_v60 = vadd.f32 %v6419_v13, %v4539_v27  ;;  %v6348_v17 = vadd.f32 1.0, %v16406_v29  ;;  %9967 = vlog2.f32 %v6357_v50 }
 0x582   :  { %v6410_v23 = vsel %vm16519_vm9, %v6407_v55, %v6404_v33  ;;  %v6395_v41 = vmul.f32 0.6931472, %v9962_v63  ;;  %8499 = vmatprep.subr.msk.mxu1 %vm6852_vm11, %v7979_v20  ;;  %v17489_v48 = vmax.f32 %v15762_v18, 0.0  ;;  %v17490_v6 = vsel %vm16268_vm10, %v16072_v46, %v16300_v59 }
 0x583   :  { %v7963_v51 = vadd.f32 -0.6931472, %v6701_v25  ;;  %v4538_v49 = vmax.f32 %v16106_v10, 0.0  ;;  %vm4667_vm12 = vcmp.ne.f32.partialorder %v16082_v43, %v16082_v43  ;;  %v6388_v57 = vadd.f32 1.0, %v6387_v37 }
 0x584   :  { %v6571_v38 = vadd.f32 %v17490_v6, %v17489_v48  ;;  %v6378_v14 = vmul.f32 -0.5, %v16415_v16  ;;  %v6398_v34 = vmul.f32 %v16343_v52, %v6397_v39  ;;  %v7978_v9 = vadd.f32 -0.6931472, %v6716_v11  ;;  %v17498_v39 = vld [vmem:[#allocation30_spill] sm:$0xff]  ;;  %v17506_v48 = vld [vmem:[#allocation21_spill] sm:$0xff] }
 0x585   :  { %v6390_v21 = vand.u32 2147483647, %v16314_v32  ;;  %v6586_v63 = vadd.f32 %v6410_v23, %v4538_v49  ;;  %vm16543_vm15 = vcmp.lt.f32.partialorder %v6399_v62, 0.0004427343  ;;  %8500 = vmatpush3.xpose.msk.msra.mxu1 %vm6852_vm11, %v7963_v51  ;;  %v6715_v46 = vsel %vm4667_vm12, %v16082_v43, %v6587_v60  ;;  %v9964_v44 = vpop.eup %9963  ;;  %v17504_v62 = vld [vmem:[#allocation32_spill] sm:$0xff]  ;;  %v17507_v51 = vld [vmem:[#allocation43_spill] sm:$0xff] }
 0x586   :  { %vm4649_vm10 = vcmp.ne.f32.partialorder %v15687_v19, %v15687_v19  ;;  %9969 = vlog2.f32 %v6348_v17  ;;  %v6339_v59 = vadd.f32 1.0, %v16437_v42  ;;  %v6386_v52 = vmul.f32 0.6931472, %v16456_v3  ;;  %8501 = vmatprep.subr.msk.mxu1 %vm6852_vm11, %v7978_v9  ;;  %v17505_v60 = vld [vmem:[#allocation36_spill] sm:$0xff]  ;;  %v17508_v9 = vld [vmem:[#allocation29_spill] sm:$0xff] }
 0x587   :  { %v6401_v8 = vsel %vm16543_vm15, %v6398_v34, %v6395_v41  ;;  %v7962_v36 = vadd.f32 -0.6931472, %v16238_v56  ;;  %v6699_v43 = vsel %vm4651_vm7, %v15762_v18, %v6571_v38  ;;  %v6369_v12 = vmul.f32 -0.5, %v16326_v47  ;;  %v17517_v56 = vld [vmem:[#allocation45_spill] sm:$0xff] }
 0x588   :  { %v4537_v7 = vmax.f32 %v16135_v15, 0.0  ;;  %v6389_v31 = vmul.f32 %v16314_v32, %v6388_v57  ;;  %v6379_v3 = vadd.f32 1.0, %v6378_v14  ;;  %vm4666_vm1 = vcmp.ne.f32.partialorder %v16106_v10, %v16106_v10 }
 0x589   :  { %v7977_v53 = vadd.f32 -0.6931472, %v6715_v46  ;;  %vm4648_vm3 = vcmp.ne.f32.partialorder %v15584_v61, %v15584_v61  ;;  %vm16568_vm4 = vcmp.lt.f32.partialorder %v6390_v21, 0.0004427343  ;;  %v6381_v18 = vand.u32 2147483647, %v16415_v16  ;;  %8502 = vmatpush3.xpose.msk.msra.mxu1 %vm6852_vm11, %v7962_v36 }
 0x58a   :  { %v6585_v54 = vadd.f32 %v6401_v8, %v4537_v7  ;;  %v6714_v45 = vsel %vm4666_vm1, %v16106_v10, %v6586_v63  ;;  %v6330_v32 = vadd.f32 1.0, %v16262_v24  ;;  %9971 = vlog2.f32 %v6339_v59  ;;  %v9966_v28 = vpop.eup %9965 }
 0x58b   :  { %v6392_v35 = vsel %vm16568_vm4, %v6389_v31, %v6386_v52  ;;  %v6377_v22 = vmul.f32 0.6931472, %v9964_v44  ;;  %8503 = vmatprep.subr.msk.mxu1 %vm6852_vm11, %v7977_v53  ;;  %v17495_v0 = vmax.f32 %v15687_v19, 0.0  ;;  %v17496_v50 = vsel %vm16023_vm6, %v16021_v4, %v16069_v1 }
 0x58c   :  { %v7961_v13 = vadd.f32 -0.6931472, %v6699_v43  ;;  %v6370_v10 = vadd.f32 1.0, %v6369_v12  ;;  %v4536_v25 = vmax.f32 %v17497_v40, 0.0  ;;  %v6360_v27 = vmul.f32 -0.5, %v16444_v30  ;;  %v17514_v43 = vld [vmem:[#allocation63_spill] sm:$0xff] }
 0x58d   :  { %v6569_v33 = vadd.f32 %v17496_v50, %v17495_v0  ;;  %v6380_v37 = vmul.f32 %v16415_v16, %v6379_v3  ;;  %vm4665_vm5 = vcmp.ne.f32.partialorder %v16135_v15, %v16135_v15  ;;  %v7976_v55 = vadd.f32 -0.6931472, %v6714_v45  ;;  %v17515_v12 = vld [vmem:[#allocation66_spill] sm:$0xff] }
 0x58e   :  { %v17499_v20 = vand.u32 2147483647, %v17498_v39  ;;  %v6372_v4 = vand.u32 2147483647, %v16326_v47  ;;  %v6584_v1 = vadd.f32 %v6392_v35, %v4536_v25  ;;  %vm16598_vm6 = vcmp.lt.f32.partialorder %v6381_v18, 0.0004427343  ;;  %8504 = vmatpush3.xpose.msk.msra.mxu1 %vm6852_vm11, %v7961_v13  ;;  %v9968_v41 = vpop.eup %9967 }
 0x58f   :  { %v6713_v16 = vsel %vm4665_vm5, %v16135_v15, %v6585_v54  ;;  %vm4647_vm7 = vcmp.ne.f32.partialorder %v17504_v62, %v17504_v62  ;;  %9973 = vlog2.f32 %v6330_v32  ;;  %v6321_v11 = vadd.f32 1.0, %v17505_v60  ;;  %8505 = vmatprep.subr.msk.mxu1 %vm6852_vm11, %v7976_v55  ;;  %v17526_v25 = vld [vmem:[#allocation65_spill] sm:$0xff] }
 0x590   :  { %vm16593_vm14 = vcmp.lt.f32.partialorder %v17499_v20, 0.0004427343  ;;  %v6368_v17 = vmul.f32 0.6931472, %v9966_v28  ;;  %v6383_v23 = vsel %vm16598_vm6, %v6380_v37, %v6377_v22  ;;  %v7960_v6 = vadd.f32 -0.6931472, %v17506_v48 }
 0x591   :  { %v6697_v15 = vsel %vm4649_vm10, %v15687_v19, %v6569_v33  ;;  %v6351_v38 = vmul.f32 -0.5, %v16406_v29  ;;  %v4535_v49 = vmax.f32 %v17507_v51, 0.0  ;;  %v6371_v57 = vmul.f32 %v16326_v47, %v6370_v10  ;;  %v17511_v47 = vld [vmem:[#allocation67_spill] sm:$0xff]  ;;  %v17523_v33 = vld [vmem:[#allocation62_spill] sm:$0xff] }
 0x592   :  { %v6361_v14 = vadd.f32 1.0, %v6360_v27  ;;  %vm4664_vm8 = vcmp.ne.f32.partialorder %v17497_v40, %v17497_v40  ;;  %v7975_v34 = vadd.f32 -0.6931472, %v6713_v16  ;;  %vm4646_vm9 = vcmp.ne.f32.partialorder %v17508_v9, %v17508_v9  ;;  %8506 = vmatpush3.xpose.msk.msra.mxu1 %vm6852_vm11, %v7960_v6  ;;  %v17527_v27 = vld [vmem:[#allocation61_spill] sm:$0xff] }
 0x593   :  { %vm16622_vm12 = vcmp.lt.f32.partialorder %v6372_v4, 0.0004427343  ;;  %v6363_v19 = vand.u32 2147483647, %v16444_v30  ;;  %v6583_v63 = vadd.f32 %v6383_v23, %v4535_v49  ;;  %v6712_v58 = vsel %vm4664_vm8, %v17497_v40, %v6584_v1  ;;  %v9970_v8 = vpop.eup %9969  ;;  %v17525_v40 = vld [vmem:[#allocation46_spill] sm:$0xff] }
 0x594   :  { %v6696_v46 = vsel %vm4648_vm3, %v15584_v61, %v17511_v47  ;;  %9975 = vlog2.f32 %v6321_v11  ;;  %v6374_v59 = vsel %vm16622_vm12, %v6371_v57, %v6368_v17  ;;  %v6359_v52 = vmul.f32 0.6931472, %v9968_v41  ;;  %8507 = vmatprep.subr.msk.mxu1 %vm6852_vm11, %v7975_v34  ;;  %v17536_v49 = vld [vmem:[#allocation38_spill] sm:$0xff] }
 0x595   :  { %v17512_v44 = vmax.f32 %v17504_v62, 0.0  ;;  %v17516_v7 = vsel %vm15960_vm2, %v17514_v43, %v17515_v12  ;;  %v7959_v3 = vadd.f32 -0.6931472, %v6697_v15  ;;  %v6352_v53 = vadd.f32 1.0, %v6351_v38  ;;  %v17531_v15 = vld [vmem:[#allocation28_spill] sm:$0xff] }
 0x596   :  { %v4534_v61 = vmax.f32 %v17517_v56, 0.0  ;;  %v6342_v18 = vmul.f32 -0.5, %v16437_v42  ;;  %v6362_v54 = vmul.f32 %v16444_v30, %v6361_v14  ;;  %vm4663_vm15 = vcmp.ne.f32.partialorder %v17507_v51, %v17507_v51  ;;  %v17522_v30 = vld [vmem:[#allocation58_spill] sm:$0xff] }
 0x597   :  { %v6567_v31 = vadd.f32 %v17516_v7, %v17512_v44  ;;  %v7974_v45 = vadd.f32 -0.6931472, %v6712_v58  ;;  %v6354_v32 = vand.u32 2147483647, %v16406_v29  ;;  %vm16650_vm10 = vcmp.lt.f32.partialorder %v6363_v19, 0.0004427343  ;;  %8508 = vmatpush3.xpose.msk.msra.mxu1 %vm6852_vm11, %v7959_v3  ;;  %v9972_v20 = vpop.eup %9971 }
 0x598   :  { %v6582_v35 = vadd.f32 %v6374_v59, %v4534_v61  ;;  %v6711_v28 = vsel %vm4663_vm15, %v17507_v51, %v6583_v63  ;;  %v17520_v0 = vmax.f32 %v17508_v9, 0.0  ;;  %v17524_v13 = vsel %vm15927_vm0, %v17522_v30, %v17523_v33  ;;  %v17551_v33 = vld [vmem:[#allocation25_spill] sm:$0xff] }
 0x599   :  { %vm4645_vm2 = vcmp.ne.f32.partialorder %v17525_v40, %v17525_v40  ;;  %v6221_v37 = vsel %vm16593_vm14, %v17527_v27, %v17526_v25  ;;  %v6350_v55 = vmul.f32 0.6931472, %v9970_v8  ;;  %v6365_v39 = vsel %vm16650_vm10, %v6362_v54, %v6359_v52  ;;  %8509 = vmatprep.subr.msk.mxu1 %vm6852_vm11, %v7974_v45 }
 0x59a   :  { %v6566_v10 = vadd.f32 %v17524_v13, %v17520_v0  ;;  %v7958_v4 = vadd.f32 -0.6931472, %v6696_v46  ;;  %v6695_v1 = vsel %vm4647_vm7, %v17504_v62, %v6567_v31  ;;  %vm4662_vm0 = vcmp.ne.f32.partialorder %v17517_v56, %v17517_v56  ;;  %v17538_v46 = vld [vmem:[#allocation69_spill] sm:$0xff] }
 0x59b   :  { %v4533_v16 = vmax.f32 %v17528_v2, 0.0  ;;  %v6333_v5 = vmul.f32 -0.5, %v16262_v24  ;;  %v6353_v11 = vmul.f32 %v16406_v29, %v6352_v53  ;;  %v6343_v17 = vadd.f32 1.0, %v6342_v18  ;;  %v17535_v29 = vld [vmem:[#allocation35_spill] sm:$0xff]  ;;  %v17543_v53 = vld [vmem:[#allocation54_spill] sm:$0xff] }
 0x59c   :  { %v7973_v23 = vadd.f32 -0.6931472, %v6711_v28  ;;  %vm16681_vm1 = vcmp.lt.f32.partialorder %v6354_v32, 0.0004427343  ;;  %v6345_v48 = vand.u32 2147483647, %v16437_v42  ;;  %8510 = vmatpush3.xpose.msk.msra.mxu1 %vm6852_vm11, %v7958_v4  ;;  %v6710_v62 = vsel %vm4662_vm0, %v17517_v56, %v6582_v35  ;;  %v9974_v19 = vpop.eup %9973 }
 0x59d   :  { %v6581_v6 = vadd.f32 %v6365_v39, %v4533_v16  ;;  %v17532_v38 = vand.u32 2147483647, %v17531_v15  ;;  %vm4644_vm4 = vcmp.ne.f32.partialorder %v17535_v29, %v17535_v29  ;;  %v6197_v57 = vmul.f32 0.6931472, %v17536_v49  ;;  %v17544_v56 = vld [vmem:[#allocation56_spill] sm:$0xff]  ;;  %v17546_v18 = vld [vmem:[#allocation50_spill] sm:$0xff] }
 0x59e   :  { %v6694_v14 = vsel %vm4646_vm9, %v17508_v9, %v6566_v10  ;;  %v6356_v34 = vsel %vm16681_vm1, %v6353_v11, %v6350_v55  ;;  %v6341_v21 = vmul.f32 0.6931472, %v9972_v20  ;;  %8511 = vmatprep.subr.msk.mxu1 %vm6852_vm11, %v7973_v23  ;;  %v17537_v63 = vmax.f32 %v17525_v40, 0.0  ;;  %v17550_v28 = vld [vmem:[#allocation57_spill] sm:$0xff]  ;;  %v17554_v20 = vld [vmem:[#allocation52_spill] sm:$0xff]  ;;  %v17557_v11 = vld [vmem:[#allocation51_spill] sm:$0xff] }
 0x59f   :  { %vm16690_vm3 = vcmp.lt.f32.partialorder %v17532_v38, 0.0004427343  ;;  %v7957_v47 = vadd.f32 -0.6931472, %v6695_v1  ;;  %v4532_v59 = vmax.f32 %v17538_v46, 0.0  ;;  %vm4661_vm5 = vcmp.ne.f32.partialorder %v17528_v2, %v17528_v2  ;;  %v17555_v1 = vld [vmem:[#allocation27_spill] sm:$0xff] }
 0x5a0   :  { %v6565_v58 = vadd.f32 %v6221_v37, %v17537_v63  ;;  %v6334_v52 = vadd.f32 1.0, %v6333_v5  ;;  %v6324_v8 = vmul.f32 -0.5, %v17505_v60  ;;  %v6344_v9 = vmul.f32 %v16437_v42, %v6343_v17  ;;  %v17556_v5 = vld [vmem:[#allocation55_spill] sm:$0xff] }
 0x5a1   :  { %v7972_v44 = vadd.f32 -0.6931472, %v6710_v62  ;;  %v6336_v36 = vand.u32 2147483647, %v16262_v24  ;;  %v6580_v43 = vadd.f32 %v6356_v34, %v4532_v59  ;;  %vm16712_vm14 = vcmp.lt.f32.partialorder %v6345_v48, 0.0004427343  ;;  %8512 = vmatpush3.xpose.msk.msra.mxu1 %vm6852_vm11, %v7957_v47  ;;  %v9976_v22 = vpop.eup %9975 }
 0x5a2   :  { %v6709_v7 = vsel %vm4661_vm5, %v17528_v2, %v6581_v6  ;;  %v17541_v31 = vmax.f32 %v17535_v29, 0.0  ;;  %v17545_v61 = vsel %vm15860_vm13, %v17543_v53, %v17544_v56  ;;  %v17547_v54 = vand.u32 2147483647, %v17546_v18  ;;  %v17558_v48 = vld [vmem:[#allocation12_spill] sm:$0xff]  ;;  %v17567_v59 = vld [vmem:[#allocation49_spill] sm:$0xff] }
 0x5a3   :  { %v6332_v32 = vmul.f32 0.6931472, %v9974_v19  ;;  %v6347_v35 = vsel %vm16712_vm14, %v6344_v9, %v6341_v21  ;;  %8513 = vmatprep.subr.msk.mxu1 %vm6852_vm11, %v7972_v44  ;;  %v7956_v50 = vadd.f32 -0.6931472, %v6694_v14  ;;  %v6693_v30 = vsel %vm4645_vm2, %v17525_v40, %v6565_v58  ;;  %v17559_v62 = vld [vmem:[#allocation20_spill] sm:$0xff]  ;;  %v17561_v14 = vld [vmem:[#allocation59_spill] sm:$0xff] }
 0x5a4   :  { %v6564_v42 = vadd.f32 %v17545_v61, %v17541_v31  ;;  %vm16727_vm6 = vcmp.lt.f32.partialorder %v17547_v54, 0.0004427343  ;;  %v4531_v13 = vmax.f32 %v17551_v33, 0.0  ;;  %v6335_v10 = vmul.f32 %v16262_v24, %v6334_v52  ;;  %v17564_v19 = vld [vmem:[#allocation33_spill] sm:$0xff] }
 0x5a5   :  { %v6203_v0 = vsel %vm16727_vm6, %v17550_v28, %v6197_v57  ;;  %v6325_v25 = vadd.f32 1.0, %v6324_v8  ;;  %vm4660_vm13 = vcmp.ne.f32.partialorder %v17538_v46, %v17538_v46  ;;  %v7971_v27 = vadd.f32 -0.6931472, %v6709_v7  ;;  %8514 = vmatpush3.xpose.msk.msra.mxu1 %vm6852_vm11, %v7956_v50  ;;  %v17568_v7 = vld [vmem:[#allocation31_spill] sm:$0xff] }
 0x5a6   :  { %vm16745_vm7 = vcmp.lt.f32.partialorder %v6336_v36, 0.0004427343  ;;  %v6327_v55 = vand.u32 2147483647, %v17505_v60  ;;  %v6579_v39 = vadd.f32 %v6347_v35, %v4531_v13  ;;  %v6708_v40 = vsel %vm4660_vm13, %v17538_v46, %v6580_v43  ;;  %v7306_v35 = vpop.f32.mrf.mxu0 }
 0x5a7   :  { %v6181_v4 = vadd.f32 1.0, %v17554_v20  ;;  %v6183_v24 = vand.u32 2147483647, %v17555_v1  ;;  %v6338_v2 = vsel %vm16745_vm7, %v6335_v10, %v6332_v32  ;;  %v6323_v16 = vmul.f32 0.6931472, %v9976_v22  ;;  %8515 = vmatprep.subr.msk.mxu1 %vm6852_vm11, %v7971_v27 }
 0x5a8   :  { %v6194_v17 = vsel %vm16690_vm3, %v17557_v11, %v17556_v5  ;;  %v6692_v23 = vsel %vm4644_vm4, %v17535_v29, %v6564_v42  ;;  %v7955_v41 = vadd.f32 -0.6931472, %v6693_v30  ;;  %v4530_v6 = vmax.f32 %v17558_v48, 0.0  ;;  %v7308_v28 = vpop.f32.mrf.mxu0 }
 0x5a9   :  { %v17560_v15 = vmax.f32 %v17559_v62, 0.0  ;;  %v6326_v49 = vmul.f32 %v17505_v60, %v6325_v25  ;;  %vm4659_vm8 = vcmp.ne.f32.partialorder %v17551_v33, %v17551_v33  ;;  %v7970_v57 = vadd.f32 -0.6931472, %v6708_v40 }
 0x5aa   :  { %v6179_v51 = vmul.f32 0.6931472, %v17561_v14  ;;  %v6578_v34 = vadd.f32 %v6338_v2, %v4530_v6  ;;  %vm16772_vm9 = vcmp.lt.f32.partialorder %v6327_v55, 0.0004427343  ;;  %8516 = vmatpush3.xpose.msk.msra.mxu1 %vm6852_vm11, %v7955_v41  ;;  %v6707_v29 = vsel %vm4659_vm8, %v17551_v33, %v6579_v39 }
 0x5ab   :  { %v6563_v38 = vadd.f32 %v6203_v0, %v17560_v15  ;;  %v4514_v63 = vmax.f32 %v17564_v19, 0.0  ;;  %vm4643_vm12 = vcmp.ne.f32.partialorder %v17559_v62, %v17559_v62  ;;  %v6329_v60 = vsel %vm16772_vm9, %v6326_v49, %v6323_v16  ;;  %8517 = vmatprep.subr.msk.mxu1 %vm6852_vm11, %v7970_v57 }
 0x5ac   :  { %v6182_v58 = vmul.f32 %v17555_v1, %v6181_v4  ;;  %vm16785_vm15 = vcmp.lt.f32.partialorder %v6183_v24, 0.0004427343  ;;  %v7954_v46 = vadd.f32 -0.6931472, %v6692_v23  ;;  %v4529_v52 = vmax.f32 %v17567_v59, 0.0 }
 0x5ad   :  { %v6562_v8 = vadd.f32 %v6194_v17, %v4514_v63  ;;  %v6691_v9 = vsel %vm4643_vm12, %v17559_v62, %v6563_v38  ;;  %vm4658_vm10 = vcmp.ne.f32.partialorder %v17558_v48, %v17558_v48  ;;  %v7969_v44 = vadd.f32 -0.6931472, %v6707_v29 }
 0x5ae   :  { %v6185_v36 = vsel %vm16785_vm15, %v6182_v58, %v6179_v51  ;;  %v6577_v43 = vadd.f32 %v6329_v60, %v4529_v52  ;;  %8518 = vmatpush3.xpose.msk.msra.mxu1 %vm6852_vm11, %v7954_v46  ;;  %v6706_v12 = vsel %vm4658_vm10, %v17558_v48, %v6578_v34  ;;  %v4513_v31 = vmax.f32 %v17568_v7, 0.0 }
 0x5af   :  { %8519 = vmatprep.subr.msk.mxu1 %vm6852_vm11, %v7969_v44  ;;  %vm4642_vm2 = vcmp.ne.f32.partialorder %v17564_v19, %v17564_v19  ;;  %v7953_v3 = vadd.f32 -0.6931472, %v6691_v9  ;;  %vm4657_vm0 = vcmp.ne.f32.partialorder %v17567_v59, %v17567_v59  ;;  %v7968_v61 = vadd.f32 -0.6931472, %v6706_v12 }
 0x5b0   :  { %v6690_v53 = vsel %vm4642_vm2, %v17564_v19, %v6562_v8  ;;  %v6561_v56 = vadd.f32 %v6185_v36, %v4513_v31  ;;  %v6705_v42 = vsel %vm4657_vm0, %v17567_v59, %v6577_v43  ;;  %vm4641_vm1 = vcmp.ne.f32.partialorder %v17568_v7, %v17568_v7 }
 0x5b1   :  { %v7952_v18 = vadd.f32 -0.6931472, %v6690_v53  ;;  %v7967_v45 = vadd.f32 -0.6931472, %v6705_v42  ;;  %v10010_v0 = vmov 1966171168   ;;  %v7539_v30 = vlaneseq }
 0x5b2   :  { %8520 = vmatpush3.xpose.msk.msra.mxu1 %vm6852_vm11, %v7953_v3  ;;  %v6689_v54 = vsel %vm4641_vm1, %v17568_v7, %v6561_v56  ;;  %v7537_v50 = vunpack.c.l.s4 %v10010_v0  ;;  %v6851_v33 = vstv %s16827_s6  ;;  %s10011_s6 = smov [#allocation3]  }
 0x5b3   :  { %8521 = vmatprep.subr.msk.mxu1 %vm6852_vm11, %v7968_v61  ;;  %v7951_v32 = vadd.f32 -0.6931472, %v6689_v54  ;;  %v7307_v25 = vadd.f32 %v7306_v35, %v6851_v33  ;;  %v7309_v27 = vadd.f32 %v7308_v28, %v6851_v33  ;;  %v7540_v55 = vshrl.u32 %v7539_v30, 7  ;;  %s7589_s27 = sshll.u32 %s10011_s6, 4  ;;  %s7590_s27 = int_to_ptr.vmem [resolvable:$true] %s7589_s27 }
 0x5b4   :  { %v7538_v37 = vunpack.c.0.s8 %v7537_v50  ;;  %s9988_s0 = scalar_lea.vmem %s7590_s27, 128  ;;  %p9993_p1 = scmp.lt.s32.totalorder %s7590_s27, %s7590_s27 }
 0x5b5   :  { %p9989_p0 = scmp.ne.s32.totalorder %s7590_s27, %s9988_s0  ;;  %p9994_p2 = scmp.lt.s32.totalorder %s9988_s0, %s9988_s0 }
 0x5b6   :  { %8522 = vmatpush3.xpose.msk.msra.mxu1 %vm6852_vm11, %v7952_v18  ;;  %v7541_v4 = vsub.s32 %v7538_v37, %v7540_v55 }
 0x5b7   :  { %8523 = vmatprep.subr.msk.mxu1 %vm6852_vm11, %v7967_v45  ;;  %p9995_p3 = por %p9994_p2, %p9993_p1 }
 0x5b9   :  { %p9996_p4 = pnand %p9995_p3, %p9989_p0 }
 0x5ba   :  { %8524 = vmatpush3.xpose.msk.msra.mxu1 %vm6852_vm11, %v7951_v32 }
 0x5bd   :  { %8526 = vmatmul.mubr.msk.f32.vlgmr.msra.gmra.mxu1 %vm6852_vm11, %v16488_v26  ;;  %v7532_v26 = vcombine.low %v7307_v25, %v7309_v27 }
 0x5bf   :  { %v7542_v5 = vrot.slane %v7532_v26, %v7541_v4 }
 0x5d3   :  { %v7377_v22 = vpop.f32.mrf.mxu1 }
 0x5d4   :  { %v7378_v39 = vadd.f32 %v7377_v22, %v6851_v33 }
 0x5d5   :  { %v7379_v13 = vpop.f32.mrf.mxu1 }
 0x5d6   :  { %v7380_v40 = vadd.f32 %v7379_v13, %v6851_v33 }
 0x5d8   :  { %v7533_v1 = vcombine.low %v7378_v39, %v7380_v40 }
 0x5da   :  { %v7549_v17 = vrot.slane %v7533_v1, %v7541_v4 }
 0x5dc   :  { %v7564_v38 = vcombine.low %v7542_v5, %v7549_v17 }
 0x5de   :  { %v7572_v57 = vrot.slane %v7564_v38, %v7541_v4 }
 0x639   :  { %v7448_v10 = vpop.f32.mrf.mxu0 }
 0x63a   :  { %v7449_v24 = vadd.f32 %v7448_v10, %v6851_v33 }
 0x63b   :  { %v7450_v20 = vpop.f32.mrf.mxu0 }
 0x63c   :  { %v7451_v2 = vadd.f32 %v7450_v20, %v6851_v33 }
 0x63e   :  { %v7534_v41 = vcombine.low %v7449_v24, %v7451_v2 }
 0x640   :  { %v7556_v62 = vrot.slane %v7534_v41, %v7541_v4 }
 0x67d   :  { %v7519_v16 = vpop.f32.mrf.mxu1 }
 0x67e   :  { %v7520_v23 = vadd.f32 %v7519_v16, %v6851_v33 }
 0x67f   :  { %v7521_v11 = vpop.f32.mrf.mxu1 }
 0x680   :  { %v7522_v48 = vadd.f32 %v7521_v11, %v6851_v33 }
 0x682   :  { %v7535_v6 = vcombine.low %v7520_v23, %v7522_v48 }
 0x684   :  { %v7563_v15 = vrot.slane %v7535_v6, %v7541_v4 }
 0x686   :  { %v7565_v49 = vcombine.low %v7556_v62, %v7563_v15 }
 0x688   :  { %v7579_v14 = vrot.slane %v7565_v49, %v7541_v4 }
 0x68a   :  { %v7580_v51 = vcombine.low %v7572_v57, %v7579_v14 }
 0x68c   :  { %7582 = vst [vmem:[#allocation3] sm:$0xff] %v7580_v51 }
 0x68d   :  { %9999 = shalt.err (!%p9996_p4)
}
 0x68e   :  { %7592 = dma.vmem_to_hbm [thread:$0]  %s7590_s27, 128, %s16828_s7, [#allocation4]  }
 0x68f   :  { %10008 = dma.done.wait [#allocation4], 128  }
 0x690   :  { %10009 = vsyncadd [#allocation4], 4294967168 }
 0x691   :  { %7596 = vsyncpa [#allocation4], 1 }

</bundles_post_ra>
